<compile_context>
chip_gen: v6e
topology: v6e:2x2x1
jax: 0.10.0
libtpu: 0.0.40
codegen_flags: <defaults>
</compile_context>

<pallas_src>
import math
import jax
import jax.numpy as jnp
from jax.experimental import pallas as pl
from jax.experimental.pallas import tpu as pltpu

DTYPE = jnp.float32

# ---------------- configuration (small synthetic shapes) ----------------
BATCH      = 2
IMG_CH     = 3
IMG_SIZE   = 32
PATCH      = 16                   # -> 2x2 = 4 patches, vis seq = 5
V_WIDTH    = 32
V_LAYERS   = 2
V_HEADS    = 4
EMBED      = 32                   # joint image/text embedding dim
N_CLS      = 4                    # synthetic "classnames"
N_CTX      = 16                   # as in AutoPrompt
SUFFIX_LEN = 7
T_SEQ      = 1 + N_CTX + SUFFIX_LEN   # 24
T_WIDTH    = 32                   # ctx_dim
T_LAYERS   = 2
T_HEADS    = 4

VMEM = pltpu.MemorySpace.VMEM
SMEM = pltpu.MemorySpace.SMEM


def _vspec():
    return pl.BlockSpec(memory_space=VMEM)


# ---------------------------- Pallas kernels ----------------------------
def pallas_matmul_nobias(x, w):
    """o = x @ w  (no bias buffer synthesized / DMA'd)."""
    M, K = x.shape
    Kw, N = w.shape
    assert K == Kw

    def kernel(x_ref, w_ref, o_ref):
        o_ref[...] = jnp.dot(x_ref[...], w_ref[...],
                             preferred_element_type=jnp.float32).astype(o_ref.dtype)

    return pl.pallas_call(
        kernel,
        out_shape=jax.ShapeDtypeStruct((M, N), x.dtype),
        in_specs=[_vspec(), _vspec()],
        out_specs=_vspec(),
    )(x, w)


# Stacked per-layer parameter names (all shape [L, ...]) consumed by the
# fused encoder kernel, in this exact order.
_STACKED = ("ln1_g", "ln1_b", "wq", "bq", "wk", "bk", "wv", "bv", "wo", "bo",
            "ln2_g", "ln2_b", "w1", "b1", "w2", "b2")


def fused_encoder(x2d, attn_mask, head_mask, p, *, n_heads, n_layers,
                  use_pre_ln):
    """Whole transformer encoder (+ final LN + projection) in ONE pallas_call.

    x2d       : [R, D]  flattened (batch*seq, width) activations
    attn_mask : [R, R]  additive mask (0 allowed, -1e9 cross-batch / causal)
    head_mask : [H, 1, D] 0/1 mask selecting each head's feature columns
    Returns   : [R, E]  every row LayerNorm'ed and projected (callers gather
                the CLS / EOT rows afterwards - row-wise ops commute with the
                gather, so semantics match the original module).
    """
    R, D = x2d.shape
    E = p["proj"].shape[1]
    d_head = D // n_heads
    scale = 1.0 / math.sqrt(d_head)

    inputs = [x2d, attn_mask, head_mask]
    if use_pre_ln:
        inputs += [p["pre_g"], p["pre_b"]]
    inputs += [p[name] for name in _STACKED]
    inputs += [p["lnf_g"], p["lnf_b"], p["proj"]]

    def kernel(*refs):
        x_ref, am_ref, hm_ref = refs[0], refs[1], refs[2]
        idx = 3
        if use_pre_ln:
            pre_g_ref, pre_b_ref = refs[3], refs[4]
            idx = 5
        layer_refs = refs[idx:idx + len(_STACKED)]
        lnf_g_ref, lnf_b_ref, proj_ref, o_ref = refs[idx + len(_STACKED):]

        (ln1_g, ln1_b, wq, bq, wk, bk, wv, bv, wo, bo,
         ln2_g, ln2_b, w1, b1, w2, b2) = layer_refs

        def layernorm(v, g, b):
            mu = jnp.mean(v, axis=-1, keepdims=True)
            var = jnp.mean(jnp.square(v - mu), axis=-1, keepdims=True)
            return (v - mu) * jax.lax.rsqrt(var + 1e-5) * g + b

        x = x_ref[...].astype(jnp.float32)
        am = am_ref[...].astype(jnp.float32)     # [R, R]
        hm = hm_ref[...].astype(jnp.float32)     # [H, 1, D]

        if use_pre_ln:
            x = layernorm(x, pre_g_ref[...], pre_b_ref[...])

        for l in range(n_layers):
            # ---- attention (all heads in one batched contraction) ----
            h = layernorm(x, ln1_g[l], ln1_b[l])
            q = jnp.dot(h, wq[l], preferred_element_type=jnp.float32) + bq[l]
            k = jnp.dot(h, wk[l], preferred_element_type=jnp.float32) + bk[l]
            v = jnp.dot(h, wv[l], preferred_element_type=jnp.float32) + bv[l]

            qh = q[None, :, :] * hm              # [H, R, D] (head-restricted)
            kh = k[None, :, :] * hm
            s = jnp.einsum('hqd,hkd->hqk', qh, kh,
                           preferred_element_type=jnp.float32) * scale
            s = s + am[None, :, :]               # batch / causal masking
            m = jnp.max(s, axis=-1, keepdims=True)
            e = jnp.exp(s - m)
            inv = pl.reciprocal(jnp.sum(e, axis=-1, keepdims=True), approx=True)
            pattn = e * inv                       # [H, R, R]

            vh = v[None, :, :] * hm               # [H, R, D]
            o3 = jnp.einsum('hqk,hkd->hqd', pattn, vh,
                            preferred_element_type=jnp.float32)
            # sum over heads: each head contributes only its own columns,
            # so the sum IS the concatenated multi-head output.
            o = o3[0]
            for hh in range(1, n_heads):
                o = o + o3[hh]

            x = x + jnp.dot(o, wo[l], preferred_element_type=jnp.float32) + bo[l]

            # ---- MLP (QuickGELU) ----
            h2 = layernorm(x, ln2_g[l], ln2_b[l])
            h2 = jnp.dot(h2, w1[l], preferred_element_type=jnp.float32) + b1[l]
            h2 = h2 * jax.nn.sigmoid(1.702 * h2)
            h2 = jnp.dot(h2, w2[l], preferred_element_type=jnp.float32) + b2[l]
            x = x + h2

        x = layernorm(x, lnf_g_ref[...], lnf_b_ref[...])
        out = jnp.dot(x, proj_ref[...], preferred_element_type=jnp.float32)
        o_ref[...] = out.astype(o_ref.dtype)

    return pl.pallas_call(
        kernel,
        out_shape=jax.ShapeDtypeStruct((R, E), x2d.dtype),
        in_specs=[_vspec() for _ in inputs],
        out_specs=_vspec(),
    )(*inputs)


def pallas_clip_logits(img_f, txt_f, scale):
    """L2-normalise both feature sets and compute scale * img @ txt.T.

    `scale` is exp(logit_scale) precomputed outside the kernel.
    """
    B, D = img_f.shape
    C, _ = txt_f.shape

    def kernel(i_ref, t_ref, s_ref, o_ref):
        iv = i_ref[...].astype(jnp.float32)
        tv = t_ref[...].astype(jnp.float32)
        iv = iv * jax.lax.rsqrt(jnp.sum(iv * iv, axis=-1, keepdims=True) + 1e-12)
        tv = tv * jax.lax.rsqrt(jnp.sum(tv * tv, axis=-1, keepdims=True) + 1e-12)
        logits = jax.lax.dot_general(iv, tv, (((1,), (1,)), ((), ())),
                                     preferred_element_type=jnp.float32)
        o_ref[...] = (s_ref[0] * logits).astype(o_ref.dtype)

    return pl.pallas_call(
        kernel,
        out_shape=jax.ShapeDtypeStruct((B, C), img_f.dtype),
        in_specs=[_vspec(), _vspec(), pl.BlockSpec(memory_space=SMEM)],
        out_specs=_vspec(),
    )(img_f, txt_f, scale.reshape(1).astype(jnp.float32))


# ---------------------------- JAX glue helpers ---------------------------
def _build_attn_mask(batch, seq, causal):
    """Additive mask [batch*seq, batch*seq]: 0 allowed, -1e9 disallowed."""
    R = batch * seq
    r = jnp.arange(R)
    allowed = (r[:, None] // seq) == (r[None, :] // seq)       # same batch
    if causal:
        allowed = allowed & ((r[None, :] % seq) <= (r[:, None] % seq))
    return jnp.where(allowed, 0.0, -1e9).astype(jnp.float32)


def _build_head_mask(n_heads, d_model):
    """0/1 mask [H, 1, D] selecting each head's feature columns."""
    dh = d_model // n_heads
    d = jnp.arange(d_model)
    hm = (d[None, :] // dh) == jnp.arange(n_heads)[:, None]
    return hm.astype(jnp.float32)[:, None, :]


# ------------------------------ model parts ------------------------------
def image_encoder(image, p):
    # layout: NCHW input [B, C, H, W]
    B, C, H, W = image.shape
    P = PATCH
    gh, gw = H // P, W // P
    patches = image.reshape(B, C, gh, P, gw, P).transpose(0, 2, 4, 1, 3, 5)
    patches = patches.reshape(B * gh * gw, C * P * P)
    pe = pallas_matmul_nobias(patches, p["conv_w"]).reshape(B, gh * gw, V_WIDTH)

    cls = jnp.broadcast_to(p["class_emb"].reshape(1, 1, V_WIDTH), (B, 1, V_WIDTH))
    x = jnp.concatenate([cls, pe], axis=1) + p["pos_emb"][None]   # [B, S, W]
    S = x.shape[1]
    x2 = x.reshape(B * S, V_WIDTH)

    am = _build_attn_mask(B, S, causal=False)
    hm = _build_head_mask(V_HEADS, V_WIDTH)
    out = fused_encoder(x2, am, hm, p["enc"], n_heads=V_HEADS,
                        n_layers=V_LAYERS, use_pre_ln=True)       # [B*S, E]
    return out.reshape(B, S, EMBED)[:, 0, :]                      # CLS rows


def prompt_learner_forward(p):
    ctx = jnp.broadcast_to(p["ctx"][None], (N_CLS, N_CTX, T_WIDTH))
    return jnp.concatenate([p["token_prefix"], ctx, p["token_suffix"]], axis=1)


def text_encoder(prompts, tokenized_prompts, p):
    x = prompts + p["pos_emb"][None]                              # [N, S, W]
    N, S, _ = x.shape
    x2 = x.reshape(N * S, T_WIDTH)

    am = _build_attn_mask(N, S, causal=True)
    hm = _build_head_mask(T_HEADS, T_WIDTH)
    out = fused_encoder(x2, am, hm, p["enc"], n_heads=T_HEADS,
                        n_layers=T_LAYERS, use_pre_ln=False)      # [N*S, E]
    out = out.reshape(N, S, EMBED)
    eot = jnp.argmax(tokenized_prompts, axis=-1)                  # EOT position
    return out[jnp.arange(N), eot]                                # [N, E]


def custom_clip_forward(image, params):
    image_features = image_encoder(image, params["visual"])
    prompts = prompt_learner_forward(params["prompt"])
    text_features = text_encoder(prompts, params["tokenized_prompts"],
                                 params["text"])
    scale = jnp.exp(jnp.asarray(params["logit_scale"], jnp.float32))
    return pallas_clip_logits(image_features, text_features, scale)


# --------------------------- parameter setup ----------------------------
def _normal(key, shape, std=0.02):
    return (std * jax.random.normal(key, shape, dtype=jnp.float32)).astype(DTYPE)


def _init_encoder(key, n_layers, width, d_out):
    ks = jax.random.split(key, 6 * n_layers + 1)

    def stack(fn):
        return jnp.stack([fn(l) for l in range(n_layers)])

    return dict(
        ln1_g=jnp.ones((n_layers, 1, width), DTYPE),
        ln1_b=jnp.zeros((n_layers, 1, width), DTYPE),
        wq=stack(lambda l: _normal(ks[6 * l + 0], (width, width))),
        bq=jnp.zeros((n_layers, 1, width), DTYPE),
        wk=stack(lambda l: _normal(ks[6 * l + 1], (width, width))),
        bk=jnp.zeros((n_layers, 1, width), DTYPE),
        wv=stack(lambda l: _normal(ks[6 * l + 2], (width, width))),
        bv=jnp.zeros((n_layers, 1, width), DTYPE),
        wo=stack(lambda l: _normal(ks[6 * l + 3], (width, width))),
        bo=jnp.zeros((n_layers, 1, width), DTYPE),
        ln2_g=jnp.ones((n_layers, 1, width), DTYPE),
        ln2_b=jnp.zeros((n_layers, 1, width), DTYPE),
        w1=stack(lambda l: _normal(ks[6 * l + 4], (width, 4 * width))),
        b1=jnp.zeros((n_layers, 1, 4 * width), DTYPE),
        w2=stack(lambda l: _normal(ks[6 * l + 5], (4 * width, width))),
        b2=jnp.zeros((n_layers, 1, width), DTYPE),
        lnf_g=jnp.ones((1, width), DTYPE),
        lnf_b=jnp.zeros((1, width), DTYPE),
        proj=_normal(ks[-1], (width, d_out)),
    )


def init_params(key):
    kv, kt, kp, _ = jax.random.split(key, 4)

    # visual (ViT) encoder
    kvs = jax.random.split(kv, 4)
    n_patches = (IMG_SIZE // PATCH) ** 2
    visual_enc = _init_encoder(kvs[3], V_LAYERS, V_WIDTH, EMBED)
    visual_enc["pre_g"] = jnp.ones((1, V_WIDTH), DTYPE)
    visual_enc["pre_b"] = jnp.zeros((1, V_WIDTH), DTYPE)
    visual = dict(
        conv_w=_normal(kvs[0], (IMG_CH * PATCH * PATCH, V_WIDTH)),
        class_emb=_normal(kvs[1], (V_WIDTH,)),
        pos_emb=_normal(kvs[2], (n_patches + 1, V_WIDTH)),
        enc=visual_enc,
    )

    # text transformer
    kts = jax.random.split(kt, 2)
    text = dict(
        pos_emb=_normal(kts[0], (T_SEQ, T_WIDTH)),
        enc=_init_encoder(kts[1], T_LAYERS, T_WIDTH, EMBED),
    )

    # prompt learner (ctx learned; prefix/suffix are frozen token embeddings)
    # TODO(synk): real CLIP tokenizer + pretrained token_embedding are replaced
    # by deterministic synthetic embeddings/ids (only argmax position matters).
    kps = jax.random.split(kp, 3)
    prompt = dict(
        ctx=_normal(kps[0], (N_CTX, T_WIDTH)),
        token_prefix=_normal(kps[1], (N_CLS, 1, T_WIDTH)),
        token_suffix=_normal(kps[2], (N_CLS, SUFFIX_LEN, T_WIDTH)),
    )

    # synthetic tokenized prompts: EOT id (max value) at a per-class position
    tok = jnp.zeros((N_CLS, T_SEQ), jnp.int32)
    eot_pos = jnp.array([1 + N_CTX + 2 + i for i in range(N_CLS)], jnp.int32)
    tok = tok.at[jnp.arange(N_CLS), eot_pos].set(49407)

    return dict(
        visual=visual,
        text=text,
        prompt=prompt,
        tokenized_prompts=tok,
        logit_scale=float(math.log(1.0 / 0.07)),   # CLIP default init
    )


# --------------------------------- main ---------------------------------
if __name__ == "__main__":
    key = jax.random.PRNGKey(0)
    kparam, kimg = jax.random.split(key)
    params = init_params(kparam)
    image = jax.random.normal(kimg, (BATCH, IMG_CH, IMG_SIZE, IMG_SIZE), DTYPE)

    forward = jax.jit(custom_clip_forward)
    logits = forward(image, params)
    logits = jax.block_until_ready(logits)

    assert logits.shape == (BATCH, N_CLS), logits.shape
    assert logits.dtype == DTYPE
    assert bool(jnp.all(jnp.isfinite(logits)))
    print("KERNEL_OK")
</pallas_src>

<mosaic_0001>
module attributes {stable_mosaic.version = 11 : i64} {
  func.func @kernel(%arg0: memref<8x768xf32, #tpu.memory_space<vmem>>, %arg1: memref<768x32xf32, #tpu.memory_space<vmem>>, %arg2: memref<8x32xf32, #tpu.memory_space<vmem>>) attributes {dimension_semantics = [], scalar_prefetch = 0 : i64, scratch_operands = 0 : i64, tpu.core_type = #tpu.core_type<tc>} {
    %c0 = arith.constant 0 : index
    %c0_0 = arith.constant 0 : index
    %0 = vector.load %arg0[%c0, %c0_0] : memref<8x768xf32, #tpu.memory_space<vmem>>, vector<8x768xf32>
    %c0_1 = arith.constant 0 : index
    %c0_2 = arith.constant 0 : index
    %1 = vector.load %arg1[%c0_1, %c0_2] : memref<768x32xf32, #tpu.memory_space<vmem>>, vector<768x32xf32>
    %cst = arith.constant dense<0.000000e+00> : vector<8x32xf32>
    %2 = tpu.matmul %0, %1, %cst {dimension_numbers = #tpu.dot_dimension_numbers<[1], [0], [0], [1], [0, 0, 1, 1], [], []>} : vector<8x768xf32>, vector<768x32xf32>, vector<8x32xf32> -> vector<8x32xf32>
    %c0_3 = arith.constant 0 : index
    %c0_4 = arith.constant 0 : index
    %3 = vector.load %arg2[%c0_3, %c0_4] : memref<8x32xf32, #tpu.memory_space<vmem>>, vector<8x32xf32>
    tpu.vector_store %arg2[%c0_3, %c0_4], %2 {strides = array<i32>} : memref<8x32xf32, #tpu.memory_space<vmem>>, vector<8x32xf32>,
    return
  }
}

module attributes {stable_mosaic.version = 11 : i64} {
  func.func @kernel(%arg0: memref<10x32xf32, #tpu.memory_space<vmem>>, %arg1: memref<10x10xf32, #tpu.memory_space<vmem>>, %arg2: memref<4x1x32xf32, #tpu.memory_space<vmem>>, %arg3: memref<1x32xf32, #tpu.memory_space<vmem>>, %arg4: memref<1x32xf32, #tpu.memory_space<vmem>>, %arg5: memref<2x1x32xf32, #tpu.memory_space<vmem>>, %arg6: memref<2x1x32xf32, #tpu.memory_space<vmem>>, %arg7: memref<2x32x32xf32, #tpu.memory_space<vmem>>, %arg8: memref<2x1x32xf32, #tpu.memory_space<vmem>>, %arg9: memref<2x32x32xf32, #tpu.memory_space<vmem>>, %arg10: memref<2x1x32xf32, #tpu.memory_space<vmem>>, %arg11: memref<2x32x32xf32, #tpu.memory_space<vmem>>, %arg12: memref<2x1x32xf32, #tpu.memory_space<vmem>>, %arg13: memref<2x32x32xf32, #tpu.memory_space<vmem>>, %arg14: memref<2x1x32xf32, #tpu.memory_space<vmem>>, %arg15: memref<2x1x32xf32, #tpu.memory_space<vmem>>, %arg16: memref<2x1x32xf32, #tpu.memory_space<vmem>>, %arg17: memref<2x32x128xf32, #tpu.memory_space<vmem>>, %arg18: memref<2x1x128xf32, #tpu.memory_space<vmem>>, %arg19: memref<2x128x32xf32, #tpu.memory_space<vmem>>, %arg20: memref<2x1x32xf32, #tpu.memory_space<vmem>>, %arg21: memref<1x32xf32, #tpu.memory_space<vmem>>, %arg22: memref<1x32xf32, #tpu.memory_space<vmem>>, %arg23: memref<32x32xf32, #tpu.memory_space<vmem>>, %arg24: memref<10x32xf32, #tpu.memory_space<vmem>>) attributes {dimension_semantics = [], scalar_prefetch = 0 : i64, scratch_operands = 0 : i64, tpu.core_type = #tpu.core_type<tc>} {
    %c0 = arith.constant 0 : index
    %c0_0 = arith.constant 0 : index
    %0 = vector.load %arg0[%c0, %c0_0] : memref<10x32xf32, #tpu.memory_space<vmem>>, vector<10x32xf32>
    %c0_1 = arith.constant 0 : index
    %c0_2 = arith.constant 0 : index
    %1 = vector.load %arg1[%c0_1, %c0_2] : memref<10x10xf32, #tpu.memory_space<vmem>>, vector<10x10xf32>
    %c0_3 = arith.constant 0 : index
    %c0_4 = arith.constant 0 : index
    %c0_5 = arith.constant 0 : index
    %2 = vector.load %arg2[%c0_3, %c0_4, %c0_5] : memref<4x1x32xf32, #tpu.memory_space<vmem>>, vector<4x1x32xf32>
    %c0_6 = arith.constant 0 : index
    %c0_7 = arith.constant 0 : index
    %3 = vector.load %arg3[%c0_6, %c0_7] : memref<1x32xf32, #tpu.memory_space<vmem>>, vector<1x32xf32>
    %c0_8 = arith.constant 0 : index
    %c0_9 = arith.constant 0 : index
    %4 = vector.load %arg4[%c0_8, %c0_9] : memref<1x32xf32, #tpu.memory_space<vmem>>, vector<1x32xf32>
    %cst = arith.constant dense<0.000000e+00> : vector<10xf32>
    %5 = vector.multi_reduction <add>, %0, %cst [1] : vector<10x32xf32> to vector<10xf32>
    %6 = vector.shape_cast %5 : vector<10xf32> to vector<10x1xf32>
    %cst_10 = arith.constant 3.200000e+01 : f32
    %7 = vector.broadcast %cst_10 : f32 to vector<10x1xf32>
    %8 = arith.divf %6, %7 : vector<10x1xf32>
    %9 = vector.broadcast %8 : vector<10x1xf32> to vector<10x32xf32>
    %10 = arith.subf %0, %9 : vector<10x32xf32>
    %11 = arith.mulf %10, %10 : vector<10x32xf32>
    %cst_11 = arith.constant dense<0.000000e+00> : vector<10xf32>
    %12 = vector.multi_reduction <add>, %11, %cst_11 [1] : vector<10x32xf32> to vector<10xf32>
    %13 = vector.shape_cast %12 : vector<10xf32> to vector<10x1xf32>
    %cst_12 = arith.constant 3.200000e+01 : f32
    %14 = vector.broadcast %cst_12 : f32 to vector<10x1xf32>
    %15 = arith.divf %13, %14 : vector<10x1xf32>
    %16 = vector.broadcast %8 : vector<10x1xf32> to vector<10x32xf32>
    %17 = arith.subf %0, %16 : vector<10x32xf32>
    %cst_13 = arith.constant 9.99999974E-6 : f32
    %18 = vector.broadcast %cst_13 : f32 to vector<10x1xf32>
    %19 = arith.addf %15, %18 : vector<10x1xf32>
    %20 = math.rsqrt %19 : vector<10x1xf32>
    %21 = vector.broadcast %20 : vector<10x1xf32> to vector<10x32xf32>
    %22 = arith.mulf %17, %21 : vector<10x32xf32>
    %23 = vector.broadcast %3 : vector<1x32xf32> to vector<10x32xf32>
    %24 = arith.mulf %22, %23 : vector<10x32xf32>
    %25 = vector.broadcast %4 : vector<1x32xf32> to vector<10x32xf32>
    %26 = arith.addf %24, %25 : vector<10x32xf32>
    %c0_14 = arith.constant 0 : index
    %c0_15 = arith.constant 0 : index
    %c0_16 = arith.constant 0 : index
    %27 = vector.load %arg5[%c0_14, %c0_15, %c0_16] : memref<2x1x32xf32, #tpu.memory_space<vmem>>, vector<1x1x32xf32>
    %28 = vector.shape_cast %27 : vector<1x1x32xf32> to vector<1x32xf32>
    %c0_17 = arith.constant 0 : index
    %c0_18 = arith.constant 0 : index
    %c0_19 = arith.constant 0 : index
    %29 = vector.load %arg6[%c0_17, %c0_18, %c0_19] : memref<2x1x32xf32, #tpu.memory_space<vmem>>, vector<1x1x32xf32>
    %30 = vector.shape_cast %29 : vector<1x1x32xf32> to vector<1x32xf32>
    %cst_20 = arith.constant dense<0.000000e+00> : vector<10xf32>
    %31 = vector.multi_reduction <add>, %26, %cst_20 [1] : vector<10x32xf32> to vector<10xf32>
    %32 = vector.shape_cast %31 : vector<10xf32> to vector<10x1xf32>
    %cst_21 = arith.constant 3.200000e+01 : f32
    %33 = vector.broadcast %cst_21 : f32 to vector<10x1xf32>
    %34 = arith.divf %32, %33 : vector<10x1xf32>
    %35 = vector.broadcast %34 : vector<10x1xf32> to vector<10x32xf32>
    %36 = arith.subf %26, %35 : vector<10x32xf32>
    %37 = arith.mulf %36, %36 : vector<10x32xf32>
    %cst_22 = arith.constant dense<0.000000e+00> : vector<10xf32>
    %38 = vector.multi_reduction <add>, %37, %cst_22 [1] : vector<10x32xf32> to vector<10xf32>
    %39 = vector.shape_cast %38 : vector<10xf32> to vector<10x1xf32>
    %cst_23 = arith.constant 3.200000e+01 : f32
    %40 = vector.broadcast %cst_23 : f32 to vector<10x1xf32>
    %41 = arith.divf %39, %40 : vector<10x1xf32>
    %42 = vector.broadcast %34 : vector<10x1xf32> to vector<10x32xf32>
    %43 = arith.subf %26, %42 : vector<10x32xf32>
    %cst_24 = arith.constant 9.99999974E-6 : f32
    %44 = vector.broadcast %cst_24 : f32 to vector<10x1xf32>
    %45 = arith.addf %41, %44 : vector<10x1xf32>
    %46 = math.rsqrt %45 : vector<10x1xf32>
    %47 = vector.broadcast %46 : vector<10x1xf32> to vector<10x32xf32>
    %48 = arith.mulf %43, %47 : vector<10x32xf32>
    %49 = vector.broadcast %28 : vector<1x32xf32> to vector<10x32xf32>
    %50 = arith.mulf %48, %49 : vector<10x32xf32>
    %51 = vector.broadcast %30 : vector<1x32xf32> to vector<10x32xf32>
    %52 = arith.addf %50, %51 : vector<10x32xf32>
    %c0_25 = arith.constant 0 : index
    %c0_26 = arith.constant 0 : index
    %c0_27 = arith.constant 0 : index
    %53 = vector.load %arg7[%c0_25, %c0_26, %c0_27] : memref<2x32x32xf32, #tpu.memory_space<vmem>>, vector<1x32x32xf32>
    %54 = vector.shape_cast %53 : vector<1x32x32xf32> to vector<32x32xf32>
    %cst_28 = arith.constant dense<0.000000e+00> : vector<10x32xf32>
    %55 = tpu.matmul %52, %54, %cst_28 {dimension_numbers = #tpu.dot_dimension_numbers<[1], [0], [0], [1], [0, 0, 1, 1], [], []>} : vector<10x32xf32>, vector<32x32xf32>, vector<10x32xf32> -> vector<10x32xf32>
    %c0_29 = arith.constant 0 : index
    %c0_30 = arith.constant 0 : index
    %c0_31 = arith.constant 0 : index
    %56 = vector.load %arg8[%c0_29, %c0_30, %c0_31] : memref<2x1x32xf32, #tpu.memory_space<vmem>>, vector<1x1x32xf32>
    %57 = vector.shape_cast %56 : vector<1x1x32xf32> to vector<1x32xf32>
    %58 = vector.broadcast %57 : vector<1x32xf32> to vector<10x32xf32>
    %59 = arith.addf %55, %58 : vector<10x32xf32>
    %c0_32 = arith.constant 0 : index
    %c0_33 = arith.constant 0 : index
    %c0_34 = arith.constant 0 : index
    %60 = vector.load %arg9[%c0_32, %c0_33, %c0_34] : memref<2x32x32xf32, #tpu.memory_space<vmem>>, vector<1x32x32xf32>
    %61 = vector.shape_cast %60 : vector<1x32x32xf32> to vector<32x32xf32>
    %cst_35 = arith.constant dense<0.000000e+00> : vector<10x32xf32>
    %62 = tpu.matmul %52, %61, %cst_35 {dimension_numbers = #tpu.dot_dimension_numbers<[1], [0], [0], [1], [0, 0, 1, 1], [], []>} : vector<10x32xf32>, vector<32x32xf32>, vector<10x32xf32> -> vector<10x32xf32>
    %c0_36 = arith.constant 0 : index
    %c0_37 = arith.constant 0 : index
    %c0_38 = arith.constant 0 : index
    %63 = vector.load %arg10[%c0_36, %c0_37, %c0_38] : memref<2x1x32xf32, #tpu.memory_space<vmem>>, vector<1x1x32xf32>
    %64 = vector.shape_cast %63 : vector<1x1x32xf32> to vector<1x32xf32>
    %65 = vector.broadcast %64 : vector<1x32xf32> to vector<10x32xf32>
    %66 = arith.addf %62, %65 : vector<10x32xf32>
    %c0_39 = arith.constant 0 : index
    %c0_40 = arith.constant 0 : index
    %c0_41 = arith.constant 0 : index
    %67 = vector.load %arg11[%c0_39, %c0_40, %c0_41] : memref<2x32x32xf32, #tpu.memory_space<vmem>>, vector<1x32x32xf32>
    %68 = vector.shape_cast %67 : vector<1x32x32xf32> to vector<32x32xf32>
    %cst_42 = arith.constant dense<0.000000e+00> : vector<10x32xf32>
    %69 = tpu.matmul %52, %68, %cst_42 {dimension_numbers = #tpu.dot_dimension_numbers<[1], [0], [0], [1], [0, 0, 1, 1], [], []>} : vector<10x32xf32>, vector<32x32xf32>, vector<10x32xf32> -> vector<10x32xf32>
    %c0_43 = arith.constant 0 : index
    %c0_44 = arith.constant 0 : index
    %c0_45 = arith.constant 0 : index
    %70 = vector.load %arg12[%c0_43, %c0_44, %c0_45] : memref<2x1x32xf32, #tpu.memory_space<vmem>>, vector<1x1x32xf32>
    %71 = vector.shape_cast %70 : vector<1x1x32xf32> to vector<1x32xf32>
    %72 = vector.broadcast %71 : vector<1x32xf32> to vector<10x32xf32>
    %73 = arith.addf %69, %72 : vector<10x32xf32>
    %74 = vector.shape_cast %59 : vector<10x32xf32> to vector<1x10x32xf32>
    %75 = vector.broadcast %74 : vector<1x10x32xf32> to vector<4x10x32xf32>
    %76 = vector.broadcast %2 : vector<4x1x32xf32> to vector<4x10x32xf32>
    %77 = arith.mulf %75, %76 : vector<4x10x32xf32>
    %78 = vector.shape_cast %66 : vector<10x32xf32> to vector<1x10x32xf32>
    %79 = vector.broadcast %78 : vector<1x10x32xf32> to vector<4x10x32xf32>
    %80 = vector.broadcast %2 : vector<4x1x32xf32> to vector<4x10x32xf32>
    %81 = arith.mulf %79, %80 : vector<4x10x32xf32>
    "tpu.trace_start"() <{level = 10 : i32, message = "hqd,hkd->hqk"}> : () -> ()
    %cst_46 = arith.constant dense<0.000000e+00> : vector<4x10x10xf32>
    %82 = tpu.matmul %77, %81, %cst_46 {dimension_numbers = #tpu.dot_dimension_numbers<[2], [2], [1], [1], [0, 0, 0, 1, 1, 1], [0], [0]>} : vector<4x10x32xf32>, vector<4x10x32xf32>, vector<4x10x10xf32> -> vector<4x10x10xf32>
    "tpu.trace_stop"() : () -> ()
    %cst_47 = arith.constant 0.353553385 : f32
    %83 = vector.broadcast %cst_47 : f32 to vector<4x10x10xf32>
    %84 = arith.mulf %82, %83 : vector<4x10x10xf32>
    %85 = vector.shape_cast %1 : vector<10x10xf32> to vector<1x10x10xf32>
    %86 = vector.broadcast %85 : vector<1x10x10xf32> to vector<4x10x10xf32>
    %87 = arith.addf %84, %86 : vector<4x10x10xf32>
    %cst_48 = arith.constant dense<0xFF800000> : vector<4x10xf32>
    %88 = vector.multi_reduction <maximumf>, %87, %cst_48 [2] : vector<4x10x10xf32> to vector<4x10xf32>
    %89 = vector.shape_cast %88 : vector<4x10xf32> to vector<4x10x1xf32>
    %90 = vector.broadcast %89 : vector<4x10x1xf32> to vector<4x10x10xf32>
    %91 = arith.subf %87, %90 : vector<4x10x10xf32>
    %92 = math.exp %91 : vector<4x10x10xf32>
    %cst_49 = arith.constant dense<0.000000e+00> : vector<4x10xf32>
    %93 = vector.multi_reduction <add>, %92, %cst_49 [2] : vector<4x10x10xf32> to vector<4x10xf32>
    %94 = vector.shape_cast %93 : vector<4x10xf32> to vector<4x10x1xf32>
    %95 = tpu.reciprocal %94 {approx = true} : vector<4x10x1xf32> -> vector<4x10x1xf32>
    %96 = vector.broadcast %95 : vector<4x10x1xf32> to vector<4x10x10xf32>
    %97 = arith.mulf %92, %96 : vector<4x10x10xf32>
    %98 = vector.shape_cast %73 : vector<10x32xf32> to vector<1x10x32xf32>
    %99 = vector.broadcast %98 : vector<1x10x32xf32> to vector<4x10x32xf32>
    %100 = vector.broadcast %2 : vector<4x1x32xf32> to vector<4x10x32xf32>
    %101 = arith.mulf %99, %100 : vector<4x10x32xf32>
    "tpu.trace_start"() <{level = 10 : i32, message = "hqk,hkd->hqd"}> : () -> ()
    %cst_50 = arith.constant dense<0.000000e+00> : vector<4x10x32xf32>
    %102 = tpu.matmul %97, %101, %cst_50 {dimension_numbers = #tpu.dot_dimension_numbers<[2], [1], [1], [2], [0, 0, 0, 1, 1, 2], [0], [0]>} : vector<4x10x10xf32>, vector<4x10x32xf32>, vector<4x10x32xf32> -> vector<4x10x32xf32>
    "tpu.trace_stop"() : () -> ()
    %103 = vector.extract_strided_slice %102 {offsets = [0, 0, 0], sizes = [1, 10, 32], strides = [1, 1, 1]} : vector<4x10x32xf32> to vector<1x10x32xf32>
    %104 = vector.shape_cast %103 : vector<1x10x32xf32> to vector<10x32xf32>
    %105 = vector.extract_strided_slice %102 {offsets = [1, 0, 0], sizes = [1, 10, 32], strides = [1, 1, 1]} : vector<4x10x32xf32> to vector<1x10x32xf32>
    %106 = vector.shape_cast %105 : vector<1x10x32xf32> to vector<10x32xf32>
    %107 = arith.addf %104, %106 : vector<10x32xf32>
    %108 = vector.extract_strided_slice %102 {offsets = [2, 0, 0], sizes = [1, 10, 32], strides = [1, 1, 1]} : vector<4x10x32xf32> to vector<1x10x32xf32>
    %109 = vector.shape_cast %108 : vector<1x10x32xf32> to vector<10x32xf32>
    %110 = arith.addf %107, %109 : vector<10x32xf32>
    %111 = vector.extract_strided_slice %102 {offsets = [3, 0, 0], sizes = [1, 10, 32], strides = [1, 1, 1]} : vector<4x10x32xf32> to vector<1x10x32xf32>
    %112 = vector.shape_cast %111 : vector<1x10x32xf32> to vector<10x32xf32>
    %113 = arith.addf %110, %112 : vector<10x32xf32>
    %c0_51 = arith.constant 0 : index
    %c0_52 = arith.constant 0 : index
    %c0_53 = arith.constant 0 : index
    %114 = vector.load %arg13[%c0_51, %c0_52, %c0_53] : memref<2x32x32xf32, #tpu.memory_space<vmem>>, vector<1x32x32xf32>
    %115 = vector.shape_cast %114 : vector<1x32x32xf32> to vector<32x32xf32>
    %cst_54 = arith.constant dense<0.000000e+00> : vector<10x32xf32>
    %116 = tpu.matmul %113, %115, %cst_54 {dimension_numbers = #tpu.dot_dimension_numbers<[1], [0], [0], [1], [0, 0, 1, 1], [], []>} : vector<10x32xf32>, vector<32x32xf32>, vector<10x32xf32> -> vector<10x32xf32>
    %117 = arith.addf %26, %116 : vector<10x32xf32>
    %c0_55 = arith.constant 0 : index
    %c0_56 = arith.constant 0 : index
    %c0_57 = arith.constant 0 : index
    %118 = vector.load %arg14[%c0_55, %c0_56, %c0_57] : memref<2x1x32xf32, #tpu.memory_space<vmem>>, vector<1x1x32xf32>
    %119 = vector.shape_cast %118 : vector<1x1x32xf32> to vector<1x32xf32>
    %120 = vector.broadcast %119 : vector<1x32xf32> to vector<10x32xf32>
    %121 = arith.addf %117, %120 : vector<10x32xf32>
    %c0_58 = arith.constant 0 : index
    %c0_59 = arith.constant 0 : index
    %c0_60 = arith.constant 0 : index
    %122 = vector.load %arg15[%c0_58, %c0_59, %c0_60] : memref<2x1x32xf32, #tpu.memory_space<vmem>>, vector<1x1x32xf32>
    %123 = vector.shape_cast %122 : vector<1x1x32xf32> to vector<1x32xf32>
    %c0_61 = arith.constant 0 : index
    %c0_62 = arith.constant 0 : index
    %c0_63 = arith.constant 0 : index
    %124 = vector.load %arg16[%c0_61, %c0_62, %c0_63] : memref<2x1x32xf32, #tpu.memory_space<vmem>>, vector<1x1x32xf32>
    %125 = vector.shape_cast %124 : vector<1x1x32xf32> to vector<1x32xf32>
    %cst_64 = arith.constant dense<0.000000e+00> : vector<10xf32>
    %126 = vector.multi_reduction <add>, %121, %cst_64 [1] : vector<10x32xf32> to vector<10xf32>
    %127 = vector.shape_cast %126 : vector<10xf32> to vector<10x1xf32>
    %cst_65 = arith.constant 3.200000e+01 : f32
    %128 = vector.broadcast %cst_65 : f32 to vector<10x1xf32>
    %129 = arith.divf %127, %128 : vector<10x1xf32>
    %130 = vector.broadcast %129 : vector<10x1xf32> to vector<10x32xf32>
    %131 = arith.subf %121, %130 : vector<10x32xf32>
    %132 = arith.mulf %131, %131 : vector<10x32xf32>
    %cst_66 = arith.constant dense<0.000000e+00> : vector<10xf32>
    %133 = vector.multi_reduction <add>, %132, %cst_66 [1] : vector<10x32xf32> to vector<10xf32>
    %134 = vector.shape_cast %133 : vector<10xf32> to vector<10x1xf32>
    %cst_67 = arith.constant 3.200000e+01 : f32
    %135 = vector.broadcast %cst_67 : f32 to vector<10x1xf32>
    %136 = arith.divf %134, %135 : vector<10x1xf32>
    %137 = vector.broadcast %129 : vector<10x1xf32> to vector<10x32xf32>
    %138 = arith.subf %121, %137 : vector<10x32xf32>
    %cst_68 = arith.constant 9.99999974E-6 : f32
    %139 = vector.broadcast %cst_68 : f32 to vector<10x1xf32>
    %140 = arith.addf %136, %139 : vector<10x1xf32>
    %141 = math.rsqrt %140 : vector<10x1xf32>
    %142 = vector.broadcast %141 : vector<10x1xf32> to vector<10x32xf32>
    %143 = arith.mulf %138, %142 : vector<10x32xf32>
    %144 = vector.broadcast %123 : vector<1x32xf32> to vector<10x32xf32>
    %145 = arith.mulf %143, %144 : vector<10x32xf32>
    %146 = vector.broadcast %125 : vector<1x32xf32> to vector<10x32xf32>
    %147 = arith.addf %145, %146 : vector<10x32xf32>
    %c0_69 = arith.constant 0 : index
    %c0_70 = arith.constant 0 : index
    %c0_71 = arith.constant 0 : index
    %148 = vector.load %arg17[%c0_69, %c0_70, %c0_71] : memref<2x32x128xf32, #tpu.memory_space<vmem>>, vector<1x32x128xf32>
    %149 = vector.shape_cast %148 : vector<1x32x128xf32> to vector<32x128xf32>
    %cst_72 = arith.constant dense<0.000000e+00> : vector<10x128xf32>
    %150 = tpu.matmul %147, %149, %cst_72 {dimension_numbers = #tpu.dot_dimension_numbers<[1], [0], [0], [1], [0, 0, 1, 1], [], []>} : vector<10x32xf32>, vector<32x128xf32>, vector<10x128xf32> -> vector<10x128xf32>
    %c0_73 = arith.constant 0 : index
    %c0_74 = arith.constant 0 : index
    %c0_75 = arith.constant 0 : index
    %151 = vector.load %arg18[%c0_73, %c0_74, %c0_75] : memref<2x1x128xf32, #tpu.memory_space<vmem>>, vector<1x1x128xf32>
    %152 = vector.shape_cast %151 : vector<1x1x128xf32> to vector<1x128xf32>
    %153 = vector.broadcast %152 : vector<1x128xf32> to vector<10x128xf32>
    %154 = arith.addf %150, %153 : vector<10x128xf32>
    %cst_76 = arith.constant 1.702000e+00 : f32
    %155 = vector.broadcast %cst_76 : f32 to vector<10x128xf32>
    %156 = arith.mulf %155, %154 : vector<10x128xf32>
    %157 = arith.negf %156 : vector<10x128xf32>
    %158 = math.exp %157 : vector<10x128xf32>
    %cst_77 = arith.constant 1.000000e+00 : f32
    %159 = vector.broadcast %cst_77 : f32 to vector<10x128xf32>
    %160 = arith.addf %159, %158 : vector<10x128xf32>
    %161 = arith.divf %159, %160 : vector<10x128xf32>
    %162 = arith.mulf %154, %161 : vector<10x128xf32>
    %c0_78 = arith.constant 0 : index
    %c0_79 = arith.constant 0 : index
    %c0_80 = arith.constant 0 : index
    %163 = vector.load %arg19[%c0_78, %c0_79, %c0_80] : memref<2x128x32xf32, #tpu.memory_space<vmem>>, vector<1x128x32xf32>
    %164 = vector.shape_cast %163 : vector<1x128x32xf32> to vector<128x32xf32>
    %cst_81 = arith.constant dense<0.000000e+00> : vector<10x32xf32>
    %165 = tpu.matmul %162, %164, %cst_81 {dimension_numbers = #tpu.dot_dimension_numbers<[1], [0], [0], [1], [0, 0, 1, 1], [], []>} : vector<10x128xf32>, vector<128x32xf32>, vector<10x32xf32> -> vector<10x32xf32>
    %c0_82 = arith.constant 0 : index
    %c0_83 = arith.constant 0 : index
    %c0_84 = arith.constant 0 : index
    %166 = vector.load %arg20[%c0_82, %c0_83, %c0_84] : memref<2x1x32xf32, #tpu.memory_space<vmem>>, vector<1x1x32xf32>
    %167 = vector.shape_cast %166 : vector<1x1x32xf32> to vector<1x32xf32>
    %168 = vector.broadcast %167 : vector<1x32xf32> to vector<10x32xf32>
    %169 = arith.addf %165, %168 : vector<10x32xf32>
    %170 = arith.addf %121, %169 : vector<10x32xf32>
    %c1 = arith.constant 1 : index
    %c0_85 = arith.constant 0 : index
    %c0_86 = arith.constant 0 : index
    %171 = vector.load %arg5[%c1, %c0_85, %c0_86] : memref<2x1x32xf32, #tpu.memory_space<vmem>>, vector<1x1x32xf32>
    %172 = vector.shape_cast %171 : vector<1x1x32xf32> to vector<1x32xf32>
    %c1_87 = arith.constant 1 : index
    %c0_88 = arith.constant 0 : index
    %c0_89 = arith.constant 0 : index
    %173 = vector.load %arg6[%c1_87, %c0_88, %c0_89] : memref<2x1x32xf32, #tpu.memory_space<vmem>>, vector<1x1x32xf32>
    %174 = vector.shape_cast %173 : vector<1x1x32xf32> to vector<1x32xf32>
    %cst_90 = arith.constant dense<0.000000e+00> : vector<10xf32>
    %175 = vector.multi_reduction <add>, %170, %cst_90 [1] : vector<10x32xf32> to vector<10xf32>
    %176 = vector.shape_cast %175 : vector<10xf32> to vector<10x1xf32>
    %cst_91 = arith.constant 3.200000e+01 : f32
    %177 = vector.broadcast %cst_91 : f32 to vector<10x1xf32>
    %178 = arith.divf %176, %177 : vector<10x1xf32>
    %179 = vector.broadcast %178 : vector<10x1xf32> to vector<10x32xf32>
    %180 = arith.subf %170, %179 : vector<10x32xf32>
    %181 = arith.mulf %180, %180 : vector<10x32xf32>
    %cst_92 = arith.constant dense<0.000000e+00> : vector<10xf32>
    %182 = vector.multi_reduction <add>, %181, %cst_92 [1] : vector<10x32xf32> to vector<10xf32>
    %183 = vector.shape_cast %182 : vector<10xf32> to vector<10x1xf32>
    %cst_93 = arith.constant 3.200000e+01 : f32
    %184 = vector.broadcast %cst_93 : f32 to vector<10x1xf32>
    %185 = arith.divf %183, %184 : vector<10x1xf32>
    %186 = vector.broadcast %178 : vector<10x1xf32> to vector<10x32xf32>
    %187 = arith.subf %170, %186 : vector<10x32xf32>
    %cst_94 = arith.constant 9.99999974E-6 : f32
    %188 = vector.broadcast %cst_94 : f32 to vector<10x1xf32>
    %189 = arith.addf %185, %188 : vector<10x1xf32>
    %190 = math.rsqrt %189 : vector<10x1xf32>
    %191 = vector.broadcast %190 : vector<10x1xf32> to vector<10x32xf32>
    %192 = arith.mulf %187, %191 : vector<10x32xf32>
    %193 = vector.broadcast %172 : vector<1x32xf32> to vector<10x32xf32>
    %194 = arith.mulf %192, %193 : vector<10x32xf32>
    %195 = vector.broadcast %174 : vector<1x32xf32> to vector<10x32xf32>
    %196 = arith.addf %194, %195 : vector<10x32xf32>
    %c1_95 = arith.constant 1 : index
    %c0_96 = arith.constant 0 : index
    %c0_97 = arith.constant 0 : index
    %197 = vector.load %arg7[%c1_95, %c0_96, %c0_97] : memref<2x32x32xf32, #tpu.memory_space<vmem>>, vector<1x32x32xf32>
    %198 = vector.shape_cast %197 : vector<1x32x32xf32> to vector<32x32xf32>
    %cst_98 = arith.constant dense<0.000000e+00> : vector<10x32xf32>
    %199 = tpu.matmul %196, %198, %cst_98 {dimension_numbers = #tpu.dot_dimension_numbers<[1], [0], [0], [1], [0, 0, 1, 1], [], []>} : vector<10x32xf32>, vector<32x32xf32>, vector<10x32xf32> -> vector<10x32xf32>
    %c1_99 = arith.constant 1 : index
    %c0_100 = arith.constant 0 : index
    %c0_101 = arith.constant 0 : index
    %200 = vector.load %arg8[%c1_99, %c0_100, %c0_101] : memref<2x1x32xf32, #tpu.memory_space<vmem>>, vector<1x1x32xf32>
    %201 = vector.shape_cast %200 : vector<1x1x32xf32> to vector<1x32xf32>
    %202 = vector.broadcast %201 : vector<1x32xf32> to vector<10x32xf32>
    %203 = arith.addf %199, %202 : vector<10x32xf32>
    %c1_102 = arith.constant 1 : index
    %c0_103 = arith.constant 0 : index
    %c0_104 = arith.constant 0 : index
    %204 = vector.load %arg9[%c1_102, %c0_103, %c0_104] : memref<2x32x32xf32, #tpu.memory_space<vmem>>, vector<1x32x32xf32>
    %205 = vector.shape_cast %204 : vector<1x32x32xf32> to vector<32x32xf32>
    %cst_105 = arith.constant dense<0.000000e+00> : vector<10x32xf32>
    %206 = tpu.matmul %196, %205, %cst_105 {dimension_numbers = #tpu.dot_dimension_numbers<[1], [0], [0], [1], [0, 0, 1, 1], [], []>} : vector<10x32xf32>, vector<32x32xf32>, vector<10x32xf32> -> vector<10x32xf32>
    %c1_106 = arith.constant 1 : index
    %c0_107 = arith.constant 0 : index
    %c0_108 = arith.constant 0 : index
    %207 = vector.load %arg10[%c1_106, %c0_107, %c0_108] : memref<2x1x32xf32, #tpu.memory_space<vmem>>, vector<1x1x32xf32>
    %208 = vector.shape_cast %207 : vector<1x1x32xf32> to vector<1x32xf32>
    %209 = vector.broadcast %208 : vector<1x32xf32> to vector<10x32xf32>
    %210 = arith.addf %206, %209 : vector<10x32xf32>
    %c1_109 = arith.constant 1 : index
    %c0_110 = arith.constant 0 : index
    %c0_111 = arith.constant 0 : index
    %211 = vector.load %arg11[%c1_109, %c0_110, %c0_111] : memref<2x32x32xf32, #tpu.memory_space<vmem>>, vector<1x32x32xf32>
    %212 = vector.shape_cast %211 : vector<1x32x32xf32> to vector<32x32xf32>
    %cst_112 = arith.constant dense<0.000000e+00> : vector<10x32xf32>
    %213 = tpu.matmul %196, %212, %cst_112 {dimension_numbers = #tpu.dot_dimension_numbers<[1], [0], [0], [1], [0, 0, 1, 1], [], []>} : vector<10x32xf32>, vector<32x32xf32>, vector<10x32xf32> -> vector<10x32xf32>
    %c1_113 = arith.constant 1 : index
    %c0_114 = arith.constant 0 : index
    %c0_115 = arith.constant 0 : index
    %214 = vector.load %arg12[%c1_113, %c0_114, %c0_115] : memref<2x1x32xf32, #tpu.memory_space<vmem>>, vector<1x1x32xf32>
    %215 = vector.shape_cast %214 : vector<1x1x32xf32> to vector<1x32xf32>
    %216 = vector.broadcast %215 : vector<1x32xf32> to vector<10x32xf32>
    %217 = arith.addf %213, %216 : vector<10x32xf32>
    %218 = vector.shape_cast %203 : vector<10x32xf32> to vector<1x10x32xf32>
    %219 = vector.broadcast %218 : vector<1x10x32xf32> to vector<4x10x32xf32>
    %220 = vector.broadcast %2 : vector<4x1x32xf32> to vector<4x10x32xf32>
    %221 = arith.mulf %219, %220 : vector<4x10x32xf32>
    %222 = vector.shape_cast %210 : vector<10x32xf32> to vector<1x10x32xf32>
    %223 = vector.broadcast %222 : vector<1x10x32xf32> to vector<4x10x32xf32>
    %224 = vector.broadcast %2 : vector<4x1x32xf32> to vector<4x10x32xf32>
    %225 = arith.mulf %223, %224 : vector<4x10x32xf32>
    "tpu.trace_start"() <{level = 10 : i32, message = "hqd,hkd->hqk"}> : () -> ()
    %cst_116 = arith.constant dense<0.000000e+00> : vector<4x10x10xf32>
    %226 = tpu.matmul %221, %225, %cst_116 {dimension_numbers = #tpu.dot_dimension_numbers<[2], [2], [1], [1], [0, 0, 0, 1, 1, 1], [0], [0]>} : vector<4x10x32xf32>, vector<4x10x32xf32>, vector<4x10x10xf32> -> vector<4x10x10xf32>
    "tpu.trace_stop"() : () -> ()
    %cst_117 = arith.constant 0.353553385 : f32
    %227 = vector.broadcast %cst_117 : f32 to vector<4x10x10xf32>
    %228 = arith.mulf %226, %227 : vector<4x10x10xf32>
    %229 = vector.shape_cast %1 : vector<10x10xf32> to vector<1x10x10xf32>
    %230 = vector.broadcast %229 : vector<1x10x10xf32> to vector<4x10x10xf32>
    %231 = arith.addf %228, %230 : vector<4x10x10xf32>
    %cst_118 = arith.constant dense<0xFF800000> : vector<4x10xf32>
    %232 = vector.multi_reduction <maximumf>, %231, %cst_118 [2] : vector<4x10x10xf32> to vector<4x10xf32>
    %233 = vector.shape_cast %232 : vector<4x10xf32> to vector<4x10x1xf32>
    %234 = vector.broadcast %233 : vector<4x10x1xf32> to vector<4x10x10xf32>
    %235 = arith.subf %231, %234 : vector<4x10x10xf32>
    %236 = math.exp %235 : vector<4x10x10xf32>
    %cst_119 = arith.constant dense<0.000000e+00> : vector<4x10xf32>
    %237 = vector.multi_reduction <add>, %236, %cst_119 [2] : vector<4x10x10xf32> to vector<4x10xf32>
    %238 = vector.shape_cast %237 : vector<4x10xf32> to vector<4x10x1xf32>
    %239 = tpu.reciprocal %238 {approx = true} : vector<4x10x1xf32> -> vector<4x10x1xf32>
    %240 = vector.broadcast %239 : vector<4x10x1xf32> to vector<4x10x10xf32>
    %241 = arith.mulf %236, %240 : vector<4x10x10xf32>
    %242 = vector.shape_cast %217 : vector<10x32xf32> to vector<1x10x32xf32>
    %243 = vector.broadcast %242 : vector<1x10x32xf32> to vector<4x10x32xf32>
    %244 = vector.broadcast %2 : vector<4x1x32xf32> to vector<4x10x32xf32>
    %245 = arith.mulf %243, %244 : vector<4x10x32xf32>
    "tpu.trace_start"() <{level = 10 : i32, message = "hqk,hkd->hqd"}> : () -> ()
    %cst_120 = arith.constant dense<0.000000e+00> : vector<4x10x32xf32>
    %246 = tpu.matmul %241, %245, %cst_120 {dimension_numbers = #tpu.dot_dimension_numbers<[2], [1], [1], [2], [0, 0, 0, 1, 1, 2], [0], [0]>} : vector<4x10x10xf32>, vector<4x10x32xf32>, vector<4x10x32xf32> -> vector<4x10x32xf32>
    "tpu.trace_stop"() : () -> ()
    %247 = vector.extract_strided_slice %246 {offsets = [0, 0, 0], sizes = [1, 10, 32], strides = [1, 1, 1]} : vector<4x10x32xf32> to vector<1x10x32xf32>
    %248 = vector.shape_cast %247 : vector<1x10x32xf32> to vector<10x32xf32>
    %249 = vector.extract_strided_slice %246 {offsets = [1, 0, 0], sizes = [1, 10, 32], strides = [1, 1, 1]} : vector<4x10x32xf32> to vector<1x10x32xf32>
    %250 = vector.shape_cast %249 : vector<1x10x32xf32> to vector<10x32xf32>
    %251 = arith.addf %248, %250 : vector<10x32xf32>
    %252 = vector.extract_strided_slice %246 {offsets = [2, 0, 0], sizes = [1, 10, 32], strides = [1, 1, 1]} : vector<4x10x32xf32> to vector<1x10x32xf32>
    %253 = vector.shape_cast %252 : vector<1x10x32xf32> to vector<10x32xf32>
    %254 = arith.addf %251, %253 : vector<10x32xf32>
    %255 = vector.extract_strided_slice %246 {offsets = [3, 0, 0], sizes = [1, 10, 32], strides = [1, 1, 1]} : vector<4x10x32xf32> to vector<1x10x32xf32>
    %256 = vector.shape_cast %255 : vector<1x10x32xf32> to vector<10x32xf32>
    %257 = arith.addf %254, %256 : vector<10x32xf32>
    %c1_121 = arith.constant 1 : index
    %c0_122 = arith.constant 0 : index
    %c0_123 = arith.constant 0 : index
    %258 = vector.load %arg13[%c1_121, %c0_122, %c0_123] : memref<2x32x32xf32, #tpu.memory_space<vmem>>, vector<1x32x32xf32>
    %259 = vector.shape_cast %258 : vector<1x32x32xf32> to vector<32x32xf32>
    %cst_124 = arith.constant dense<0.000000e+00> : vector<10x32xf32>
    %260 = tpu.matmul %257, %259, %cst_124 {dimension_numbers = #tpu.dot_dimension_numbers<[1], [0], [0], [1], [0, 0, 1, 1], [], []>} : vector<10x32xf32>, vector<32x32xf32>, vector<10x32xf32> -> vector<10x32xf32>
    %261 = arith.addf %170, %260 : vector<10x32xf32>
    %c1_125 = arith.constant 1 : index
    %c0_126 = arith.constant 0 : index
    %c0_127 = arith.constant 0 : index
    %262 = vector.load %arg14[%c1_125, %c0_126, %c0_127] : memref<2x1x32xf32, #tpu.memory_space<vmem>>, vector<1x1x32xf32>
    %263 = vector.shape_cast %262 : vector<1x1x32xf32> to vector<1x32xf32>
    %264 = vector.broadcast %263 : vector<1x32xf32> to vector<10x32xf32>
    %265 = arith.addf %261, %264 : vector<10x32xf32>
    %c1_128 = arith.constant 1 : index
    %c0_129 = arith.constant 0 : index
    %c0_130 = arith.constant 0 : index
    %266 = vector.load %arg15[%c1_128, %c0_129, %c0_130] : memref<2x1x32xf32, #tpu.memory_space<vmem>>, vector<1x1x32xf32>
    %267 = vector.shape_cast %266 : vector<1x1x32xf32> to vector<1x32xf32>
    %c1_131 = arith.constant 1 : index
    %c0_132 = arith.constant 0 : index
    %c0_133 = arith.constant 0 : index
    %268 = vector.load %arg16[%c1_131, %c0_132, %c0_133] : memref<2x1x32xf32, #tpu.memory_space<vmem>>, vector<1x1x32xf32>
    %269 = vector.shape_cast %268 : vector<1x1x32xf32> to vector<1x32xf32>
    %cst_134 = arith.constant dense<0.000000e+00> : vector<10xf32>
    %270 = vector.multi_reduction <add>, %265, %cst_134 [1] : vector<10x32xf32> to vector<10xf32>
    %271 = vector.shape_cast %270 : vector<10xf32> to vector<10x1xf32>
    %cst_135 = arith.constant 3.200000e+01 : f32
    %272 = vector.broadcast %cst_135 : f32 to vector<10x1xf32>
    %273 = arith.divf %271, %272 : vector<10x1xf32>
    %274 = vector.broadcast %273 : vector<10x1xf32> to vector<10x32xf32>
    %275 = arith.subf %265, %274 : vector<10x32xf32>
    %276 = arith.mulf %275, %275 : vector<10x32xf32>
    %cst_136 = arith.constant dense<0.000000e+00> : vector<10xf32>
    %277 = vector.multi_reduction <add>, %276, %cst_136 [1] : vector<10x32xf32> to vector<10xf32>
    %278 = vector.shape_cast %277 : vector<10xf32> to vector<10x1xf32>
    %cst_137 = arith.constant 3.200000e+01 : f32
    %279 = vector.broadcast %cst_137 : f32 to vector<10x1xf32>
    %280 = arith.divf %278, %279 : vector<10x1xf32>
    %281 = vector.broadcast %273 : vector<10x1xf32> to vector<10x32xf32>
    %282 = arith.subf %265, %281 : vector<10x32xf32>
    %cst_138 = arith.constant 9.99999974E-6 : f32
    %283 = vector.broadcast %cst_138 : f32 to vector<10x1xf32>
    %284 = arith.addf %280, %283 : vector<10x1xf32>
    %285 = math.rsqrt %284 : vector<10x1xf32>
    %286 = vector.broadcast %285 : vector<10x1xf32> to vector<10x32xf32>
    %287 = arith.mulf %282, %286 : vector<10x32xf32>
    %288 = vector.broadcast %267 : vector<1x32xf32> to vector<10x32xf32>
    %289 = arith.mulf %287, %288 : vector<10x32xf32>
    %290 = vector.broadcast %269 : vector<1x32xf32> to vector<10x32xf32>
    %291 = arith.addf %289, %290 : vector<10x32xf32>
    %c1_139 = arith.constant 1 : index
    %c0_140 = arith.constant 0 : index
    %c0_141 = arith.constant 0 : index
    %292 = vector.load %arg17[%c1_139, %c0_140, %c0_141] : memref<2x32x128xf32, #tpu.memory_space<vmem>>, vector<1x32x128xf32>
    %293 = vector.shape_cast %292 : vector<1x32x128xf32> to vector<32x128xf32>
    %cst_142 = arith.constant dense<0.000000e+00> : vector<10x128xf32>
    %294 = tpu.matmul %291, %293, %cst_142 {dimension_numbers = #tpu.dot_dimension_numbers<[1], [0], [0], [1], [0, 0, 1, 1], [], []>} : vector<10x32xf32>, vector<32x128xf32>, vector<10x128xf32> -> vector<10x128xf32>
    %c1_143 = arith.constant 1 : index
    %c0_144 = arith.constant 0 : index
    %c0_145 = arith.constant 0 : index
    %295 = vector.load %arg18[%c1_143, %c0_144, %c0_145] : memref<2x1x128xf32, #tpu.memory_space<vmem>>, vector<1x1x128xf32>
    %296 = vector.shape_cast %295 : vector<1x1x128xf32> to vector<1x128xf32>
    %297 = vector.broadcast %296 : vector<1x128xf32> to vector<10x128xf32>
    %298 = arith.addf %294, %297 : vector<10x128xf32>
    %cst_146 = arith.constant 1.702000e+00 : f32
    %299 = vector.broadcast %cst_146 : f32 to vector<10x128xf32>
    %300 = arith.mulf %299, %298 : vector<10x128xf32>
    %301 = arith.negf %300 : vector<10x128xf32>
    %302 = math.exp %301 : vector<10x128xf32>
    %cst_147 = arith.constant 1.000000e+00 : f32
    %303 = vector.broadcast %cst_147 : f32 to vector<10x128xf32>
    %304 = arith.addf %303, %302 : vector<10x128xf32>
    %305 = arith.divf %303, %304 : vector<10x128xf32>
    %306 = arith.mulf %298, %305 : vector<10x128xf32>
    %c1_148 = arith.constant 1 : index
    %c0_149 = arith.constant 0 : index
    %c0_150 = arith.constant 0 : index
    %307 = vector.load %arg19[%c1_148, %c0_149, %c0_150] : memref<2x128x32xf32, #tpu.memory_space<vmem>>, vector<1x128x32xf32>
    %308 = vector.shape_cast %307 : vector<1x128x32xf32> to vector<128x32xf32>
    %cst_151 = arith.constant dense<0.000000e+00> : vector<10x32xf32>
    %309 = tpu.matmul %306, %308, %cst_151 {dimension_numbers = #tpu.dot_dimension_numbers<[1], [0], [0], [1], [0, 0, 1, 1], [], []>} : vector<10x128xf32>, vector<128x32xf32>, vector<10x32xf32> -> vector<10x32xf32>
    %c1_152 = arith.constant 1 : index
    %c0_153 = arith.constant 0 : index
    %c0_154 = arith.constant 0 : index
    %310 = vector.load %arg20[%c1_152, %c0_153, %c0_154] : memref<2x1x32xf32, #tpu.memory_space<vmem>>, vector<1x1x32xf32>
    %311 = vector.shape_cast %310 : vector<1x1x32xf32> to vector<1x32xf32>
    %312 = vector.broadcast %311 : vector<1x32xf32> to vector<10x32xf32>
    %313 = arith.addf %309, %312 : vector<10x32xf32>
    %314 = arith.addf %265, %313 : vector<10x32xf32>
    %c0_155 = arith.constant 0 : index
    %c0_156 = arith.constant 0 : index
    %315 = vector.load %arg21[%c0_155, %c0_156] : memref<1x32xf32, #tpu.memory_space<vmem>>, vector<1x32xf32>
    %c0_157 = arith.constant 0 : index
    %c0_158 = arith.constant 0 : index
    %316 = vector.load %arg22[%c0_157, %c0_158] : memref<1x32xf32, #tpu.memory_space<vmem>>, vector<1x32xf32>
    %cst_159 = arith.constant dense<0.000000e+00> : vector<10xf32>
    %317 = vector.multi_reduction <add>, %314, %cst_159 [1] : vector<10x32xf32> to vector<10xf32>
    %318 = vector.shape_cast %317 : vector<10xf32> to vector<10x1xf32>
    %cst_160 = arith.constant 3.200000e+01 : f32
    %319 = vector.broadcast %cst_160 : f32 to vector<10x1xf32>
    %320 = arith.divf %318, %319 : vector<10x1xf32>
    %321 = vector.broadcast %320 : vector<10x1xf32> to vector<10x32xf32>
    %322 = arith.subf %314, %321 : vector<10x32xf32>
    %323 = arith.mulf %322, %322 : vector<10x32xf32>
    %cst_161 = arith.constant dense<0.000000e+00> : vector<10xf32>
    %324 = vector.multi_reduction <add>, %323, %cst_161 [1] : vector<10x32xf32> to vector<10xf32>
    %325 = vector.shape_cast %324 : vector<10xf32> to vector<10x1xf32>
    %cst_162 = arith.constant 3.200000e+01 : f32
    %326 = vector.broadcast %cst_162 : f32 to vector<10x1xf32>
    %327 = arith.divf %325, %326 : vector<10x1xf32>
    %328 = vector.broadcast %320 : vector<10x1xf32> to vector<10x32xf32>
    %329 = arith.subf %314, %328 : vector<10x32xf32>
    %cst_163 = arith.constant 9.99999974E-6 : f32
    %330 = vector.broadcast %cst_163 : f32 to vector<10x1xf32>
    %331 = arith.addf %327, %330 : vector<10x1xf32>
    %332 = math.rsqrt %331 : vector<10x1xf32>
    %333 = vector.broadcast %332 : vector<10x1xf32> to vector<10x32xf32>
    %334 = arith.mulf %329, %333 : vector<10x32xf32>
    %335 = vector.broadcast %315 : vector<1x32xf32> to vector<10x32xf32>
    %336 = arith.mulf %334, %335 : vector<10x32xf32>
    %337 = vector.broadcast %316 : vector<1x32xf32> to vector<10x32xf32>
    %338 = arith.addf %336, %337 : vector<10x32xf32>
    %c0_164 = arith.constant 0 : index
    %c0_165 = arith.constant 0 : index
    %339 = vector.load %arg23[%c0_164, %c0_165] : memref<32x32xf32, #tpu.memory_space<vmem>>, vector<32x32xf32>
    %cst_166 = arith.constant dense<0.000000e+00> : vector<10x32xf32>
    %340 = tpu.matmul %338, %339, %cst_166 {dimension_numbers = #tpu.dot_dimension_numbers<[1], [0], [0], [1], [0, 0, 1, 1], [], []>} : vector<10x32xf32>, vector<32x32xf32>, vector<10x32xf32> -> vector<10x32xf32>
    %c0_167 = arith.constant 0 : index
    %c0_168 = arith.constant 0 : index
    %341 = vector.load %arg24[%c0_167, %c0_168] : memref<10x32xf32, #tpu.memory_space<vmem>>, vector<10x32xf32>
    tpu.vector_store %arg24[%c0_167, %c0_168], %340 {strides = array<i32>} : memref<10x32xf32, #tpu.memory_space<vmem>>, vector<10x32xf32>,
    return
  }
}

module attributes {stable_mosaic.version = 11 : i64} {
  func.func @kernel(%arg0: memref<96x32xf32, #tpu.memory_space<vmem>>, %arg1: memref<96x96xf32, #tpu.memory_space<vmem>>, %arg2: memref<4x1x32xf32, #tpu.memory_space<vmem>>, %arg3: memref<2x1x32xf32, #tpu.memory_space<vmem>>, %arg4: memref<2x1x32xf32, #tpu.memory_space<vmem>>, %arg5: memref<2x32x32xf32, #tpu.memory_space<vmem>>, %arg6: memref<2x1x32xf32, #tpu.memory_space<vmem>>, %arg7: memref<2x32x32xf32, #tpu.memory_space<vmem>>, %arg8: memref<2x1x32xf32, #tpu.memory_space<vmem>>, %arg9: memref<2x32x32xf32, #tpu.memory_space<vmem>>, %arg10: memref<2x1x32xf32, #tpu.memory_space<vmem>>, %arg11: memref<2x32x32xf32, #tpu.memory_space<vmem>>, %arg12: memref<2x1x32xf32, #tpu.memory_space<vmem>>, %arg13: memref<2x1x32xf32, #tpu.memory_space<vmem>>, %arg14: memref<2x1x32xf32, #tpu.memory_space<vmem>>, %arg15: memref<2x32x128xf32, #tpu.memory_space<vmem>>, %arg16: memref<2x1x128xf32, #tpu.memory_space<vmem>>, %arg17: memref<2x128x32xf32, #tpu.memory_space<vmem>>, %arg18: memref<2x1x32xf32, #tpu.memory_space<vmem>>, %arg19: memref<1x32xf32, #tpu.memory_space<vmem>>, %arg20: memref<1x32xf32, #tpu.memory_space<vmem>>, %arg21: memref<32x32xf32, #tpu.memory_space<vmem>>, %arg22: memref<96x32xf32, #tpu.memory_space<vmem>>) attributes {dimension_semantics = [], scalar_prefetch = 0 : i64, scratch_operands = 0 : i64, tpu.core_type = #tpu.core_type<tc>} {
    %c0 = arith.constant 0 : index
    %c0_0 = arith.constant 0 : index
    %0 = vector.load %arg0[%c0, %c0_0] : memref<96x32xf32, #tpu.memory_space<vmem>>, vector<96x32xf32>
    %c0_1 = arith.constant 0 : index
    %c0_2 = arith.constant 0 : index
    %1 = vector.load %arg1[%c0_1, %c0_2] : memref<96x96xf32, #tpu.memory_space<vmem>>, vector<96x96xf32>
    %c0_3 = arith.constant 0 : index
    %c0_4 = arith.constant 0 : index
    %c0_5 = arith.constant 0 : index
    %2 = vector.load %arg2[%c0_3, %c0_4, %c0_5] : memref<4x1x32xf32, #tpu.memory_space<vmem>>, vector<4x1x32xf32>
    %c0_6 = arith.constant 0 : index
    %c0_7 = arith.constant 0 : index
    %c0_8 = arith.constant 0 : index
    %3 = vector.load %arg3[%c0_6, %c0_7, %c0_8] : memref<2x1x32xf32, #tpu.memory_space<vmem>>, vector<1x1x32xf32>
    %4 = vector.shape_cast %3 : vector<1x1x32xf32> to vector<1x32xf32>
    %c0_9 = arith.constant 0 : index
    %c0_10 = arith.constant 0 : index
    %c0_11 = arith.constant 0 : index
    %5 = vector.load %arg4[%c0_9, %c0_10, %c0_11] : memref<2x1x32xf32, #tpu.memory_space<vmem>>, vector<1x1x32xf32>
    %6 = vector.shape_cast %5 : vector<1x1x32xf32> to vector<1x32xf32>
    %cst = arith.constant dense<0.000000e+00> : vector<96xf32>
    %7 = vector.multi_reduction <add>, %0, %cst [1] : vector<96x32xf32> to vector<96xf32>
    %8 = vector.shape_cast %7 : vector<96xf32> to vector<96x1xf32>
    %cst_12 = arith.constant 3.200000e+01 : f32
    %9 = vector.broadcast %cst_12 : f32 to vector<96x1xf32>
    %10 = arith.divf %8, %9 : vector<96x1xf32>
    %11 = vector.broadcast %10 : vector<96x1xf32> to vector<96x32xf32>
    %12 = arith.subf %0, %11 : vector<96x32xf32>
    %13 = arith.mulf %12, %12 : vector<96x32xf32>
    %cst_13 = arith.constant dense<0.000000e+00> : vector<96xf32>
    %14 = vector.multi_reduction <add>, %13, %cst_13 [1] : vector<96x32xf32> to vector<96xf32>
    %15 = vector.shape_cast %14 : vector<96xf32> to vector<96x1xf32>
    %cst_14 = arith.constant 3.200000e+01 : f32
    %16 = vector.broadcast %cst_14 : f32 to vector<96x1xf32>
    %17 = arith.divf %15, %16 : vector<96x1xf32>
    %18 = vector.broadcast %10 : vector<96x1xf32> to vector<96x32xf32>
    %19 = arith.subf %0, %18 : vector<96x32xf32>
    %cst_15 = arith.constant 9.99999974E-6 : f32
    %20 = vector.broadcast %cst_15 : f32 to vector<96x1xf32>
    %21 = arith.addf %17, %20 : vector<96x1xf32>
    %22 = math.rsqrt %21 : vector<96x1xf32>
    %23 = vector.broadcast %22 : vector<96x1xf32> to vector<96x32xf32>
    %24 = arith.mulf %19, %23 : vector<96x32xf32>
    %25 = vector.broadcast %4 : vector<1x32xf32> to vector<96x32xf32>
    %26 = arith.mulf %24, %25 : vector<96x32xf32>
    %27 = vector.broadcast %6 : vector<1x32xf32> to vector<96x32xf32>
    %28 = arith.addf %26, %27 : vector<96x32xf32>
    %c0_16 = arith.constant 0 : index
    %c0_17 = arith.constant 0 : index
    %c0_18 = arith.constant 0 : index
    %29 = vector.load %arg5[%c0_16, %c0_17, %c0_18] : memref<2x32x32xf32, #tpu.memory_space<vmem>>, vector<1x32x32xf32>
    %30 = vector.shape_cast %29 : vector<1x32x32xf32> to vector<32x32xf32>
    %cst_19 = arith.constant dense<0.000000e+00> : vector<96x32xf32>
    %31 = tpu.matmul %28, %30, %cst_19 {dimension_numbers = #tpu.dot_dimension_numbers<[1], [0], [0], [1], [0, 0, 1, 1], [], []>} : vector<96x32xf32>, vector<32x32xf32>, vector<96x32xf32> -> vector<96x32xf32>
    %c0_20 = arith.constant 0 : index
    %c0_21 = arith.constant 0 : index
    %c0_22 = arith.constant 0 : index
    %32 = vector.load %arg6[%c0_20, %c0_21, %c0_22] : memref<2x1x32xf32, #tpu.memory_space<vmem>>, vector<1x1x32xf32>
    %33 = vector.shape_cast %32 : vector<1x1x32xf32> to vector<1x32xf32>
    %34 = vector.broadcast %33 : vector<1x32xf32> to vector<96x32xf32>
    %35 = arith.addf %31, %34 : vector<96x32xf32>
    %c0_23 = arith.constant 0 : index
    %c0_24 = arith.constant 0 : index
    %c0_25 = arith.constant 0 : index
    %36 = vector.load %arg7[%c0_23, %c0_24, %c0_25] : memref<2x32x32xf32, #tpu.memory_space<vmem>>, vector<1x32x32xf32>
    %37 = vector.shape_cast %36 : vector<1x32x32xf32> to vector<32x32xf32>
    %cst_26 = arith.constant dense<0.000000e+00> : vector<96x32xf32>
    %38 = tpu.matmul %28, %37, %cst_26 {dimension_numbers = #tpu.dot_dimension_numbers<[1], [0], [0], [1], [0, 0, 1, 1], [], []>} : vector<96x32xf32>, vector<32x32xf32>, vector<96x32xf32> -> vector<96x32xf32>
    %c0_27 = arith.constant 0 : index
    %c0_28 = arith.constant 0 : index
    %c0_29 = arith.constant 0 : index
    %39 = vector.load %arg8[%c0_27, %c0_28, %c0_29] : memref<2x1x32xf32, #tpu.memory_space<vmem>>, vector<1x1x32xf32>
    %40 = vector.shape_cast %39 : vector<1x1x32xf32> to vector<1x32xf32>
    %41 = vector.broadcast %40 : vector<1x32xf32> to vector<96x32xf32>
    %42 = arith.addf %38, %41 : vector<96x32xf32>
    %c0_30 = arith.constant 0 : index
    %c0_31 = arith.constant 0 : index
    %c0_32 = arith.constant 0 : index
    %43 = vector.load %arg9[%c0_30, %c0_31, %c0_32] : memref<2x32x32xf32, #tpu.memory_space<vmem>>, vector<1x32x32xf32>
    %44 = vector.shape_cast %43 : vector<1x32x32xf32> to vector<32x32xf32>
    %cst_33 = arith.constant dense<0.000000e+00> : vector<96x32xf32>
    %45 = tpu.matmul %28, %44, %cst_33 {dimension_numbers = #tpu.dot_dimension_numbers<[1], [0], [0], [1], [0, 0, 1, 1], [], []>} : vector<96x32xf32>, vector<32x32xf32>, vector<96x32xf32> -> vector<96x32xf32>
    %c0_34 = arith.constant 0 : index
    %c0_35 = arith.constant 0 : index
    %c0_36 = arith.constant 0 : index
    %46 = vector.load %arg10[%c0_34, %c0_35, %c0_36] : memref<2x1x32xf32, #tpu.memory_space<vmem>>, vector<1x1x32xf32>
    %47 = vector.shape_cast %46 : vector<1x1x32xf32> to vector<1x32xf32>
    %48 = vector.broadcast %47 : vector<1x32xf32> to vector<96x32xf32>
    %49 = arith.addf %45, %48 : vector<96x32xf32>
    %50 = vector.shape_cast %35 : vector<96x32xf32> to vector<1x96x32xf32>
    %51 = vector.broadcast %50 : vector<1x96x32xf32> to vector<4x96x32xf32>
    %52 = vector.broadcast %2 : vector<4x1x32xf32> to vector<4x96x32xf32>
    %53 = arith.mulf %51, %52 : vector<4x96x32xf32>
    %54 = vector.shape_cast %42 : vector<96x32xf32> to vector<1x96x32xf32>
    %55 = vector.broadcast %54 : vector<1x96x32xf32> to vector<4x96x32xf32>
    %56 = vector.broadcast %2 : vector<4x1x32xf32> to vector<4x96x32xf32>
    %57 = arith.mulf %55, %56 : vector<4x96x32xf32>
    "tpu.trace_start"() <{level = 10 : i32, message = "hqd,hkd->hqk"}> : () -> ()
    %cst_37 = arith.constant dense<0.000000e+00> : vector<4x96x96xf32>
    %58 = tpu.matmul %53, %57, %cst_37 {dimension_numbers = #tpu.dot_dimension_numbers<[2], [2], [1], [1], [0, 0, 0, 1, 1, 1], [0], [0]>} : vector<4x96x32xf32>, vector<4x96x32xf32>, vector<4x96x96xf32> -> vector<4x96x96xf32>
    "tpu.trace_stop"() : () -> ()
    %cst_38 = arith.constant 0.353553385 : f32
    %59 = vector.broadcast %cst_38 : f32 to vector<4x96x96xf32>
    %60 = arith.mulf %58, %59 : vector<4x96x96xf32>
    %61 = vector.shape_cast %1 : vector<96x96xf32> to vector<1x96x96xf32>
    %62 = vector.broadcast %61 : vector<1x96x96xf32> to vector<4x96x96xf32>
    %63 = arith.addf %60, %62 : vector<4x96x96xf32>
    %cst_39 = arith.constant dense<0xFF800000> : vector<4x96xf32>
    %64 = vector.multi_reduction <maximumf>, %63, %cst_39 [2] : vector<4x96x96xf32> to vector<4x96xf32>
    %65 = vector.shape_cast %64 : vector<4x96xf32> to vector<4x96x1xf32>
    %66 = vector.broadcast %65 : vector<4x96x1xf32> to vector<4x96x96xf32>
    %67 = arith.subf %63, %66 : vector<4x96x96xf32>
    %68 = math.exp %67 : vector<4x96x96xf32>
    %cst_40 = arith.constant dense<0.000000e+00> : vector<4x96xf32>
    %69 = vector.multi_reduction <add>, %68, %cst_40 [2] : vector<4x96x96xf32> to vector<4x96xf32>
    %70 = vector.shape_cast %69 : vector<4x96xf32> to vector<4x96x1xf32>
    %71 = tpu.reciprocal %70 {approx = true} : vector<4x96x1xf32> -> vector<4x96x1xf32>
    %72 = vector.broadcast %71 : vector<4x96x1xf32> to vector<4x96x96xf32>
    %73 = arith.mulf %68, %72 : vector<4x96x96xf32>
    %74 = vector.shape_cast %49 : vector<96x32xf32> to vector<1x96x32xf32>
    %75 = vector.broadcast %74 : vector<1x96x32xf32> to vector<4x96x32xf32>
    %76 = vector.broadcast %2 : vector<4x1x32xf32> to vector<4x96x32xf32>
    %77 = arith.mulf %75, %76 : vector<4x96x32xf32>
    "tpu.trace_start"() <{level = 10 : i32, message = "hqk,hkd->hqd"}> : () -> ()
    %cst_41 = arith.constant dense<0.000000e+00> : vector<4x96x32xf32>
    %78 = tpu.matmul %73, %77, %cst_41 {dimension_numbers = #tpu.dot_dimension_numbers<[2], [1], [1], [2], [0, 0, 0, 1, 1, 2], [0], [0]>} : vector<4x96x96xf32>, vector<4x96x32xf32>, vector<4x96x32xf32> -> vector<4x96x32xf32>
    "tpu.trace_stop"() : () -> ()
    %79 = vector.extract_strided_slice %78 {offsets = [0, 0, 0], sizes = [1, 96, 32], strides = [1, 1, 1]} : vector<4x96x32xf32> to vector<1x96x32xf32>
    %80 = vector.shape_cast %79 : vector<1x96x32xf32> to vector<96x32xf32>
    %81 = vector.extract_strided_slice %78 {offsets = [1, 0, 0], sizes = [1, 96, 32], strides = [1, 1, 1]} : vector<4x96x32xf32> to vector<1x96x32xf32>
    %82 = vector.shape_cast %81 : vector<1x96x32xf32> to vector<96x32xf32>
    %83 = arith.addf %80, %82 : vector<96x32xf32>
    %84 = vector.extract_strided_slice %78 {offsets = [2, 0, 0], sizes = [1, 96, 32], strides = [1, 1, 1]} : vector<4x96x32xf32> to vector<1x96x32xf32>
    %85 = vector.shape_cast %84 : vector<1x96x32xf32> to vector<96x32xf32>
    %86 = arith.addf %83, %85 : vector<96x32xf32>
    %87 = vector.extract_strided_slice %78 {offsets = [3, 0, 0], sizes = [1, 96, 32], strides = [1, 1, 1]} : vector<4x96x32xf32> to vector<1x96x32xf32>
    %88 = vector.shape_cast %87 : vector<1x96x32xf32> to vector<96x32xf32>
    %89 = arith.addf %86, %88 : vector<96x32xf32>
    %c0_42 = arith.constant 0 : index
    %c0_43 = arith.constant 0 : index
    %c0_44 = arith.constant 0 : index
    %90 = vector.load %arg11[%c0_42, %c0_43, %c0_44] : memref<2x32x32xf32, #tpu.memory_space<vmem>>, vector<1x32x32xf32>
    %91 = vector.shape_cast %90 : vector<1x32x32xf32> to vector<32x32xf32>
    %cst_45 = arith.constant dense<0.000000e+00> : vector<96x32xf32>
    %92 = tpu.matmul %89, %91, %cst_45 {dimension_numbers = #tpu.dot_dimension_numbers<[1], [0], [0], [1], [0, 0, 1, 1], [], []>} : vector<96x32xf32>, vector<32x32xf32>, vector<96x32xf32> -> vector<96x32xf32>
    %93 = arith.addf %0, %92 : vector<96x32xf32>
    %c0_46 = arith.constant 0 : index
    %c0_47 = arith.constant 0 : index
    %c0_48 = arith.constant 0 : index
    %94 = vector.load %arg12[%c0_46, %c0_47, %c0_48] : memref<2x1x32xf32, #tpu.memory_space<vmem>>, vector<1x1x32xf32>
    %95 = vector.shape_cast %94 : vector<1x1x32xf32> to vector<1x32xf32>
    %96 = vector.broadcast %95 : vector<1x32xf32> to vector<96x32xf32>
    %97 = arith.addf %93, %96 : vector<96x32xf32>
    %c0_49 = arith.constant 0 : index
    %c0_50 = arith.constant 0 : index
    %c0_51 = arith.constant 0 : index
    %98 = vector.load %arg13[%c0_49, %c0_50, %c0_51] : memref<2x1x32xf32, #tpu.memory_space<vmem>>, vector<1x1x32xf32>
    %99 = vector.shape_cast %98 : vector<1x1x32xf32> to vector<1x32xf32>
    %c0_52 = arith.constant 0 : index
    %c0_53 = arith.constant 0 : index
    %c0_54 = arith.constant 0 : index
    %100 = vector.load %arg14[%c0_52, %c0_53, %c0_54] : memref<2x1x32xf32, #tpu.memory_space<vmem>>, vector<1x1x32xf32>
    %101 = vector.shape_cast %100 : vector<1x1x32xf32> to vector<1x32xf32>
    %cst_55 = arith.constant dense<0.000000e+00> : vector<96xf32>
    %102 = vector.multi_reduction <add>, %97, %cst_55 [1] : vector<96x32xf32> to vector<96xf32>
    %103 = vector.shape_cast %102 : vector<96xf32> to vector<96x1xf32>
    %cst_56 = arith.constant 3.200000e+01 : f32
    %104 = vector.broadcast %cst_56 : f32 to vector<96x1xf32>
    %105 = arith.divf %103, %104 : vector<96x1xf32>
    %106 = vector.broadcast %105 : vector<96x1xf32> to vector<96x32xf32>
    %107 = arith.subf %97, %106 : vector<96x32xf32>
    %108 = arith.mulf %107, %107 : vector<96x32xf32>
    %cst_57 = arith.constant dense<0.000000e+00> : vector<96xf32>
    %109 = vector.multi_reduction <add>, %108, %cst_57 [1] : vector<96x32xf32> to vector<96xf32>
    %110 = vector.shape_cast %109 : vector<96xf32> to vector<96x1xf32>
    %cst_58 = arith.constant 3.200000e+01 : f32
    %111 = vector.broadcast %cst_58 : f32 to vector<96x1xf32>
    %112 = arith.divf %110, %111 : vector<96x1xf32>
    %113 = vector.broadcast %105 : vector<96x1xf32> to vector<96x32xf32>
    %114 = arith.subf %97, %113 : vector<96x32xf32>
    %cst_59 = arith.constant 9.99999974E-6 : f32
    %115 = vector.broadcast %cst_59 : f32 to vector<96x1xf32>
    %116 = arith.addf %112, %115 : vector<96x1xf32>
    %117 = math.rsqrt %116 : vector<96x1xf32>
    %118 = vector.broadcast %117 : vector<96x1xf32> to vector<96x32xf32>
    %119 = arith.mulf %114, %118 : vector<96x32xf32>
    %120 = vector.broadcast %99 : vector<1x32xf32> to vector<96x32xf32>
    %121 = arith.mulf %119, %120 : vector<96x32xf32>
    %122 = vector.broadcast %101 : vector<1x32xf32> to vector<96x32xf32>
    %123 = arith.addf %121, %122 : vector<96x32xf32>
    %c0_60 = arith.constant 0 : index
    %c0_61 = arith.constant 0 : index
    %c0_62 = arith.constant 0 : index
    %124 = vector.load %arg15[%c0_60, %c0_61, %c0_62] : memref<2x32x128xf32, #tpu.memory_space<vmem>>, vector<1x32x128xf32>
    %125 = vector.shape_cast %124 : vector<1x32x128xf32> to vector<32x128xf32>
    %cst_63 = arith.constant dense<0.000000e+00> : vector<96x128xf32>
    %126 = tpu.matmul %123, %125, %cst_63 {dimension_numbers = #tpu.dot_dimension_numbers<[1], [0], [0], [1], [0, 0, 1, 1], [], []>} : vector<96x32xf32>, vector<32x128xf32>, vector<96x128xf32> -> vector<96x128xf32>
    %c0_64 = arith.constant 0 : index
    %c0_65 = arith.constant 0 : index
    %c0_66 = arith.constant 0 : index
    %127 = vector.load %arg16[%c0_64, %c0_65, %c0_66] : memref<2x1x128xf32, #tpu.memory_space<vmem>>, vector<1x1x128xf32>
    %128 = vector.shape_cast %127 : vector<1x1x128xf32> to vector<1x128xf32>
    %129 = vector.broadcast %128 : vector<1x128xf32> to vector<96x128xf32>
    %130 = arith.addf %126, %129 : vector<96x128xf32>
    %cst_67 = arith.constant 1.702000e+00 : f32
    %131 = vector.broadcast %cst_67 : f32 to vector<96x128xf32>
    %132 = arith.mulf %131, %130 : vector<96x128xf32>
    %133 = arith.negf %132 : vector<96x128xf32>
    %134 = math.exp %133 : vector<96x128xf32>
    %cst_68 = arith.constant 1.000000e+00 : f32
    %135 = vector.broadcast %cst_68 : f32 to vector<96x128xf32>
    %136 = arith.addf %135, %134 : vector<96x128xf32>
    %137 = arith.divf %135, %136 : vector<96x128xf32>
    %138 = arith.mulf %130, %137 : vector<96x128xf32>
    %c0_69 = arith.constant 0 : index
    %c0_70 = arith.constant 0 : index
    %c0_71 = arith.constant 0 : index
    %139 = vector.load %arg17[%c0_69, %c0_70, %c0_71] : memref<2x128x32xf32, #tpu.memory_space<vmem>>, vector<1x128x32xf32>
    %140 = vector.shape_cast %139 : vector<1x128x32xf32> to vector<128x32xf32>
    %cst_72 = arith.constant dense<0.000000e+00> : vector<96x32xf32>
    %141 = tpu.matmul %138, %140, %cst_72 {dimension_numbers = #tpu.dot_dimension_numbers<[1], [0], [0], [1], [0, 0, 1, 1], [], []>} : vector<96x128xf32>, vector<128x32xf32>, vector<96x32xf32> -> vector<96x32xf32>
    %c0_73 = arith.constant 0 : index
    %c0_74 = arith.constant 0 : index
    %c0_75 = arith.constant 0 : index
    %142 = vector.load %arg18[%c0_73, %c0_74, %c0_75] : memref<2x1x32xf32, #tpu.memory_space<vmem>>, vector<1x1x32xf32>
    %143 = vector.shape_cast %142 : vector<1x1x32xf32> to vector<1x32xf32>
    %144 = vector.broadcast %143 : vector<1x32xf32> to vector<96x32xf32>
    %145 = arith.addf %141, %144 : vector<96x32xf32>
    %146 = arith.addf %97, %145 : vector<96x32xf32>
    %c1 = arith.constant 1 : index
    %c0_76 = arith.constant 0 : index
    %c0_77 = arith.constant 0 : index
    %147 = vector.load %arg3[%c1, %c0_76, %c0_77] : memref<2x1x32xf32, #tpu.memory_space<vmem>>, vector<1x1x32xf32>
    %148 = vector.shape_cast %147 : vector<1x1x32xf32> to vector<1x32xf32>
    %c1_78 = arith.constant 1 : index
    %c0_79 = arith.constant 0 : index
    %c0_80 = arith.constant 0 : index
    %149 = vector.load %arg4[%c1_78, %c0_79, %c0_80] : memref<2x1x32xf32, #tpu.memory_space<vmem>>, vector<1x1x32xf32>
    %150 = vector.shape_cast %149 : vector<1x1x32xf32> to vector<1x32xf32>
    %cst_81 = arith.constant dense<0.000000e+00> : vector<96xf32>
    %151 = vector.multi_reduction <add>, %146, %cst_81 [1] : vector<96x32xf32> to vector<96xf32>
    %152 = vector.shape_cast %151 : vector<96xf32> to vector<96x1xf32>
    %cst_82 = arith.constant 3.200000e+01 : f32
    %153 = vector.broadcast %cst_82 : f32 to vector<96x1xf32>
    %154 = arith.divf %152, %153 : vector<96x1xf32>
    %155 = vector.broadcast %154 : vector<96x1xf32> to vector<96x32xf32>
    %156 = arith.subf %146, %155 : vector<96x32xf32>
    %157 = arith.mulf %156, %156 : vector<96x32xf32>
    %cst_83 = arith.constant dense<0.000000e+00> : vector<96xf32>
    %158 = vector.multi_reduction <add>, %157, %cst_83 [1] : vector<96x32xf32> to vector<96xf32>
    %159 = vector.shape_cast %158 : vector<96xf32> to vector<96x1xf32>
    %cst_84 = arith.constant 3.200000e+01 : f32
    %160 = vector.broadcast %cst_84 : f32 to vector<96x1xf32>
    %161 = arith.divf %159, %160 : vector<96x1xf32>
    %162 = vector.broadcast %154 : vector<96x1xf32> to vector<96x32xf32>
    %163 = arith.subf %146, %162 : vector<96x32xf32>
    %cst_85 = arith.constant 9.99999974E-6 : f32
    %164 = vector.broadcast %cst_85 : f32 to vector<96x1xf32>
    %165 = arith.addf %161, %164 : vector<96x1xf32>
    %166 = math.rsqrt %165 : vector<96x1xf32>
    %167 = vector.broadcast %166 : vector<96x1xf32> to vector<96x32xf32>
    %168 = arith.mulf %163, %167 : vector<96x32xf32>
    %169 = vector.broadcast %148 : vector<1x32xf32> to vector<96x32xf32>
    %170 = arith.mulf %168, %169 : vector<96x32xf32>
    %171 = vector.broadcast %150 : vector<1x32xf32> to vector<96x32xf32>
    %172 = arith.addf %170, %171 : vector<96x32xf32>
    %c1_86 = arith.constant 1 : index
    %c0_87 = arith.constant 0 : index
    %c0_88 = arith.constant 0 : index
    %173 = vector.load %arg5[%c1_86, %c0_87, %c0_88] : memref<2x32x32xf32, #tpu.memory_space<vmem>>, vector<1x32x32xf32>
    %174 = vector.shape_cast %173 : vector<1x32x32xf32> to vector<32x32xf32>
    %cst_89 = arith.constant dense<0.000000e+00> : vector<96x32xf32>
    %175 = tpu.matmul %172, %174, %cst_89 {dimension_numbers = #tpu.dot_dimension_numbers<[1], [0], [0], [1], [0, 0, 1, 1], [], []>} : vector<96x32xf32>, vector<32x32xf32>, vector<96x32xf32> -> vector<96x32xf32>
    %c1_90 = arith.constant 1 : index
    %c0_91 = arith.constant 0 : index
    %c0_92 = arith.constant 0 : index
    %176 = vector.load %arg6[%c1_90, %c0_91, %c0_92] : memref<2x1x32xf32, #tpu.memory_space<vmem>>, vector<1x1x32xf32>
    %177 = vector.shape_cast %176 : vector<1x1x32xf32> to vector<1x32xf32>
    %178 = vector.broadcast %177 : vector<1x32xf32> to vector<96x32xf32>
    %179 = arith.addf %175, %178 : vector<96x32xf32>
    %c1_93 = arith.constant 1 : index
    %c0_94 = arith.constant 0 : index
    %c0_95 = arith.constant 0 : index
    %180 = vector.load %arg7[%c1_93, %c0_94, %c0_95] : memref<2x32x32xf32, #tpu.memory_space<vmem>>, vector<1x32x32xf32>
    %181 = vector.shape_cast %180 : vector<1x32x32xf32> to vector<32x32xf32>
    %cst_96 = arith.constant dense<0.000000e+00> : vector<96x32xf32>
    %182 = tpu.matmul %172, %181, %cst_96 {dimension_numbers = #tpu.dot_dimension_numbers<[1], [0], [0], [1], [0, 0, 1, 1], [], []>} : vector<96x32xf32>, vector<32x32xf32>, vector<96x32xf32> -> vector<96x32xf32>
    %c1_97 = arith.constant 1 : index
    %c0_98 = arith.constant 0 : index
    %c0_99 = arith.constant 0 : index
    %183 = vector.load %arg8[%c1_97, %c0_98, %c0_99] : memref<2x1x32xf32, #tpu.memory_space<vmem>>, vector<1x1x32xf32>
    %184 = vector.shape_cast %183 : vector<1x1x32xf32> to vector<1x32xf32>
    %185 = vector.broadcast %184 : vector<1x32xf32> to vector<96x32xf32>
    %186 = arith.addf %182, %185 : vector<96x32xf32>
    %c1_100 = arith.constant 1 : index
    %c0_101 = arith.constant 0 : index
    %c0_102 = arith.constant 0 : index
    %187 = vector.load %arg9[%c1_100, %c0_101, %c0_102] : memref<2x32x32xf32, #tpu.memory_space<vmem>>, vector<1x32x32xf32>
    %188 = vector.shape_cast %187 : vector<1x32x32xf32> to vector<32x32xf32>
    %cst_103 = arith.constant dense<0.000000e+00> : vector<96x32xf32>
    %189 = tpu.matmul %172, %188, %cst_103 {dimension_numbers = #tpu.dot_dimension_numbers<[1], [0], [0], [1], [0, 0, 1, 1], [], []>} : vector<96x32xf32>, vector<32x32xf32>, vector<96x32xf32> -> vector<96x32xf32>
    %c1_104 = arith.constant 1 : index
    %c0_105 = arith.constant 0 : index
    %c0_106 = arith.constant 0 : index
    %190 = vector.load %arg10[%c1_104, %c0_105, %c0_106] : memref<2x1x32xf32, #tpu.memory_space<vmem>>, vector<1x1x32xf32>
    %191 = vector.shape_cast %190 : vector<1x1x32xf32> to vector<1x32xf32>
    %192 = vector.broadcast %191 : vector<1x32xf32> to vector<96x32xf32>
    %193 = arith.addf %189, %192 : vector<96x32xf32>
    %194 = vector.shape_cast %179 : vector<96x32xf32> to vector<1x96x32xf32>
    %195 = vector.broadcast %194 : vector<1x96x32xf32> to vector<4x96x32xf32>
    %196 = vector.broadcast %2 : vector<4x1x32xf32> to vector<4x96x32xf32>
    %197 = arith.mulf %195, %196 : vector<4x96x32xf32>
    %198 = vector.shape_cast %186 : vector<96x32xf32> to vector<1x96x32xf32>
    %199 = vector.broadcast %198 : vector<1x96x32xf32> to vector<4x96x32xf32>
    %200 = vector.broadcast %2 : vector<4x1x32xf32> to vector<4x96x32xf32>
    %201 = arith.mulf %199, %200 : vector<4x96x32xf32>
    "tpu.trace_start"() <{level = 10 : i32, message = "hqd,hkd->hqk"}> : () -> ()
    %cst_107 = arith.constant dense<0.000000e+00> : vector<4x96x96xf32>
    %202 = tpu.matmul %197, %201, %cst_107 {dimension_numbers = #tpu.dot_dimension_numbers<[2], [2], [1], [1], [0, 0, 0, 1, 1, 1], [0], [0]>} : vector<4x96x32xf32>, vector<4x96x32xf32>, vector<4x96x96xf32> -> vector<4x96x96xf32>
    "tpu.trace_stop"() : () -> ()
    %cst_108 = arith.constant 0.353553385 : f32
    %203 = vector.broadcast %cst_108 : f32 to vector<4x96x96xf32>
    %204 = arith.mulf %202, %203 : vector<4x96x96xf32>
    %205 = vector.shape_cast %1 : vector<96x96xf32> to vector<1x96x96xf32>
    %206 = vector.broadcast %205 : vector<1x96x96xf32> to vector<4x96x96xf32>
    %207 = arith.addf %204, %206 : vector<4x96x96xf32>
    %cst_109 = arith.constant dense<0xFF800000> : vector<4x96xf32>
    %208 = vector.multi_reduction <maximumf>, %207, %cst_109 [2] : vector<4x96x96xf32> to vector<4x96xf32>
    %209 = vector.shape_cast %208 : vector<4x96xf32> to vector<4x96x1xf32>
    %210 = vector.broadcast %209 : vector<4x96x1xf32> to vector<4x96x96xf32>
    %211 = arith.subf %207, %210 : vector<4x96x96xf32>
    %212 = math.exp %211 : vector<4x96x96xf32>
    %cst_110 = arith.constant dense<0.000000e+00> : vector<4x96xf32>
    %213 = vector.multi_reduction <add>, %212, %cst_110 [2] : vector<4x96x96xf32> to vector<4x96xf32>
    %214 = vector.shape_cast %213 : vector<4x96xf32> to vector<4x96x1xf32>
    %215 = tpu.reciprocal %214 {approx = true} : vector<4x96x1xf32> -> vector<4x96x1xf32>
    %216 = vector.broadcast %215 : vector<4x96x1xf32> to vector<4x96x96xf32>
    %217 = arith.mulf %212, %216 : vector<4x96x96xf32>
    %218 = vector.shape_cast %193 : vector<96x32xf32> to vector<1x96x32xf32>
    %219 = vector.broadcast %218 : vector<1x96x32xf32> to vector<4x96x32xf32>
    %220 = vector.broadcast %2 : vector<4x1x32xf32> to vector<4x96x32xf32>
    %221 = arith.mulf %219, %220 : vector<4x96x32xf32>
    "tpu.trace_start"() <{level = 10 : i32, message = "hqk,hkd->hqd"}> : () -> ()
    %cst_111 = arith.constant dense<0.000000e+00> : vector<4x96x32xf32>
    %222 = tpu.matmul %217, %221, %cst_111 {dimension_numbers = #tpu.dot_dimension_numbers<[2], [1], [1], [2], [0, 0, 0, 1, 1, 2], [0], [0]>} : vector<4x96x96xf32>, vector<4x96x32xf32>, vector<4x96x32xf32> -> vector<4x96x32xf32>
    "tpu.trace_stop"() : () -> ()
    %223 = vector.extract_strided_slice %222 {offsets = [0, 0, 0], sizes = [1, 96, 32], strides = [1, 1, 1]} : vector<4x96x32xf32> to vector<1x96x32xf32>
    %224 = vector.shape_cast %223 : vector<1x96x32xf32> to vector<96x32xf32>
    %225 = vector.extract_strided_slice %222 {offsets = [1, 0, 0], sizes = [1, 96, 32], strides = [1, 1, 1]} : vector<4x96x32xf32> to vector<1x96x32xf32>
    %226 = vector.shape_cast %225 : vector<1x96x32xf32> to vector<96x32xf32>
    %227 = arith.addf %224, %226 : vector<96x32xf32>
    %228 = vector.extract_strided_slice %222 {offsets = [2, 0, 0], sizes = [1, 96, 32], strides = [1, 1, 1]} : vector<4x96x32xf32> to vector<1x96x32xf32>
    %229 = vector.shape_cast %228 : vector<1x96x32xf32> to vector<96x32xf32>
    %230 = arith.addf %227, %229 : vector<96x32xf32>
    %231 = vector.extract_strided_slice %222 {offsets = [3, 0, 0], sizes = [1, 96, 32], strides = [1, 1, 1]} : vector<4x96x32xf32> to vector<1x96x32xf32>
    %232 = vector.shape_cast %231 : vector<1x96x32xf32> to vector<96x32xf32>
    %233 = arith.addf %230, %232 : vector<96x32xf32>
    %c1_112 = arith.constant 1 : index
    %c0_113 = arith.constant 0 : index
    %c0_114 = arith.constant 0 : index
    %234 = vector.load %arg11[%c1_112, %c0_113, %c0_114] : memref<2x32x32xf32, #tpu.memory_space<vmem>>, vector<1x32x32xf32>
    %235 = vector.shape_cast %234 : vector<1x32x32xf32> to vector<32x32xf32>
    %cst_115 = arith.constant dense<0.000000e+00> : vector<96x32xf32>
    %236 = tpu.matmul %233, %235, %cst_115 {dimension_numbers = #tpu.dot_dimension_numbers<[1], [0], [0], [1], [0, 0, 1, 1], [], []>} : vector<96x32xf32>, vector<32x32xf32>, vector<96x32xf32> -> vector<96x32xf32>
    %237 = arith.addf %146, %236 : vector<96x32xf32>
    %c1_116 = arith.constant 1 : index
    %c0_117 = arith.constant 0 : index
    %c0_118 = arith.constant 0 : index
    %238 = vector.load %arg12[%c1_116, %c0_117, %c0_118] : memref<2x1x32xf32, #tpu.memory_space<vmem>>, vector<1x1x32xf32>
    %239 = vector.shape_cast %238 : vector<1x1x32xf32> to vector<1x32xf32>
    %240 = vector.broadcast %239 : vector<1x32xf32> to vector<96x32xf32>
    %241 = arith.addf %237, %240 : vector<96x32xf32>
    %c1_119 = arith.constant 1 : index
    %c0_120 = arith.constant 0 : index
    %c0_121 = arith.constant 0 : index
    %242 = vector.load %arg13[%c1_119, %c0_120, %c0_121] : memref<2x1x32xf32, #tpu.memory_space<vmem>>, vector<1x1x32xf32>
    %243 = vector.shape_cast %242 : vector<1x1x32xf32> to vector<1x32xf32>
    %c1_122 = arith.constant 1 : index
    %c0_123 = arith.constant 0 : index
    %c0_124 = arith.constant 0 : index
    %244 = vector.load %arg14[%c1_122, %c0_123, %c0_124] : memref<2x1x32xf32, #tpu.memory_space<vmem>>, vector<1x1x32xf32>
    %245 = vector.shape_cast %244 : vector<1x1x32xf32> to vector<1x32xf32>
    %cst_125 = arith.constant dense<0.000000e+00> : vector<96xf32>
    %246 = vector.multi_reduction <add>, %241, %cst_125 [1] : vector<96x32xf32> to vector<96xf32>
    %247 = vector.shape_cast %246 : vector<96xf32> to vector<96x1xf32>
    %cst_126 = arith.constant 3.200000e+01 : f32
    %248 = vector.broadcast %cst_126 : f32 to vector<96x1xf32>
    %249 = arith.divf %247, %248 : vector<96x1xf32>
    %250 = vector.broadcast %249 : vector<96x1xf32> to vector<96x32xf32>
    %251 = arith.subf %241, %250 : vector<96x32xf32>
    %252 = arith.mulf %251, %251 : vector<96x32xf32>
    %cst_127 = arith.constant dense<0.000000e+00> : vector<96xf32>
    %253 = vector.multi_reduction <add>, %252, %cst_127 [1] : vector<96x32xf32> to vector<96xf32>
    %254 = vector.shape_cast %253 : vector<96xf32> to vector<96x1xf32>
    %cst_128 = arith.constant 3.200000e+01 : f32
    %255 = vector.broadcast %cst_128 : f32 to vector<96x1xf32>
    %256 = arith.divf %254, %255 : vector<96x1xf32>
    %257 = vector.broadcast %249 : vector<96x1xf32> to vector<96x32xf32>
    %258 = arith.subf %241, %257 : vector<96x32xf32>
    %cst_129 = arith.constant 9.99999974E-6 : f32
    %259 = vector.broadcast %cst_129 : f32 to vector<96x1xf32>
    %260 = arith.addf %256, %259 : vector<96x1xf32>
    %261 = math.rsqrt %260 : vector<96x1xf32>
    %262 = vector.broadcast %261 : vector<96x1xf32> to vector<96x32xf32>
    %263 = arith.mulf %258, %262 : vector<96x32xf32>
    %264 = vector.broadcast %243 : vector<1x32xf32> to vector<96x32xf32>
    %265 = arith.mulf %263, %264 : vector<96x32xf32>
    %266 = vector.broadcast %245 : vector<1x32xf32> to vector<96x32xf32>
    %267 = arith.addf %265, %266 : vector<96x32xf32>
    %c1_130 = arith.constant 1 : index
    %c0_131 = arith.constant 0 : index
    %c0_132 = arith.constant 0 : index
    %268 = vector.load %arg15[%c1_130, %c0_131, %c0_132] : memref<2x32x128xf32, #tpu.memory_space<vmem>>, vector<1x32x128xf32>
    %269 = vector.shape_cast %268 : vector<1x32x128xf32> to vector<32x128xf32>
    %cst_133 = arith.constant dense<0.000000e+00> : vector<96x128xf32>
    %270 = tpu.matmul %267, %269, %cst_133 {dimension_numbers = #tpu.dot_dimension_numbers<[1], [0], [0], [1], [0, 0, 1, 1], [], []>} : vector<96x32xf32>, vector<32x128xf32>, vector<96x128xf32> -> vector<96x128xf32>
    %c1_134 = arith.constant 1 : index
    %c0_135 = arith.constant 0 : index
    %c0_136 = arith.constant 0 : index
    %271 = vector.load %arg16[%c1_134, %c0_135, %c0_136] : memref<2x1x128xf32, #tpu.memory_space<vmem>>, vector<1x1x128xf32>
    %272 = vector.shape_cast %271 : vector<1x1x128xf32> to vector<1x128xf32>
    %273 = vector.broadcast %272 : vector<1x128xf32> to vector<96x128xf32>
    %274 = arith.addf %270, %273 : vector<96x128xf32>
    %cst_137 = arith.constant 1.702000e+00 : f32
    %275 = vector.broadcast %cst_137 : f32 to vector<96x128xf32>
    %276 = arith.mulf %275, %274 : vector<96x128xf32>
    %277 = arith.negf %276 : vector<96x128xf32>
    %278 = math.exp %277 : vector<96x128xf32>
    %cst_138 = arith.constant 1.000000e+00 : f32
    %279 = vector.broadcast %cst_138 : f32 to vector<96x128xf32>
    %280 = arith.addf %279, %278 : vector<96x128xf32>
    %281 = arith.divf %279, %280 : vector<96x128xf32>
    %282 = arith.mulf %274, %281 : vector<96x128xf32>
    %c1_139 = arith.constant 1 : index
    %c0_140 = arith.constant 0 : index
    %c0_141 = arith.constant 0 : index
    %283 = vector.load %arg17[%c1_139, %c0_140, %c0_141] : memref<2x128x32xf32, #tpu.memory_space<vmem>>, vector<1x128x32xf32>
    %284 = vector.shape_cast %283 : vector<1x128x32xf32> to vector<128x32xf32>
    %cst_142 = arith.constant dense<0.000000e+00> : vector<96x32xf32>
    %285 = tpu.matmul %282, %284, %cst_142 {dimension_numbers = #tpu.dot_dimension_numbers<[1], [0], [0], [1], [0, 0, 1, 1], [], []>} : vector<96x128xf32>, vector<128x32xf32>, vector<96x32xf32> -> vector<96x32xf32>
    %c1_143 = arith.constant 1 : index
    %c0_144 = arith.constant 0 : index
    %c0_145 = arith.constant 0 : index
    %286 = vector.load %arg18[%c1_143, %c0_144, %c0_145] : memref<2x1x32xf32, #tpu.memory_space<vmem>>, vector<1x1x32xf32>
    %287 = vector.shape_cast %286 : vector<1x1x32xf32> to vector<1x32xf32>
    %288 = vector.broadcast %287 : vector<1x32xf32> to vector<96x32xf32>
    %289 = arith.addf %285, %288 : vector<96x32xf32>
    %290 = arith.addf %241, %289 : vector<96x32xf32>
    %c0_146 = arith.constant 0 : index
    %c0_147 = arith.constant 0 : index
    %291 = vector.load %arg19[%c0_146, %c0_147] : memref<1x32xf32, #tpu.memory_space<vmem>>, vector<1x32xf32>
    %c0_148 = arith.constant 0 : index
    %c0_149 = arith.constant 0 : index
    %292 = vector.load %arg20[%c0_148, %c0_149] : memref<1x32xf32, #tpu.memory_space<vmem>>, vector<1x32xf32>
    %cst_150 = arith.constant dense<0.000000e+00> : vector<96xf32>
    %293 = vector.multi_reduction <add>, %290, %cst_150 [1] : vector<96x32xf32> to vector<96xf32>
    %294 = vector.shape_cast %293 : vector<96xf32> to vector<96x1xf32>
    %cst_151 = arith.constant 3.200000e+01 : f32
    %295 = vector.broadcast %cst_151 : f32 to vector<96x1xf32>
    %296 = arith.divf %294, %295 : vector<96x1xf32>
    %297 = vector.broadcast %296 : vector<96x1xf32> to vector<96x32xf32>
    %298 = arith.subf %290, %297 : vector<96x32xf32>
    %299 = arith.mulf %298, %298 : vector<96x32xf32>
    %cst_152 = arith.constant dense<0.000000e+00> : vector<96xf32>
    %300 = vector.multi_reduction <add>, %299, %cst_152 [1] : vector<96x32xf32> to vector<96xf32>
    %301 = vector.shape_cast %300 : vector<96xf32> to vector<96x1xf32>
    %cst_153 = arith.constant 3.200000e+01 : f32
    %302 = vector.broadcast %cst_153 : f32 to vector<96x1xf32>
    %303 = arith.divf %301, %302 : vector<96x1xf32>
    %304 = vector.broadcast %296 : vector<96x1xf32> to vector<96x32xf32>
    %305 = arith.subf %290, %304 : vector<96x32xf32>
    %cst_154 = arith.constant 9.99999974E-6 : f32
    %306 = vector.broadcast %cst_154 : f32 to vector<96x1xf32>
    %307 = arith.addf %303, %306 : vector<96x1xf32>
    %308 = math.rsqrt %307 : vector<96x1xf32>
    %309 = vector.broadcast %308 : vector<96x1xf32> to vector<96x32xf32>
    %310 = arith.mulf %305, %309 : vector<96x32xf32>
    %311 = vector.broadcast %291 : vector<1x32xf32> to vector<96x32xf32>
    %312 = arith.mulf %310, %311 : vector<96x32xf32>
    %313 = vector.broadcast %292 : vector<1x32xf32> to vector<96x32xf32>
    %314 = arith.addf %312, %313 : vector<96x32xf32>
    %c0_155 = arith.constant 0 : index
    %c0_156 = arith.constant 0 : index
    %315 = vector.load %arg21[%c0_155, %c0_156] : memref<32x32xf32, #tpu.memory_space<vmem>>, vector<32x32xf32>
    %cst_157 = arith.constant dense<0.000000e+00> : vector<96x32xf32>
    %316 = tpu.matmul %314, %315, %cst_157 {dimension_numbers = #tpu.dot_dimension_numbers<[1], [0], [0], [1], [0, 0, 1, 1], [], []>} : vector<96x32xf32>, vector<32x32xf32>, vector<96x32xf32> -> vector<96x32xf32>
    %c0_158 = arith.constant 0 : index
    %c0_159 = arith.constant 0 : index
    %317 = vector.load %arg22[%c0_158, %c0_159] : memref<96x32xf32, #tpu.memory_space<vmem>>, vector<96x32xf32>
    tpu.vector_store %arg22[%c0_158, %c0_159], %316 {strides = array<i32>} : memref<96x32xf32, #tpu.memory_space<vmem>>, vector<96x32xf32>,
    return
  }
}

module attributes {stable_mosaic.version = 11 : i64} {
  func.func @kernel(%arg0: memref<2x32xf32, #tpu.memory_space<vmem>>, %arg1: memref<4x32xf32, #tpu.memory_space<vmem>>, %arg2: memref<1xf32, #tpu.memory_space<smem>>, %arg3: memref<2x4xf32, #tpu.memory_space<vmem>>) attributes {dimension_semantics = [], scalar_prefetch = 0 : i64, scratch_operands = 0 : i64, tpu.core_type = #tpu.core_type<tc>} {
    %c0 = arith.constant 0 : index
    %c0_0 = arith.constant 0 : index
    %0 = vector.load %arg0[%c0, %c0_0] : memref<2x32xf32, #tpu.memory_space<vmem>>, vector<2x32xf32>
    %c0_1 = arith.constant 0 : index
    %c0_2 = arith.constant 0 : index
    %1 = vector.load %arg1[%c0_1, %c0_2] : memref<4x32xf32, #tpu.memory_space<vmem>>, vector<4x32xf32>
    %2 = arith.mulf %0, %0 : vector<2x32xf32>
    %cst = arith.constant dense<0.000000e+00> : vector<2xf32>
    %3 = vector.multi_reduction <add>, %2, %cst [1] : vector<2x32xf32> to vector<2xf32>
    %4 = vector.shape_cast %3 : vector<2xf32> to vector<2x1xf32>
    %cst_3 = arith.constant 9.99999996E-13 : f32
    %5 = vector.broadcast %cst_3 : f32 to vector<2x1xf32>
    %6 = arith.addf %4, %5 : vector<2x1xf32>
    %7 = math.rsqrt %6 : vector<2x1xf32>
    %8 = vector.broadcast %7 : vector<2x1xf32> to vector<2x32xf32>
    %9 = arith.mulf %0, %8 : vector<2x32xf32>
    %10 = arith.mulf %1, %1 : vector<4x32xf32>
    %cst_4 = arith.constant dense<0.000000e+00> : vector<4xf32>
    %11 = vector.multi_reduction <add>, %10, %cst_4 [1] : vector<4x32xf32> to vector<4xf32>
    %12 = vector.shape_cast %11 : vector<4xf32> to vector<4x1xf32>
    %cst_5 = arith.constant 9.99999996E-13 : f32
    %13 = vector.broadcast %cst_5 : f32 to vector<4x1xf32>
    %14 = arith.addf %12, %13 : vector<4x1xf32>
    %15 = math.rsqrt %14 : vector<4x1xf32>
    %16 = vector.broadcast %15 : vector<4x1xf32> to vector<4x32xf32>
    %17 = arith.mulf %1, %16 : vector<4x32xf32>
    %cst_6 = arith.constant dense<0.000000e+00> : vector<2x4xf32>
    %18 = tpu.matmul %9, %17, %cst_6 {dimension_numbers = #tpu.dot_dimension_numbers<[1], [1], [0], [0], [0, 0, 1, 0], [], []>} : vector<2x32xf32>, vector<4x32xf32>, vector<2x4xf32> -> vector<2x4xf32>
    %c0_7 = arith.constant 0 : index
    %19 = memref.load %arg2[%c0_7] : memref<1xf32, #tpu.memory_space<smem>>
    %20 = vector.broadcast %19 : f32 to vector<2x4xf32>
    %21 = arith.mulf %20, %18 : vector<2x4xf32>
    %c0_8 = arith.constant 0 : index
    %c0_9 = arith.constant 0 : index
    %22 = vector.load %arg3[%c0_8, %c0_9] : memref<2x4xf32, #tpu.memory_space<vmem>>, vector<2x4xf32>
    tpu.vector_store %arg3[%c0_8, %c0_9], %21 {strides = array<i32>} : memref<2x4xf32, #tpu.memory_space<vmem>>, vector<2x4xf32>,
    return
  }
}

</mosaic_0001>

<bundles_post_ra>
// kernel: custom_clip_forward.4
= control target key start
LH: loop header
LB: loop body
LE: loop exit
PB: predicated region body
PF: predicated region fallthrough
CT: control target
= control target key end

     0   :  { %vm323_vm0 = vcmask 261120   ;;  %s758_s1 = inlined_call_operand.vmem [shape: f32[768,32], index: 1, kind: input, shape index: {}]   ;;  %s759_s0 = inlined_call_operand.vmem [shape: f32[8,768], index: 0, kind: input, shape index: {}]   ;;  %s760_s2 = inlined_call_operand.vmem [shape: f32[8,32], index: 2, kind: output, shape index: {}]  }
   0x1   :  { %v48_v0 = vld [vmem:[%s758_s1 + $0xf8] sm:$0xff]  ;;  %v47_v4 = vld [vmem:[%s758_s1 + $0xf0] sm:$0xff]  ;;  %v46_v8 = vld [vmem:[%s758_s1 + $0xe8] sm:$0xff] }
   0x2   :  { %v80_v1 = vld [vmem:[%s758_s1 + $0x1f8] sm:$0xff]  ;;  %329 = vmatprep.subr.mxu0 %v48_v0  ;;  %v79_v5 = vld [vmem:[%s758_s1 + $0x1f0] sm:$0xff]  ;;  %v78_v9 = vld [vmem:[%s758_s1 + $0x1e8] sm:$0xff] }
   0x3   :  { %v32_v2 = vld [vmem:[%s758_s1 + $0x78] sm:$0xff]  ;;  %364 = vmatprep.subr.mxu1 %v80_v1  ;;  %v31_v6 = vld [vmem:[%s758_s1 + $0x70] sm:$0xff]  ;;  %v30_v10 = vld [vmem:[%s758_s1 + $0x68] sm:$0xff] }
   0x4   :  { %v64_v3 = vld [vmem:[%s758_s1 + $0x178] sm:$0xff]  ;;  %330 = vmatpush3.msra.mxu0 %v32_v2  ;;  %v63_v7 = vld [vmem:[%s758_s1 + $0x170] sm:$0xff]  ;;  %v62_v11 = vld [vmem:[%s758_s1 + $0x168] sm:$0xff] }
   0x5   :  { %365 = vmatpush3.msra.mxu1 %v64_v3  ;;  %331 = vmatprep.subr.mxu0 %v47_v4  ;;  %v45_v12 = vld [vmem:[%s758_s1 + $0xe0] sm:$0xff]  ;;  %v44_v16 = vld [vmem:[%s758_s1 + $0xd8] sm:$0xff]  ;;  %v43_v20 = vld [vmem:[%s758_s1 + $0xd0] sm:$0xff] }
   0x6   :  { %366 = vmatprep.subr.mxu1 %v79_v5  ;;  %332 = vmatpush3.msra.mxu0 %v31_v6  ;;  %v77_v13 = vld [vmem:[%s758_s1 + $0x1e0] sm:$0xff]  ;;  %v76_v17 = vld [vmem:[%s758_s1 + $0x1d8] sm:$0xff]  ;;  %v75_v21 = vld [vmem:[%s758_s1 + $0x1d0] sm:$0xff] }
   0x7   :  { %367 = vmatpush3.msra.mxu1 %v63_v7  ;;  %333 = vmatprep.subr.mxu0 %v46_v8  ;;  %v29_v14 = vld [vmem:[%s758_s1 + $0x60] sm:$0xff]  ;;  %v28_v18 = vld [vmem:[%s758_s1 + $0x58] sm:$0xff]  ;;  %v27_v22 = vld [vmem:[%s758_s1 + $0x50] sm:$0xff] }
   0x8   :  { %368 = vmatprep.subr.mxu1 %v78_v9  ;;  %v61_v15 = vld [vmem:[%s758_s1 + $0x160] sm:$0xff]  ;;  %334 = vmatpush3.msra.mxu0 %v30_v10  ;;  %v60_v19 = vld [vmem:[%s758_s1 + $0x158] sm:$0xff]  ;;  %v59_v23 = vld [vmem:[%s758_s1 + $0x150] sm:$0xff] }
   0x9   :  { %369 = vmatpush3.msra.mxu1 %v62_v11  ;;  %335 = vmatprep.subr.mxu0 %v45_v12  ;;  %v42_v24 = vld [vmem:[%s758_s1 + $0xc8] sm:$0xff]  ;;  %v41_v28 = vld [vmem:[%s758_s1 + $0xc0] sm:$0xff]  ;;  %v40_v32 = vld [vmem:[%s758_s1 + $0xb8] sm:$0xff] }
   0xa   :  { %370 = vmatprep.subr.mxu1 %v77_v13  ;;  %336 = vmatpush3.msra.mxu0 %v29_v14  ;;  %v74_v25 = vld [vmem:[%s758_s1 + $0x1c8] sm:$0xff]  ;;  %v73_v29 = vld [vmem:[%s758_s1 + $0x1c0] sm:$0xff]  ;;  %v72_v33 = vld [vmem:[%s758_s1 + $0x1b8] sm:$0xff] }
   0xb   :  { %371 = vmatpush3.msra.mxu1 %v61_v15  ;;  %337 = vmatprep.subr.mxu0 %v44_v16  ;;  %v26_v26 = vld [vmem:[%s758_s1 + $0x48] sm:$0xff]  ;;  %v25_v30 = vld [vmem:[%s758_s1 + $0x40] sm:$0xff]  ;;  %v24_v34 = vld [vmem:[%s758_s1 + $0x38] sm:$0xff] }
   0xc   :  { %372 = vmatprep.subr.mxu1 %v76_v17  ;;  %338 = vmatpush3.msra.mxu0 %v28_v18  ;;  %v58_v27 = vld [vmem:[%s758_s1 + $0x148] sm:$0xff]  ;;  %v57_v31 = vld [vmem:[%s758_s1 + $0x140] sm:$0xff]  ;;  %v56_v35 = vld [vmem:[%s758_s1 + $0x138] sm:$0xff] }
   0xd   :  { %373 = vmatpush3.msra.mxu1 %v60_v19  ;;  %339 = vmatprep.subr.mxu0 %v43_v20  ;;  %v39_v36 = vld [vmem:[%s758_s1 + $0xb0] sm:$0xff]  ;;  %v38_v40 = vld [vmem:[%s758_s1 + $0xa8] sm:$0xff]  ;;  %v37_v44 = vld [vmem:[%s758_s1 + $0xa0] sm:$0xff] }
   0xe   :  { %374 = vmatprep.subr.mxu1 %v75_v21  ;;  %340 = vmatpush3.msra.mxu0 %v27_v22  ;;  %v71_v37 = vld [vmem:[%s758_s1 + $0x1b0] sm:$0xff]  ;;  %v70_v41 = vld [vmem:[%s758_s1 + $0x1a8] sm:$0xff]  ;;  %v69_v45 = vld [vmem:[%s758_s1 + $0x1a0] sm:$0xff] }
   0xf   :  { %375 = vmatpush3.msra.mxu1 %v59_v23  ;;  %341 = vmatprep.subr.mxu0 %v42_v24  ;;  %v23_v38 = vld [vmem:[%s758_s1 + $0x30] sm:$0xff]  ;;  %v22_v42 = vld [vmem:[%s758_s1 + $0x28] sm:$0xff]  ;;  %v21_v46 = vld [vmem:[%s758_s1 + $0x20] sm:$0xff] }
  0x10   :  { %376 = vmatprep.subr.mxu1 %v74_v25  ;;  %342 = vmatpush3.msra.mxu0 %v26_v26  ;;  %v55_v39 = vld [vmem:[%s758_s1 + $0x130] sm:$0xff]  ;;  %v54_v43 = vld [vmem:[%s758_s1 + $0x128] sm:$0xff]  ;;  %v53_v47 = vld [vmem:[%s758_s1 + $0x120] sm:$0xff] }
  0x11   :  { %377 = vmatpush3.msra.mxu1 %v58_v27  ;;  %343 = vmatprep.subr.mxu0 %v41_v28  ;;  %v36_v48 = vld [vmem:[%s758_s1 + $0x98] sm:$0xff]  ;;  %v35_v52 = vld [vmem:[%s758_s1 + $0x90] sm:$0xff]  ;;  %v34_v56 = vld [vmem:[%s758_s1 + $0x88] sm:$0xff] }
  0x12   :  { %378 = vmatprep.subr.mxu1 %v73_v29  ;;  %344 = vmatpush3.msra.mxu0 %v25_v30  ;;  %v68_v49 = vld [vmem:[%s758_s1 + $0x198] sm:$0xff]  ;;  %v67_v53 = vld [vmem:[%s758_s1 + $0x190] sm:$0xff]  ;;  %v66_v57 = vld [vmem:[%s758_s1 + $0x188] sm:$0xff] }
  0x13   :  { %379 = vmatpush3.msra.mxu1 %v57_v31  ;;  %345 = vmatprep.subr.mxu0 %v40_v32  ;;  %v20_v50 = vld [vmem:[%s758_s1 + $0x18] sm:$0xff]  ;;  %v19_v54 = vld [vmem:[%s758_s1 + $0x10] sm:$0xff]  ;;  %v18_v58 = vld [vmem:[%s758_s1 + $0x8] sm:$0xff] }
  0x14   :  { %380 = vmatprep.subr.mxu1 %v72_v33  ;;  %346 = vmatpush3.msra.mxu0 %v24_v34  ;;  %v52_v51 = vld [vmem:[%s758_s1 + $0x118] sm:$0xff]  ;;  %v51_v55 = vld [vmem:[%s758_s1 + $0x110] sm:$0xff]  ;;  %v50_v59 = vld [vmem:[%s758_s1 + $0x108] sm:$0xff] }
  0x15   :  { %381 = vmatpush3.msra.mxu1 %v56_v35  ;;  %347 = vmatprep.subr.mxu0 %v39_v36  ;;  %v33_v60 = vld [vmem:[%s758_s1 + $0x80] sm:$0xff]  ;;  %v12_v63 = vld [vmem:[%s759_s0 + $0x8] sm:$0xff]  ;;  %v14_v1 = vld [vmem:[%s759_s0 + $0x18] sm:$0xff] }
  0x16   :  { %382 = vmatprep.subr.mxu1 %v71_v37  ;;  %348 = vmatpush3.msra.mxu0 %v23_v38  ;;  %v65_v61 = vld [vmem:[%s758_s1 + $0x180] sm:$0xff]  ;;  %v13_v3 = vld [vmem:[%s759_s0 + $0x10] sm:$0xff]  ;;  %v112_v4 = vld [vmem:[%s758_s1 + $0x2f8] sm:$0xff] }
  0x17   :  { %383 = vmatpush3.msra.mxu1 %v55_v39  ;;  %349 = vmatprep.subr.mxu0 %v38_v40  ;;  %v17_v62 = vld [vmem:[%s758_s1] sm:$0xff]  ;;  %v96_v5 = vld [vmem:[%s758_s1 + $0x278] sm:$0xff]  ;;  %v16_v6 = vld [vmem:[%s759_s0 + $0x28] sm:$0xff] }
  0x18   :  { %384 = vmatprep.subr.mxu1 %v70_v41  ;;  %350 = vmatpush3.msra.mxu0 %v22_v42  ;;  %v49_v0 = vld [vmem:[%s758_s1 + $0x100] sm:$0xff]  ;;  %v111_v7 = vld [vmem:[%s758_s1 + $0x2f0] sm:$0xff]  ;;  %v110_v9 = vld [vmem:[%s758_s1 + $0x2e8] sm:$0xff] }
  0x19   :  { %385 = vmatpush3.msra.mxu1 %v54_v43  ;;  %351 = vmatprep.subr.mxu0 %v37_v44  ;;  %v11_v2 = vld [vmem:[%s759_s0] sm:$0xff]  ;;  %v95_v8 = vld [vmem:[%s758_s1 + $0x270] sm:$0xff]  ;;  %v94_v10 = vld [vmem:[%s758_s1 + $0x268] sm:$0xff] }
  0x1a   :  { %386 = vmatprep.subr.mxu1 %v69_v45  ;;  %352 = vmatpush3.msra.mxu0 %v21_v46  ;;  %v109_v11 = vld [vmem:[%s758_s1 + $0x2e0] sm:$0xff]  ;;  %v108_v13 = vld [vmem:[%s758_s1 + $0x2d8] sm:$0xff]  ;;  %v107_v15 = vld [vmem:[%s758_s1 + $0x2d0] sm:$0xff] }
  0x1b   :  { %387 = vmatpush3.msra.mxu1 %v53_v47  ;;  %353 = vmatprep.subr.mxu0 %v36_v48  ;;  %v93_v12 = vld [vmem:[%s758_s1 + $0x260] sm:$0xff]  ;;  %v92_v14 = vld [vmem:[%s758_s1 + $0x258] sm:$0xff]  ;;  %v91_v16 = vld [vmem:[%s758_s1 + $0x250] sm:$0xff] }
  0x1c   :  { %388 = vmatprep.subr.mxu1 %v68_v49  ;;  %354 = vmatpush3.msra.mxu0 %v20_v50  ;;  %v106_v17 = vld [vmem:[%s758_s1 + $0x2c8] sm:$0xff]  ;;  %v105_v19 = vld [vmem:[%s758_s1 + $0x2c0] sm:$0xff]  ;;  %v104_v21 = vld [vmem:[%s758_s1 + $0x2b8] sm:$0xff] }
  0x1d   :  { %389 = vmatpush3.msra.mxu1 %v52_v51  ;;  %355 = vmatprep.subr.mxu0 %v35_v52  ;;  %v90_v18 = vld [vmem:[%s758_s1 + $0x248] sm:$0xff]  ;;  %v89_v20 = vld [vmem:[%s758_s1 + $0x240] sm:$0xff]  ;;  %v88_v22 = vld [vmem:[%s758_s1 + $0x238] sm:$0xff] }
  0x1e   :  { %390 = vmatprep.subr.mxu1 %v67_v53  ;;  %356 = vmatpush3.msra.mxu0 %v19_v54  ;;  %v103_v23 = vld [vmem:[%s758_s1 + $0x2b0] sm:$0xff]  ;;  %v102_v25 = vld [vmem:[%s758_s1 + $0x2a8] sm:$0xff]  ;;  %v101_v27 = vld [vmem:[%s758_s1 + $0x2a0] sm:$0xff] }
  0x1f   :  { %391 = vmatpush3.msra.mxu1 %v51_v55  ;;  %357 = vmatprep.subr.mxu0 %v34_v56  ;;  %v87_v24 = vld [vmem:[%s758_s1 + $0x230] sm:$0xff]  ;;  %v86_v26 = vld [vmem:[%s758_s1 + $0x228] sm:$0xff]  ;;  %v85_v28 = vld [vmem:[%s758_s1 + $0x220] sm:$0xff] }
  0x20   :  { %392 = vmatprep.subr.mxu1 %v66_v57  ;;  %358 = vmatpush3.msra.mxu0 %v18_v58  ;;  %v100_v29 = vld [vmem:[%s758_s1 + $0x298] sm:$0xff]  ;;  %v99_v31 = vld [vmem:[%s758_s1 + $0x290] sm:$0xff]  ;;  %v98_v33 = vld [vmem:[%s758_s1 + $0x288] sm:$0xff] }
  0x21   :  { %393 = vmatpush3.msra.mxu1 %v50_v59  ;;  %359 = vmatprep.subr.mxu0 %v33_v60  ;;  %v84_v30 = vld [vmem:[%s758_s1 + $0x218] sm:$0xff]  ;;  %v83_v32 = vld [vmem:[%s758_s1 + $0x210] sm:$0xff]  ;;  %v82_v34 = vld [vmem:[%s758_s1 + $0x208] sm:$0xff] }
  0x22   :  { %394 = vmatprep.subr.mxu1 %v65_v61  ;;  %360 = vmatpush3.msra.mxu0 %v17_v62  ;;  %v97_v35 = vld [vmem:[%s758_s1 + $0x280] sm:$0xff] }
  0x23   :  { %177 = vmatprep.mubr.f32.mxu0 %v12_v63  ;;  %395 = vmatpush3.msra.mxu1 %v49_v0  ;;  %v81_v36 = vld [vmem:[%s758_s1 + $0x200] sm:$0xff] }
  0x24   :  { %247 = vmatprep.mubr.f32.mxu1 %v14_v1  ;;  %178 = vmatmul.mubr.f32.vlgmr.msra.gmra.mxu0 %v11_v2  ;;  %v15_v37 = vld [vmem:[%s759_s0 + $0x20] sm:$0xff] }
  0x25   :  { %248 = vmatmul.mubr.f32.vlgmr.msra.gmra.mxu1 %v13_v3  ;;  %399 = vmatprep.subr.mxu0 %v112_v4 }
  0x26   :  { %317 = vmatprep.mubr.f32.mxu0 %v16_v6  ;;  %400 = vmatpush3.msra.mxu0 %v96_v5 }
  0x27   :  { %401 = vmatprep.subr.mxu0 %v111_v7 }
  0x28   :  { %402 = vmatpush3.msra.mxu0 %v95_v8 }
  0x29   :  { %403 = vmatprep.subr.mxu0 %v110_v9 }
  0x2a   :  { %404 = vmatpush3.msra.mxu0 %v94_v10 }
  0x2b   :  { %405 = vmatprep.subr.mxu0 %v109_v11 }
  0x2c   :  { %406 = vmatpush3.msra.mxu0 %v93_v12 }
  0x2d   :  { %407 = vmatprep.subr.mxu0 %v108_v13 }
  0x2e   :  { %408 = vmatpush3.msra.mxu0 %v92_v14 }
  0x2f   :  { %409 = vmatprep.subr.mxu0 %v107_v15 }
  0x30   :  { %410 = vmatpush3.msra.mxu0 %v91_v16 }
  0x31   :  { %411 = vmatprep.subr.mxu0 %v106_v17 }
  0x32   :  { %412 = vmatpush3.msra.mxu0 %v90_v18 }
  0x33   :  { %413 = vmatprep.subr.mxu0 %v105_v19 }
  0x34   :  { %414 = vmatpush3.msra.mxu0 %v89_v20 }
  0x35   :  { %415 = vmatprep.subr.mxu0 %v104_v21 }
  0x36   :  { %416 = vmatpush3.msra.mxu0 %v88_v22 }
  0x37   :  { %417 = vmatprep.subr.mxu0 %v103_v23 }
  0x38   :  { %418 = vmatpush3.msra.mxu0 %v87_v24 }
  0x39   :  { %419 = vmatprep.subr.mxu0 %v102_v25 }
  0x3a   :  { %420 = vmatpush3.msra.mxu0 %v86_v26 }
  0x3b   :  { %421 = vmatprep.subr.mxu0 %v101_v27 }
  0x3c   :  { %422 = vmatpush3.msra.mxu0 %v85_v28 }
  0x3d   :  { %423 = vmatprep.subr.mxu0 %v100_v29 }
  0x3e   :  { %424 = vmatpush3.msra.mxu0 %v84_v30 }
  0x3f   :  { %425 = vmatprep.subr.mxu0 %v99_v31 }
  0x40   :  { %426 = vmatpush3.msra.mxu0 %v83_v32 }
  0x41   :  { %427 = vmatprep.subr.mxu0 %v98_v33 }
  0x42   :  { %428 = vmatpush3.msra.mxu0 %v82_v34 }
  0x43   :  { %429 = vmatprep.subr.mxu0 %v97_v35 }
  0x44   :  { %430 = vmatpush3.msra.mxu0 %v81_v36 }
  0x45   :  { %318 = vmatmul.mubr.f32.vlgmr.msra.gmra.mxu0 %v15_v37 }
  0xe4   :  { %v361_v38 = vpop.f32.mrf.mxu0 }
  0xe5   :  { %v396_v39 = vpop.f32.mrf.mxu1 }
  0xe6   :  { %v362_v40 = vpop.f32.mrf.mxu0 }
  0xe7   :  { %v397_v41 = vpop.f32.mrf.mxu1  ;;  %v363_v42 = vadd.f32 %v362_v40, %v361_v38 }
  0xe8   :  { %v398_v43 = vadd.f32 %v397_v41, %v396_v39 }
  0xea   :  { %v250_v46 = vadd.f32 %v398_v43, %v363_v42 }
 0x105   :  { %v431_v44 = vpop.f32.mrf.mxu0 }
 0x107   :  { %v432_v45 = vpop.f32.mrf.mxu0 }
 0x108   :  { %v433_v47 = vadd.f32 %v432_v45, %v431_v44 }
 0x10a   :  { %v320_v48 = vadd.f32 %v433_v47, %v250_v46 }
 0x10c   :  { %324 = vst.msk [vmem:[%s760_s2] sm:$0xff] %vm323_vm0, %v320_v48 }

// kernel: custom_clip_forward.7
= control target key start
LH: loop header
LB: loop body
LE: loop exit
PB: predicated region body
PF: predicated region fallthrough
CT: control target
= control target key end

     0   :  { %vm27_vm0 = vcmask 257024   ;;  %s203_s0 = inlined_call_operand.vmem [shape: f32[2,32], index: 0, kind: input, shape index: {}]   ;;  %s204_s1 = inlined_call_operand.vmem [shape: f32[4,32], index: 1, kind: input, shape index: {}]   ;;  %s205_s2 = inlined_call_operand.<no memory space> [shape: f32[1], index: 2, kind: input, shape index: {}]   ;;  %s206_s3 = inlined_call_operand.hbm [shape: f32[2,4], index: 3, kind: output, shape index: {}]  }
   0x1   :  { %v17_v0 = vld [vmem:[%s204_s1] sm:$0xf] }
   0x2   :  { %v16_v1 = vld [vmem:[%s203_s0] sm:$0x3]  ;;  %v26_v2 = vmul.f32 %v17_v0, %v17_v0 }
   0x3   :  { %v18_v3 = vmul.f32 %v16_v1, %v16_v1 }
   0x4   :  { %9 = vsyncpa [#allocation4], 0  ;;  %vm19_vm1 = vcmask 254976   ;;  %v28_v4 = vsel %vm27_vm0, %v26_v2, 0.0  ;;  %v168_v6 = vmov 0.0   ;;  %vm169_vm2 = vmmov 0  }
   0x5   :  { %29 = vadd.xlane.f32.xlu0 %v28_v4  ;;  %v20_v5 = vsel %vm19_vm1, %v18_v3, 0.0  ;;  %134 = vmatprep.subr.mxu0 %v168_v6  ;;  %vm34_vm3 = vcmask 261120   ;;  %v112_v15 = vstv %s205_s2  ;;  %s170_s16 = smov [#allocation3]   ;;  %vm114_vm4 = vcmask 25600  }
   0x6   :  { %136 = vmatprep.mubr.msk.f32.mxu0 %vm169_vm2, %v168_v6  ;;  %s122_s17 = sshll.u32 %s170_s16, 4  ;;  %s123_s17 = int_to_ptr.vmem [resolvable:$true] %s122_s17 }
   0x7   :  { %s146_s18 = scalar_lea.vmem %s123_s17, 32  ;;  %p151_p1 = scmp.lt.s32.totalorder %s123_s17, %s123_s17 }
   0x8   :  { %p147_p0 = scmp.ne.s32.totalorder %s123_s17, %s146_s18  ;;  %p152_p2 = scmp.lt.s32.totalorder %s146_s18, %s146_s18 }
   0x9   :  { %21 = vadd.xlane.f32.xlu0 %v20_v5 }
   0xa   :  { %p153_p3 = por %p152_p2, %p151_p1 }
   0xc   :  { %p154_p4 = pnand %p153_p3, %p147_p0 }
  0x8e   :  { %v30_v7 = vpop.xlane.xlu0 %29 }
  0x8f   :  { %v31_v8 = vadd.f32 1e-12, %v30_v7 }
  0x91   :  { %142 = vrsqrt.f32 %v31_v8 }
  0x92   :  { %v22_v9 = vpop.xlane.xlu0 %21 }
  0x93   :  { %v23_v10 = vadd.f32 1e-12, %v22_v9 }
  0x95   :  { %144 = vrsqrt.f32 %v23_v10 }
  0x9e   :  { %v143_v11 = vpop.eup %142 }
  0x9f   :  { %v33_v12 = vmul.f32 %v143_v11, %v17_v0 }
  0xa1   :  { %135 = vmatpush3.xpose.msk.msra.mxu0 %vm34_vm3, %v33_v12 }
  0xa2   :  { %v145_v13 = vpop.eup %144 }
  0xa3   :  { %v25_v14 = vmul.f32 %v145_v13, %v16_v1 }
  0xa5   :  { %137 = vmatmul.mubr.msk.f32.vlgmr.msra.gmra.mxu0 %vm34_vm3, %v25_v14 }
 0x165   :  { %v107_v16 = vpop.f32.mrf.mxu0 }
 0x166   :  { %v113_v17 = vmul.f32 %v112_v15, %v107_v16 }
 0x167   :  { %v138_v18 = vpop.f32.mrf.mxu0 }
 0x168   :  { %115 = vst.msk [vmem:[#allocation3] sm:$0x3] %vm114_vm4, %v113_v17 }
 0x169   :  { %157 = shalt.err (!%p154_p4)
}
 0x16a   :  { %125 = dma.vmem_to_hbm [thread:$0]  %s123_s17, 32, %s206_s3, [#allocation4]  }
 0x16b   :  { %166 = dma.done.wait [#allocation4], 32  }
 0x16c   :  { %167 = vsyncadd [#allocation4], 4294967264 }
 0x16d   :  { %129 = vsyncpa [#allocation4], 1 }

// kernel: custom_clip_forward.5
= control target key start
LH: loop header
LB: loop body
LE: loop exit
PB: predicated region body
PF: predicated region fallthrough
CT: control target
= control target key end

     0   :  { %vm87_vm0 = vcmask 261120   ;;  %vm91_vm1 = vcmask 254976   ;;  %vm948_vm2 = vcmask 1041408   ;;  %vm848_vm3 = vcmask 74752   ;;  %s4760_s0 = inlined_call_operand.vmem [shape: f32[10,32], index: 0, kind: input, shape index: {}]   ;;  %s4761_s3 = inlined_call_operand.vmem [shape: f32[1,32], index: 3, kind: input, shape index: {}]   ;;  %s4762_s4 = inlined_call_operand.vmem [shape: f32[1,32], index: 4, kind: input, shape index: {}]   ;;  %s4763_s7 = inlined_call_operand.vmem [shape: f32[2,32,32], index: 7, kind: input, shape index: {}]   ;;  %s4764_s11 = inlined_call_operand.vmem [shape: f32[2,32,32], index: 11, kind: input, shape index: {}]   ;;  %s4765_s9 = inlined_call_operand.vmem [shape: f32[2,32,32], index: 9, kind: input, shape index: {}]   ;;  %s4766_s5 = inlined_call_operand.vmem [shape: f32[2,1,32], index: 5, kind: input, shape index: {}]   ;;  %s4767_s6 = inlined_call_operand.vmem [shape: f32[2,1,32], index: 6, kind: input, shape index: {}]   ;;  %s4768_s8 = inlined_call_operand.vmem [shape: f32[2,1,32], index: 8, kind: input, shape index: {}]   ;;  %s4769_s2 = inlined_call_operand.vmem [shape: f32[4,1,32], index: 2, kind: input, shape index: {}]   ;;  %s4770_s10 = inlined_call_operand.vmem [shape: f32[2,1,32], index: 10, kind: input, shape index: {}]   ;;  %s4771_s12 = inlined_call_operand.vmem [shape: f32[2,1,32], index: 12, kind: input, shape index: {}]   ;;  %s4772_s1 = inlined_call_operand.vmem [shape: f32[10,10], index: 1, kind: input, shape index: {}]   ;;  %s4773_s13 = inlined_call_operand.vmem [shape: f32[2,32,32], index: 13, kind: input, shape index: {}]   ;;  %s4774_s14 = inlined_call_operand.vmem [shape: f32[2,1,32], index: 14, kind: input, shape index: {}]   ;;  %s4775_s17 = inlined_call_operand.vmem [shape: f32[2,32,128], index: 17, kind: input, shape index: {}]   ;;  %s4776_s15 = inlined_call_operand.vmem [shape: f32[2,1,32], index: 15, kind: input, shape index: {}]   ;;  %s4777_s16 = inlined_call_operand.vmem [shape: f32[2,1,32], index: 16, kind: input, shape index: {}]   ;;  %s4778_s19 = inlined_call_operand.vmem [shape: f32[2,128,32], index: 19, kind: input, shape index: {}]   ;;  %s4779_s18 = inlined_call_operand.vmem [shape: f32[2,1,128], index: 18, kind: input, shape index: {}]   ;;  %s4780_s20 = inlined_call_operand.vmem [shape: f32[2,1,32], index: 20, kind: input, shape index: {}]   ;;  %s4781_s23 = inlined_call_operand.vmem [shape: f32[32,32], index: 23, kind: input, shape index: {}]   ;;  %s4782_s21 = inlined_call_operand.vmem [shape: f32[1,32], index: 21, kind: input, shape index: {}]   ;;  %s4783_s22 = inlined_call_operand.vmem [shape: f32[1,32], index: 22, kind: input, shape index: {}]   ;;  %s4784_s24 = inlined_call_operand.vmem [shape: f32[10,32], index: 24, kind: output, shape index: {}]  }
   0x1   :  { %4792 = sst [smem:[#allocation2_spill]] %s4760_s0  ;;  %vm844_vm4 = vcmask 80896  }
   0x2   :  { %4793 = sst [smem:[#allocation3_spill]] %s4761_s3 }
   0x3   :  { %4794 = sst [smem:[#allocation4_spill]] %s4762_s4 }
   0x4   :  { %4795 = sst [smem:[#allocation5_spill]] %s4763_s7 }
   0x5   :  { %4796 = sst [smem:[#allocation6_spill]] %s4764_s11 }
   0x6   :  { %4797 = sst [smem:[#allocation7_spill]] %s4765_s9 }
   0x7   :  { %4798 = sst [smem:[#allocation8_spill]] %s4766_s5 }
   0x8   :  { %4799 = sst [smem:[#allocation9_spill]] %s4767_s6 }
   0x9   :  { %4800 = sst [smem:[#allocation10_spill]] %s4768_s8 }
   0xa   :  { %s4801_s27 = sld [smem:[#allocation2_spill]] }
   0xb   :  { %s4802_s0 = sld [smem:[#allocation3_spill]] }
   0xc   :  { %s4803_s7 = sld [smem:[#allocation4_spill]] }
   0xd   :  { %s4804_s11 = sld [smem:[#allocation5_spill]] }
   0xe   :  { %s4805_s26 = sld [smem:[#allocation6_spill]] }
   0xf   :  { %s4806_s28 = sld [smem:[#allocation7_spill]] }
  0x10   :  { %v77_v0 = vld [vmem:[%s4801_s27] sm:$0xff]  ;;  %v78_v1 = vld [vmem:[%s4801_s27 + $0x8] sm:$0x3]  ;;  %s4807_s29 = sld [smem:[#allocation8_spill]] }
  0x11   :  { %v88_v2 = vsel %vm87_vm0, %v77_v0, 0.0  ;;  %v92_v3 = vsel %vm91_vm1, %v78_v1, 0.0  ;;  %v3258_v21 = vld [vmem:[%s4802_s0] ss:$0 sm:$0xff]  ;;  %s4808_s30 = sld [smem:[#allocation9_spill]] }
  0x12   :  { %89 = vadd.xlane.f32.xlu0 %v88_v2  ;;  %v3259_v23 = vld [vmem:[%s4803_s7] ss:$0 sm:$0xff]  ;;  %s4809_s0 = sld [smem:[#allocation10_spill]] }
  0x13   :  { %v179_v42 = vld [vmem:[%s4804_s11 + $0x18] sm:$0xff]  ;;  %v178_v44 = vld [vmem:[%s4804_s11 + $0x10] sm:$0xff]  ;;  %v177_v46 = vld [vmem:[%s4804_s11 + $0x8] sm:$0xff] }
  0x14   :  { %v357_v43 = vld [vmem:[%s4805_s26 + $0x18] sm:$0xff]  ;;  %3580 = vmatprep.subr.mxu1 %v179_v42  ;;  %v356_v45 = vld [vmem:[%s4805_s26 + $0x10] sm:$0xff]  ;;  %v355_v47 = vld [vmem:[%s4805_s26 + $0x8] sm:$0xff] }
  0x15   :  { %3602 = vmatprep.subr.mxu0 %v357_v43  ;;  %3581 = vmatpush3.msra.mxu1 %v179_v42  ;;  %v176_v48 = vld [vmem:[%s4804_s11] sm:$0xff]  ;;  %v271_v50 = vld [vmem:[%s4806_s28 + $0x18] sm:$0xff] }
  0x16   :  { %93 = vadd.xlane.f32.xlu0 %v92_v3  ;;  %3603 = vmatpush3.msra.mxu0 %v357_v43  ;;  %v354_v49 = vld [vmem:[%s4805_s26] sm:$0xff]  ;;  %v270_v3 = vld [vmem:[%s4806_s28 + $0x10] sm:$0xff] }
  0x17   :  { %3582 = vmatprep.subr.mxu1 %v178_v44  ;;  %3604 = vmatprep.subr.mxu0 %v356_v45  ;;  %v3260_v58 = vld [vmem:[%s4807_s29] ss:$0 sm:$0xff] }
  0x18   :  { %3583 = vmatpush3.msra.mxu1 %v178_v44  ;;  %3605 = vmatpush3.msra.mxu0 %v356_v45  ;;  %v3261_v60 = vld [vmem:[%s4808_s30] ss:$0 sm:$0xff] }
  0x19   :  { %3584 = vmatprep.subr.mxu1 %v177_v46  ;;  %3606 = vmatprep.subr.mxu0 %v355_v47 }
  0x1a   :  { %3585 = vmatpush3.msra.mxu1 %v177_v46  ;;  %3607 = vmatpush3.msra.mxu0 %v355_v47 }
  0x1b   :  { %3586 = vmatprep.subr.mxu1 %v176_v48  ;;  %3608 = vmatprep.subr.mxu0 %v354_v49 }
  0x1c   :  { %3587 = vmatpush3.msra.mxu1 %v176_v48  ;;  %3609 = vmatpush3.msra.mxu0 %v354_v49  ;;  %v4279_v48 = vld [vmem:[%s4772_s1 + $0x8] sm:$0x3] }
  0x1d   :  { %3591 = vmatprep.subr.mxu1 %v271_v50 }
  0x9b   :  { %v90_v4 = vpop.xlane.xlu0 %89 }
  0x9c   :  { %v96_v5 = vmul.f32 0.03125, %v90_v4  ;;  %v269_v4 = vld [vmem:[%s4806_s28 + $0x8] sm:$0xff] }
  0x9e   :  { %v98_v6 = vsub.f32 %v77_v0, %v96_v5  ;;  %v268_v5 = vld [vmem:[%s4806_s28] sm:$0xff] }
  0x9f   :  { %v94_v7 = vpop.xlane.xlu0 %93 }
  0xa0   :  { %v97_v8 = vmul.f32 0.03125, %v94_v7  ;;  %v100_v9 = vmul.f32 %v98_v6, %v98_v6 }
  0xa2   :  { %v99_v10 = vsub.f32 %v78_v1, %v97_v8  ;;  %v102_v11 = vsel %vm87_vm0, %v100_v9, 0.0  ;;  %v3262_v8 = vld [vmem:[%s4809_s0] ss:$0 sm:$0xff] }
  0xa3   :  { %103 = vadd.xlane.f32.xlu1 %v102_v11  ;;  %v4202_v11 = vld [vmem:[%s4769_s2 + $0x1] ss:$0 sm:$0xff] }
  0xa4   :  { %v101_v12 = vmul.f32 %v99_v10, %v99_v10 }
  0xa6   :  { %v105_v13 = vsel %vm91_vm1, %v101_v12, 0.0  ;;  %v3265_v12 = vld [vmem:[%s4770_s10] ss:$0 sm:$0xff] }
  0xa7   :  { %106 = vadd.xlane.f32.xlu1 %v105_v13 }
 0x12c   :  { %v104_v14 = vpop.xlane.xlu1 %103 }
 0x12d   :  { %v108_v15 = vmul.f32 0.03125, %v104_v14 }
 0x12f   :  { %v110_v16 = vadd.f32 1e-05, %v108_v15 }
 0x130   :  { %v107_v17 = vpop.xlane.xlu1 %106 }
 0x131   :  { %3883 = vrsqrt.f32 %v110_v16  ;;  %v109_v18 = vmul.f32 0.03125, %v107_v17 }
 0x133   :  { %v111_v19 = vadd.f32 1e-05, %v109_v18 }
 0x135   :  { %3885 = vrsqrt.f32 %v111_v19 }
 0x13e   :  { %v3884_v20 = vpop.eup %3883 }
 0x13f   :  { %v114_v22 = vmul.f32 %v3884_v20, %v98_v6 }
 0x141   :  { %v122_v24 = vmul.f32 %v3258_v21, %v114_v22 }
 0x142   :  { %v3886_v25 = vpop.eup %3885 }
 0x143   :  { %v4131_v26 = vadd.f32 %v3259_v23, %v122_v24  ;;  %v115_v27 = vmul.f32 %v3886_v25, %v99_v10  ;;  %v4197_v10 = vld [vmem:[%s4769_s2] ss:$0 sm:$0xff]  ;;  %v4224_v24 = vld [vmem:[%s4769_s2 + $0x2] ss:$0 sm:$0xff]  ;;  %v4229_v25 = vld [vmem:[%s4769_s2 + $0x3] ss:$0 sm:$0xff] }
 0x145   :  { %v134_v28 = vsel %vm87_vm0, %v4131_v26, 0.0  ;;  %v123_v29 = vmul.f32 %v3258_v21, %v115_v27 }
 0x146   :  { %135 = vadd.xlane.f32.xlu0 %v134_v28 }
 0x147   :  { %v4135_v30 = vadd.f32 %v3259_v23, %v123_v29 }
 0x149   :  { %v137_v31 = vsel %vm91_vm1, %v4135_v30, 0.0 }
 0x14a   :  { %138 = vadd.xlane.f32.xlu1 %v137_v31  ;;  %v3268_v31 = vld [vmem:[%s4771_s12] ss:$0 sm:$0xff] }
 0x1cf   :  { %v136_v32 = vpop.xlane.xlu0 %135 }
 0x1d0   :  { %v140_v33 = vmul.f32 0.03125, %v136_v32 }
 0x1d2   :  { %v142_v34 = vsub.f32 %v4131_v26, %v140_v33 }
 0x1d3   :  { %v139_v35 = vpop.xlane.xlu1 %138 }
 0x1d4   :  { %v141_v36 = vmul.f32 0.03125, %v139_v35  ;;  %v144_v37 = vmul.f32 %v142_v34, %v142_v34 }
 0x1d6   :  { %v143_v38 = vsub.f32 %v4135_v30, %v141_v36  ;;  %v146_v39 = vsel %vm87_vm0, %v144_v37, 0.0 }
 0x1d7   :  { %147 = vadd.xlane.f32.xlu0 %v146_v39 }
 0x1d8   :  { %v145_v40 = vmul.f32 %v143_v38, %v143_v38 }
 0x1da   :  { %v149_v41 = vsel %vm91_vm1, %v145_v40, 0.0 }
 0x1db   :  { %150 = vadd.xlane.f32.xlu1 %v149_v41 }
 0x260   :  { %v148_v51 = vpop.xlane.xlu0 %147 }
 0x261   :  { %v152_v52 = vmul.f32 0.03125, %v148_v51 }
 0x263   :  { %v154_v53 = vadd.f32 1e-05, %v152_v52 }
 0x264   :  { %v151_v54 = vpop.xlane.xlu1 %150 }
 0x265   :  { %3887 = vrsqrt.f32 %v154_v53  ;;  %v153_v55 = vmul.f32 0.03125, %v151_v54  ;;  %v4284_v53 = vld [vmem:[%s4772_s1] sm:$0xff] }
 0x267   :  { %v155_v56 = vadd.f32 1e-05, %v153_v55 }
 0x269   :  { %3889 = vrsqrt.f32 %v155_v56 }
 0x272   :  { %v3888_v57 = vpop.eup %3887 }
 0x273   :  { %v158_v59 = vmul.f32 %v3888_v57, %v142_v34 }
 0x275   :  { %v166_v61 = vmul.f32 %v3260_v58, %v158_v59 }
 0x276   :  { %v3890_v62 = vpop.eup %3889 }
 0x277   :  { %v159_v63 = vmul.f32 %v3890_v62, %v143_v38  ;;  %v174_v0 = vadd.f32 %v3261_v60, %v166_v61 }
 0x279   :  { %v167_v1 = vmul.f32 %v3260_v58, %v159_v63  ;;  %3588 = vmatprep.mubr.msk.f32.mxu1 %vm87_vm0, %v174_v0  ;;  %3610 = vmatprep.mubr.msk.f32.mxu0 %vm87_vm0, %v174_v0 }
 0x27b   :  { %v175_v2 = vadd.f32 %v3261_v60, %v167_v1 }
 0x27d   :  { %3589 = vmatmul.mubr.msk.f32.vlgmr.msra.gmra.mxu1 %vm87_vm0, %v175_v2  ;;  %3611 = vmatmul.mubr.msk.f32.vlgmr.msra.gmra.mxu0 %vm87_vm0, %v175_v2 }
 0x27e   :  { %3592 = vmatpush3.msra.mxu1 %v271_v50  ;;  %3599 = vmatprep.mubr.msk.f32.mxu1 %vm87_vm0, %v174_v0 }
 0x27f   :  { %3593 = vmatprep.subr.mxu1 %v270_v3 }
 0x280   :  { %3594 = vmatpush3.msra.mxu1 %v270_v3 }
 0x281   :  { %3595 = vmatprep.subr.mxu1 %v269_v4 }
 0x282   :  { %3596 = vmatpush3.msra.mxu1 %v269_v4 }
 0x283   :  { %3597 = vmatprep.subr.mxu1 %v268_v5 }
 0x284   :  { %3598 = vmatpush3.msra.mxu1 %v268_v5 }
 0x285   :  { %3600 = vmatmul.mubr.msk.f32.vlgmr.msra.gmra.mxu1 %vm87_vm0, %v175_v2 }
 0x33d   :  { %v3590_v6 = vpop.f32.mrf.mxu1  ;;  %v3612_v29 = vpop.f32.mrf.mxu0 }
 0x33e   :  { %v265_v23 = vadd.f32 %v3590_v6, %v3262_v8  ;;  %v4243_v35 = vadd.f32 %v3612_v29, %v3268_v31 }
 0x33f   :  { %v259_v7 = vpop.f32.mrf.mxu1  ;;  %v431_v37 = vpop.f32.mrf.mxu0 }
 0x340   :  { %v260_v9 = vadd.f32 %v3262_v8, %v259_v7  ;;  %v465_v32 = vmul.f32 %v4197_v10, %v265_v23  ;;  %v467_v33 = vmul.f32 %v4202_v11, %v265_v23  ;;  %v4256_v40 = vadd.f32 %v3268_v31, %v431_v37 }
 0x341   :  { %v935_v41 = vmul.f32 %v4197_v10, %v4243_v35  ;;  %v469_v42 = vmul.f32 %v4224_v24, %v265_v23  ;;  %v471_v43 = vmul.f32 %v4229_v25, %v265_v23  ;;  %v4272_v45 = vmul.f32 %v4202_v11, %v4243_v35 }
 0x342   :  { %v464_v13 = vmul.f32 %v4197_v10, %v260_v9  ;;  %v466_v14 = vmul.f32 %v4202_v11, %v260_v9  ;;  %v468_v34 = vmul.f32 %v4224_v24, %v260_v9  ;;  %v470_v36 = vmul.f32 %v4229_v25, %v260_v9 }
 0x343   :  { %v934_v44 = vmul.f32 %v4197_v10, %v4256_v40 }
 0x344   :  { %3617 = vmatprep.mubr.msk.f32.mxu1 %vm87_vm0, %v464_v13  ;;  %3624 = vmatprep.mubr.msk.f32.mxu0 %vm87_vm0, %v466_v14 }
 0x345   :  { %v3601_v15 = vpop.f32.mrf.mxu1 }
 0x346   :  { %v351_v16 = vadd.f32 %v3601_v15, %v3265_v12 }
 0x347   :  { %v345_v17 = vpop.f32.mrf.mxu1 }
 0x348   :  { %v346_v18 = vadd.f32 %v3265_v12, %v345_v17  ;;  %v473_v19 = vmul.f32 %v4197_v10, %v351_v16  ;;  %v475_v20 = vmul.f32 %v4202_v11, %v351_v16  ;;  %v477_v27 = vmul.f32 %v4224_v24, %v351_v16 }
 0x349   :  { %v479_v28 = vmul.f32 %v4229_v25, %v351_v16 }
 0x34a   :  { %3613 = vmatprep.subr.msk.mxu1 %vm87_vm0, %v473_v19  ;;  %3620 = vmatprep.subr.msk.mxu0 %vm87_vm0, %v475_v20  ;;  %v472_v21 = vmul.f32 %v4197_v10, %v346_v18  ;;  %v474_v22 = vmul.f32 %v4202_v11, %v346_v18  ;;  %v476_v38 = vmul.f32 %v4224_v24, %v346_v18 }
 0x34b   :  { %3614 = vmatpush3.xpose.msk.msra.mxu1 %vm87_vm0, %v473_v19  ;;  %3621 = vmatpush3.xpose.msk.msra.mxu0 %vm87_vm0, %v475_v20  ;;  %v478_v39 = vmul.f32 %v4229_v25, %v346_v18 }
 0x34c   :  { %3615 = vmatprep.subr.msk.mxu1 %vm87_vm0, %v472_v21  ;;  %3622 = vmatprep.subr.msk.mxu0 %vm87_vm0, %v474_v22 }
 0x34f   :  { %3616 = vmatpush3.xpose.msk.msra.mxu1 %vm87_vm0, %v472_v21  ;;  %3623 = vmatpush3.xpose.msk.msra.mxu0 %vm87_vm0, %v474_v22 }
 0x350   :  { %3627 = vmatprep.subr.msk.mxu1 %vm87_vm0, %v477_v27  ;;  %3634 = vmatprep.subr.msk.mxu0 %vm87_vm0, %v479_v28 }
 0x352   :  { %3618 = vmatmul.mubr.msk.f32.vlgmr.msra.gmra.mxu1 %vm87_vm0, %v465_v32  ;;  %3625 = vmatmul.mubr.msk.f32.vlgmr.msra.gmra.mxu0 %vm87_vm0, %v467_v33 }
 0x353   :  { %3628 = vmatpush3.xpose.msk.msra.mxu1 %vm87_vm0, %v477_v27  ;;  %3631 = vmatprep.mubr.msk.f32.mxu1 %vm87_vm0, %v468_v34 }
 0x354   :  { %3635 = vmatpush3.xpose.msk.msra.mxu0 %vm87_vm0, %v479_v28  ;;  %3638 = vmatprep.mubr.msk.f32.mxu0 %vm87_vm0, %v470_v36 }
 0x355   :  { %3629 = vmatprep.subr.msk.mxu1 %vm87_vm0, %v476_v38  ;;  %3636 = vmatprep.subr.msk.mxu0 %vm87_vm0, %v478_v39 }
 0x357   :  { %3630 = vmatpush3.xpose.msk.msra.mxu1 %vm87_vm0, %v476_v38 }
 0x358   :  { %3637 = vmatpush3.xpose.msk.msra.mxu0 %vm87_vm0, %v478_v39  ;;  %3641 = vmatprep.subr.msk.mxu1 %vm948_vm2, %v935_v41 }
 0x35a   :  { %3632 = vmatmul.mubr.msk.f32.vlgmr.msra.gmra.mxu1 %vm87_vm0, %v469_v42 }
 0x35b   :  { %3639 = vmatmul.mubr.msk.f32.vlgmr.msra.gmra.mxu0 %vm87_vm0, %v471_v43  ;;  %3642 = vmatpush3.msk.msra.mxu1 %vm948_vm2, %v935_v41 }
 0x35c   :  { %3643 = vmatprep.subr.mxu1 %v934_v44 }
 0x35d   :  { %3644 = vmatpush3.msra.mxu1 %v934_v44 }
 0x35e   :  { %3648 = vmatprep.subr.msk.mxu1 %vm948_vm2, %v4272_v45 }
 0x412   :  { %v3619_v46 = vpop.f32.mrf.mxu1  ;;  %v3626_v47 = vpop.f32.mrf.mxu0 }
 0x413   :  { %v829_v49 = vmul.f32 0.35355338, %v3619_v46  ;;  %v831_v50 = vmul.f32 0.35355338, %v3626_v47 }
 0x414   :  { %v558_v51 = vpop.f32.mrf.mxu1  ;;  %v645_v52 = vpop.f32.mrf.mxu0 }
 0x415   :  { %v828_v54 = vmul.f32 0.35355338, %v558_v51  ;;  %v830_v55 = vmul.f32 0.35355338, %v645_v52  ;;  %v837_v56 = vadd.f32 %v829_v49, %v4279_v48  ;;  %v839_v59 = vadd.f32 %v831_v50, %v4279_v48 }
 0x417   :  { %v849_v57 = vsel %vm848_vm3, %v837_v56, -inf  ;;  %v836_v58 = vadd.f32 %v828_v54, %v4284_v53  ;;  %v838_v61 = vadd.f32 %v830_v55, %v4284_v53  ;;  %v855_v1 = vsel %vm848_vm3, %v839_v59, -inf }
 0x418   :  { %850 = vmax.xlane.f32.xlu1 %v849_v57 }
 0x419   :  { %v845_v60 = vsel %vm844_vm4, %v836_v58, -inf  ;;  %v852_v6 = vsel %vm844_vm4, %v838_v61, -inf }
 0x41a   :  { %846 = vmax.xlane.f32.xlu0 %v845_v60  ;;  %v3633_v62 = vpop.f32.mrf.mxu1 }
 0x41b   :  { %v3640_v63 = vpop.f32.mrf.mxu0  ;;  %v833_v0 = vmul.f32 0.35355338, %v3633_v62 }
 0x41c   :  { %v835_v2 = vmul.f32 0.35355338, %v3640_v63  ;;  %856 = vmax.xlane.f32.xlu1 %v855_v1  ;;  %v732_v3 = vpop.f32.mrf.mxu1 }
 0x41d   :  { %v819_v4 = vpop.f32.mrf.mxu0  ;;  %v832_v5 = vmul.f32 0.35355338, %v732_v3  ;;  %v841_v7 = vadd.f32 %v833_v0, %v4279_v48 }
 0x41e   :  { %v834_v8 = vmul.f32 0.35355338, %v819_v4  ;;  %853 = vmax.xlane.f32.xlu0 %v852_v6  ;;  %v843_v13 = vadd.f32 %v835_v2, %v4279_v48 }
 0x41f   :  { %v861_v9 = vsel %vm848_vm3, %v841_v7, -inf  ;;  %v840_v12 = vadd.f32 %v832_v5, %v4284_v53 }
 0x420   :  { %862 = vmax.xlane.f32.xlu1 %v861_v9  ;;  %v842_v15 = vadd.f32 %v834_v8, %v4284_v53  ;;  %v867_v16 = vsel %vm848_vm3, %v843_v13, -inf }
 0x421   :  { %v858_v14 = vsel %vm844_vm4, %v840_v12, -inf }
 0x422   :  { %859 = vmax.xlane.f32.xlu0 %v858_v14  ;;  %v864_v17 = vsel %vm844_vm4, %v842_v15, -inf }
 0x424   :  { %868 = vmax.xlane.f32.xlu1 %v867_v16 }
 0x426   :  { %865 = vmax.xlane.f32.xlu0 %v864_v17 }
 0x4a1   :  { %v851_v18 = vpop.xlane.xlu1 %850 }
 0x4a2   :  { %v871_v19 = vsub.f32 %v837_v56, %v851_v18 }
 0x4a3   :  { %v847_v20 = vpop.xlane.xlu0 %846 }
 0x4a4   :  { %v880_v21 = vmul.f32 1.442695, %v871_v19  ;;  %v870_v22 = vsub.f32 %v836_v58, %v847_v20  ;;  %v936_v19 = vmul.f32 %v4202_v11, %v4256_v40 }
 0x4a5   :  { %v857_v23 = vpop.xlane.xlu1 %856 }
 0x4a6   :  { %3891 = vpow2.f32 %v880_v21  ;;  %v878_v27 = vmul.f32 1.442695, %v870_v22  ;;  %v873_v28 = vsub.f32 %v839_v59, %v857_v23  ;;  %v939_v21 = vmul.f32 %v4224_v24, %v4243_v35 }
 0x4a7   :  { %v854_v29 = vpop.xlane.xlu0 %853 }
 0x4a8   :  { %3893 = vpow2.f32 %v878_v27  ;;  %v884_v31 = vmul.f32 1.442695, %v873_v28  ;;  %v872_v32 = vsub.f32 %v838_v61, %v854_v29  ;;  %v938_v28 = vmul.f32 %v4224_v24, %v4256_v40 }
 0x4a9   :  { %v863_v33 = vpop.xlane.xlu1 %862  ;;  %v941_v29 = vmul.f32 %v4229_v25, %v4243_v35  ;;  %v1288_v35 = vld [vmem:[%s4773_s13 + $0x18] sm:$0xff] }
 0x4aa   :  { %3895 = vpow2.f32 %v884_v31  ;;  %v882_v34 = vmul.f32 1.442695, %v872_v32  ;;  %v875_v36 = vsub.f32 %v841_v7, %v863_v33  ;;  %3669 = vmatprep.subr.mxu0 %v1288_v35 }
 0x4ab   :  { %v860_v37 = vpop.xlane.xlu0 %859  ;;  %3670 = vmatpush3.msra.mxu0 %v1288_v35  ;;  %v1547_v35 = vld [vmem:[%s4778_s19 + $0x70] sm:$0xff] }
 0x4ac   :  { %3897 = vpow2.f32 %v882_v34  ;;  %v888_v38 = vmul.f32 1.442695, %v875_v36  ;;  %v874_v39 = vsub.f32 %v840_v12, %v860_v37  ;;  %v940_v34 = vmul.f32 %v4229_v25, %v4256_v40  ;;  %v1287_v40 = vld [vmem:[%s4773_s13 + $0x10] sm:$0xff] }
 0x4ad   :  { %v869_v41 = vpop.xlane.xlu1 %868  ;;  %3671 = vmatprep.subr.mxu0 %v1287_v40 }
 0x4ae   :  { %3899 = vpow2.f32 %v888_v38  ;;  %v886_v42 = vmul.f32 1.442695, %v874_v39  ;;  %v877_v43 = vsub.f32 %v843_v13, %v869_v41  ;;  %3672 = vmatpush3.msra.mxu0 %v1287_v40  ;;  %v1286_v38 = vld [vmem:[%s4773_s13 + $0x8] sm:$0xff]  ;;  %v1285_v39 = vld [vmem:[%s4773_s13] sm:$0xff] }
 0x4af   :  { %v866_v44 = vpop.xlane.xlu0 %865  ;;  %3673 = vmatprep.subr.mxu0 %v1286_v38  ;;  %v1546_v40 = vld [vmem:[%s4778_s19 + $0x68] sm:$0xff] }
 0x4b0   :  { %3901 = vpow2.f32 %v886_v42  ;;  %v892_v46 = vmul.f32 1.442695, %v877_v43  ;;  %v876_v47 = vsub.f32 %v842_v15, %v866_v44  ;;  %3674 = vmatpush3.msra.mxu0 %v1286_v38  ;;  %v1545_v38 = vld [vmem:[%s4778_s19 + $0x60] sm:$0xff] }
 0x4b1   :  { %3675 = vmatprep.subr.mxu0 %v1285_v39 }
 0x4b2   :  { %3903 = vpow2.f32 %v892_v46  ;;  %v890_v49 = vmul.f32 1.442695, %v876_v47  ;;  %3676 = vmatpush3.msra.mxu0 %v1285_v39  ;;  %v1544_v39 = vld [vmem:[%s4778_s19 + $0x58] sm:$0xff] }
 0x4b3   :  { %v3892_v50 = vpop.eup %3891 }
 0x4b4   :  { %3905 = vpow2.f32 %v890_v49  ;;  %v897_v51 = vsel %vm848_vm3, %v3892_v50, 0.0 }
 0x4b5   :  { %v3894_v52 = vpop.eup %3893  ;;  %898 = vadd.xlane.f32.xlu1 %v897_v51 }
 0x4b6   :  { %v894_v54 = vsel %vm844_vm4, %v3894_v52, 0.0 }
 0x4b7   :  { %v3896_v55 = vpop.eup %3895  ;;  %895 = vadd.xlane.f32.xlu0 %v894_v54 }
 0x4b8   :  { %v903_v56 = vsel %vm848_vm3, %v3896_v55, 0.0 }
 0x4b9   :  { %v3898_v57 = vpop.eup %3897  ;;  %904 = vadd.xlane.f32.xlu1 %v903_v56 }
 0x4ba   :  { %v900_v58 = vsel %vm844_vm4, %v3898_v57, 0.0 }
 0x4bb   :  { %v3900_v59 = vpop.eup %3899  ;;  %901 = vadd.xlane.f32.xlu0 %v900_v58 }
 0x4bc   :  { %v909_v60 = vsel %vm848_vm3, %v3900_v59, 0.0 }
 0x4bd   :  { %v3902_v61 = vpop.eup %3901  ;;  %910 = vadd.xlane.f32.xlu1 %v909_v60 }
 0x4be   :  { %v906_v62 = vsel %vm844_vm4, %v3902_v61, 0.0 }
 0x4bf   :  { %v3904_v63 = vpop.eup %3903  ;;  %907 = vadd.xlane.f32.xlu0 %v906_v62 }
 0x4c0   :  { %v915_v0 = vsel %vm848_vm3, %v3904_v63, 0.0 }
 0x4c1   :  { %v3906_v1 = vpop.eup %3905  ;;  %916 = vadd.xlane.f32.xlu1 %v915_v0 }
 0x4c2   :  { %v912_v2 = vsel %vm844_vm4, %v3906_v1, 0.0 }
 0x4c3   :  { %913 = vadd.xlane.f32.xlu0 %v912_v2 }
 0x53e   :  { %v899_v3 = vpop.xlane.xlu1 %898 }
 0x53f   :  { %3907 = vrcp.f32 %v899_v3 }
 0x540   :  { %v896_v4 = vpop.xlane.xlu0 %895 }
 0x541   :  { %3909 = vrcp.f32 %v896_v4 }
 0x542   :  { %v905_v5 = vpop.xlane.xlu1 %904 }
 0x543   :  { %3911 = vrcp.f32 %v905_v5 }
 0x544   :  { %v902_v6 = vpop.xlane.xlu0 %901 }
 0x545   :  { %3913 = vrcp.f32 %v902_v6 }
 0x546   :  { %v911_v7 = vpop.xlane.xlu1 %910 }
 0x547   :  { %3915 = vrcp.f32 %v911_v7 }
 0x548   :  { %v908_v8 = vpop.xlane.xlu0 %907 }
 0x549   :  { %3917 = vrcp.f32 %v908_v8 }
 0x54a   :  { %v917_v9 = vpop.xlane.xlu1 %916 }
 0x54b   :  { %3919 = vrcp.f32 %v917_v9 }
 0x54c   :  { %v914_v12 = vpop.xlane.xlu0 %913  ;;  %v3908_v13 = vpop.eup %3907 }
 0x54d   :  { %3921 = vrcp.f32 %v914_v12  ;;  %v927_v16 = vmul.f32 %v3908_v13, %v3892_v50  ;;  %v1428_v13 = vld [vmem:[%s4775_s17 + $0x18] sm:$0xff] }
 0x54e   :  { %v3910_v14 = vpop.eup %3909 }
 0x54f   :  { %v926_v15 = vmul.f32 %v3910_v14, %v3894_v52  ;;  %v1427_v14 = vld [vmem:[%s4775_s17 + $0x10] sm:$0xff] }
 0x550   :  { %v3912_v17 = vpop.eup %3911 }
 0x551   :  { %3645 = vmatprep.mubr.msk.f32.mxu1 %vm844_vm4, %v926_v15  ;;  %v929_v22 = vmul.f32 %v3912_v17, %v3896_v55  ;;  %v1426_v15 = vld [vmem:[%s4775_s17 + $0x8] sm:$0xff] }
 0x552   :  { %v3914_v18 = vpop.eup %3913  ;;  %3646 = vmatmul.mubr.msk.f32.vlgmr.msra.gmra.mxu1 %vm844_vm4, %v927_v16  ;;  %v1425_v16 = vld [vmem:[%s4775_s17] sm:$0xff] }
 0x553   :  { %3649 = vmatpush3.msk.msra.mxu1 %vm948_vm2, %v4272_v45  ;;  %v928_v20 = vmul.f32 %v3914_v18, %v3898_v57 }
 0x554   :  { %3650 = vmatprep.subr.mxu1 %v936_v19  ;;  %v3916_v23 = vpop.eup %3915 }
 0x555   :  { %3651 = vmatpush3.msra.mxu1 %v936_v19  ;;  %3652 = vmatprep.mubr.msk.f32.mxu1 %vm844_vm4, %v928_v20  ;;  %v931_v31 = vmul.f32 %v3916_v23, %v3900_v59  ;;  %v3305_v59 = vld [vmem:[%s4774_s14] ss:$0 sm:$0xff] }
 0x556   :  { %v3918_v27 = vpop.eup %3917  ;;  %3655 = vmatprep.subr.msk.mxu1 %vm948_vm2, %v939_v21  ;;  %3653 = vmatmul.mubr.msk.f32.vlgmr.msra.gmra.mxu1 %vm844_vm4, %v929_v22 }
 0x557   :  { %3656 = vmatpush3.msk.msra.mxu1 %vm948_vm2, %v939_v21  ;;  %v930_v45 = vmul.f32 %v3918_v27, %v3902_v61  ;;  %v3306_v27 = vld [vmem:[%s4776_s15] ss:$0 sm:$0xff] }
 0x558   :  { %3657 = vmatprep.subr.mxu1 %v938_v28  ;;  %v3920_v32 = vpop.eup %3919 }
 0x559   :  { %3658 = vmatpush3.msra.mxu1 %v938_v28  ;;  %3659 = vmatprep.mubr.msk.f32.mxu1 %vm844_vm4, %v930_v45  ;;  %v933_v37 = vmul.f32 %v3920_v32, %v3904_v63  ;;  %v3307_v32 = vld [vmem:[%s4777_s16] ss:$0 sm:$0xff] }
 0x55a   :  { %v3922_v33 = vpop.eup %3921  ;;  %3662 = vmatprep.subr.msk.mxu1 %vm948_vm2, %v941_v29  ;;  %3660 = vmatmul.mubr.msk.f32.vlgmr.msra.gmra.mxu1 %vm844_vm4, %v931_v31 }
 0x55b   :  { %3663 = vmatpush3.msk.msra.mxu1 %vm948_vm2, %v941_v29  ;;  %v932_v36 = vmul.f32 %v3922_v33, %v3906_v1 }
 0x55c   :  { %3664 = vmatprep.subr.mxu1 %v940_v34 }
 0x55d   :  { %3665 = vmatpush3.msra.mxu1 %v940_v34  ;;  %3666 = vmatprep.mubr.msk.f32.mxu1 %vm844_vm4, %v932_v36 }
 0x55e   :  { %3667 = vmatmul.mubr.msk.f32.vlgmr.msra.gmra.mxu1 %vm844_vm4, %v933_v37  ;;  %3680 = vmatprep.subr.mxu1 %v1428_v13  ;;  %v1548_v37 = vld [vmem:[%s4778_s19 + $0x78] sm:$0xff] }
 0x55f   :  { %3681 = vmatpush3.msra.mxu1 %v1428_v13  ;;  %3691 = vmatprep.subr.mxu0 %v1548_v37 }
 0x560   :  { %3682 = vmatprep.subr.mxu1 %v1427_v14 }
 0x561   :  { %3683 = vmatpush3.msra.mxu1 %v1427_v14 }
 0x562   :  { %3684 = vmatprep.subr.mxu1 %v1426_v15 }
 0x563   :  { %3685 = vmatpush3.msra.mxu1 %v1426_v15 }
 0x564   :  { %3686 = vmatprep.subr.mxu1 %v1425_v16 }
 0x565   :  { %3687 = vmatpush3.msra.mxu1 %v1425_v16 }
 0x612   :  { %v3647_v41 = vpop.f32.mrf.mxu1 }
 0x614   :  { %v1018_v42 = vpop.f32.mrf.mxu1 }
 0x616   :  { %v3654_v43 = vpop.f32.mrf.mxu1 }
 0x617   :  { %v1280_v50 = vadd.f32 %v3654_v43, %v3647_v41  ;;  %v1543_v41 = vld [vmem:[%s4778_s19 + $0x50] sm:$0xff]  ;;  %v1541_v43 = vld [vmem:[%s4778_s19 + $0x40] sm:$0xff] }
 0x618   :  { %v1102_v44 = vpop.f32.mrf.mxu1 }
 0x619   :  { %v1279_v49 = vadd.f32 %v1102_v44, %v1018_v42  ;;  %v1542_v42 = vld [vmem:[%s4778_s19 + $0x48] sm:$0xff]  ;;  %v1540_v44 = vld [vmem:[%s4778_s19 + $0x38] sm:$0xff] }
 0x61a   :  { %v3661_v46 = vpop.f32.mrf.mxu1 }
 0x61b   :  { %v1282_v54 = vadd.f32 %v3661_v46, %v1280_v50  ;;  %v1539_v46 = vld [vmem:[%s4778_s19 + $0x30] sm:$0xff]  ;;  %v1536_v50 = vld [vmem:[%s4778_s19 + $0x18] sm:$0xff] }
 0x61c   :  { %v1186_v47 = vpop.f32.mrf.mxu1 }
 0x61d   :  { %v1281_v52 = vadd.f32 %v1279_v49, %v1186_v47  ;;  %v1538_v47 = vld [vmem:[%s4778_s19 + $0x28] sm:$0xff]  ;;  %v1537_v49 = vld [vmem:[%s4778_s19 + $0x20] sm:$0xff] }
 0x61e   :  { %v3668_v51 = vpop.f32.mrf.mxu1 }
 0x61f   :  { %v1284_v57 = vadd.f32 %v3668_v51, %v1282_v54  ;;  %v1535_v51 = vld [vmem:[%s4778_s19 + $0x10] sm:$0xff]  ;;  %v1533_v54 = vld [vmem:[%s4778_s19] sm:$0xff] }
 0x620   :  { %v1270_v55 = vpop.f32.mrf.mxu1 }
 0x621   :  { %v1283_v56 = vadd.f32 %v1281_v52, %v1270_v55  ;;  %v1534_v52 = vld [vmem:[%s4778_s19 + $0x8] sm:$0xff]  ;;  %v3308_v55 = vld [vmem:[%s4779_s18] ss:$0 sm:$0xff] }
 0x623   :  { %3677 = vmatprep.mubr.msk.f32.mxu0 %vm87_vm0, %v1283_v56 }
 0x624   :  { %3678 = vmatmul.mubr.msk.f32.vlgmr.msra.gmra.mxu0 %vm87_vm0, %v1284_v57 }
 0x625   :  { %3692 = vmatpush3.msra.mxu0 %v1548_v37 }
 0x626   :  { %3693 = vmatprep.subr.mxu0 %v1547_v35 }
 0x627   :  { %3694 = vmatpush3.msra.mxu0 %v1547_v35 }
 0x628   :  { %3695 = vmatprep.subr.mxu0 %v1546_v40 }
 0x629   :  { %3696 = vmatpush3.msra.mxu0 %v1546_v40 }
 0x62a   :  { %3697 = vmatprep.subr.mxu0 %v1545_v38 }
 0x62b   :  { %3698 = vmatpush3.msra.mxu0 %v1545_v38 }
 0x62c   :  { %3699 = vmatprep.subr.mxu0 %v1544_v39 }
 0x62d   :  { %3700 = vmatpush3.msra.mxu0 %v1544_v39 }
 0x62e   :  { %3701 = vmatprep.subr.mxu0 %v1543_v41 }
 0x62f   :  { %3702 = vmatpush3.msra.mxu0 %v1543_v41 }
 0x630   :  { %3703 = vmatprep.subr.mxu0 %v1542_v42 }
 0x631   :  { %3704 = vmatpush3.msra.mxu0 %v1542_v42  ;;  %v3316_v42 = vld [vmem:[%s4807_s29 + $0x1] ss:$0 sm:$0xff] }
 0x632   :  { %3705 = vmatprep.subr.mxu0 %v1541_v43 }
 0x633   :  { %3706 = vmatpush3.msra.mxu0 %v1541_v43 }
 0x634   :  { %3707 = vmatprep.subr.mxu0 %v1540_v44 }
 0x635   :  { %3708 = vmatpush3.msra.mxu0 %v1540_v44 }
 0x636   :  { %3709 = vmatprep.subr.mxu0 %v1539_v46 }
 0x637   :  { %3710 = vmatpush3.msra.mxu0 %v1539_v46  ;;  %v3317_v46 = vld [vmem:[%s4808_s30 + $0x1] ss:$0 sm:$0xff] }
 0x638   :  { %3711 = vmatprep.subr.mxu0 %v1538_v47 }
 0x639   :  { %3712 = vmatpush3.msra.mxu0 %v1538_v47 }
 0x63a   :  { %3713 = vmatprep.subr.mxu0 %v1537_v49 }
 0x63b   :  { %3714 = vmatpush3.msra.mxu0 %v1537_v49 }
 0x63c   :  { %3715 = vmatprep.subr.mxu0 %v1536_v50 }
 0x63d   :  { %3716 = vmatpush3.msra.mxu0 %v1536_v50 }
 0x63e   :  { %3717 = vmatprep.subr.mxu0 %v1535_v51 }
 0x63f   :  { %3718 = vmatpush3.msra.mxu0 %v1535_v51 }
 0x640   :  { %3719 = vmatprep.subr.mxu0 %v1534_v52 }
 0x641   :  { %3720 = vmatpush3.msra.mxu0 %v1534_v52 }
 0x642   :  { %3721 = vmatprep.subr.mxu0 %v1533_v54 }
 0x643   :  { %3722 = vmatpush3.msra.mxu0 %v1533_v54  ;;  %v3328_v54 = vld [vmem:[%s4806_s28 + $0x30] sm:$0xff] }
 0x6e4   :  { %v3679_v58 = vpop.f32.mrf.mxu0 }
 0x6e5   :  { %v1371_v60 = vadd.f32 %v3679_v58, %v4135_v30 }
 0x6e6   :  { %v1361_v61 = vpop.f32.mrf.mxu0 }
 0x6e7   :  { %v4352_v62 = vadd.f32 %v3305_v59, %v1371_v60  ;;  %v1370_v63 = vadd.f32 %v1361_v61, %v4131_v26 }
 0x6e9   :  { %v4355_v0 = vadd.f32 %v3305_v59, %v1370_v63  ;;  %v1386_v1 = vsel %vm91_vm1, %v4352_v62, 0.0 }
 0x6ea   :  { %1387 = vadd.xlane.f32.xlu1 %v1386_v1 }
 0x6eb   :  { %v1383_v2 = vsel %vm87_vm0, %v4355_v0, 0.0 }
 0x6ec   :  { %1384 = vadd.xlane.f32.xlu0 %v1383_v2 }
 0x773   :  { %v1388_v3 = vpop.xlane.xlu1 %1387 }
 0x774   :  { %v1390_v4 = vmul.f32 0.03125, %v1388_v3 }
 0x775   :  { %v1385_v5 = vpop.xlane.xlu0 %1384 }
 0x776   :  { %v1392_v30 = vsub.f32 %v4352_v62, %v1390_v4  ;;  %v1389_v6 = vmul.f32 0.03125, %v1385_v5 }
 0x778   :  { %v1391_v7 = vsub.f32 %v4355_v0, %v1389_v6  ;;  %v1394_v8 = vmul.f32 %v1392_v30, %v1392_v30 }
 0x77a   :  { %v1398_v26 = vsel %vm91_vm1, %v1394_v8, 0.0  ;;  %v1393_v9 = vmul.f32 %v1391_v7, %v1391_v7 }
 0x77b   :  { %1399 = vadd.xlane.f32.xlu1 %v1398_v26  ;;  %v3313_v26 = vld [vmem:[%s4780_s20] ss:$0 sm:$0xff] }
 0x77c   :  { %v1395_v12 = vsel %vm87_vm0, %v1393_v9, 0.0 }
 0x77d   :  { %1396 = vadd.xlane.f32.xlu0 %v1395_v12 }
 0x804   :  { %v1400_v17 = vpop.xlane.xlu1 %1399 }
 0x805   :  { %v1402_v18 = vmul.f32 0.03125, %v1400_v17 }
 0x806   :  { %v1397_v19 = vpop.xlane.xlu0 %1396 }
 0x807   :  { %v1404_v20 = vadd.f32 1e-05, %v1402_v18  ;;  %v1401_v21 = vmul.f32 0.03125, %v1397_v19 }
 0x809   :  { %3923 = vrsqrt.f32 %v1404_v20  ;;  %v1403_v22 = vadd.f32 1e-05, %v1401_v21 }
 0x80b   :  { %3925 = vrsqrt.f32 %v1403_v22 }
 0x816   :  { %v3924_v23 = vpop.eup %3923 }
 0x817   :  { %v1408_v28 = vmul.f32 %v3924_v23, %v1392_v30 }
 0x818   :  { %v3926_v45 = vpop.eup %3925 }
 0x819   :  { %v1407_v29 = vmul.f32 %v3926_v45, %v1391_v7  ;;  %v1416_v31 = vmul.f32 %v3306_v27, %v1408_v28 }
 0x81b   :  { %v1415_v33 = vmul.f32 %v3306_v27, %v1407_v29  ;;  %v1424_v36 = vadd.f32 %v3307_v32, %v1416_v31  ;;  %v3321_v29 = vld [vmem:[%s4804_s11 + $0x38] sm:$0xff]  ;;  %v3320_v31 = vld [vmem:[%s4804_s11 + $0x30] sm:$0xff] }
 0x81c   :  { %3726 = vmatprep.subr.mxu1 %v3321_v29 }
 0x81d   :  { %v1423_v34 = vadd.f32 %v3307_v32, %v1415_v33  ;;  %v3319_v32 = vld [vmem:[%s4804_s11 + $0x28] sm:$0xff]  ;;  %v3318_v33 = vld [vmem:[%s4804_s11 + $0x20] sm:$0xff] }
 0x81f   :  { %3688 = vmatprep.mubr.msk.f32.mxu1 %vm87_vm0, %v1423_v34  ;;  %v3329_v34 = vld [vmem:[%s4806_s28 + $0x38] sm:$0xff] }
 0x820   :  { %3689 = vmatmul.mubr.msk.f32.vlgmr.msra.gmra.mxu1 %vm87_vm0, %v1424_v36 }
 0x821   :  { %3727 = vmatpush3.msra.mxu1 %v3321_v29 }
 0x822   :  { %3728 = vmatprep.subr.mxu1 %v3320_v31 }
 0x823   :  { %3729 = vmatpush3.msra.mxu1 %v3320_v31 }
 0x824   :  { %3730 = vmatprep.subr.mxu1 %v3319_v32 }
 0x825   :  { %3731 = vmatpush3.msra.mxu1 %v3319_v32 }
 0x826   :  { %3732 = vmatprep.subr.mxu1 %v3318_v33 }
 0x827   :  { %3733 = vmatpush3.msra.mxu1 %v3318_v33 }
 0x828   :  { %3737 = vmatprep.subr.mxu1 %v3329_v34 }
 0x8e0   :  { %v3690_v56 = vpop.f32.mrf.mxu1 }
 0x8e1   :  { %v1514_v57 = vadd.f32 %v3690_v56, %v3308_v55  ;;  %v3326_v56 = vld [vmem:[%s4806_s28 + $0x20] sm:$0xff] }
 0x8e2   :  { %v1508_v58 = vpop.f32.mrf.mxu1 }
 0x8e3   :  { %v3312_v59 = vmul.f32 -1.702, %v1514_v57  ;;  %v1509_v60 = vadd.f32 %v3308_v55, %v1508_v58  ;;  %v3327_v55 = vld [vmem:[%s4806_s28 + $0x28] sm:$0xff]  ;;  %v3336_v58 = vld [vmem:[%s4805_s26 + $0x30] sm:$0xff] }
 0x8e5   :  { %v1523_v61 = vmul.f32 1.442695, %v3312_v59  ;;  %v3311_v63 = vmul.f32 -1.702, %v1509_v60  ;;  %v3335_v59 = vld [vmem:[%s4805_s26 + $0x28] sm:$0xff] }
 0x8e7   :  { %3927 = vpow2.f32 %v1523_v61  ;;  %v1521_v1 = vmul.f32 1.442695, %v3311_v63 }
 0x8e9   :  { %3929 = vpow2.f32 %v1521_v1  ;;  %v3323_v1 = vld [vmem:[%s4809_s0 + $0x1] ss:$0 sm:$0xff] }
 0x8f4   :  { %v3928_v2 = vpop.eup %3927 }
 0x8f5   :  { %v1526_v3 = vadd.f32 1.0, %v3928_v2 }
 0x8f6   :  { %v3930_v4 = vpop.eup %3929 }
 0x8f7   :  { %v1525_v5 = vadd.f32 1.0, %v3930_v4  ;;  %3931 = vrcp.f32 %v1526_v3  ;;  %v3331_v3 = vld [vmem:[%s4770_s10 + $0x1] ss:$0 sm:$0xff] }
 0x8f9   :  { %3933 = vrcp.f32 %v1525_v5 }
 0x904   :  { %v3932_v30 = vpop.eup %3931 }
 0x905   :  { %v1532_v8 = vmul.f32 %v3932_v30, %v1514_v57  ;;  %v3337_v57 = vld [vmem:[%s4805_s26 + $0x38] sm:$0xff] }
 0x906   :  { %v3934_v6 = vpop.eup %3933 }
 0x907   :  { %v1531_v7 = vmul.f32 %v3934_v6, %v1509_v60  ;;  %v3334_v60 = vld [vmem:[%s4805_s26 + $0x20] sm:$0xff] }
 0x909   :  { %3723 = vmatprep.mubr.f32.mxu0 %v1531_v7 }
 0x90a   :  { %3724 = vmatmul.mubr.f32.vlgmr.msra.gmra.mxu0 %v1532_v8 }
 0x9ca   :  { %v3725_v9 = vpop.f32.mrf.mxu0 }
 0x9cb   :  { %v1628_v12 = vadd.f32 %v3725_v9, %v3313_v26 }
 0x9cc   :  { %v1622_v13 = vpop.f32.mrf.mxu0 }
 0x9cd   :  { %v4440_v14 = vadd.f32 %v1628_v12, %v4352_v62  ;;  %v1623_v15 = vadd.f32 %v3313_v26, %v1622_v13 }
 0x9cf   :  { %v4443_v16 = vadd.f32 %v1623_v15, %v4355_v0  ;;  %v1640_v17 = vsel %vm91_vm1, %v4440_v14, 0.0 }
 0x9d0   :  { %1641 = vadd.xlane.f32.xlu1 %v1640_v17 }
 0x9d1   :  { %v1637_v18 = vsel %vm87_vm0, %v4443_v16, 0.0 }
 0x9d2   :  { %1638 = vadd.xlane.f32.xlu0 %v1637_v18 }
 0xa59   :  { %v1642_v19 = vpop.xlane.xlu1 %1641 }
 0xa5a   :  { %v1644_v20 = vmul.f32 0.03125, %v1642_v19 }
 0xa5b   :  { %v1639_v21 = vpop.xlane.xlu0 %1638 }
 0xa5c   :  { %v1646_v22 = vsub.f32 %v4440_v14, %v1644_v20  ;;  %v1643_v23 = vmul.f32 0.03125, %v1639_v21  ;;  %v3339_v20 = vld [vmem:[%s4771_s12 + $0x1] ss:$0 sm:$0xff] }
 0xa5e   :  { %v1645_v62 = vsub.f32 %v4443_v16, %v1643_v23  ;;  %v1648_v27 = vmul.f32 %v1646_v22, %v1646_v22 }
 0xa60   :  { %v1652_v0 = vsel %vm91_vm1, %v1648_v27, 0.0  ;;  %v1647_v28 = vmul.f32 %v1645_v62, %v1645_v62 }
 0xa61   :  { %1653 = vadd.xlane.f32.xlu1 %v1652_v0 }
 0xa62   :  { %v1649_v45 = vsel %vm87_vm0, %v1647_v28, 0.0 }
 0xa63   :  { %1650 = vadd.xlane.f32.xlu0 %v1649_v45  ;;  %v3987_v45 = vld [vmem:[%s4769_s2] ss:$0 sm:$0xff] }
 0xaea   :  { %v1654_v36 = vpop.xlane.xlu1 %1653 }
 0xaeb   :  { %v1656_v37 = vmul.f32 0.03125, %v1654_v36 }
 0xaec   :  { %v1651_v35 = vpop.xlane.xlu0 %1650 }
 0xaed   :  { %v1658_v40 = vadd.f32 1e-05, %v1656_v37  ;;  %v1655_v38 = vmul.f32 0.03125, %v1651_v35 }
 0xaef   :  { %3935 = vrsqrt.f32 %v1658_v40  ;;  %v1657_v39 = vadd.f32 1e-05, %v1655_v38 }
 0xaf1   :  { %3937 = vrsqrt.f32 %v1657_v39 }
 0xafc   :  { %v3936_v41 = vpop.eup %3935 }
 0xafd   :  { %v1662_v43 = vmul.f32 %v3936_v41, %v1646_v22 }
 0xafe   :  { %v3938_v44 = vpop.eup %3937 }
 0xaff   :  { %v1661_v47 = vmul.f32 %v3938_v44, %v1645_v62  ;;  %v1670_v49 = vmul.f32 %v3316_v42, %v1662_v43 }
 0xb01   :  { %v1669_v50 = vmul.f32 %v3316_v42, %v1661_v47  ;;  %v1678_v51 = vadd.f32 %v3317_v46, %v1670_v49 }
 0xb03   :  { %v1677_v52 = vadd.f32 %v3317_v46, %v1669_v50 }
 0xb05   :  { %3734 = vmatprep.mubr.msk.f32.mxu1 %vm87_vm0, %v1677_v52 }
 0xb06   :  { %3735 = vmatmul.mubr.msk.f32.vlgmr.msra.gmra.mxu1 %vm87_vm0, %v1678_v51 }
 0xb07   :  { %3738 = vmatpush3.msra.mxu1 %v3329_v34  ;;  %3745 = vmatprep.mubr.msk.f32.mxu1 %vm87_vm0, %v1677_v52 }
 0xb08   :  { %3739 = vmatprep.subr.mxu1 %v3328_v54 }
 0xb09   :  { %3740 = vmatpush3.msra.mxu1 %v3328_v54 }
 0xb0a   :  { %3741 = vmatprep.subr.mxu1 %v3327_v55 }
 0xb0b   :  { %3742 = vmatpush3.msra.mxu1 %v3327_v55 }
 0xb0c   :  { %3743 = vmatprep.subr.mxu1 %v3326_v56 }
 0xb0d   :  { %3744 = vmatpush3.msra.mxu1 %v3326_v56 }
 0xb0e   :  { %3746 = vmatmul.mubr.msk.f32.vlgmr.msra.gmra.mxu1 %vm87_vm0, %v1678_v51  ;;  %3748 = vmatprep.subr.mxu1 %v3337_v57 }
 0xb0f   :  { %3749 = vmatpush3.msra.mxu1 %v3337_v57  ;;  %3756 = vmatprep.mubr.msk.f32.mxu1 %vm87_vm0, %v1677_v52 }
 0xb10   :  { %3750 = vmatprep.subr.mxu1 %v3336_v58 }
 0xb11   :  { %3751 = vmatpush3.msra.mxu1 %v3336_v58 }
 0xb12   :  { %3752 = vmatprep.subr.mxu1 %v3335_v59 }
 0xb13   :  { %3753 = vmatpush3.msra.mxu1 %v3335_v59 }
 0xb14   :  { %3754 = vmatprep.subr.mxu1 %v3334_v60 }
 0xb15   :  { %3755 = vmatpush3.msra.mxu1 %v3334_v60 }
 0xb16   :  { %3757 = vmatmul.mubr.msk.f32.vlgmr.msra.gmra.mxu1 %vm87_vm0, %v1678_v51 }
 0xbc6   :  { %v3736_v61 = vpop.f32.mrf.mxu1 }
 0xbc7   :  { %v1770_v15 = vadd.f32 %v3736_v61, %v3323_v1 }
 0xbc8   :  { %v1764_v63 = vpop.f32.mrf.mxu1 }
 0xbc9   :  { %v1765_v2 = vadd.f32 %v3323_v1, %v1764_v63  ;;  %v1950_v21 = vmul.f32 %v4197_v10, %v1770_v15  ;;  %v1952_v22 = vmul.f32 %v4202_v11, %v1770_v15  ;;  %v1954_v32 = vmul.f32 %v4224_v24, %v1770_v15 }
 0xbca   :  { %v1956_v33 = vmul.f32 %v4229_v25, %v1770_v15 }
 0xbcb   :  { %v1949_v4 = vmul.f32 %v4197_v10, %v1765_v2  ;;  %v1951_v5 = vmul.f32 %v4202_v11, %v1765_v2  ;;  %v1953_v23 = vmul.f32 %v4224_v24, %v1765_v2  ;;  %v1955_v27 = vmul.f32 %v4229_v25, %v1765_v2 }
 0xbcd   :  { %3763 = vmatprep.mubr.msk.f32.mxu1 %vm87_vm0, %v1949_v4  ;;  %3770 = vmatprep.mubr.msk.f32.mxu0 %vm87_vm0, %v1951_v5 }
 0xbce   :  { %v3747_v30 = vpop.f32.mrf.mxu1 }
 0xbcf   :  { %v1858_v6 = vadd.f32 %v3747_v30, %v3331_v3 }
 0xbd0   :  { %v1852_v7 = vpop.f32.mrf.mxu1 }
 0xbd1   :  { %v1853_v8 = vadd.f32 %v3331_v3, %v1852_v7  ;;  %v1958_v26 = vmul.f32 %v4197_v10, %v1858_v6  ;;  %v1960_v9 = vmul.f32 %v4202_v11, %v1858_v6  ;;  %v1962_v17 = vmul.f32 %v4224_v24, %v1858_v6 }
 0xbd2   :  { %v1964_v18 = vmul.f32 %v4229_v25, %v1858_v6 }
 0xbd3   :  { %3759 = vmatprep.subr.msk.mxu1 %vm87_vm0, %v1958_v26  ;;  %3766 = vmatprep.subr.msk.mxu0 %vm87_vm0, %v1960_v9  ;;  %v1957_v12 = vmul.f32 %v4197_v10, %v1853_v8  ;;  %v1959_v13 = vmul.f32 %v4202_v11, %v1853_v8  ;;  %v1961_v10 = vmul.f32 %v4224_v24, %v1853_v8 }
 0xbd4   :  { %3760 = vmatpush3.xpose.msk.msra.mxu1 %vm87_vm0, %v1958_v26  ;;  %3767 = vmatpush3.xpose.msk.msra.mxu0 %vm87_vm0, %v1960_v9  ;;  %v1963_v11 = vmul.f32 %v4229_v25, %v1853_v8  ;;  %v4570_v25 = vld [vmem:[%s4769_s2 + $0x1] ss:$0 sm:$0xff] }
 0xbd5   :  { %3761 = vmatprep.subr.msk.mxu1 %vm87_vm0, %v1957_v12  ;;  %3768 = vmatprep.subr.msk.mxu0 %vm87_vm0, %v1959_v13 }
 0xbd6   :  { %v3758_v19 = vpop.f32.mrf.mxu1 }
 0xbd7   :  { %v4533_v62 = vadd.f32 %v3758_v19, %v3339_v20 }
 0xbd8   :  { %3762 = vmatpush3.xpose.msk.msra.mxu1 %vm87_vm0, %v1957_v12  ;;  %3769 = vmatpush3.xpose.msk.msra.mxu0 %vm87_vm0, %v1959_v13  ;;  %v1940_v0 = vpop.f32.mrf.mxu1 }
 0xbd9   :  { %3773 = vmatprep.subr.msk.mxu1 %vm87_vm0, %v1962_v17  ;;  %3780 = vmatprep.subr.msk.mxu0 %vm87_vm0, %v1964_v18  ;;  %v4546_v28 = vadd.f32 %v3339_v20, %v1940_v0  ;;  %v2418_v29 = vmul.f32 %v3987_v45, %v4533_v62  ;;  %v2422_v31 = vmul.f32 %v4224_v24, %v4533_v62 }
 0xbda   :  { %v4574_v37 = vmul.f32 %v4570_v25, %v4533_v62 }
 0xbdb   :  { %3764 = vmatmul.mubr.msk.f32.vlgmr.msra.gmra.mxu1 %vm87_vm0, %v1950_v21  ;;  %3771 = vmatmul.mubr.msk.f32.vlgmr.msra.gmra.mxu0 %vm87_vm0, %v1952_v22  ;;  %v2417_v34 = vmul.f32 %v3987_v45, %v4546_v28  ;;  %v2421_v36 = vmul.f32 %v4224_v24, %v4546_v28 }
 0xbdc   :  { %3774 = vmatpush3.xpose.msk.msra.mxu1 %vm87_vm0, %v1962_v17  ;;  %3777 = vmatprep.mubr.msk.f32.mxu1 %vm87_vm0, %v1953_v23 }
 0xbdd   :  { %3781 = vmatpush3.xpose.msk.msra.mxu0 %vm87_vm0, %v1964_v18  ;;  %3784 = vmatprep.mubr.msk.f32.mxu0 %vm87_vm0, %v1955_v27 }
 0xbde   :  { %3775 = vmatprep.subr.msk.mxu1 %vm87_vm0, %v1961_v10  ;;  %3782 = vmatprep.subr.msk.mxu0 %vm87_vm0, %v1963_v11 }
 0xbe0   :  { %3776 = vmatpush3.xpose.msk.msra.mxu1 %vm87_vm0, %v1961_v10 }
 0xbe1   :  { %3783 = vmatpush3.xpose.msk.msra.mxu0 %vm87_vm0, %v1963_v11  ;;  %3787 = vmatprep.subr.msk.mxu1 %vm948_vm2, %v2418_v29 }
 0xbe2   :  { %3801 = vmatprep.subr.msk.mxu0 %vm948_vm2, %v2422_v31 }
 0xbe3   :  { %3778 = vmatmul.mubr.msk.f32.vlgmr.msra.gmra.mxu1 %vm87_vm0, %v1954_v32 }
 0xbe4   :  { %3785 = vmatmul.mubr.msk.f32.vlgmr.msra.gmra.mxu0 %vm87_vm0, %v1956_v33  ;;  %3788 = vmatpush3.msk.msra.mxu1 %vm948_vm2, %v2418_v29 }
 0xbe5   :  { %3802 = vmatpush3.msk.msra.mxu0 %vm948_vm2, %v2422_v31  ;;  %3789 = vmatprep.subr.mxu1 %v2417_v34 }
 0xbe6   :  { %3803 = vmatprep.subr.mxu0 %v2421_v36  ;;  %3790 = vmatpush3.msra.mxu1 %v2417_v34 }
 0xbe7   :  { %3804 = vmatpush3.msra.mxu0 %v2421_v36  ;;  %3794 = vmatprep.subr.msk.mxu1 %vm948_vm2, %v4574_v37 }
 0xc9b   :  { %v3765_v35 = vpop.f32.mrf.mxu1  ;;  %v3772_v24 = vpop.f32.mrf.mxu0 }
 0xc9c   :  { %v2314_v40 = vmul.f32 0.35355338, %v3765_v35  ;;  %v2316_v38 = vmul.f32 0.35355338, %v3772_v24 }
 0xc9d   :  { %v2043_v39 = vpop.f32.mrf.mxu1  ;;  %v2130_v41 = vpop.f32.mrf.mxu0 }
 0xc9e   :  { %v2313_v42 = vmul.f32 0.35355338, %v2043_v39  ;;  %v2315_v43 = vmul.f32 0.35355338, %v2130_v41  ;;  %v2322_v44 = vadd.f32 %v2314_v40, %v4279_v48  ;;  %v2324_v49 = vadd.f32 %v2316_v38, %v4279_v48 }
 0xca0   :  { %v2332_v46 = vsel %vm848_vm3, %v2322_v44, -inf  ;;  %v2321_v47 = vadd.f32 %v2313_v42, %v4284_v53  ;;  %v2323_v51 = vadd.f32 %v2315_v43, %v4284_v53  ;;  %v2338_v56 = vsel %vm848_vm3, %v2324_v49, -inf }
 0xca1   :  { %2333 = vmax.xlane.f32.xlu1 %v2332_v46 }
 0xca2   :  { %v2329_v50 = vsel %vm844_vm4, %v2321_v47, -inf  ;;  %v2335_v61 = vsel %vm844_vm4, %v2323_v51, -inf }
 0xca3   :  { %2330 = vmax.xlane.f32.xlu0 %v2329_v50  ;;  %v3779_v52 = vpop.f32.mrf.mxu1 }
 0xca4   :  { %v3786_v54 = vpop.f32.mrf.mxu0  ;;  %v2318_v55 = vmul.f32 0.35355338, %v3779_v52 }
 0xca5   :  { %v2320_v57 = vmul.f32 0.35355338, %v3786_v54  ;;  %2339 = vmax.xlane.f32.xlu1 %v2338_v56  ;;  %v2217_v58 = vpop.f32.mrf.mxu1 }
 0xca6   :  { %v2304_v59 = vpop.f32.mrf.mxu0  ;;  %v2317_v60 = vmul.f32 0.35355338, %v2217_v58  ;;  %v2326_v63 = vadd.f32 %v2318_v55, %v4279_v48 }
 0xca7   :  { %v2319_v1 = vmul.f32 0.35355338, %v2304_v59  ;;  %2336 = vmax.xlane.f32.xlu0 %v2335_v61  ;;  %v2328_v4 = vadd.f32 %v2320_v57, %v4279_v48 }
 0xca8   :  { %v2344_v2 = vsel %vm848_vm3, %v2326_v63, -inf  ;;  %v2325_v3 = vadd.f32 %v2317_v60, %v4284_v53 }
 0xca9   :  { %2345 = vmax.xlane.f32.xlu1 %v2344_v2  ;;  %v2327_v30 = vadd.f32 %v2319_v1, %v4284_v53  ;;  %v2350_v6 = vsel %vm848_vm3, %v2328_v4, -inf }
 0xcaa   :  { %v2341_v5 = vsel %vm844_vm4, %v2325_v3, -inf }
 0xcab   :  { %2342 = vmax.xlane.f32.xlu0 %v2341_v5  ;;  %v2347_v7 = vsel %vm844_vm4, %v2327_v30, -inf  ;;  %v2419_v5 = vmul.f32 %v4570_v25, %v4546_v28 }
 0xcad   :  { %2351 = vmax.xlane.f32.xlu1 %v2350_v6  ;;  %v3989_v6 = vld [vmem:[%s4769_s2 + $0x3] ss:$0 sm:$0xff] }
 0xcae   :  { %v2423_v25 = vmul.f32 %v3989_v6, %v4546_v28  ;;  %v3373_v28 = vld [vmem:[%s4773_s13 + $0x38] sm:$0xff] }
 0xcaf   :  { %2348 = vmax.xlane.f32.xlu0 %v2347_v7  ;;  %v2424_v7 = vmul.f32 %v3989_v6, %v4533_v62  ;;  %3815 = vmatprep.subr.mxu0 %v3373_v28 }
 0xd2a   :  { %v2334_v8 = vpop.xlane.xlu1 %2333 }
 0xd2b   :  { %v2354_v26 = vsub.f32 %v2322_v44, %v2334_v8 }
 0xd2c   :  { %v2331_v9 = vpop.xlane.xlu0 %2330 }
 0xd2d   :  { %v2363_v12 = vmul.f32 1.442695, %v2354_v26  ;;  %v2353_v13 = vsub.f32 %v2321_v47, %v2331_v9 }
 0xd2e   :  { %v2340_v15 = vpop.xlane.xlu1 %2339 }
 0xd2f   :  { %3939 = vpow2.f32 %v2363_v12  ;;  %v2361_v48 = vmul.f32 1.442695, %v2353_v13  ;;  %v2356_v17 = vsub.f32 %v2324_v49, %v2340_v15 }
 0xd30   :  { %v2337_v18 = vpop.xlane.xlu0 %2336 }
 0xd31   :  { %3941 = vpow2.f32 %v2361_v48  ;;  %v2367_v19 = vmul.f32 1.442695, %v2356_v17  ;;  %v2355_v53 = vsub.f32 %v2323_v51, %v2337_v18  ;;  %v3372_v17 = vld [vmem:[%s4773_s13 + $0x30] sm:$0xff]  ;;  %v3371_v18 = vld [vmem:[%s4773_s13 + $0x28] sm:$0xff] }
 0xd32   :  { %v2346_v20 = vpop.xlane.xlu1 %2345 }
 0xd33   :  { %3943 = vpow2.f32 %v2367_v19  ;;  %v2365_v21 = vmul.f32 1.442695, %v2355_v53  ;;  %v2358_v22 = vsub.f32 %v2326_v63, %v2346_v20  ;;  %v3370_v19 = vld [vmem:[%s4773_s13 + $0x20] sm:$0xff] }
 0xd34   :  { %v2343_v23 = vpop.xlane.xlu0 %2342 }
 0xd35   :  { %3945 = vpow2.f32 %v2365_v21  ;;  %v2371_v27 = vmul.f32 1.442695, %v2358_v22  ;;  %v2357_v0 = vsub.f32 %v2325_v3, %v2343_v23 }
 0xd36   :  { %v2352_v10 = vpop.xlane.xlu1 %2351 }
 0xd37   :  { %3947 = vpow2.f32 %v2371_v27  ;;  %v2369_v11 = vmul.f32 1.442695, %v2357_v0  ;;  %v2360_v45 = vsub.f32 %v2328_v4, %v2352_v10 }
 0xd38   :  { %v2349_v29 = vpop.xlane.xlu0 %2348 }
 0xd39   :  { %3949 = vpow2.f32 %v2369_v11  ;;  %v2375_v31 = vmul.f32 1.442695, %v2360_v45  ;;  %v2359_v32 = vsub.f32 %v2327_v30, %v2349_v29 }
 0xd3b   :  { %3951 = vpow2.f32 %v2375_v31  ;;  %v2373_v33 = vmul.f32 1.442695, %v2359_v32 }
 0xd3c   :  { %v3940_v34 = vpop.eup %3939 }
 0xd3d   :  { %3953 = vpow2.f32 %v2373_v33  ;;  %v2380_v36 = vsel %vm848_vm3, %v3940_v34, 0.0 }
 0xd3e   :  { %v3942_v35 = vpop.eup %3941  ;;  %2381 = vadd.xlane.f32.xlu1 %v2380_v36  ;;  %v3377_v36 = vld [vmem:[%s4774_s14 + $0x1] ss:$0 sm:$0xff] }
 0xd3f   :  { %v2377_v24 = vsel %vm844_vm4, %v3942_v35, 0.0 }
 0xd40   :  { %v3944_v40 = vpop.eup %3943  ;;  %2378 = vadd.xlane.f32.xlu0 %v2377_v24 }
 0xd41   :  { %v2386_v38 = vsel %vm848_vm3, %v3944_v40, 0.0 }
 0xd42   :  { %v3946_v39 = vpop.eup %3945  ;;  %2387 = vadd.xlane.f32.xlu1 %v2386_v38 }
 0xd43   :  { %v2383_v41 = vsel %vm844_vm4, %v3946_v39, 0.0 }
 0xd44   :  { %v3948_v42 = vpop.eup %3947  ;;  %2384 = vadd.xlane.f32.xlu0 %v2383_v41 }
 0xd45   :  { %v2392_v43 = vsel %vm848_vm3, %v3948_v42, 0.0 }
 0xd46   :  { %v3950_v44 = vpop.eup %3949  ;;  %2393 = vadd.xlane.f32.xlu1 %v2392_v43 }
 0xd47   :  { %v2389_v46 = vsel %vm844_vm4, %v3950_v44, 0.0 }
 0xd48   :  { %v3952_v47 = vpop.eup %3951  ;;  %2390 = vadd.xlane.f32.xlu0 %v2389_v46 }
 0xd49   :  { %v2398_v49 = vsel %vm848_vm3, %v3952_v47, 0.0 }
 0xd4a   :  { %v3954_v50 = vpop.eup %3953  ;;  %2399 = vadd.xlane.f32.xlu1 %v2398_v49 }
 0xd4b   :  { %v2395_v51 = vsel %vm844_vm4, %v3954_v50, 0.0 }
 0xd4c   :  { %2396 = vadd.xlane.f32.xlu0 %v2395_v51 }
 0xdc7   :  { %v2382_v52 = vpop.xlane.xlu1 %2381 }
 0xdc8   :  { %3955 = vrcp.f32 %v2382_v52 }
 0xdc9   :  { %v2379_v54 = vpop.xlane.xlu0 %2378 }
 0xdca   :  { %3957 = vrcp.f32 %v2379_v54  ;;  %v3385_v54 = vld [vmem:[%s4775_s17 + $0x38] sm:$0xff] }
 0xdcb   :  { %v2388_v55 = vpop.xlane.xlu1 %2387 }
 0xdcc   :  { %3959 = vrcp.f32 %v2388_v55  ;;  %v3384_v55 = vld [vmem:[%s4775_s17 + $0x30] sm:$0xff] }
 0xdcd   :  { %v2385_v56 = vpop.xlane.xlu0 %2384 }
 0xdce   :  { %3961 = vrcp.f32 %v2385_v56  ;;  %v3383_v56 = vld [vmem:[%s4775_s17 + $0x28] sm:$0xff] }
 0xdcf   :  { %v2394_v57 = vpop.xlane.xlu1 %2393 }
 0xdd0   :  { %3963 = vrcp.f32 %v2394_v57  ;;  %v3382_v57 = vld [vmem:[%s4775_s17 + $0x20] sm:$0xff] }
 0xdd1   :  { %v2391_v58 = vpop.xlane.xlu0 %2390 }
 0xdd2   :  { %3965 = vrcp.f32 %v2391_v58 }
 0xdd3   :  { %v2400_v59 = vpop.xlane.xlu1 %2399 }
 0xdd4   :  { %3967 = vrcp.f32 %v2400_v59 }
 0xdd5   :  { %v2397_v60 = vpop.xlane.xlu0 %2396  ;;  %v3956_v61 = vpop.eup %3955 }
 0xdd6   :  { %3969 = vrcp.f32 %v2397_v60  ;;  %v2410_v2 = vmul.f32 %v3956_v61, %v3940_v34 }
 0xdd7   :  { %v3958_v63 = vpop.eup %3957 }
 0xdd8   :  { %v2409_v1 = vmul.f32 %v3958_v63, %v3942_v35 }
 0xdd9   :  { %v3960_v3 = vpop.eup %3959 }
 0xdda   :  { %3791 = vmatprep.mubr.msk.f32.mxu1 %vm844_vm4, %v2409_v1  ;;  %v2412_v8 = vmul.f32 %v3960_v3, %v3944_v40  ;;  %v3380_v3 = vld [vmem:[%s4776_s15 + $0x1] ss:$0 sm:$0xff] }
 0xddb   :  { %v3962_v4 = vpop.eup %3961  ;;  %3792 = vmatmul.mubr.msk.f32.vlgmr.msra.gmra.mxu1 %vm844_vm4, %v2410_v2 }
 0xddc   :  { %3795 = vmatpush3.msk.msra.mxu1 %vm948_vm2, %v4574_v37  ;;  %v2411_v30 = vmul.f32 %v3962_v4, %v3946_v39 }
 0xddd   :  { %3796 = vmatprep.subr.mxu1 %v2419_v5  ;;  %v3964_v26 = vpop.eup %3963 }
 0xdde   :  { %3797 = vmatpush3.msra.mxu1 %v2419_v5  ;;  %3798 = vmatprep.mubr.msk.f32.mxu1 %vm844_vm4, %v2411_v30  ;;  %v2414_v12 = vmul.f32 %v3964_v26, %v3948_v42 }
 0xddf   :  { %v3966_v9 = vpop.eup %3965  ;;  %3808 = vmatprep.subr.msk.mxu1 %vm948_vm2, %v2424_v7  ;;  %3799 = vmatmul.mubr.msk.f32.vlgmr.msra.gmra.mxu1 %vm844_vm4, %v2412_v8 }
 0xde0   :  { %3809 = vmatpush3.msk.msra.mxu1 %vm948_vm2, %v2424_v7  ;;  %v2413_v37 = vmul.f32 %v3966_v9, %v3950_v44  ;;  %v3381_v7 = vld [vmem:[%s4777_s16 + $0x1] ss:$0 sm:$0xff] }
 0xde1   :  { %3810 = vmatprep.subr.mxu1 %v2423_v25  ;;  %v3968_v13 = vpop.eup %3967 }
 0xde2   :  { %3811 = vmatpush3.msra.mxu1 %v2423_v25  ;;  %3805 = vmatprep.mubr.msk.f32.mxu0 %vm844_vm4, %v2413_v37  ;;  %v2416_v48 = vmul.f32 %v3968_v13, %v3952_v47  ;;  %v3407_v25 = vld [vmem:[%s4778_s19 + $0xf8] sm:$0xff]  ;;  %v3406_v37 = vld [vmem:[%s4778_s19 + $0xf0] sm:$0xff]  ;;  %v3404_v13 = vld [vmem:[%s4778_s19 + $0xe0] sm:$0xff] }
 0xde3   :  { %v3970_v62 = vpop.eup %3969  ;;  %3806 = vmatmul.mubr.msk.f32.vlgmr.msra.gmra.mxu0 %vm844_vm4, %v2414_v12  ;;  %3826 = vmatprep.subr.mxu1 %v3385_v54  ;;  %v3405_v12 = vld [vmem:[%s4778_s19 + $0xe8] sm:$0xff] }
 0xde4   :  { %v2415_v15 = vmul.f32 %v3970_v62, %v3954_v50  ;;  %3816 = vmatpush3.msra.mxu0 %v3373_v28  ;;  %v3403_v62 = vld [vmem:[%s4778_s19 + $0xd8] sm:$0xff]  ;;  %v3400_v28 = vld [vmem:[%s4778_s19 + $0xc0] sm:$0xff] }
 0xde5   :  { %3817 = vmatprep.subr.mxu0 %v3372_v17 }
 0xde6   :  { %3812 = vmatprep.mubr.msk.f32.mxu1 %vm844_vm4, %v2415_v15  ;;  %3818 = vmatpush3.msra.mxu0 %v3372_v17  ;;  %v3402_v15 = vld [vmem:[%s4778_s19 + $0xd0] sm:$0xff]  ;;  %v3399_v17 = vld [vmem:[%s4778_s19 + $0xb8] sm:$0xff] }
 0xde7   :  { %3813 = vmatmul.mubr.msk.f32.vlgmr.msra.gmra.mxu1 %vm844_vm4, %v2416_v48  ;;  %3819 = vmatprep.subr.mxu0 %v3371_v18  ;;  %v3401_v48 = vld [vmem:[%s4778_s19 + $0xc8] sm:$0xff] }
 0xde8   :  { %3820 = vmatpush3.msra.mxu0 %v3371_v18  ;;  %3827 = vmatpush3.msra.mxu1 %v3385_v54  ;;  %v3398_v18 = vld [vmem:[%s4778_s19 + $0xb0] sm:$0xff] }
 0xde9   :  { %3821 = vmatprep.subr.mxu0 %v3370_v19  ;;  %3828 = vmatprep.subr.mxu1 %v3384_v55 }
 0xdea   :  { %3822 = vmatpush3.msra.mxu0 %v3370_v19  ;;  %3829 = vmatpush3.msra.mxu1 %v3384_v55  ;;  %v3397_v19 = vld [vmem:[%s4778_s19 + $0xa8] sm:$0xff] }
 0xdeb   :  { %3830 = vmatprep.subr.mxu1 %v3383_v56  ;;  %3837 = vmatprep.subr.mxu0 %v3407_v25 }
 0xdec   :  { %3831 = vmatpush3.msra.mxu1 %v3383_v56 }
 0xded   :  { %3832 = vmatprep.subr.mxu1 %v3382_v57 }
 0xdee   :  { %3833 = vmatpush3.msra.mxu1 %v3382_v57 }
 0xe9b   :  { %v3793_v53 = vpop.f32.mrf.mxu1 }
 0xe9d   :  { %v2500_v20 = vpop.f32.mrf.mxu1 }
 0xe9f   :  { %v3800_v21 = vpop.f32.mrf.mxu1 }
 0xea0   :  { %v2762_v10 = vadd.f32 %v3800_v21, %v3793_v53  ;;  %v3396_v53 = vld [vmem:[%s4778_s19 + $0xa0] sm:$0xff]  ;;  %v3394_v21 = vld [vmem:[%s4778_s19 + $0x90] sm:$0xff] }
 0xea1   :  { %v2584_v22 = vpop.f32.mrf.mxu1 }
 0xea2   :  { %v2761_v0 = vadd.f32 %v2584_v22, %v2500_v20  ;;  %v3395_v20 = vld [vmem:[%s4778_s19 + $0x98] sm:$0xff]  ;;  %v3393_v22 = vld [vmem:[%s4778_s19 + $0x88] sm:$0xff] }
 0xea3   :  { %v3807_v23 = vpop.f32.mrf.mxu0 }
 0xea4   :  { %v2764_v29 = vadd.f32 %v3807_v23, %v2762_v10  ;;  %v3392_v23 = vld [vmem:[%s4778_s19 + $0x80] sm:$0xff] }
 0xea5   :  { %v2668_v27 = vpop.f32.mrf.mxu0 }
 0xea6   :  { %v2763_v45 = vadd.f32 %v2761_v0, %v2668_v27  ;;  %v3387_v27 = vld [vmem:[%s4779_s18 + $0x1] ss:$0 sm:$0xff] }
 0xea7   :  { %v3814_v11 = vpop.f32.mrf.mxu1 }
 0xea8   :  { %v2766_v33 = vadd.f32 %v3814_v11, %v2764_v29 }
 0xea9   :  { %v2752_v31 = vpop.f32.mrf.mxu1 }
 0xeaa   :  { %v2765_v32 = vadd.f32 %v2763_v45, %v2752_v31 }
 0xeac   :  { %3823 = vmatprep.mubr.msk.f32.mxu0 %vm87_vm0, %v2765_v32 }
 0xead   :  { %3824 = vmatmul.mubr.msk.f32.vlgmr.msra.gmra.mxu0 %vm87_vm0, %v2766_v33 }
 0xeae   :  { %3838 = vmatpush3.msra.mxu0 %v3407_v25 }
 0xeaf   :  { %3839 = vmatprep.subr.mxu0 %v3406_v37 }
 0xeb0   :  { %3840 = vmatpush3.msra.mxu0 %v3406_v37 }
 0xeb1   :  { %3841 = vmatprep.subr.mxu0 %v3405_v12 }
 0xeb2   :  { %3842 = vmatpush3.msra.mxu0 %v3405_v12 }
 0xeb3   :  { %3843 = vmatprep.subr.mxu0 %v3404_v13 }
 0xeb4   :  { %3844 = vmatpush3.msra.mxu0 %v3404_v13 }
 0xeb5   :  { %3845 = vmatprep.subr.mxu0 %v3403_v62 }
 0xeb6   :  { %3846 = vmatpush3.msra.mxu0 %v3403_v62  ;;  %v3411_v62 = vld [vmem:[%s4783_s22] ss:$0 sm:$0xff] }
 0xeb7   :  { %3847 = vmatprep.subr.mxu0 %v3402_v15 }
 0xeb8   :  { %3848 = vmatpush3.msra.mxu0 %v3402_v15 }
 0xeb9   :  { %3849 = vmatprep.subr.mxu0 %v3401_v48 }
 0xeba   :  { %3850 = vmatpush3.msra.mxu0 %v3401_v48 }
 0xebb   :  { %3851 = vmatprep.subr.mxu0 %v3400_v28 }
 0xebc   :  { %3852 = vmatpush3.msra.mxu0 %v3400_v28 }
 0xebd   :  { %3853 = vmatprep.subr.mxu0 %v3399_v17 }
 0xebe   :  { %3854 = vmatpush3.msra.mxu0 %v3399_v17 }
 0xebf   :  { %3855 = vmatprep.subr.mxu0 %v3398_v18 }
 0xec0   :  { %3856 = vmatpush3.msra.mxu0 %v3398_v18 }
 0xec1   :  { %3857 = vmatprep.subr.mxu0 %v3397_v19 }
 0xec2   :  { %3858 = vmatpush3.msra.mxu0 %v3397_v19 }
 0xec3   :  { %3859 = vmatprep.subr.mxu0 %v3396_v53 }
 0xec4   :  { %3860 = vmatpush3.msra.mxu0 %v3396_v53 }
 0xec5   :  { %3861 = vmatprep.subr.mxu0 %v3395_v20 }
 0xec6   :  { %3862 = vmatpush3.msra.mxu0 %v3395_v20 }
 0xec7   :  { %3863 = vmatprep.subr.mxu0 %v3394_v21 }
 0xec8   :  { %3864 = vmatpush3.msra.mxu0 %v3394_v21 }
 0xec9   :  { %3865 = vmatprep.subr.mxu0 %v3393_v22 }
 0xeca   :  { %3866 = vmatpush3.msra.mxu0 %v3393_v22 }
 0xecb   :  { %3867 = vmatprep.subr.mxu0 %v3392_v23 }
 0xecc   :  { %3868 = vmatpush3.msra.mxu0 %v3392_v23 }
 0xf6d   :  { %v3825_v34 = vpop.f32.mrf.mxu0 }
 0xf6e   :  { %v2854_v35 = vadd.f32 %v3825_v34, %v4440_v14 }
 0xf6f   :  { %v2844_v24 = vpop.f32.mrf.mxu0 }
 0xf70   :  { %v4639_v40 = vadd.f32 %v3377_v36, %v2854_v35  ;;  %v2853_v38 = vadd.f32 %v2844_v24, %v4443_v16 }
 0xf72   :  { %v4642_v39 = vadd.f32 %v3377_v36, %v2853_v38  ;;  %v2872_v41 = vsel %vm91_vm1, %v4639_v40, 0.0 }
 0xf73   :  { %2873 = vadd.xlane.f32.xlu1 %v2872_v41 }
 0xf74   :  { %v2869_v42 = vsel %vm87_vm0, %v4642_v39, 0.0 }
 0xf75   :  { %2870 = vadd.xlane.f32.xlu0 %v2869_v42 }
 0xffc   :  { %v2874_v43 = vpop.xlane.xlu1 %2873 }
 0xffd   :  { %v2876_v44 = vmul.f32 0.03125, %v2874_v43 }
 0xffe   :  { %v2871_v46 = vpop.xlane.xlu0 %2870 }
 0xfff   :  { %v2878_v14 = vsub.f32 %v4639_v40, %v2876_v44  ;;  %v2875_v47 = vmul.f32 0.03125, %v2871_v46  ;;  %v3409_v44 = vld [vmem:[%s4780_s20 + $0x1] ss:$0 sm:$0xff] }
0x1001   :  { %v2877_v49 = vsub.f32 %v4642_v39, %v2875_v47  ;;  %v2880_v50 = vmul.f32 %v2878_v14, %v2878_v14 }
0x1003   :  { %v2884_v16 = vsel %vm91_vm1, %v2880_v50, 0.0  ;;  %v2879_v51 = vmul.f32 %v2877_v49, %v2877_v49 }
0x1004   :  { %2885 = vadd.xlane.f32.xlu1 %v2884_v16 }
0x1005   :  { %v2881_v52 = vsel %vm87_vm0, %v2879_v51, 0.0 }
0x1006   :  { %2882 = vadd.xlane.f32.xlu0 %v2881_v52 }
0x108d   :  { %v2886_v58 = vpop.xlane.xlu1 %2885 }
0x108e   :  { %v2888_v59 = vmul.f32 0.03125, %v2886_v58 }
0x108f   :  { %v2883_v60 = vpop.xlane.xlu0 %2882 }
0x1090   :  { %v2890_v61 = vadd.f32 1e-05, %v2888_v59  ;;  %v2887_v63 = vmul.f32 0.03125, %v2883_v60 }
0x1092   :  { %3971 = vrsqrt.f32 %v2890_v61  ;;  %v2889_v1 = vadd.f32 1e-05, %v2887_v63 }
0x1094   :  { %3973 = vrsqrt.f32 %v2889_v1  ;;  %v3169_v1 = vld [vmem:[%s4781_s23 + $0x10] sm:$0xff] }
0x109f   :  { %v3972_v2 = vpop.eup %3971 }
0x10a0   :  { %v2894_v4 = vmul.f32 %v3972_v2, %v2878_v14  ;;  %v3168_v2 = vld [vmem:[%s4781_s23 + $0x8] sm:$0xff] }
0x10a1   :  { %v3974_v5 = vpop.eup %3973 }
0x10a2   :  { %v2893_v30 = vmul.f32 %v3974_v5, %v2877_v49  ;;  %v2902_v6 = vmul.f32 %v3380_v3, %v2894_v4 }
0x10a4   :  { %v2901_v8 = vmul.f32 %v3380_v3, %v2893_v30  ;;  %v2910_v9 = vadd.f32 %v3381_v7, %v2902_v6  ;;  %v3167_v3 = vld [vmem:[%s4781_s23] sm:$0xff] }
0x10a6   :  { %v2909_v26 = vadd.f32 %v3381_v7, %v2901_v8 }
0x10a8   :  { %3834 = vmatprep.mubr.msk.f32.mxu1 %vm87_vm0, %v2909_v26 }
0x10a9   :  { %3835 = vmatmul.mubr.msk.f32.vlgmr.msra.gmra.mxu1 %vm87_vm0, %v2910_v9  ;;  %v3410_v9 = vld [vmem:[%s4782_s21] ss:$0 sm:$0xff] }
0x1169   :  { %v3836_v0 = vpop.f32.mrf.mxu1 }
0x116a   :  { %v3002_v10 = vadd.f32 %v3836_v0, %v3387_v27 }
0x116b   :  { %v2996_v11 = vpop.f32.mrf.mxu1 }
0x116c   :  { %v3391_v45 = vmul.f32 -1.702, %v3002_v10  ;;  %v2997_v29 = vadd.f32 %v3387_v27, %v2996_v11 }
0x116e   :  { %v3011_v31 = vmul.f32 1.442695, %v3391_v45  ;;  %v3390_v32 = vmul.f32 -1.702, %v2997_v29 }
0x1170   :  { %3975 = vpow2.f32 %v3011_v31  ;;  %v3009_v33 = vmul.f32 1.442695, %v3390_v32 }
0x1172   :  { %3977 = vpow2.f32 %v3009_v33 }
0x117d   :  { %v3976_v34 = vpop.eup %3975 }
0x117e   :  { %v3014_v36 = vadd.f32 1.0, %v3976_v34 }
0x117f   :  { %v3978_v35 = vpop.eup %3977 }
0x1180   :  { %v3013_v24 = vadd.f32 1.0, %v3978_v35  ;;  %3979 = vrcp.f32 %v3014_v36 }
0x1182   :  { %3981 = vrcp.f32 %v3013_v24 }
0x118d   :  { %v3980_v38 = vpop.eup %3979 }
0x118e   :  { %v3020_v43 = vmul.f32 %v3980_v38, %v3002_v10 }
0x118f   :  { %v3982_v41 = vpop.eup %3981 }
0x1190   :  { %v3019_v42 = vmul.f32 %v3982_v41, %v2997_v29 }
0x1192   :  { %3869 = vmatprep.mubr.f32.mxu0 %v3019_v42 }
0x1193   :  { %3870 = vmatmul.mubr.f32.vlgmr.msra.gmra.mxu0 %v3020_v43 }
0x1253   :  { %v3871_v46 = vpop.f32.mrf.mxu0 }
0x1254   :  { %v3118_v14 = vadd.f32 %v3871_v46, %v3409_v44 }
0x1255   :  { %v3112_v47 = vpop.f32.mrf.mxu0 }
0x1256   :  { %v3113_v49 = vadd.f32 %v3409_v44, %v3112_v47  ;;  %v3122_v50 = vadd.f32 %v3118_v14, %v4639_v40 }
0x1258   :  { %v3128_v16 = vsel %vm91_vm1, %v3122_v50, 0.0  ;;  %v3121_v51 = vadd.f32 %v3113_v49, %v4642_v39  ;;  %v3170_v39 = vld [vmem:[%s4781_s23 + $0x18] sm:$0xff] }
0x1259   :  { %3129 = vadd.xlane.f32.xlu1 %v3128_v16  ;;  %3872 = vmatprep.subr.mxu1 %v3170_v39 }
0x125a   :  { %v3125_v52 = vsel %vm87_vm0, %v3121_v51, 0.0  ;;  %3873 = vmatpush3.msra.mxu1 %v3170_v39 }
0x125b   :  { %3126 = vadd.xlane.f32.xlu0 %v3125_v52  ;;  %3874 = vmatprep.subr.mxu1 %v3169_v1 }
0x125c   :  { %3875 = vmatpush3.msra.mxu1 %v3169_v1 }
0x125d   :  { %3876 = vmatprep.subr.mxu1 %v3168_v2 }
0x125e   :  { %3877 = vmatpush3.msra.mxu1 %v3168_v2 }
0x125f   :  { %3878 = vmatprep.subr.mxu1 %v3167_v3 }
0x1260   :  { %3879 = vmatpush3.msra.mxu1 %v3167_v3 }
0x12e2   :  { %v3130_v54 = vpop.xlane.xlu1 %3129 }
0x12e3   :  { %v3132_v55 = vmul.f32 0.03125, %v3130_v54 }
0x12e4   :  { %v3127_v56 = vpop.xlane.xlu0 %3126 }
0x12e5   :  { %v3134_v57 = vsub.f32 %v3122_v50, %v3132_v55  ;;  %v3131_v58 = vmul.f32 0.03125, %v3127_v56 }
0x12e7   :  { %v3133_v59 = vsub.f32 %v3121_v51, %v3131_v58  ;;  %v3136_v60 = vmul.f32 %v3134_v57, %v3134_v57 }
0x12e9   :  { %v3140_v61 = vsel %vm91_vm1, %v3136_v60, 0.0  ;;  %v3135_v63 = vmul.f32 %v3133_v59, %v3133_v59 }
0x12ea   :  { %3141 = vadd.xlane.f32.xlu1 %v3140_v61 }
0x12eb   :  { %v3137_v40 = vsel %vm87_vm0, %v3135_v63, 0.0 }
0x12ec   :  { %3138 = vadd.xlane.f32.xlu0 %v3137_v40 }
0x1373   :  { %v3142_v4 = vpop.xlane.xlu1 %3141 }
0x1374   :  { %v3144_v5 = vmul.f32 0.03125, %v3142_v4 }
0x1375   :  { %v3139_v30 = vpop.xlane.xlu0 %3138 }
0x1376   :  { %v3146_v6 = vadd.f32 1e-05, %v3144_v5  ;;  %v3143_v7 = vmul.f32 0.03125, %v3139_v30 }
0x1378   :  { %3983 = vrsqrt.f32 %v3146_v6  ;;  %v3145_v8 = vadd.f32 1e-05, %v3143_v7 }
0x137a   :  { %3985 = vrsqrt.f32 %v3145_v8 }
0x1385   :  { %v3984_v26 = vpop.eup %3983 }
0x1386   :  { %v3150_v25 = vmul.f32 %v3984_v26, %v3134_v57 }
0x1387   :  { %v3986_v37 = vpop.eup %3985 }
0x1388   :  { %v3149_v12 = vmul.f32 %v3986_v37, %v3133_v59  ;;  %v3158_v13 = vmul.f32 %v3410_v9, %v3150_v25 }
0x138a   :  { %v3157_v15 = vmul.f32 %v3410_v9, %v3149_v12  ;;  %v3166_v28 = vadd.f32 %v3411_v62, %v3158_v13 }
0x138c   :  { %v3165_v48 = vadd.f32 %v3411_v62, %v3157_v15 }
0x138e   :  { %3880 = vmatprep.mubr.msk.f32.mxu1 %vm87_vm0, %v3165_v48 }
0x138f   :  { %3881 = vmatmul.mubr.msk.f32.vlgmr.msra.gmra.mxu1 %vm87_vm0, %v3166_v28 }
0x144f   :  { %v3882_v17 = vpop.f32.mrf.mxu1 }
0x1450   :  { %3253 = vst.msk [vmem:[%s4784_s24 + $0x8] sm:$0x3] %vm91_vm1, %v3882_v17 }
0x1451   :  { %v3243_v18 = vpop.f32.mrf.mxu1 }
0x1452   :  { %3252 = vst.msk [vmem:[%s4784_s24] sm:$0xff] %vm87_vm0, %v3243_v18 }

// kernel: custom_clip_forward.6
= control target key start
LH: loop header
LB: loop body
LE: loop exit
PB: predicated region body
PF: predicated region fallthrough
CT: control target
= control target key end

     0   :  { %vm101_vm0 = vcmask 261120   ;;  %vm1743_vm1 = vcmask 785408   ;;  %s14897_s0 = inlined_call_operand.vmem [shape: f32[96,32], index: 0, kind: input, shape index: {}]   ;;  %s14898_s5 = inlined_call_operand.vmem [shape: f32[2,32,32], index: 5, kind: input, shape index: {}]   ;;  %s14899_s7 = inlined_call_operand.vmem [shape: f32[2,32,32], index: 7, kind: input, shape index: {}]   ;;  %s14900_s9 = inlined_call_operand.vmem [shape: f32[2,32,32], index: 9, kind: input, shape index: {}]   ;;  %s14901_s3 = inlined_call_operand.vmem [shape: f32[2,1,32], index: 3, kind: input, shape index: {}]   ;;  %s14902_s4 = inlined_call_operand.vmem [shape: f32[2,1,32], index: 4, kind: input, shape index: {}]   ;;  %s14903_s6 = inlined_call_operand.vmem [shape: f32[2,1,32], index: 6, kind: input, shape index: {}]   ;;  %s14904_s2 = inlined_call_operand.vmem [shape: f32[4,1,32], index: 2, kind: input, shape index: {}]   ;;  %s14905_s8 = inlined_call_operand.vmem [shape: f32[2,1,32], index: 8, kind: input, shape index: {}]   ;;  %s14906_s10 = inlined_call_operand.vmem [shape: f32[2,1,32], index: 10, kind: input, shape index: {}]   ;;  %s14907_s1 = inlined_call_operand.vmem [shape: f32[96,96], index: 1, kind: input, shape index: {}]   ;;  %s14908_s11 = inlined_call_operand.vmem [shape: f32[2,32,32], index: 11, kind: input, shape index: {}]   ;;  %s14909_s12 = inlined_call_operand.vmem [shape: f32[2,1,32], index: 12, kind: input, shape index: {}]   ;;  %s14910_s15 = inlined_call_operand.vmem [shape: f32[2,32,128], index: 15, kind: input, shape index: {}]   ;;  %s14911_s13 = inlined_call_operand.vmem [shape: f32[2,1,32], index: 13, kind: input, shape index: {}]   ;;  %s14912_s14 = inlined_call_operand.vmem [shape: f32[2,1,32], index: 14, kind: input, shape index: {}]   ;;  %s14913_s17 = inlined_call_operand.vmem [shape: f32[2,128,32], index: 17, kind: input, shape index: {}]   ;;  %s14914_s16 = inlined_call_operand.vmem [shape: f32[2,1,128], index: 16, kind: input, shape index: {}]   ;;  %s14915_s18 = inlined_call_operand.vmem [shape: f32[2,1,32], index: 18, kind: input, shape index: {}]   ;;  %s14916_s21 = inlined_call_operand.vmem [shape: f32[32,32], index: 21, kind: input, shape index: {}]   ;;  %s14917_s19 = inlined_call_operand.vmem [shape: f32[1,32], index: 19, kind: input, shape index: {}]   ;;  %s14918_s20 = inlined_call_operand.vmem [shape: f32[1,32], index: 20, kind: input, shape index: {}]   ;;  %s14919_s22 = inlined_call_operand.vmem [shape: f32[96,32], index: 22, kind: output, shape index: {}]  }
   0x1   :  { %14981 = sst [smem:[#allocation25_spill]] %s14897_s0 }
   0x2   :  { %14982 = sst [smem:[#allocation26_spill]] %s14898_s5 }
   0x3   :  { %14983 = sst [smem:[#allocation27_spill]] %s14899_s7 }
   0x4   :  { %14984 = sst [smem:[#allocation28_spill]] %s14900_s9 }
   0x5   :  { %14985 = sst [smem:[#allocation29_spill]] %s14901_s3 }
   0x6   :  { %14986 = sst [smem:[#allocation30_spill]] %s14902_s4 }
   0x7   :  { %14987 = sst [smem:[#allocation31_spill]] %s14903_s6 }
   0x8   :  { %s14988_s29 = sld [smem:[#allocation25_spill]] }
   0x9   :  { %s14989_s7 = sld [smem:[#allocation26_spill]] }
   0xa   :  { %s14990_s28 = sld [smem:[#allocation27_spill]] }
   0xb   :  { %s14991_s0 = sld [smem:[#allocation28_spill]] }
   0xc   :  { %s14992_s5 = sld [smem:[#allocation29_spill]] }
   0xd   :  { %s14993_s25 = sld [smem:[#allocation30_spill]] }
   0xe   :  { %v71_v0 = vld [vmem:[%s14988_s29] sm:$0xff]  ;;  %v73_v1 = vld [vmem:[%s14988_s29 + $0x10] sm:$0xff]  ;;  %v72_v2 = vld [vmem:[%s14988_s29 + $0x8] sm:$0xff]  ;;  %s14994_s6 = sld [smem:[#allocation31_spill]] }
   0xf   :  { %v102_v3 = vsel %vm101_vm0, %v71_v0, 0.0  ;;  %v108_v4 = vsel %vm101_vm0, %v73_v1, 0.0  ;;  %v74_v5 = vld [vmem:[%s14988_s29 + $0x18] sm:$0xff]  ;;  %v105_v6 = vsel %vm101_vm0, %v72_v2, 0.0  ;;  %v75_v8 = vld [vmem:[%s14988_s29 + $0x20] sm:$0xff]  ;;  %v76_v9 = vld [vmem:[%s14988_s29 + $0x28] sm:$0xff] }
  0x10   :  { %103 = vadd.xlane.f32.xlu0 %v102_v3  ;;  %109 = vadd.xlane.f32.xlu1 %v108_v4  ;;  %v111_v7 = vsel %vm101_vm0, %v74_v5, 0.0  ;;  %v114_v10 = vsel %vm101_vm0, %v75_v8, 0.0  ;;  %v117_v11 = vsel %vm101_vm0, %v76_v9, 0.0  ;;  %v77_v12 = vld [vmem:[%s14988_s29 + $0x30] sm:$0xff]  ;;  %v78_v13 = vld [vmem:[%s14988_s29 + $0x38] sm:$0xff]  ;;  %v79_v16 = vld [vmem:[%s14988_s29 + $0x40] sm:$0xff] }
  0x11   :  { %v120_v14 = vsel %vm101_vm0, %v77_v12, 0.0  ;;  %v123_v15 = vsel %vm101_vm0, %v78_v13, 0.0  ;;  %v80_v17 = vld [vmem:[%s14988_s29 + $0x48] sm:$0xff]  ;;  %v126_v18 = vsel %vm101_vm0, %v79_v16, 0.0  ;;  %v10889_v20 = vld [vmem:[%s14988_s29 + $0x50] sm:$0xff]  ;;  %v10894_v21 = vld [vmem:[%s14988_s29 + $0x58] sm:$0xff] }
  0x12   :  { %v129_v19 = vsel %vm101_vm0, %v80_v17, 0.0  ;;  %v132_v22 = vsel %vm101_vm0, %v10889_v20, 0.0  ;;  %v135_v23 = vsel %vm101_vm0, %v10894_v21, 0.0 }
  0x14   :  { %106 = vadd.xlane.f32.xlu0 %v105_v6  ;;  %112 = vadd.xlane.f32.xlu1 %v111_v7 }
  0x18   :  { %115 = vadd.xlane.f32.xlu0 %v114_v10  ;;  %118 = vadd.xlane.f32.xlu1 %v117_v11 }
  0x1c   :  { %121 = vadd.xlane.f32.xlu0 %v120_v14  ;;  %124 = vadd.xlane.f32.xlu1 %v123_v15 }
  0x20   :  { %127 = vadd.xlane.f32.xlu0 %v126_v18  ;;  %130 = vadd.xlane.f32.xlu1 %v129_v19 }
  0x24   :  { %133 = vadd.xlane.f32.xlu0 %v132_v22  ;;  %136 = vadd.xlane.f32.xlu1 %v135_v23  ;;  %v297_v22 = vld [vmem:[%s14989_s7 + $0x10] sm:$0xff] }
  0x25   :  { %v469_v23 = vld [vmem:[%s14990_s28 + $0x10] sm:$0xff] }
  0x99   :  { %v104_v24 = vpop.xlane.xlu0 %103  ;;  %v110_v25 = vpop.xlane.xlu1 %109 }
  0x9a   :  { %v139_v26 = vmul.f32 0.03125, %v104_v24  ;;  %v141_v27 = vmul.f32 0.03125, %v110_v25  ;;  %v296_v24 = vld [vmem:[%s14989_s7 + $0x8] sm:$0xff] }
  0x9b   :  { %v468_v25 = vld [vmem:[%s14990_s28 + $0x8] sm:$0xff] }
  0x9c   :  { %v10900_v28 = vsub.f32 %v71_v0, %v139_v26  ;;  %v10902_v29 = vsub.f32 %v73_v1, %v141_v27  ;;  %v295_v26 = vld [vmem:[%s14989_s7] sm:$0xff] }
  0x9d   :  { %v107_v30 = vpop.xlane.xlu0 %106  ;;  %v113_v31 = vpop.xlane.xlu1 %112  ;;  %v467_v27 = vld [vmem:[%s14990_s28] sm:$0xff] }
  0x9e   :  { %v140_v32 = vmul.f32 0.03125, %v107_v30  ;;  %v142_v33 = vmul.f32 0.03125, %v113_v31  ;;  %v163_v34 = vmul.f32 %v10900_v28, %v10900_v28  ;;  %v165_v35 = vmul.f32 %v10902_v29, %v10902_v29  ;;  %v10989_v30 = vld [vmem:[%s14991_s0 + $0x18] sm:$0xff] }
  0xa0   :  { %v10908_v36 = vsub.f32 %v72_v2, %v140_v32  ;;  %v10910_v37 = vsub.f32 %v74_v5, %v142_v33  ;;  %v175_v38 = vsel %vm101_vm0, %v163_v34, 0.0  ;;  %v181_v41 = vsel %vm101_vm0, %v165_v35, 0.0 }
  0xa1   :  { %176 = vadd.xlane.f32.xlu0 %v175_v38  ;;  %v116_v39 = vpop.xlane.xlu0 %115  ;;  %v119_v40 = vpop.xlane.xlu1 %118 }
  0xa2   :  { %v143_v42 = vmul.f32 0.03125, %v116_v39  ;;  %v144_v43 = vmul.f32 0.03125, %v119_v40  ;;  %v164_v44 = vmul.f32 %v10908_v36, %v10908_v36  ;;  %v166_v45 = vmul.f32 %v10910_v37, %v10910_v37 }
  0xa4   :  { %v10918_v46 = vsub.f32 %v75_v8, %v143_v42  ;;  %v10920_v47 = vsub.f32 %v76_v9, %v144_v43  ;;  %v178_v48 = vsel %vm101_vm0, %v164_v44, 0.0  ;;  %v184_v51 = vsel %vm101_vm0, %v166_v45, 0.0 }
  0xa5   :  { %182 = vadd.xlane.f32.xlu0 %v181_v41  ;;  %179 = vadd.xlane.f32.xlu1 %v178_v48  ;;  %v122_v49 = vpop.xlane.xlu0 %121  ;;  %v125_v50 = vpop.xlane.xlu1 %124 }
  0xa6   :  { %v145_v52 = vmul.f32 0.03125, %v122_v49  ;;  %v146_v53 = vmul.f32 0.03125, %v125_v50  ;;  %v167_v54 = vmul.f32 %v10918_v46, %v10918_v46  ;;  %v168_v55 = vmul.f32 %v10920_v47, %v10920_v47 }
  0xa8   :  { %v10928_v56 = vsub.f32 %v77_v12, %v145_v52  ;;  %v10930_v57 = vsub.f32 %v78_v13, %v146_v53  ;;  %v187_v58 = vsel %vm101_vm0, %v167_v54, 0.0  ;;  %v190_v61 = vsel %vm101_vm0, %v168_v55, 0.0 }
  0xa9   :  { %185 = vadd.xlane.f32.xlu1 %v184_v51  ;;  %188 = vadd.xlane.f32.xlu0 %v187_v58  ;;  %v128_v59 = vpop.xlane.xlu0 %127  ;;  %v131_v60 = vpop.xlane.xlu1 %130 }
  0xaa   :  { %v147_v62 = vmul.f32 0.03125, %v128_v59  ;;  %v148_v63 = vmul.f32 0.03125, %v131_v60  ;;  %v169_v0 = vmul.f32 %v10928_v56, %v10928_v56  ;;  %v170_v1 = vmul.f32 %v10930_v57, %v10930_v57 }
  0xac   :  { %v10938_v2 = vsub.f32 %v79_v16, %v147_v62  ;;  %v10940_v3 = vsub.f32 %v80_v17, %v148_v63  ;;  %v193_v4 = vsel %vm101_vm0, %v169_v0, 0.0  ;;  %v196_v7 = vsel %vm101_vm0, %v170_v1, 0.0  ;;  %v10995_v63 = vld [vmem:[%s14992_s5] ss:$0 sm:$0xff] }
  0xad   :  { %191 = vadd.xlane.f32.xlu1 %v190_v61  ;;  %194 = vadd.xlane.f32.xlu0 %v193_v4  ;;  %v134_v5 = vpop.xlane.xlu0 %133  ;;  %v137_v6 = vpop.xlane.xlu1 %136 }
  0xae   :  { %v149_v8 = vmul.f32 0.03125, %v134_v5  ;;  %v150_v9 = vmul.f32 0.03125, %v137_v6  ;;  %v171_v10 = vmul.f32 %v10938_v2, %v10938_v2  ;;  %v172_v11 = vmul.f32 %v10940_v3, %v10940_v3 }
  0xb0   :  { %v10949_v12 = vsub.f32 %v10889_v20, %v149_v8  ;;  %v10952_v13 = vsub.f32 %v10894_v21, %v150_v9  ;;  %v199_v14 = vsel %vm101_vm0, %v171_v10, 0.0  ;;  %v202_v15 = vsel %vm101_vm0, %v172_v11, 0.0  ;;  %v298_v20 = vld [vmem:[%s14989_s7 + $0x18] sm:$0xff] }
  0xb1   :  { %197 = vadd.xlane.f32.xlu1 %v196_v7  ;;  %200 = vadd.xlane.f32.xlu0 %v199_v14  ;;  %v470_v21 = vld [vmem:[%s14990_s28 + $0x18] sm:$0xff]  ;;  %v11001_v7 = vld [vmem:[%s14993_s25] ss:$0 sm:$0xff] }
  0xb2   :  { %v173_v16 = vmul.f32 %v10949_v12, %v10949_v12  ;;  %v174_v17 = vmul.f32 %v10952_v13, %v10952_v13  ;;  %9033 = vmatprep.subr.mxu0 %v298_v20  ;;  %9059 = vmatprep.subr.mxu1 %v470_v21 }
  0xb3   :  { %9034 = vmatpush3.msra.mxu0 %v298_v20  ;;  %9060 = vmatpush3.msra.mxu1 %v470_v21 }
  0xb4   :  { %v205_v18 = vsel %vm101_vm0, %v173_v16, 0.0  ;;  %v208_v19 = vsel %vm101_vm0, %v174_v17, 0.0  ;;  %9035 = vmatprep.subr.mxu0 %v297_v22  ;;  %9061 = vmatprep.subr.mxu1 %v469_v23 }
  0xb5   :  { %203 = vadd.xlane.f32.xlu1 %v202_v15  ;;  %206 = vadd.xlane.f32.xlu0 %v205_v18 }
  0xb6   :  { %9036 = vmatpush3.msra.mxu0 %v297_v22  ;;  %9062 = vmatpush3.msra.mxu1 %v469_v23 }
  0xb7   :  { %9037 = vmatprep.subr.mxu0 %v296_v24  ;;  %9063 = vmatprep.subr.mxu1 %v468_v25 }
  0xb8   :  { %9038 = vmatpush3.msra.mxu0 %v296_v24  ;;  %9064 = vmatpush3.msra.mxu1 %v468_v25 }
  0xb9   :  { %209 = vadd.xlane.f32.xlu1 %v208_v19  ;;  %9039 = vmatprep.subr.mxu0 %v295_v26 }
  0xba   :  { %9065 = vmatprep.subr.mxu1 %v467_v27  ;;  %9040 = vmatpush3.msra.mxu0 %v295_v26 }
  0xbb   :  { %9066 = vmatpush3.msra.mxu1 %v467_v27  ;;  %9085 = vmatprep.subr.mxu0 %v10989_v30 }
 0x12a   :  { %v177_v31 = vpop.xlane.xlu0 %176 }
 0x12b   :  { %v211_v32 = vmul.f32 0.03125, %v177_v31 }
 0x12d   :  { %v223_v33 = vadd.f32 1e-05, %v211_v32  ;;  %v605_v32 = vld [vmem:[%s14991_s0 + $0x10] sm:$0xff] }
 0x12e   :  { %v180_v34 = vpop.xlane.xlu1 %179  ;;  %v183_v35 = vpop.xlane.xlu0 %182 }
 0x12f   :  { %10099 = vrsqrt.f32 %v223_v33  ;;  %v212_v38 = vmul.f32 0.03125, %v180_v34  ;;  %v213_v39 = vmul.f32 0.03125, %v183_v35 }
 0x131   :  { %v224_v40 = vadd.f32 1e-05, %v212_v38  ;;  %v225_v41 = vadd.f32 1e-05, %v213_v39 }
 0x132   :  { %v186_v42 = vpop.xlane.xlu1 %185  ;;  %v189_v43 = vpop.xlane.xlu0 %188 }
 0x133   :  { %10101 = vrsqrt.f32 %v224_v40  ;;  %v214_v44 = vmul.f32 0.03125, %v186_v42  ;;  %v215_v45 = vmul.f32 0.03125, %v189_v43 }
 0x134   :  { %10103 = vrsqrt.f32 %v225_v41  ;;  %v604_v41 = vld [vmem:[%s14991_s0 + $0x8] sm:$0xff] }
 0x135   :  { %v226_v48 = vadd.f32 1e-05, %v214_v44  ;;  %v227_v49 = vadd.f32 1e-05, %v215_v45 }
 0x136   :  { %v192_v50 = vpop.xlane.xlu1 %191  ;;  %v195_v51 = vpop.xlane.xlu0 %194 }
 0x137   :  { %10105 = vrsqrt.f32 %v226_v48  ;;  %v216_v52 = vmul.f32 0.03125, %v192_v50  ;;  %v217_v53 = vmul.f32 0.03125, %v195_v51 }
 0x138   :  { %10107 = vrsqrt.f32 %v227_v49  ;;  %v603_v49 = vld [vmem:[%s14991_s0] sm:$0xff] }
 0x139   :  { %v228_v54 = vadd.f32 1e-05, %v216_v52  ;;  %v229_v55 = vadd.f32 1e-05, %v217_v53 }
 0x13a   :  { %v198_v58 = vpop.xlane.xlu1 %197  ;;  %v201_v59 = vpop.xlane.xlu0 %200 }
 0x13b   :  { %10109 = vrsqrt.f32 %v228_v54  ;;  %v218_v60 = vmul.f32 0.03125, %v198_v58  ;;  %v219_v61 = vmul.f32 0.03125, %v201_v59 }
 0x13c   :  { %v10100_v62 = vpop.eup %10099  ;;  %10111 = vrsqrt.f32 %v229_v55 }
 0x13d   :  { %v230_v0 = vadd.f32 1e-05, %v218_v60  ;;  %v231_v1 = vadd.f32 1e-05, %v219_v61  ;;  %v247_v4 = vmul.f32 %v10100_v62, %v10900_v28 }
 0x13e   :  { %v204_v5 = vpop.xlane.xlu1 %203  ;;  %v207_v6 = vpop.xlane.xlu0 %206 }
 0x13f   :  { %10113 = vrsqrt.f32 %v230_v0  ;;  %v220_v8 = vmul.f32 0.03125, %v204_v5  ;;  %v221_v9 = vmul.f32 0.03125, %v207_v6  ;;  %v265_v10 = vmul.f32 %v10995_v63, %v247_v4 }
 0x140   :  { %v10102_v11 = vpop.eup %10101  ;;  %10115 = vrsqrt.f32 %v231_v1 }
 0x141   :  { %v10104_v14 = vpop.eup %10103  ;;  %v232_v15 = vadd.f32 1e-05, %v220_v8  ;;  %v233_v16 = vadd.f32 1e-05, %v221_v9  ;;  %v11005_v17 = vadd.f32 %v11001_v7, %v265_v10  ;;  %v248_v28 = vmul.f32 %v10102_v11, %v10908_v36  ;;  %v11119_v8 = vld [vmem:[%s14904_s2] ss:$0 sm:$0xff] }
 0x142   :  { %v210_v18 = vpop.xlane.xlu1 %209  ;;  %v249_v19 = vmul.f32 %v10104_v14, %v10902_v29  ;;  %v11124_v9 = vld [vmem:[%s14904_s2 + $0x1] ss:$0 sm:$0xff] }
 0x143   :  { %10117 = vrsqrt.f32 %v232_v15  ;;  %v222_v20 = vmul.f32 0.03125, %v210_v18  ;;  %9041 = vmatprep.mubr.msk.f32.mxu0 %vm101_vm0, %v11005_v17  ;;  %9067 = vmatprep.mubr.msk.f32.mxu1 %vm101_vm0, %v11005_v17  ;;  %v266_v21 = vmul.f32 %v10995_v63, %v248_v28 }
 0x144   :  { %v10106_v22 = vpop.eup %10105  ;;  %10119 = vrsqrt.f32 %v233_v16  ;;  %v267_v23 = vmul.f32 %v10995_v63, %v249_v19 }
 0x145   :  { %v10108_v24 = vpop.eup %10107  ;;  %v234_v25 = vadd.f32 1e-05, %v222_v20  ;;  %v11016_v36 = vadd.f32 %v11001_v7, %v266_v21  ;;  %v250_v29 = vmul.f32 %v10106_v22, %v10910_v37  ;;  %v11137_v20 = vld [vmem:[%s14905_s8] ss:$0 sm:$0xff] }
 0x146   :  { %v11020_v26 = vadd.f32 %v11001_v7, %v267_v23  ;;  %v251_v27 = vmul.f32 %v10108_v24, %v10918_v46 }
 0x147   :  { %10121 = vrsqrt.f32 %v234_v25  ;;  %9042 = vmatmul.mubr.msk.f32.vlgmr.msra.gmra.mxu0 %vm101_vm0, %v11016_v36  ;;  %9068 = vmatmul.mubr.msk.f32.vlgmr.msra.gmra.mxu1 %vm101_vm0, %v11016_v36  ;;  %v268_v31 = vmul.f32 %v10995_v63, %v250_v29 }
 0x148   :  { %v10110_v33 = vpop.eup %10109  ;;  %9044 = vmatprep.mubr.msk.f32.mxu0 %vm101_vm0, %v11020_v26  ;;  %9070 = vmatprep.mubr.msk.f32.mxu1 %vm101_vm0, %v11020_v26  ;;  %v269_v37 = vmul.f32 %v10995_v63, %v251_v27 }
 0x149   :  { %v10112_v46 = vpop.eup %10111  ;;  %v286_v34 = vadd.f32 %v11001_v7, %v268_v31  ;;  %v252_v35 = vmul.f32 %v10110_v33, %v10920_v47  ;;  %9086 = vmatpush3.msra.mxu0 %v10989_v30 }
 0x14a   :  { %v287_v38 = vadd.f32 %v11001_v7, %v269_v37  ;;  %v253_v39 = vmul.f32 %v10112_v46, %v10928_v56  ;;  %9087 = vmatprep.subr.mxu0 %v605_v32 }
 0x14b   :  { %9045 = vmatmul.mubr.msk.f32.gmra.mxu0 %vm101_vm0, %v286_v34  ;;  %9071 = vmatmul.mubr.msk.f32.gmra.mxu1 %vm101_vm0, %v286_v34  ;;  %v270_v40 = vmul.f32 %v10995_v63, %v252_v35 }
 0x14c   :  { %v10114_v42 = vpop.eup %10113  ;;  %9047 = vmatprep.mubr.msk.f32.mxu0 %vm101_vm0, %v287_v38  ;;  %9073 = vmatprep.mubr.msk.f32.mxu1 %vm101_vm0, %v287_v38  ;;  %v271_v47 = vmul.f32 %v10995_v63, %v253_v39 }
 0x14d   :  { %v10116_v30 = vpop.eup %10115  ;;  %v288_v56 = vadd.f32 %v11001_v7, %v270_v40  ;;  %v254_v43 = vmul.f32 %v10114_v42, %v10930_v57  ;;  %9088 = vmatpush3.msra.mxu0 %v605_v32 }
 0x14e   :  { %v289_v44 = vadd.f32 %v11001_v7, %v271_v47  ;;  %v255_v45 = vmul.f32 %v10116_v30, %v10938_v2  ;;  %9089 = vmatprep.subr.mxu0 %v604_v41 }
 0x14f   :  { %9048 = vmatmul.mubr.msk.f32.gmra.mxu0 %vm101_vm0, %v288_v56  ;;  %9074 = vmatmul.mubr.msk.f32.gmra.mxu1 %vm101_vm0, %v288_v56  ;;  %v272_v48 = vmul.f32 %v10995_v63, %v254_v43 }
 0x150   :  { %v10118_v50 = vpop.eup %10117  ;;  %9050 = vmatprep.mubr.msk.f32.mxu0 %vm101_vm0, %v289_v44  ;;  %9076 = vmatprep.mubr.msk.f32.mxu1 %vm101_vm0, %v289_v44  ;;  %v273_v57 = vmul.f32 %v10995_v63, %v255_v45 }
 0x151   :  { %v10120_v51 = vpop.eup %10119  ;;  %v290_v2 = vadd.f32 %v11001_v7, %v272_v48  ;;  %v256_v52 = vmul.f32 %v10118_v50, %v10940_v3  ;;  %9090 = vmatpush3.msra.mxu0 %v604_v41 }
 0x152   :  { %v291_v53 = vadd.f32 %v11001_v7, %v273_v57  ;;  %v257_v54 = vmul.f32 %v10120_v51, %v10949_v12  ;;  %9091 = vmatprep.subr.mxu0 %v603_v49 }
 0x153   :  { %9051 = vmatmul.mubr.msk.f32.gmra.mxu0 %vm101_vm0, %v290_v2  ;;  %9077 = vmatmul.mubr.msk.f32.gmra.mxu1 %vm101_vm0, %v290_v2  ;;  %v274_v55 = vmul.f32 %v10995_v63, %v256_v52 }
 0x154   :  { %v10122_v58 = vpop.eup %10121  ;;  %9053 = vmatprep.mubr.msk.f32.mxu0 %vm101_vm0, %v291_v53  ;;  %9079 = vmatprep.mubr.msk.f32.mxu1 %vm101_vm0, %v291_v53  ;;  %v275_v59 = vmul.f32 %v10995_v63, %v257_v54 }
 0x155   :  { %v292_v3 = vadd.f32 %v11001_v7, %v274_v55  ;;  %v258_v60 = vmul.f32 %v10122_v58, %v10952_v13  ;;  %9092 = vmatpush3.msra.mxu0 %v603_v49  ;;  %v11102_v13 = vld [vmem:[%s14994_s6] ss:$0 sm:$0xff] }
 0x156   :  { %v293_v12 = vadd.f32 %v11001_v7, %v275_v59 }
 0x157   :  { %9054 = vmatmul.mubr.msk.f32.gmra.mxu0 %vm101_vm0, %v292_v3  ;;  %9080 = vmatmul.mubr.msk.f32.gmra.mxu1 %vm101_vm0, %v292_v3  ;;  %v276_v61 = vmul.f32 %v10995_v63, %v258_v60 }
 0x158   :  { %9056 = vmatprep.mubr.msk.f32.mxu0 %vm101_vm0, %v293_v12  ;;  %9082 = vmatprep.mubr.msk.f32.mxu1 %vm101_vm0, %v293_v12 }
 0x159   :  { %v294_v62 = vadd.f32 %v11001_v7, %v276_v61 }
 0x15b   :  { %9057 = vmatmul.mubr.msk.f32.gmra.mxu0 %vm101_vm0, %v294_v62  ;;  %9083 = vmatmul.mubr.msk.f32.gmra.mxu1 %vm101_vm0, %v294_v62 }
 0x15c   :  { %9093 = vmatprep.mubr.msk.f32.mxu0 %vm101_vm0, %v11005_v17 }
 0x15f   :  { %9094 = vmatmul.mubr.msk.f32.vlgmr.msra.gmra.mxu0 %vm101_vm0, %v11016_v36 }
 0x160   :  { %9096 = vmatprep.mubr.msk.f32.mxu0 %vm101_vm0, %v11020_v26 }
 0x163   :  { %9097 = vmatmul.mubr.msk.f32.gmra.mxu0 %vm101_vm0, %v286_v34 }
 0x164   :  { %9099 = vmatprep.mubr.msk.f32.mxu0 %vm101_vm0, %v287_v38 }
 0x167   :  { %9100 = vmatmul.mubr.msk.f32.gmra.mxu0 %vm101_vm0, %v288_v56 }
 0x168   :  { %9102 = vmatprep.mubr.msk.f32.mxu0 %vm101_vm0, %v289_v44 }
 0x16b   :  { %9103 = vmatmul.mubr.msk.f32.gmra.mxu0 %vm101_vm0, %v290_v2 }
 0x16c   :  { %9105 = vmatprep.mubr.msk.f32.mxu0 %vm101_vm0, %v291_v53 }
 0x16f   :  { %9106 = vmatmul.mubr.msk.f32.gmra.mxu0 %vm101_vm0, %v292_v3 }
 0x170   :  { %9108 = vmatprep.mubr.msk.f32.mxu0 %vm101_vm0, %v293_v12 }
 0x173   :  { %9109 = vmatmul.mubr.msk.f32.gmra.mxu0 %vm101_vm0, %v294_v62 }
 0x207   :  { %v9043_v63 = vpop.f32.mrf.mxu0  ;;  %v11104_v0 = vpop.f32.mrf.mxu1 }
 0x208   :  { %v11107_v1 = vadd.f32 %v9043_v63, %v11102_v13  ;;  %v11255_v58 = vadd.f32 %v11104_v0, %v11137_v20 }
 0x209   :  { %v408_v4 = vpop.f32.mrf.mxu0  ;;  %v11109_v5 = vpop.f32.mrf.mxu1 }
 0x20a   :  { %v11112_v6 = vadd.f32 %v11102_v13, %v408_v4  ;;  %v11269_v12 = vadd.f32 %v11137_v20, %v11109_v5  ;;  %v812_v61 = vmul.f32 %v11119_v8, %v11255_v58  ;;  %v824_v62 = vmul.f32 %v11124_v9, %v11255_v58 }
 0x20b   :  { %v11114_v7 = vpop.f32.mrf.mxu1  ;;  %v11171_v37 = vpop.f32.mrf.mxu0 }
 0x20c   :  { %v763_v11 = vmul.f32 %v11119_v8, %v11112_v6  ;;  %v775_v14 = vmul.f32 %v11124_v9, %v11112_v6  ;;  %v11229_v50 = vadd.f32 %v11114_v7, %v11137_v20  ;;  %v811_v0 = vmul.f32 %v11119_v8, %v11269_v12  ;;  %v11294_v7 = vld [vmem:[%s14904_s2 + $0x2] ss:$0 sm:$0xff] }
 0x20d   :  { %v11126_v10 = vpop.f32.mrf.mxu1  ;;  %v11184_v38 = vpop.f32.mrf.mxu0  ;;  %v823_v4 = vmul.f32 %v11124_v9, %v11269_v12 }
 0x20e   :  { %9135 = vmatprep.mubr.msk.f32.mxu1 %vm101_vm0, %v763_v11  ;;  %9177 = vmatprep.mubr.msk.f32.mxu0 %vm101_vm0, %v775_v14  ;;  %v11241_v52 = vadd.f32 %v11137_v20, %v11126_v10  ;;  %v814_v53 = vmul.f32 %v11119_v8, %v11229_v50  ;;  %v826_v54 = vmul.f32 %v11124_v9, %v11229_v50  ;;  %v11299_v10 = vld [vmem:[%s14904_s2 + $0x3] ss:$0 sm:$0xff] }
 0x20f   :  { %v9075_v15 = vpop.f32.mrf.mxu1  ;;  %v11197_v42 = vpop.f32.mrf.mxu0  ;;  %v11303_v11 = vadd.f32 %v11102_v13, %v11184_v38 }
 0x210   :  { %v11202_v47 = vadd.f32 %v9075_v15, %v11137_v20  ;;  %v813_v59 = vmul.f32 %v11119_v8, %v11241_v52  ;;  %v825_v3 = vmul.f32 %v11124_v9, %v11241_v52 }
 0x211   :  { %v564_v16 = vpop.f32.mrf.mxu1  ;;  %v11210_v43 = vpop.f32.mrf.mxu0 }
 0x212   :  { %v11215_v44 = vadd.f32 %v11137_v20, %v564_v16  ;;  %v816_v45 = vmul.f32 %v11119_v8, %v11202_v47  ;;  %v828_v48 = vmul.f32 %v11124_v9, %v11202_v47  ;;  %v764_v16 = vmul.f32 %v11119_v8, %v11107_v1 }
 0x213   :  { %v9078_v17 = vpop.f32.mrf.mxu1  ;;  %v11223_v49 = vpop.f32.mrf.mxu0 }
 0x214   :  { %v11176_v46 = vadd.f32 %v9078_v17, %v11137_v20  ;;  %v815_v57 = vmul.f32 %v11119_v8, %v11215_v44  ;;  %v827_v51 = vmul.f32 %v11124_v9, %v11215_v44  ;;  %v776_v17 = vmul.f32 %v11124_v9, %v11107_v1 }
 0x215   :  { %v574_v28 = vpop.f32.mrf.mxu1  ;;  %v438_v2 = vpop.f32.mrf.mxu0 }
 0x216   :  { %v11189_v39 = vadd.f32 %v11137_v20, %v574_v28  ;;  %v818_v40 = vmul.f32 %v11119_v8, %v11176_v46  ;;  %v830_v41 = vmul.f32 %v11124_v9, %v11176_v46  ;;  %v11317_v28 = vadd.f32 %v11171_v37, %v11102_v13 }
 0x217   :  { %v9081_v18 = vpop.f32.mrf.mxu1  ;;  %v11249_v55 = vpop.f32.mrf.mxu0 }
 0x218   :  { %v11150_v29 = vadd.f32 %v9081_v18, %v11137_v20  ;;  %v817_v30 = vmul.f32 %v11119_v8, %v11189_v39  ;;  %v829_v56 = vmul.f32 %v11124_v9, %v11189_v39 }
 0x219   :  { %v584_v19 = vpop.f32.mrf.mxu1  ;;  %v11263_v60 = vpop.f32.mrf.mxu0 }
 0x21a   :  { %v11163_v31 = vadd.f32 %v11137_v20, %v584_v19  ;;  %v820_v32 = vmul.f32 %v11119_v8, %v11150_v29  ;;  %v832_v33 = vmul.f32 %v11124_v9, %v11150_v29  ;;  %v11325_v19 = vadd.f32 %v11102_v13, %v11210_v43 }
 0x21b   :  { %v9084_v21 = vpop.f32.mrf.mxu1  ;;  %v11277_v63 = vpop.f32.mrf.mxu0  ;;  %v844_v37 = vmul.f32 %v11294_v7, %v11150_v29 }
 0x21c   :  { %v11140_v22 = vadd.f32 %v9084_v21, %v11137_v20  ;;  %v819_v34 = vmul.f32 %v11119_v8, %v11163_v31  ;;  %v831_v35 = vmul.f32 %v11124_v9, %v11163_v31  ;;  %v777_v21 = vmul.f32 %v11124_v9, %v11303_v11 }
 0x21d   :  { %v594_v23 = vpop.f32.mrf.mxu1  ;;  %v11287_v5 = vpop.f32.mrf.mxu0  ;;  %v855_v43 = vmul.f32 %v11299_v10, %v11163_v31 }
 0x21e   :  { %v11143_v24 = vadd.f32 %v11137_v20, %v594_v23  ;;  %v822_v25 = vmul.f32 %v11119_v8, %v11140_v22  ;;  %v834_v36 = vmul.f32 %v11124_v9, %v11140_v22  ;;  %v846_v14 = vmul.f32 %v11294_v7, %v11140_v22 }
 0x21f   :  { %v858_v15 = vmul.f32 %v11299_v10, %v11140_v22  ;;  %v11319_v18 = vpop.f32.mrf.mxu0  ;;  %v765_v20 = vmul.f32 %v11119_v8, %v11303_v11 }
 0x220   :  { %9111 = vmatprep.subr.msk.mxu1 %vm101_vm0, %v822_v25  ;;  %9153 = vmatprep.subr.msk.mxu0 %vm101_vm0, %v834_v36  ;;  %v821_v26 = vmul.f32 %v11119_v8, %v11143_v24  ;;  %v833_v27 = vmul.f32 %v11124_v9, %v11143_v24  ;;  %v845_v22 = vmul.f32 %v11294_v7, %v11143_v24 }
 0x221   :  { %9112 = vmatpush3.xpose.msk.msra.mxu1 %vm101_vm0, %v822_v25  ;;  %9154 = vmatpush3.xpose.msk.msra.mxu0 %vm101_vm0, %v834_v36  ;;  %v857_v23 = vmul.f32 %v11299_v10, %v11143_v24  ;;  %v11341_v25 = vadd.f32 %v11197_v42, %v11102_v13  ;;  %v11343_v36 = vpop.f32.mrf.mxu0  ;;  %v767_v24 = vmul.f32 %v11119_v8, %v11325_v19 }
 0x222   :  { %9113 = vmatprep.subr.msk.mxu1 %vm101_vm0, %v821_v26  ;;  %9155 = vmatprep.subr.msk.mxu0 %vm101_vm0, %v833_v27  ;;  %v11382_v42 = vadd.f32 %v11102_v13, %v11263_v60 }
 0x223   :  { %v11372_v38 = vpop.f32.mrf.mxu0 }
 0x225   :  { %9114 = vmatpush3.xpose.msk.msra.mxu1 %vm101_vm0, %v821_v26  ;;  %9156 = vmatpush3.xpose.msk.msra.mxu0 %vm101_vm0, %v833_v27  ;;  %v766_v26 = vmul.f32 %v11119_v8, %v11317_v28  ;;  %v778_v27 = vmul.f32 %v11124_v9, %v11317_v28 }
 0x226   :  { %9115 = vmatprep.subr.msk.mxu1 %vm101_vm0, %v820_v32  ;;  %9157 = vmatprep.subr.msk.mxu0 %vm101_vm0, %v832_v33 }
 0x229   :  { %9116 = vmatpush3.xpose.msk.msra.mxu1 %vm101_vm0, %v820_v32  ;;  %9158 = vmatpush3.xpose.msk.msra.mxu0 %vm101_vm0, %v832_v33  ;;  %v11352_v32 = vadd.f32 %v11102_v13, %v438_v2  ;;  %v779_v33 = vmul.f32 %v11124_v9, %v11325_v19  ;;  %v783_v2 = vmul.f32 %v11124_v9, %v11382_v42 }
 0x22a   :  { %9117 = vmatprep.subr.msk.mxu1 %vm101_vm0, %v819_v34  ;;  %9159 = vmatprep.subr.msk.mxu0 %vm101_vm0, %v831_v35 }
 0x22d   :  { %9118 = vmatpush3.xpose.msk.msra.mxu1 %vm101_vm0, %v819_v34  ;;  %9160 = vmatpush3.xpose.msk.msra.mxu0 %vm101_vm0, %v831_v35  ;;  %v856_v34 = vmul.f32 %v11299_v10, %v11150_v29  ;;  %v11370_v35 = vadd.f32 %v11223_v49, %v11102_v13  ;;  %v769_v29 = vmul.f32 %v11119_v8, %v11352_v32 }
 0x22e   :  { %9119 = vmatprep.subr.msk.mxu1 %vm101_vm0, %v818_v40  ;;  %9161 = vmatprep.subr.msk.mxu0 %vm101_vm0, %v830_v41 }
 0x22f   :  { %v770_v49 = vmul.f32 %v11119_v8, %v11370_v35 }
 0x231   :  { %9120 = vmatpush3.xpose.msk.msra.mxu1 %vm101_vm0, %v818_v40  ;;  %9162 = vmatpush3.xpose.msk.msra.mxu0 %vm101_vm0, %v830_v41  ;;  %v768_v40 = vmul.f32 %v11119_v8, %v11341_v25  ;;  %v780_v41 = vmul.f32 %v11124_v9, %v11341_v25 }
 0x232   :  { %9121 = vmatprep.subr.msk.mxu1 %vm101_vm0, %v817_v30  ;;  %9163 = vmatprep.subr.msk.mxu0 %vm101_vm0, %v829_v56 }
 0x235   :  { %9122 = vmatpush3.xpose.msk.msra.mxu1 %vm101_vm0, %v817_v30  ;;  %9164 = vmatpush3.xpose.msk.msra.mxu0 %vm101_vm0, %v829_v56  ;;  %v781_v30 = vmul.f32 %v11124_v9, %v11352_v32  ;;  %v843_v56 = vmul.f32 %v11294_v7, %v11163_v31  ;;  %v771_v31 = vmul.f32 %v11119_v8, %v11382_v42 }
 0x236   :  { %9123 = vmatprep.subr.msk.mxu1 %vm101_vm0, %v816_v45  ;;  %9165 = vmatprep.subr.msk.mxu0 %vm101_vm0, %v828_v48 }
 0x239   :  { %9124 = vmatpush3.xpose.msk.msra.mxu1 %vm101_vm0, %v816_v45  ;;  %9166 = vmatpush3.xpose.msk.msra.mxu0 %vm101_vm0, %v828_v48  ;;  %v11400_v45 = vadd.f32 %v11249_v55, %v11102_v13  ;;  %v11402_v48 = vpop.f32.mrf.mxu0  ;;  %v11430_v55 = vadd.f32 %v11277_v63, %v11102_v13 }
 0x23a   :  { %9125 = vmatprep.subr.msk.mxu1 %vm101_vm0, %v815_v57  ;;  %9167 = vmatprep.subr.msk.mxu0 %vm101_vm0, %v827_v51 }
 0x23b   :  { %v784_v60 = vmul.f32 %v11124_v9, %v11400_v45 }
 0x23d   :  { %9126 = vmatpush3.xpose.msk.msra.mxu1 %vm101_vm0, %v815_v57  ;;  %9168 = vmatpush3.xpose.msk.msra.mxu0 %vm101_vm0, %v827_v51  ;;  %v782_v57 = vmul.f32 %v11124_v9, %v11370_v35  ;;  %v11412_v51 = vadd.f32 %v11102_v13, %v11287_v5  ;;  %v787_v5 = vmul.f32 %v11294_v7, %v11112_v6 }
 0x23e   :  { %9127 = vmatprep.subr.msk.mxu1 %vm101_vm0, %v814_v53  ;;  %9169 = vmatprep.subr.msk.mxu0 %vm101_vm0, %v826_v54 }
 0x23f   :  { %v773_v13 = vmul.f32 %v11119_v8, %v11412_v51 }
 0x241   :  { %9128 = vmatpush3.xpose.msk.msra.mxu1 %vm101_vm0, %v814_v53  ;;  %9170 = vmatpush3.xpose.msk.msra.mxu0 %vm101_vm0, %v826_v54  ;;  %v842_v53 = vmul.f32 %v11294_v7, %v11176_v46  ;;  %v854_v54 = vmul.f32 %v11299_v10, %v11176_v46  ;;  %v785_v46 = vmul.f32 %v11124_v9, %v11412_v51 }
 0x242   :  { %9129 = vmatprep.subr.msk.mxu1 %vm101_vm0, %v813_v59  ;;  %9171 = vmatprep.subr.msk.mxu0 %vm101_vm0, %v825_v3 }
 0x245   :  { %9130 = vmatpush3.xpose.msk.msra.mxu1 %vm101_vm0, %v813_v59  ;;  %9172 = vmatpush3.xpose.msk.msra.mxu0 %vm101_vm0, %v825_v3  ;;  %v11432_v59 = vpop.f32.mrf.mxu0  ;;  %v772_v3 = vmul.f32 %v11119_v8, %v11400_v45 }
 0x246   :  { %9131 = vmatprep.subr.msk.mxu1 %vm101_vm0, %v812_v61  ;;  %9173 = vmatprep.subr.msk.mxu0 %vm101_vm0, %v824_v62 }
 0x247   :  { %v11454_v63 = vpop.f32.mrf.mxu0 }
 0x249   :  { %9132 = vmatpush3.xpose.msk.msra.mxu1 %vm101_vm0, %v812_v61  ;;  %9174 = vmatpush3.xpose.msk.msra.mxu0 %vm101_vm0, %v824_v62  ;;  %v841_v61 = vmul.f32 %v11294_v7, %v11189_v39  ;;  %v853_v62 = vmul.f32 %v11299_v10, %v11189_v39  ;;  %v799_v39 = vmul.f32 %v11299_v10, %v11112_v6 }
 0x24a   :  { %9133 = vmatprep.subr.msk.mxu1 %vm101_vm0, %v811_v0  ;;  %9175 = vmatprep.subr.msk.mxu0 %vm101_vm0, %v823_v4  ;;  %v839_v6 = vmul.f32 %v11294_v7, %v11215_v44 }
 0x24d   :  { %9134 = vmatpush3.xpose.msk.msra.mxu1 %vm101_vm0, %v811_v0  ;;  %9176 = vmatpush3.xpose.msk.msra.mxu0 %vm101_vm0, %v823_v4  ;;  %v774_v0 = vmul.f32 %v11119_v8, %v11430_v55  ;;  %v786_v4 = vmul.f32 %v11124_v9, %v11430_v55 }
 0x24e   :  { %9195 = vmatprep.subr.msk.mxu1 %vm101_vm0, %v846_v14  ;;  %9237 = vmatprep.subr.msk.mxu0 %vm101_vm0, %v858_v15 }
 0x250   :  { %9136 = vmatmul.mubr.msk.f32.vlgmr.msra.gmra.mxu1 %vm101_vm0, %v764_v16  ;;  %9178 = vmatmul.mubr.msk.f32.vlgmr.msra.gmra.mxu0 %vm101_vm0, %v776_v17  ;;  %v11476_v16 = vpop.f32.mrf.mxu0  ;;  %v851_v17 = vmul.f32 %v11299_v10, %v11215_v44  ;;  %v837_v44 = vmul.f32 %v11294_v7, %v11241_v52 }
 0x251   :  { %9138 = vmatprep.mubr.msk.f32.mxu1 %vm101_vm0, %v765_v20  ;;  %9180 = vmatprep.mubr.msk.f32.mxu0 %vm101_vm0, %v777_v21  ;;  %v850_v21 = vmul.f32 %v11299_v10, %v11229_v50 }
 0x252   :  { %9196 = vmatpush3.xpose.msk.msra.mxu1 %vm101_vm0, %v846_v14  ;;  %9238 = vmatpush3.xpose.msk.msra.mxu0 %vm101_vm0, %v858_v15  ;;  %v840_v14 = vmul.f32 %v11294_v7, %v11202_v47  ;;  %v852_v15 = vmul.f32 %v11299_v10, %v11202_v47  ;;  %v11486_v20 = vpop.f32.mrf.mxu0  ;;  %v838_v47 = vmul.f32 %v11294_v7, %v11229_v50 }
 0x253   :  { %9197 = vmatprep.subr.msk.mxu1 %vm101_vm0, %v845_v22  ;;  %9239 = vmatprep.subr.msk.mxu0 %vm101_vm0, %v857_v23  ;;  %v836_v50 = vmul.f32 %v11294_v7, %v11255_v58 }
 0x254   :  { %9139 = vmatmul.mubr.msk.f32.gmra.mxu1 %vm101_vm0, %v766_v26  ;;  %9181 = vmatmul.mubr.msk.f32.gmra.mxu0 %vm101_vm0, %v778_v27  ;;  %v848_v27 = vmul.f32 %v11299_v10, %v11255_v58  ;;  %v835_v58 = vmul.f32 %v11294_v7, %v11269_v12 }
 0x255   :  { %9141 = vmatprep.mubr.msk.f32.mxu1 %vm101_vm0, %v767_v24  ;;  %9183 = vmatprep.mubr.msk.f32.mxu0 %vm101_vm0, %v779_v33 }
 0x256   :  { %9198 = vmatpush3.xpose.msk.msra.mxu1 %vm101_vm0, %v845_v22  ;;  %9240 = vmatpush3.xpose.msk.msra.mxu0 %vm101_vm0, %v857_v23  ;;  %v9107_v22 = vpop.f32.mrf.mxu0  ;;  %v849_v23 = vmul.f32 %v11299_v10, %v11241_v52  ;;  %v11519_v52 = vld [vmem:[%s14906_s10] ss:$0 sm:$0xff] }
 0x257   :  { %9199 = vmatprep.subr.msk.mxu1 %vm101_vm0, %v844_v37  ;;  %9241 = vmatprep.subr.msk.mxu0 %vm101_vm0, %v856_v34 }
 0x258   :  { %9142 = vmatmul.mubr.msk.f32.gmra.mxu1 %vm101_vm0, %v768_v40  ;;  %9184 = vmatmul.mubr.msk.f32.gmra.mxu0 %vm101_vm0, %v780_v41  ;;  %v720_v26 = vpop.f32.mrf.mxu0 }
 0x259   :  { %9144 = vmatprep.mubr.msk.f32.mxu1 %vm101_vm0, %v769_v29  ;;  %9186 = vmatprep.mubr.msk.f32.mxu0 %vm101_vm0, %v781_v30  ;;  %v800_v30 = vmul.f32 %v11299_v10, %v11107_v1 }
 0x25a   :  { %9200 = vmatpush3.xpose.msk.msra.mxu1 %vm101_vm0, %v844_v37  ;;  %9242 = vmatpush3.xpose.msk.msra.mxu0 %vm101_vm0, %v856_v34  ;;  %v9110_v24 = vpop.f32.mrf.mxu0  ;;  %v847_v37 = vmul.f32 %v11299_v10, %v11269_v12  ;;  %v788_v12 = vmul.f32 %v11294_v7, %v11107_v1 }
 0x25b   :  { %9201 = vmatprep.subr.msk.mxu1 %vm101_vm0, %v843_v56  ;;  %9243 = vmatprep.subr.msk.mxu0 %vm101_vm0, %v855_v43  ;;  %v11522_v33 = vadd.f32 %v9110_v24, %v11519_v52  ;;  %v11673_v24 = vadd.f32 %v11519_v52, %v11343_v36 }
 0x25c   :  { %9145 = vmatmul.mubr.msk.f32.gmra.mxu1 %vm101_vm0, %v770_v49  ;;  %9187 = vmatmul.mubr.msk.f32.gmra.mxu0 %vm101_vm0, %v782_v57  ;;  %v730_v34 = vpop.f32.mrf.mxu0  ;;  %v11550_v49 = vadd.f32 %v9107_v22, %v11519_v52  ;;  %v808_v22 = vmul.f32 %v11299_v10, %v11400_v45 }
 0x25d   :  { %9147 = vmatprep.mubr.msk.f32.mxu1 %vm101_vm0, %v771_v31  ;;  %9189 = vmatprep.mubr.msk.f32.mxu0 %vm101_vm0, %v783_v2  ;;  %v2283_v40 = vmul.f32 %v11119_v8, %v11522_v33  ;;  %v2295_v41 = vmul.f32 %v11124_v9, %v11522_v33  ;;  %v11537_v29 = vadd.f32 %v11519_v52, %v730_v34 }
 0x25e   :  { %9202 = vmatpush3.xpose.msk.msra.mxu1 %vm101_vm0, %v843_v56  ;;  %9244 = vmatpush3.xpose.msk.msra.mxu0 %vm101_vm0, %v855_v43  ;;  %v789_v56 = vmul.f32 %v11294_v7, %v11303_v11  ;;  %v801_v43 = vmul.f32 %v11299_v10, %v11303_v11  ;;  %14995 = vst [vmem:[#allocation2_spill] sm:$0xff] %v11550_v49  ;;  %15004 = vst [vmem:[#allocation11_spill] sm:$0xff] %v11673_v24 }
 0x25f   :  { %9203 = vmatprep.subr.msk.mxu1 %vm101_vm0, %v842_v53  ;;  %9245 = vmatprep.subr.msk.mxu0 %vm101_vm0, %v854_v54  ;;  %v2282_v1 = vmul.f32 %v11119_v8, %v11537_v29  ;;  %v2294_v57 = vmul.f32 %v11124_v9, %v11537_v29  ;;  %v11561_v11 = vadd.f32 %v11519_v52, %v720_v26 }
 0x260   :  { %9148 = vmatmul.mubr.msk.f32.gmra.mxu1 %vm101_vm0, %v772_v3  ;;  %9190 = vmatmul.mubr.msk.f32.gmra.mxu0 %vm101_vm0, %v784_v60  ;;  %v790_v31 = vmul.f32 %v11294_v7, %v11317_v28  ;;  %v802_v2 = vmul.f32 %v11299_v10, %v11317_v28  ;;  %v791_v3 = vmul.f32 %v11294_v7, %v11325_v19 }
 0x261   :  { %9150 = vmatprep.mubr.msk.f32.mxu1 %vm101_vm0, %v773_v13  ;;  %9192 = vmatprep.mubr.msk.f32.mxu0 %vm101_vm0, %v785_v46  ;;  %14996 = vst [vmem:[#allocation3_spill] sm:$0xff] %v11561_v11  ;;  %v803_v60 = vmul.f32 %v11299_v10, %v11325_v19  ;;  %v11579_v28 = vadd.f32 %v11476_v16, %v11519_v52 }
 0x262   :  { %9204 = vmatpush3.xpose.msk.msra.mxu1 %vm101_vm0, %v842_v53  ;;  %9246 = vmatpush3.xpose.msk.msra.mxu0 %vm101_vm0, %v854_v54  ;;  %v2281_v53 = vmul.f32 %v11119_v8, %v11550_v49  ;;  %v2293_v54 = vmul.f32 %v11124_v9, %v11550_v49  ;;  %v2280_v13 = vmul.f32 %v11119_v8, %v11561_v11 }
 0x263   :  { %9205 = vmatprep.subr.msk.mxu1 %vm101_vm0, %v841_v61  ;;  %9247 = vmatprep.subr.msk.mxu0 %vm101_vm0, %v853_v62  ;;  %14997 = vst [vmem:[#allocation4_spill] sm:$0xff] %v11579_v28  ;;  %v2292_v46 = vmul.f32 %v11124_v9, %v11561_v11  ;;  %v11589_v19 = vadd.f32 %v11519_v52, %v11486_v20 }
 0x264   :  { %9151 = vmatmul.mubr.msk.f32.gmra.mxu1 %vm101_vm0, %v774_v0  ;;  %9193 = vmatmul.mubr.msk.f32.gmra.mxu0 %vm101_vm0, %v786_v4  ;;  %v2279_v0 = vmul.f32 %v11119_v8, %v11579_v28  ;;  %v2291_v4 = vmul.f32 %v11124_v9, %v11579_v28  ;;  %v806_v16 = vmul.f32 %v11299_v10, %v11370_v35 }
 0x265   :  { %9219 = vmatprep.mubr.msk.f32.mxu1 %vm101_vm0, %v787_v5  ;;  %9261 = vmatprep.mubr.msk.f32.mxu0 %vm101_vm0, %v799_v39  ;;  %14998 = vst [vmem:[#allocation5_spill] sm:$0xff] %v11589_v19  ;;  %v793_v5 = vmul.f32 %v11294_v7, %v11352_v32  ;;  %v805_v39 = vmul.f32 %v11299_v10, %v11352_v32 }
 0x266   :  { %9206 = vmatpush3.xpose.msk.msra.mxu1 %vm101_vm0, %v841_v61  ;;  %9248 = vmatpush3.xpose.msk.msra.mxu0 %vm101_vm0, %v853_v62  ;;  %v792_v61 = vmul.f32 %v11294_v7, %v11341_v25  ;;  %v804_v62 = vmul.f32 %v11299_v10, %v11341_v25  ;;  %v11607_v25 = vadd.f32 %v11432_v59, %v11519_v52 }
 0x267   :  { %9207 = vmatprep.subr.msk.mxu1 %vm101_vm0, %v840_v14  ;;  %9249 = vmatprep.subr.msk.mxu0 %vm101_vm0, %v852_v15  ;;  %v11617_v32 = vadd.f32 %v11519_v52, %v11454_v63  ;;  %v794_v59 = vmul.f32 %v11294_v7, %v11370_v35  ;;  %v795_v63 = vmul.f32 %v11294_v7, %v11382_v42 }
 0x268   :  { %14999 = vst [vmem:[#allocation6_spill] sm:$0xff] %v11607_v25  ;;  %v807_v20 = vmul.f32 %v11299_v10, %v11382_v42  ;;  %v11635_v35 = vadd.f32 %v11372_v38, %v11519_v52  ;;  %v11645_v42 = vadd.f32 %v11519_v52, %v11402_v48  ;;  %v796_v38 = vmul.f32 %v11294_v7, %v11400_v45 }
 0x269   :  { %15000 = vst [vmem:[#allocation7_spill] sm:$0xff] %v11617_v32  ;;  %v797_v48 = vmul.f32 %v11294_v7, %v11412_v51  ;;  %v809_v26 = vmul.f32 %v11299_v10, %v11412_v51  ;;  %v11663_v45 = vadd.f32 %v11319_v18, %v11519_v52  ;;  %v798_v18 = vmul.f32 %v11294_v7, %v11430_v55 }
 0x26a   :  { %9208 = vmatpush3.xpose.msk.msra.mxu1 %vm101_vm0, %v840_v14  ;;  %9250 = vmatpush3.xpose.msk.msra.mxu0 %vm101_vm0, %v852_v15  ;;  %v2278_v14 = vmul.f32 %v11119_v8, %v11589_v19  ;;  %v2290_v15 = vmul.f32 %v11124_v9, %v11589_v19  ;;  %15001 = vst [vmem:[#allocation8_spill] sm:$0xff] %v11635_v35  ;;  %15002 = vst [vmem:[#allocation9_spill] sm:$0xff] %v11645_v42 }
 0x26b   :  { %9209 = vmatprep.subr.msk.mxu1 %vm101_vm0, %v839_v6  ;;  %9251 = vmatprep.subr.msk.mxu0 %vm101_vm0, %v851_v17  ;;  %15003 = vst [vmem:[#allocation10_spill] sm:$0xff] %v11663_v45  ;;  %v810_v51 = vmul.f32 %v11299_v10, %v11430_v55  ;;  %v2272_v36 = vmul.f32 %v11119_v8, %v11673_v24 }
 0x26c   :  { %v2284_v55 = vmul.f32 %v11124_v9, %v11673_v24  ;;  %v11691_v52 = vmul.f32 %v11294_v7, %v11522_v33  ;;  %v11695_v34 = vmul.f32 %v11299_v10, %v11522_v33  ;;  %v11707_v10 = vld [vmem:[%s14907_s1] sm:$0xff] }
 0x26e   :  { %9210 = vmatpush3.xpose.msk.msra.mxu1 %vm101_vm0, %v839_v6  ;;  %9252 = vmatpush3.xpose.msk.msra.mxu0 %vm101_vm0, %v851_v17  ;;  %v2277_v6 = vmul.f32 %v11119_v8, %v11607_v25  ;;  %v2289_v17 = vmul.f32 %v11124_v9, %v11607_v25  ;;  %15005 = vst [vmem:[#allocation12_spill] sm:$0xff] %v11695_v34 }
 0x26f   :  { %9211 = vmatprep.subr.msk.mxu1 %vm101_vm0, %v838_v47  ;;  %9253 = vmatprep.subr.msk.mxu0 %vm101_vm0, %v850_v21 }
 0x272   :  { %9212 = vmatpush3.xpose.msk.msra.mxu1 %vm101_vm0, %v838_v47  ;;  %9254 = vmatpush3.xpose.msk.msra.mxu0 %vm101_vm0, %v850_v21  ;;  %v2276_v47 = vmul.f32 %v11119_v8, %v11617_v32  ;;  %v2288_v21 = vmul.f32 %v11124_v9, %v11617_v32 }
 0x273   :  { %9213 = vmatprep.subr.msk.mxu1 %vm101_vm0, %v837_v44  ;;  %9255 = vmatprep.subr.msk.mxu0 %vm101_vm0, %v849_v23 }
 0x276   :  { %9214 = vmatpush3.xpose.msk.msra.mxu1 %vm101_vm0, %v837_v44  ;;  %9256 = vmatpush3.xpose.msk.msra.mxu0 %vm101_vm0, %v849_v23  ;;  %v2275_v44 = vmul.f32 %v11119_v8, %v11635_v35  ;;  %v2287_v23 = vmul.f32 %v11124_v9, %v11635_v35 }
 0x277   :  { %9215 = vmatprep.subr.msk.mxu1 %vm101_vm0, %v836_v50  ;;  %9257 = vmatprep.subr.msk.mxu0 %vm101_vm0, %v848_v27 }
 0x27a   :  { %9216 = vmatpush3.xpose.msk.msra.mxu1 %vm101_vm0, %v836_v50  ;;  %9258 = vmatpush3.xpose.msk.msra.mxu0 %vm101_vm0, %v848_v27  ;;  %v2274_v50 = vmul.f32 %v11119_v8, %v11645_v42  ;;  %v2286_v27 = vmul.f32 %v11124_v9, %v11645_v42 }
 0x27b   :  { %9217 = vmatprep.subr.msk.mxu1 %vm101_vm0, %v835_v58  ;;  %9259 = vmatprep.subr.msk.mxu0 %vm101_vm0, %v847_v37 }
 0x27e   :  { %9218 = vmatpush3.xpose.msk.msra.mxu1 %vm101_vm0, %v835_v58  ;;  %9260 = vmatpush3.xpose.msk.msra.mxu0 %vm101_vm0, %v847_v37  ;;  %v2273_v58 = vmul.f32 %v11119_v8, %v11663_v45  ;;  %v2285_v37 = vmul.f32 %v11124_v9, %v11663_v45 }
 0x27f   :  { %9279 = vmatprep.subr.mxu1 %v2283_v40  ;;  %9321 = vmatprep.subr.mxu0 %v2295_v41 }
 0x281   :  { %9220 = vmatmul.mubr.msk.f32.vlgmr.msra.gmra.mxu1 %vm101_vm0, %v788_v12  ;;  %9262 = vmatmul.mubr.msk.f32.vlgmr.msra.gmra.mxu0 %vm101_vm0, %v800_v30 }
 0x282   :  { %9222 = vmatprep.mubr.msk.f32.mxu1 %vm101_vm0, %v789_v56  ;;  %9264 = vmatprep.mubr.msk.f32.mxu0 %vm101_vm0, %v801_v43 }
 0x283   :  { %9280 = vmatpush3.msra.mxu1 %v2283_v40  ;;  %9322 = vmatpush3.msra.mxu0 %v2295_v41  ;;  %v11702_v40 = vld [vmem:[%s14907_s1 + $0x8] sm:$0xff] }
 0x284   :  { %9281 = vmatprep.subr.mxu1 %v2282_v1  ;;  %9323 = vmatprep.subr.mxu0 %v2294_v57 }
 0x285   :  { %9282 = vmatpush3.msra.mxu1 %v2282_v1  ;;  %9324 = vmatpush3.msra.mxu0 %v2294_v57 }
 0x286   :  { %9223 = vmatmul.mubr.msk.f32.gmra.mxu1 %vm101_vm0, %v790_v31  ;;  %9265 = vmatmul.mubr.msk.f32.gmra.mxu0 %vm101_vm0, %v802_v2 }
 0x287   :  { %9283 = vmatprep.subr.mxu1 %v2281_v53  ;;  %9325 = vmatprep.subr.mxu0 %v2293_v54 }
 0x288   :  { %9225 = vmatprep.mubr.msk.f32.mxu1 %vm101_vm0, %v791_v3  ;;  %9267 = vmatprep.mubr.msk.f32.mxu0 %vm101_vm0, %v803_v60  ;;  %v11723_v60 = vld [vmem:[%s14907_s1 + $0x18] sm:$0xff] }
 0x289   :  { %9284 = vmatpush3.msra.mxu1 %v2281_v53  ;;  %9326 = vmatpush3.msra.mxu0 %v2293_v54 }
 0x28a   :  { %9285 = vmatprep.subr.mxu1 %v2280_v13  ;;  %9327 = vmatprep.subr.mxu0 %v2292_v46 }
 0x28b   :  { %9286 = vmatpush3.msra.mxu1 %v2280_v13  ;;  %9328 = vmatpush3.msra.mxu0 %v2292_v46 }
 0x28c   :  { %9226 = vmatmul.mubr.msk.f32.gmra.mxu1 %vm101_vm0, %v792_v61  ;;  %9268 = vmatmul.mubr.msk.f32.gmra.mxu0 %vm101_vm0, %v804_v62 }
 0x28d   :  { %9287 = vmatprep.subr.mxu1 %v2279_v0  ;;  %9329 = vmatprep.subr.mxu0 %v2291_v4 }
 0x28e   :  { %9228 = vmatprep.mubr.msk.f32.mxu1 %vm101_vm0, %v793_v5  ;;  %9270 = vmatprep.mubr.msk.f32.mxu0 %vm101_vm0, %v805_v39 }
 0x28f   :  { %9288 = vmatpush3.msra.mxu1 %v2279_v0  ;;  %9330 = vmatpush3.msra.mxu0 %v2291_v4  ;;  %v11733_v4 = vld [vmem:[%s14907_s1 + $0x10] sm:$0xff] }
 0x290   :  { %9289 = vmatprep.subr.mxu1 %v2278_v14  ;;  %9331 = vmatprep.subr.mxu0 %v2290_v15 }
 0x291   :  { %9290 = vmatpush3.msra.mxu1 %v2278_v14  ;;  %9332 = vmatpush3.msra.mxu0 %v2290_v15 }
 0x292   :  { %9229 = vmatmul.mubr.msk.f32.gmra.mxu1 %vm101_vm0, %v794_v59  ;;  %9271 = vmatmul.mubr.msk.f32.gmra.mxu0 %vm101_vm0, %v806_v16 }
 0x293   :  { %9291 = vmatprep.subr.mxu1 %v2277_v6  ;;  %9333 = vmatprep.subr.mxu0 %v2289_v17 }
 0x294   :  { %9231 = vmatprep.mubr.msk.f32.mxu1 %vm101_vm0, %v795_v63  ;;  %9273 = vmatprep.mubr.msk.f32.mxu0 %vm101_vm0, %v807_v20 }
 0x295   :  { %9292 = vmatpush3.msra.mxu1 %v2277_v6  ;;  %9334 = vmatpush3.msra.mxu0 %v2289_v17 }
 0x296   :  { %9293 = vmatprep.subr.mxu1 %v2276_v47  ;;  %9335 = vmatprep.subr.mxu0 %v2288_v21 }
 0x297   :  { %9294 = vmatpush3.msra.mxu1 %v2276_v47  ;;  %9336 = vmatpush3.msra.mxu0 %v2288_v21  ;;  %v11753_v21 = vld [vmem:[%s14907_s1 + $0x28] sm:$0xff] }
 0x298   :  { %9232 = vmatmul.mubr.msk.f32.gmra.mxu1 %vm101_vm0, %v796_v38  ;;  %9274 = vmatmul.mubr.msk.f32.gmra.mxu0 %vm101_vm0, %v808_v22 }
 0x299   :  { %9295 = vmatprep.subr.mxu1 %v2275_v44  ;;  %9337 = vmatprep.subr.mxu0 %v2287_v23 }
 0x29a   :  { %9234 = vmatprep.mubr.msk.f32.mxu1 %vm101_vm0, %v797_v48  ;;  %9276 = vmatprep.mubr.msk.f32.mxu0 %vm101_vm0, %v809_v26  ;;  %v11763_v26 = vld [vmem:[%s14907_s1 + $0x20] sm:$0xff] }
 0x29b   :  { %9296 = vmatpush3.msra.mxu1 %v2275_v44  ;;  %9338 = vmatpush3.msra.mxu0 %v2287_v23 }
 0x29c   :  { %9297 = vmatprep.subr.mxu1 %v2274_v50  ;;  %9339 = vmatprep.subr.mxu0 %v2286_v27 }
 0x29d   :  { %9298 = vmatpush3.msra.mxu1 %v2274_v50  ;;  %9340 = vmatpush3.msra.mxu0 %v2286_v27 }
 0x29e   :  { %9235 = vmatmul.mubr.msk.f32.gmra.mxu1 %vm101_vm0, %v798_v18  ;;  %9277 = vmatmul.mubr.msk.f32.gmra.mxu0 %vm101_vm0, %v810_v51 }
 0x29f   :  { %9299 = vmatprep.subr.mxu1 %v2273_v58  ;;  %9341 = vmatprep.subr.mxu0 %v2285_v37 }
 0x2a0   :  { %9300 = vmatpush3.msra.mxu1 %v2273_v58  ;;  %9342 = vmatpush3.msra.mxu0 %v2285_v37 }
 0x2a1   :  { %9301 = vmatprep.subr.mxu1 %v2272_v36  ;;  %9343 = vmatprep.subr.mxu0 %v2284_v55 }
 0x2a2   :  { %9302 = vmatpush3.msra.mxu1 %v2272_v36  ;;  %9344 = vmatpush3.msra.mxu0 %v2284_v55 }
 0x2a3   :  { %9363 = vmatprep.subr.mxu1 %v11691_v52  ;;  %9405 = vmatprep.subr.mxu0 %v11695_v34 }
 0x310   :  { %v9137_v8 = vpop.f32.mrf.mxu1  ;;  %v9179_v9 = vpop.f32.mrf.mxu0 }
 0x311   :  { %v1648_v41 = vmul.f32 0.35355338, %v9137_v8  ;;  %v1660_v7 = vmul.f32 0.35355338, %v9179_v9 }
 0x312   :  { %v997_v12 = vpop.f32.mrf.mxu1  ;;  %v1194_v30 = vpop.f32.mrf.mxu0 }
 0x313   :  { %v1647_v33 = vmul.f32 0.35355338, %v997_v12  ;;  %v1659_v56 = vmul.f32 0.35355338, %v1194_v30  ;;  %v11710_v43 = vadd.f32 %v1648_v41, %v11702_v40  ;;  %v11718_v54 = vadd.f32 %v1660_v7, %v11702_v40  ;;  %v11783_v7 = vld [vmem:[%s14907_s1 + $0x38] sm:$0xff] }
 0x314   :  { %v9140_v1 = vpop.f32.mrf.mxu1  ;;  %v9182_v57 = vpop.f32.mrf.mxu0 }
 0x315   :  { %v1650_v31 = vmul.f32 0.35355338, %v9140_v1  ;;  %v1747_v2 = vsel %vm1743_vm1, %v11710_v43, -inf  ;;  %v11715_v53 = vadd.f32 %v1647_v33, %v11707_v10  ;;  %v11728_v61 = vadd.f32 %v1659_v56, %v11707_v10 }
 0x316   :  { %1748 = vmax.xlane.f32.xlu1 %v1747_v2  ;;  %v1007_v3 = vpop.f32.mrf.mxu1  ;;  %v1204_v62 = vpop.f32.mrf.mxu0  ;;  %v1662_v5 = vmul.f32 0.35355338, %v9182_v57  ;;  %v1783_v39 = vsel %vm1743_vm1, %v11718_v54, -inf  ;;  %v11793_v57 = vld [vmem:[%s14907_s1 + $0x30] sm:$0xff] }
 0x317   :  { %v1649_v13 = vmul.f32 0.35355338, %v1007_v3  ;;  %v1744_v46 = vsel %vm1743_vm1, %v11715_v53, -inf  ;;  %v11738_v14 = vadd.f32 %v1650_v31, %v11723_v60  ;;  %v1661_v15 = vmul.f32 0.35355338, %v1204_v62 }
 0x318   :  { %1745 = vmax.xlane.f32.xlu0 %v1744_v46  ;;  %v9143_v0 = vpop.f32.mrf.mxu1  ;;  %v1780_v59 = vsel %vm1743_vm1, %v11728_v61, -inf  ;;  %v9185_v6 = vpop.f32.mrf.mxu0  ;;  %v11748_v47 = vadd.f32 %v1662_v5, %v11723_v60 }
 0x319   :  { %v11743_v16 = vadd.f32 %v1649_v13, %v11733_v4  ;;  %v1652_v63 = vmul.f32 0.35355338, %v9143_v0  ;;  %v1753_v20 = vsel %vm1743_vm1, %v11738_v14, -inf  ;;  %v11758_v44 = vadd.f32 %v1661_v15, %v11733_v4 }
 0x31a   :  { %1784 = vmax.xlane.f32.xlu1 %v1783_v39  ;;  %v1017_v17 = vpop.f32.mrf.mxu1  ;;  %v1214_v23 = vpop.f32.mrf.mxu0  ;;  %v1664_v50 = vmul.f32 0.35355338, %v9185_v6  ;;  %v1789_v27 = vsel %vm1743_vm1, %v11748_v47, -inf  ;;  %v11813_v6 = vld [vmem:[%s14907_s1 + $0x48] sm:$0xff] }
 0x31b   :  { %v1651_v38 = vmul.f32 0.35355338, %v1017_v17  ;;  %v1750_v22 = vsel %vm1743_vm1, %v11743_v16, -inf  ;;  %v11768_v18 = vadd.f32 %v1652_v63, %v11753_v21  ;;  %v1663_v51 = vmul.f32 0.35355338, %v1214_v23  ;;  %v11823_v23 = vld [vmem:[%s14907_s1 + $0x40] sm:$0xff] }
 0x31c   :  { %1781 = vmax.xlane.f32.xlu0 %v1780_v59  ;;  %v9146_v48 = vpop.f32.mrf.mxu1  ;;  %v1786_v58 = vsel %vm1743_vm1, %v11758_v44, -inf  ;;  %v9188_v36 = vpop.f32.mrf.mxu0  ;;  %v11778_v41 = vadd.f32 %v1664_v50, %v11753_v21 }
 0x31d   :  { %v11773_v37 = vadd.f32 %v1651_v38, %v11763_v26  ;;  %v1654_v8 = vmul.f32 0.35355338, %v9146_v48  ;;  %v1759_v9 = vsel %vm1743_vm1, %v11768_v18, -inf  ;;  %v11788_v33 = vadd.f32 %v1663_v51, %v11763_v26 }
 0x31e   :  { %1754 = vmax.xlane.f32.xlu1 %v1753_v20  ;;  %v1027_v55 = vpop.f32.mrf.mxu1  ;;  %v1224_v56 = vpop.f32.mrf.mxu0  ;;  %v1666_v31 = vmul.f32 0.35355338, %v9188_v36  ;;  %v1795_v2 = vsel %vm1743_vm1, %v11778_v41, -inf }
 0x31f   :  { %v1653_v12 = vmul.f32 0.35355338, %v1027_v55  ;;  %v1756_v30 = vsel %vm1743_vm1, %v11773_v37, -inf  ;;  %v11798_v3 = vadd.f32 %v1654_v8, %v11783_v7  ;;  %v1665_v13 = vmul.f32 0.35355338, %v1224_v56  ;;  %v11843_v56 = vld [vmem:[%s14907_s1 + $0x58] sm:$0xff] }
 0x320   :  { %1751 = vmax.xlane.f32.xlu0 %v1750_v22  ;;  %v9149_v1 = vpop.f32.mrf.mxu1  ;;  %v1792_v46 = vsel %vm1743_vm1, %v11788_v33, -inf  ;;  %v9191_v0 = vpop.f32.mrf.mxu0  ;;  %v11808_v59 = vadd.f32 %v1666_v31, %v11783_v7 }
 0x321   :  { %v11803_v62 = vadd.f32 %v1653_v12, %v11793_v57  ;;  %v1656_v39 = vmul.f32 0.35355338, %v9149_v1  ;;  %v1765_v15 = vsel %vm1743_vm1, %v11798_v3, -inf  ;;  %v11818_v20 = vadd.f32 %v1665_v13, %v11793_v57 }
 0x322   :  { %1790 = vmax.xlane.f32.xlu1 %v1789_v27  ;;  %v1037_v5 = vpop.f32.mrf.mxu1  ;;  %v1234_v38 = vpop.f32.mrf.mxu0  ;;  %v1668_v48 = vmul.f32 0.35355338, %v9191_v0  ;;  %v1801_v50 = vsel %vm1743_vm1, %v11808_v59, -inf }
 0x323   :  { %v1655_v17 = vmul.f32 0.35355338, %v1037_v5  ;;  %v1762_v63 = vsel %vm1743_vm1, %v11803_v62, -inf  ;;  %v11828_v27 = vadd.f32 %v1656_v39, %v11813_v6  ;;  %v1667_v51 = vmul.f32 0.35355338, %v1234_v38 }
 0x324   :  { %1787 = vmax.xlane.f32.xlu0 %v1786_v58  ;;  %v9152_v22 = vpop.f32.mrf.mxu1  ;;  %v1798_v58 = vsel %vm1743_vm1, %v11818_v20, -inf  ;;  %v9194_v55 = vpop.f32.mrf.mxu0 }
 0x325   :  { %v11833_v36 = vadd.f32 %v1655_v17, %v11823_v23  ;;  %v1771_v12 = vsel %vm1743_vm1, %v11828_v27, -inf  ;;  %v1670_v0 = vmul.f32 0.35355338, %v9194_v55 }
 0x326   :  { %1760 = vmax.xlane.f32.xlu1 %v1759_v9  ;;  %v1047_v8 = vpop.f32.mrf.mxu1  ;;  %v1658_v9 = vmul.f32 0.35355338, %v9152_v22  ;;  %v1244_v13 = vpop.f32.mrf.mxu0 }
 0x327   :  { %v1657_v1 = vmul.f32 0.35355338, %v1047_v8  ;;  %v1768_v31 = vsel %vm1743_vm1, %v11833_v36, -inf  ;;  %v11868_v22 = vadd.f32 %v1670_v0, %v11843_v56 }
 0x328   :  { %1757 = vmax.xlane.f32.xlu0 %v1756_v30  ;;  %v11838_v30 = vadd.f32 %v1668_v48, %v11813_v6  ;;  %v11858_v39 = vadd.f32 %v1658_v9, %v11843_v56 }
 0x329   :  { %v1813_v55 = vsel %vm1743_vm1, %v11868_v22, -inf }
 0x32a   :  { %1796 = vmax.xlane.f32.xlu1 %v1795_v2  ;;  %v11848_v2 = vadd.f32 %v1667_v51, %v11823_v23  ;;  %v1807_v5 = vsel %vm1743_vm1, %v11838_v30, -inf  ;;  %v1777_v38 = vsel %vm1743_vm1, %v11858_v39, -inf }
 0x32c   :  { %1793 = vmax.xlane.f32.xlu0 %v1792_v46  ;;  %v11853_v46 = vld [vmem:[%s14907_s1 + $0x50] sm:$0xff]  ;;  %v1804_v17 = vsel %vm1743_vm1, %v11848_v2, -inf }
 0x32e   :  { %1766 = vmax.xlane.f32.xlu1 %v1765_v15  ;;  %v1669_v15 = vmul.f32 0.35355338, %v1244_v13 }
 0x330   :  { %1763 = vmax.xlane.f32.xlu0 %v1762_v63  ;;  %v11863_v63 = vadd.f32 %v1657_v1, %v11853_v46 }
 0x332   :  { %1802 = vmax.xlane.f32.xlu1 %v1801_v50  ;;  %v1774_v48 = vsel %vm1743_vm1, %v11863_v63, -inf  ;;  %v11873_v50 = vadd.f32 %v1669_v15, %v11853_v46 }
 0x334   :  { %1799 = vmax.xlane.f32.xlu0 %v1798_v58 }
 0x336   :  { %1772 = vmax.xlane.f32.xlu1 %v1771_v12 }
 0x338   :  { %1769 = vmax.xlane.f32.xlu0 %v1768_v31  ;;  %v1810_v31 = vsel %vm1743_vm1, %v11873_v50, -inf }
 0x33a   :  { %1808 = vmax.xlane.f32.xlu1 %v1807_v5 }
 0x33c   :  { %1805 = vmax.xlane.f32.xlu0 %v1804_v17 }
 0x33e   :  { %1778 = vmax.xlane.f32.xlu1 %v1777_v38 }
 0x340   :  { %1775 = vmax.xlane.f32.xlu0 %v1774_v48 }
 0x341   :  { %v9263_v51 = vpop.f32.mrf.mxu0  ;;  %v9221_v58 = vpop.f32.mrf.mxu1 }
 0x342   :  { %v1684_v8 = vmul.f32 0.35355338, %v9263_v51  ;;  %v1672_v9 = vmul.f32 0.35355338, %v9221_v58  ;;  %1814 = vmax.xlane.f32.xlu1 %v1813_v55 }
 0x343   :  { %v1588_v12 = vpop.f32.mrf.mxu0  ;;  %v1391_v1 = vpop.f32.mrf.mxu1 }
 0x344   :  { %v1683_v13 = vmul.f32 0.35355338, %v1588_v12  ;;  %v1671_v0 = vmul.f32 0.35355338, %v1391_v1  ;;  %1811 = vmax.xlane.f32.xlu0 %v1810_v31  ;;  %v11880_v5 = vadd.f32 %v1672_v9, %v11702_v40  ;;  %v11888_v51 = vadd.f32 %v1684_v8, %v11702_v40 }
 0x346   :  { %v9266_v15 = vpop.f32.mrf.mxu0  ;;  %v9224_v17 = vpop.f32.mrf.mxu1  ;;  %v1819_v38 = vsel %vm1743_vm1, %v11880_v5, -inf  ;;  %v11885_v48 = vadd.f32 %v1671_v0, %v11707_v10  ;;  %v11893_v9 = vadd.f32 %v1683_v13, %v11707_v10  ;;  %v1855_v0 = vsel %vm1743_vm1, %v11888_v51, -inf }
 0x347   :  { %v1674_v58 = vmul.f32 0.35355338, %v9224_v17  ;;  %1820 = vmax.xlane.f32.xlu1 %v1819_v38  ;;  %v1686_v24 = vmul.f32 0.35355338, %v9266_v15 }
 0x348   :  { %v1401_v55 = vpop.f32.mrf.mxu1  ;;  %v1816_v12 = vsel %vm1743_vm1, %v11885_v48, -inf  ;;  %v1598_v1 = vpop.f32.mrf.mxu0  ;;  %v1852_v17 = vsel %vm1743_vm1, %v11893_v9, -inf }
 0x349   :  { %v1673_v31 = vmul.f32 0.35355338, %v1401_v55  ;;  %1817 = vmax.xlane.f32.xlu0 %v1816_v12  ;;  %v11898_v45 = vadd.f32 %v1674_v58, %v11723_v60  ;;  %v1685_v40 = vmul.f32 0.35355338, %v1598_v1  ;;  %v11908_v12 = vadd.f32 %v1686_v24, %v11723_v60 }
 0x34b   :  { %1856 = vmax.xlane.f32.xlu1 %v1855_v0  ;;  %v11903_v38 = vadd.f32 %v1673_v31, %v11733_v4  ;;  %v1825_v15 = vsel %vm1743_vm1, %v11898_v45, -inf  ;;  %v11913_v0 = vadd.f32 %v1685_v40, %v11733_v4 }
 0x34c   :  { %v9227_v8 = vpop.f32.mrf.mxu1  ;;  %v9269_v10 = vpop.f32.mrf.mxu0 }
 0x34d   :  { %1853 = vmax.xlane.f32.xlu0 %v1852_v17  ;;  %v1676_v13 = vmul.f32 0.35355338, %v9227_v8  ;;  %v1822_v1 = vsel %vm1743_vm1, %v11903_v38, -inf  ;;  %v1688_v42 = vmul.f32 0.35355338, %v9269_v10  ;;  %v1861_v8 = vsel %vm1743_vm1, %v11908_v12, -inf }
 0x34e   :  { %v1411_v55 = vpop.f32.mrf.mxu1  ;;  %v1608_v31 = vpop.f32.mrf.mxu0  ;;  %v1858_v60 = vsel %vm1743_vm1, %v11913_v0, -inf }
 0x34f   :  { %1826 = vmax.xlane.f32.xlu1 %v1825_v15  ;;  %v1675_v58 = vmul.f32 0.35355338, %v1411_v55  ;;  %v11918_v35 = vadd.f32 %v1676_v13, %v11753_v21  ;;  %v1687_v24 = vmul.f32 0.35355338, %v1608_v31 }
 0x351   :  { %1823 = vmax.xlane.f32.xlu0 %v1822_v1  ;;  %v11923_v55 = vadd.f32 %v1675_v58, %v11763_v26  ;;  %v1831_v10 = vsel %vm1743_vm1, %v11918_v35, -inf  ;;  %v11928_v1 = vadd.f32 %v1688_v42, %v11753_v21 }
 0x352   :  { %v9230_v17 = vpop.f32.mrf.mxu1  ;;  %v9272_v4 = vpop.f32.mrf.mxu0 }
 0x353   :  { %1862 = vmax.xlane.f32.xlu1 %v1861_v8  ;;  %v1678_v15 = vmul.f32 0.35355338, %v9230_v17  ;;  %v1828_v31 = vsel %vm1743_vm1, %v11923_v55, -inf  ;;  %v11933_v8 = vadd.f32 %v1687_v24, %v11763_v26  ;;  %v1690_v25 = vmul.f32 0.35355338, %v9272_v4 }
 0x354   :  { %v1421_v40 = vpop.f32.mrf.mxu1  ;;  %v1618_v58 = vpop.f32.mrf.mxu0  ;;  %v1867_v17 = vsel %vm1743_vm1, %v11928_v1, -inf }
 0x355   :  { %1859 = vmax.xlane.f32.xlu0 %v1858_v60  ;;  %v1677_v13 = vmul.f32 0.35355338, %v1421_v40  ;;  %v11938_v60 = vadd.f32 %v1678_v15, %v11783_v7  ;;  %v1689_v42 = vmul.f32 0.35355338, %v1618_v58  ;;  %v1864_v21 = vsel %vm1743_vm1, %v11933_v8, -inf }
 0x357   :  { %1832 = vmax.xlane.f32.xlu1 %v1831_v10  ;;  %v11943_v40 = vadd.f32 %v1677_v13, %v11793_v57  ;;  %v1837_v4 = vsel %vm1743_vm1, %v11938_v60, -inf }
 0x358   :  { %v9233_v32 = vpop.f32.mrf.mxu1  ;;  %v9275_v26 = vpop.f32.mrf.mxu0 }
 0x359   :  { %1829 = vmax.xlane.f32.xlu0 %v1828_v31  ;;  %v1680_v10 = vmul.f32 0.35355338, %v9233_v32  ;;  %v11948_v31 = vadd.f32 %v1690_v25, %v11783_v7  ;;  %v1834_v58 = vsel %vm1743_vm1, %v11943_v40, -inf  ;;  %v1692_v28 = vmul.f32 0.35355338, %v9275_v26 }
 0x35a   :  { %v1431_v24 = vpop.f32.mrf.mxu1  ;;  %v1628_v13 = vpop.f32.mrf.mxu0 }
 0x35b   :  { %1868 = vmax.xlane.f32.xlu1 %v1867_v17  ;;  %v1679_v15 = vmul.f32 0.35355338, %v1431_v24  ;;  %v11953_v17 = vadd.f32 %v1689_v42, %v11793_v57  ;;  %v1873_v32 = vsel %vm1743_vm1, %v11948_v31, -inf  ;;  %v1691_v25 = vmul.f32 0.35355338, %v1628_v13 }
 0x35d   :  { %1865 = vmax.xlane.f32.xlu0 %v1864_v21  ;;  %v11958_v21 = vadd.f32 %v1680_v10, %v11813_v6  ;;  %v1870_v7 = vsel %vm1743_vm1, %v11953_v17, -inf  ;;  %v11963_v24 = vadd.f32 %v1679_v15, %v11823_v23 }
 0x35e   :  { %v9236_v19 = vpop.f32.mrf.mxu1  ;;  %v9278_v57 = vpop.f32.mrf.mxu0 }
 0x35f   :  { %1838 = vmax.xlane.f32.xlu1 %v1837_v4  ;;  %v1682_v4 = vmul.f32 0.35355338, %v9236_v19  ;;  %v1843_v26 = vsel %vm1743_vm1, %v11958_v21, -inf  ;;  %v1840_v13 = vsel %vm1743_vm1, %v11963_v24, -inf  ;;  %v1694_v34 = vmul.f32 0.35355338, %v9278_v57 }
 0x360   :  { %v1441_v42 = vpop.f32.mrf.mxu1  ;;  %v1638_v15 = vpop.f32.mrf.mxu0 }
 0x361   :  { %1835 = vmax.xlane.f32.xlu0 %v1834_v58  ;;  %v11968_v58 = vadd.f32 %v1692_v28, %v11813_v6  ;;  %v1681_v10 = vmul.f32 0.35355338, %v1441_v42  ;;  %v1693_v28 = vmul.f32 0.35355338, %v1638_v15 }
 0x363   :  { %1874 = vmax.xlane.f32.xlu1 %v1873_v32  ;;  %v11973_v32 = vadd.f32 %v1691_v25, %v11823_v23  ;;  %v1879_v19 = vsel %vm1743_vm1, %v11968_v58, -inf  ;;  %v11983_v42 = vadd.f32 %v1681_v10, %v11853_v46  ;;  %v11988_v25 = vadd.f32 %v1694_v34, %v11843_v56 }
 0x365   :  { %1871 = vmax.xlane.f32.xlu0 %v1870_v7  ;;  %v11978_v7 = vadd.f32 %v1682_v4, %v11843_v56  ;;  %v1876_v6 = vsel %vm1743_vm1, %v11973_v32, -inf  ;;  %v1846_v57 = vsel %vm1743_vm1, %v11983_v42, -inf  ;;  %v11993_v4 = vadd.f32 %v1693_v28, %v11853_v46 }
 0x367   :  { %1844 = vmax.xlane.f32.xlu1 %v1843_v26  ;;  %v1849_v23 = vsel %vm1743_vm1, %v11978_v7, -inf  ;;  %v1885_v26 = vsel %vm1743_vm1, %v11988_v25, -inf  ;;  %v1882_v10 = vsel %vm1743_vm1, %v11993_v4, -inf }
 0x369   :  { %1841 = vmax.xlane.f32.xlu0 %v1840_v13 }
 0x36b   :  { %1880 = vmax.xlane.f32.xlu1 %v1879_v19 }
 0x36d   :  { %1877 = vmax.xlane.f32.xlu0 %v1876_v6 }
 0x36f   :  { %1850 = vmax.xlane.f32.xlu1 %v1849_v23 }
 0x371   :  { %1847 = vmax.xlane.f32.xlu0 %v1846_v57 }
 0x373   :  { %1886 = vmax.xlane.f32.xlu1 %v1885_v26 }
 0x375   :  { %1883 = vmax.xlane.f32.xlu0 %v1882_v10 }
 0x39f   :  { %v1749_v13 = vpop.xlane.xlu1 %1748 }
 0x3a0   :  { %v1889_v34 = vsub.f32 %v11710_v43, %v1749_v13 }
 0x3a1   :  { %v1746_v56 = vpop.xlane.xlu0 %1745 }
 0x3a2   :  { %v1938_v15 = vmul.f32 1.442695, %v1889_v34  ;;  %v1888_v19 = vsub.f32 %v11715_v53, %v1746_v56 }
 0x3a3   :  { %v1785_v6 = vpop.xlane.xlu1 %1784 }
 0x3a4   :  { %10123 = vpow2.f32 %v1938_v15  ;;  %v1936_v46 = vmul.f32 1.442695, %v1888_v19  ;;  %v1901_v28 = vsub.f32 %v11718_v54, %v1785_v6 }
 0x3a5   :  { %v1782_v23 = vpop.xlane.xlu0 %1781 }
 0x3a6   :  { %10125 = vpow2.f32 %v1936_v46  ;;  %v1962_v57 = vmul.f32 1.442695, %v1901_v28  ;;  %v1900_v26 = vsub.f32 %v11728_v61, %v1782_v23 }
 0x3a7   :  { %v1755_v11 = vpop.xlane.xlu1 %1754 }
 0x3a8   :  { %10127 = vpow2.f32 %v1962_v57  ;;  %v1960_v10 = vmul.f32 1.442695, %v1900_v26  ;;  %v1891_v49 = vsub.f32 %v11738_v14, %v1755_v11 }
 0x3a9   :  { %v1752_v43 = vpop.xlane.xlu0 %1751 }
 0x3aa   :  { %10129 = vpow2.f32 %v1960_v10  ;;  %v1942_v13 = vmul.f32 1.442695, %v1891_v49  ;;  %v1890_v53 = vsub.f32 %v11743_v16, %v1752_v43 }
 0x3ab   :  { %v1791_v34 = vpop.xlane.xlu1 %1790 }
 0x3ac   :  { %10131 = vpow2.f32 %v1942_v13  ;;  %v1940_v56 = vmul.f32 1.442695, %v1890_v53  ;;  %v1903_v54 = vsub.f32 %v11748_v47, %v1791_v34 }
 0x3ad   :  { %v1788_v15 = vpop.xlane.xlu0 %1787 }
 0x3ae   :  { %10133 = vpow2.f32 %v1940_v56  ;;  %v1966_v19 = vmul.f32 1.442695, %v1903_v54  ;;  %v1902_v61 = vsub.f32 %v11758_v44, %v1788_v15 }
 0x3af   :  { %v1761_v6 = vpop.xlane.xlu1 %1760 }
 0x3b0   :  { %10135 = vpow2.f32 %v1966_v19  ;;  %v1964_v46 = vmul.f32 1.442695, %v1902_v61  ;;  %v1893_v11 = vsub.f32 %v11768_v18, %v1761_v6 }
 0x3b1   :  { %v12008_v14 = vpop.eup %10123  ;;  %v1758_v49 = vpop.xlane.xlu0 %1757 }
 0x3b2   :  { %10137 = vpow2.f32 %v1964_v46  ;;  %v1946_v16 = vmul.f32 1.442695, %v1893_v11  ;;  %v1892_v28 = vsub.f32 %v11773_v37, %v1758_v49  ;;  %v2035_v47 = vsel %vm1743_vm1, %v12008_v14, 0.0 }
 0x3b3   :  { %v12013_v23 = vpop.eup %10125  ;;  %v1797_v57 = vpop.xlane.xlu1 %1796  ;;  %2036 = vadd.xlane.f32.xlu1 %v2035_v47 }
 0x3b4   :  { %10139 = vpow2.f32 %v1946_v16  ;;  %v1944_v44 = vmul.f32 1.442695, %v1892_v28  ;;  %v1905_v26 = vsub.f32 %v11778_v41, %v1797_v57  ;;  %v2032_v18 = vsel %vm1743_vm1, %v12013_v23, 0.0 }
 0x3b5   :  { %v12018_v10 = vpop.eup %10127  ;;  %v1794_v43 = vpop.xlane.xlu0 %1793  ;;  %2033 = vadd.xlane.f32.xlu0 %v2032_v18 }
 0x3b6   :  { %10141 = vpow2.f32 %v1944_v44  ;;  %v1970_v37 = vmul.f32 1.442695, %v1905_v26  ;;  %v1904_v13 = vsub.f32 %v11788_v33, %v1794_v43  ;;  %v2071_v53 = vsel %vm1743_vm1, %v12018_v10, 0.0 }
 0x3b7   :  { %v12023_v34 = vpop.eup %10129  ;;  %v1767_v56 = vpop.xlane.xlu1 %1766  ;;  %2072 = vadd.xlane.f32.xlu1 %v2071_v53 }
 0x3b8   :  { %10143 = vpow2.f32 %v1970_v37  ;;  %v1968_v41 = vmul.f32 1.442695, %v1904_v13  ;;  %v1895_v54 = vsub.f32 %v11798_v3, %v1767_v56  ;;  %v2068_v15 = vsel %vm1743_vm1, %v12023_v34, 0.0 }
 0x3b9   :  { %v12028_v19 = vpop.eup %10131  ;;  %v1764_v61 = vpop.xlane.xlu0 %1763  ;;  %2069 = vadd.xlane.f32.xlu0 %v2068_v15 }
 0x3ba   :  { %10145 = vpow2.f32 %v1968_v41  ;;  %v1950_v33 = vmul.f32 1.442695, %v1895_v54  ;;  %v1894_v6 = vsub.f32 %v11803_v62, %v1764_v61  ;;  %v2041_v46 = vsel %vm1743_vm1, %v12028_v19, 0.0 }
 0x3bb   :  { %v12033_v11 = vpop.eup %10133  ;;  %v1803_v49 = vpop.xlane.xlu1 %1802  ;;  %2042 = vadd.xlane.f32.xlu1 %v2041_v46 }
 0x3bc   :  { %10147 = vpow2.f32 %v1950_v33  ;;  %v1948_v3 = vmul.f32 1.442695, %v1894_v6  ;;  %v1907_v16 = vsub.f32 %v11808_v59, %v1803_v49  ;;  %v2038_v28 = vsel %vm1743_vm1, %v12033_v11, 0.0 }
 0x3bd   :  { %v12038_v47 = vpop.eup %10135  ;;  %v1800_v57 = vpop.xlane.xlu0 %1799  ;;  %2039 = vadd.xlane.f32.xlu0 %v2038_v28 }
 0x3be   :  { %10149 = vpow2.f32 %v1948_v3  ;;  %v1974_v62 = vmul.f32 1.442695, %v1907_v16  ;;  %v1906_v44 = vsub.f32 %v11818_v20, %v1800_v57  ;;  %v2077_v26 = vsel %vm1743_vm1, %v12038_v47, 0.0 }
 0x3bf   :  { %v12043_v18 = vpop.eup %10137  ;;  %v1773_v43 = vpop.xlane.xlu1 %1772  ;;  %2078 = vadd.xlane.f32.xlu1 %v2077_v26 }
 0x3c0   :  { %10151 = vpow2.f32 %v1974_v62  ;;  %v1972_v59 = vmul.f32 1.442695, %v1906_v44  ;;  %v1897_v37 = vsub.f32 %v11828_v27, %v1773_v43  ;;  %v2074_v13 = vsel %vm1743_vm1, %v12043_v18, 0.0 }
 0x3c1   :  { %v12048_v53 = vpop.eup %10139  ;;  %v1770_v56 = vpop.xlane.xlu0 %1769  ;;  %2075 = vadd.xlane.f32.xlu0 %v2074_v13 }
 0x3c2   :  { %10153 = vpow2.f32 %v1972_v59  ;;  %v1954_v20 = vmul.f32 1.442695, %v1897_v37  ;;  %v1896_v41 = vsub.f32 %v11833_v36, %v1770_v56  ;;  %v2047_v54 = vsel %vm1743_vm1, %v12048_v53, 0.0 }
 0x3c3   :  { %v12053_v15 = vpop.eup %10141  ;;  %v1809_v61 = vpop.xlane.xlu1 %1808  ;;  %2048 = vadd.xlane.f32.xlu1 %v2047_v54 }
 0x3c4   :  { %10155 = vpow2.f32 %v1954_v20  ;;  %v1952_v27 = vmul.f32 1.442695, %v1896_v41  ;;  %v1909_v33 = vsub.f32 %v11838_v30, %v1809_v61  ;;  %v2044_v6 = vsel %vm1743_vm1, %v12053_v15, 0.0 }
 0x3c5   :  { %v12058_v46 = vpop.eup %10143  ;;  %v1806_v49 = vpop.xlane.xlu0 %1805  ;;  %2045 = vadd.xlane.f32.xlu0 %v2044_v6 }
 0x3c6   :  { %10157 = vpow2.f32 %v1952_v27  ;;  %v1978_v36 = vmul.f32 1.442695, %v1909_v33  ;;  %v1908_v3 = vsub.f32 %v11848_v2, %v1806_v49  ;;  %v2083_v16 = vsel %vm1743_vm1, %v12058_v46, 0.0 }
 0x3c7   :  { %v12063_v28 = vpop.eup %10145  ;;  %v1779_v57 = vpop.xlane.xlu1 %1778  ;;  %2084 = vadd.xlane.f32.xlu1 %v2083_v16 }
 0x3c8   :  { %10159 = vpow2.f32 %v1978_v36  ;;  %v1976_v30 = vmul.f32 1.442695, %v1908_v3  ;;  %v1899_v62 = vsub.f32 %v11858_v39, %v1779_v57  ;;  %v2080_v44 = vsel %vm1743_vm1, %v12063_v28, 0.0 }
 0x3c9   :  { %v12068_v26 = vpop.eup %10147  ;;  %v1776_v43 = vpop.xlane.xlu0 %1775  ;;  %2081 = vadd.xlane.f32.xlu0 %v2080_v44 }
 0x3ca   :  { %10161 = vpow2.f32 %v1976_v30  ;;  %v1958_v2 = vmul.f32 1.442695, %v1899_v62  ;;  %v1898_v59 = vsub.f32 %v11863_v63, %v1776_v43  ;;  %v2053_v37 = vsel %vm1743_vm1, %v12068_v26, 0.0 }
 0x3cb   :  { %v12073_v13 = vpop.eup %10149  ;;  %v1815_v56 = vpop.xlane.xlu1 %1814  ;;  %2054 = vadd.xlane.f32.xlu1 %v2053_v37 }
 0x3cc   :  { %10163 = vpow2.f32 %v1958_v2  ;;  %v1956_v39 = vmul.f32 1.442695, %v1898_v59  ;;  %v1911_v20 = vsub.f32 %v11868_v22, %v1815_v56  ;;  %v2050_v41 = vsel %vm1743_vm1, %v12073_v13, 0.0 }
 0x3cd   :  { %v12078_v54 = vpop.eup %10151  ;;  %v1812_v61 = vpop.xlane.xlu0 %1811  ;;  %2051 = vadd.xlane.f32.xlu0 %v2050_v41 }
 0x3ce   :  { %10165 = vpow2.f32 %v1956_v39  ;;  %v1982_v63 = vmul.f32 1.442695, %v1911_v20  ;;  %v1910_v27 = vsub.f32 %v11873_v50, %v1812_v61  ;;  %v2089_v33 = vsel %vm1743_vm1, %v12078_v54, 0.0 }
 0x3cf   :  { %v12083_v6 = vpop.eup %10153  ;;  %2090 = vadd.xlane.f32.xlu1 %v2089_v33 }
 0x3d0   :  { %10167 = vpow2.f32 %v1982_v63  ;;  %v1980_v49 = vmul.f32 1.442695, %v1910_v27  ;;  %v1821_v22 = vpop.xlane.xlu1 %1820  ;;  %v2086_v36 = vsel %vm1743_vm1, %v12083_v6, 0.0 }
 0x3d1   :  { %v12087_v3 = vpop.eup %10155  ;;  %v1913_v16 = vsub.f32 %v11880_v5, %v1821_v22  ;;  %2087 = vadd.xlane.f32.xlu0 %v2086_v36 }
 0x3d2   :  { %10169 = vpow2.f32 %v1980_v49  ;;  %v1818_v57 = vpop.xlane.xlu0 %1817  ;;  %v2059_v50 = vsel %vm1743_vm1, %v12087_v3, 0.0 }
 0x3d3   :  { %v12092_v30 = vpop.eup %10157  ;;  %v1986_v62 = vmul.f32 1.442695, %v1913_v16  ;;  %v1912_v44 = vsub.f32 %v11885_v48, %v1818_v57  ;;  %2060 = vadd.xlane.f32.xlu1 %v2059_v50 }
 0x3d4   :  { %v1857_v43 = vpop.xlane.xlu1 %1856  ;;  %v2056_v2 = vsel %vm1743_vm1, %v12092_v30, 0.0 }
 0x3d5   :  { %v12097_v59 = vpop.eup %10159  ;;  %10171 = vpow2.f32 %v1986_v62  ;;  %v1984_v5 = vmul.f32 1.442695, %v1912_v44  ;;  %v1925_v37 = vsub.f32 %v11888_v51, %v1857_v43  ;;  %2057 = vadd.xlane.f32.xlu0 %v2056_v2 }
 0x3d6   :  { %v1854_v56 = vpop.xlane.xlu0 %1853  ;;  %v2095_v39 = vsel %vm1743_vm1, %v12097_v59, 0.0 }
 0x3d7   :  { %v12102_v20 = vpop.eup %10161  ;;  %10173 = vpow2.f32 %v1984_v5  ;;  %v2010_v48 = vmul.f32 1.442695, %v1925_v37  ;;  %v1924_v41 = vsub.f32 %v11893_v9, %v1854_v56  ;;  %2096 = vadd.xlane.f32.xlu1 %v2095_v39 }
 0x3d8   :  { %v1827_v61 = vpop.xlane.xlu1 %1826  ;;  %v2092_v63 = vsel %vm1743_vm1, %v12102_v20, 0.0 }
 0x3d9   :  { %v12107_v27 = vpop.eup %10163  ;;  %10175 = vpow2.f32 %v2010_v48  ;;  %v2008_v51 = vmul.f32 1.442695, %v1924_v41  ;;  %v1915_v33 = vsub.f32 %v11898_v45, %v1827_v61  ;;  %2093 = vadd.xlane.f32.xlu0 %v2092_v63 }
 0x3da   :  { %v1824_v49 = vpop.xlane.xlu0 %1823  ;;  %v2065_v22 = vsel %vm1743_vm1, %v12107_v27, 0.0 }
 0x3db   :  { %v12112_v36 = vpop.eup %10165  ;;  %10177 = vpow2.f32 %v2008_v51  ;;  %v1990_v9 = vmul.f32 1.442695, %v1915_v33  ;;  %v1914_v16 = vsub.f32 %v11903_v38, %v1824_v49  ;;  %2066 = vadd.xlane.f32.xlu1 %v2065_v22 }
 0x3dc   :  { %v1863_v57 = vpop.xlane.xlu1 %1862  ;;  %v2062_v50 = vsel %vm1743_vm1, %v12112_v36, 0.0 }
 0x3dd   :  { %v12117_v62 = vpop.eup %10167  ;;  %10179 = vpow2.f32 %v1990_v9  ;;  %v1988_v45 = vmul.f32 1.442695, %v1914_v16  ;;  %v1927_v44 = vsub.f32 %v11908_v12, %v1863_v57  ;;  %2063 = vadd.xlane.f32.xlu0 %v2062_v50 }
 0x3de   :  { %v1860_v43 = vpop.xlane.xlu0 %1859  ;;  %v2101_v2 = vsel %vm1743_vm1, %v12117_v62, 0.0 }
 0x3df   :  { %v12122_v5 = vpop.eup %10169  ;;  %10181 = vpow2.f32 %v1988_v45  ;;  %v2014_v38 = vmul.f32 1.442695, %v1927_v44  ;;  %v1926_v37 = vsub.f32 %v11913_v0, %v1860_v43  ;;  %2102 = vadd.xlane.f32.xlu1 %v2101_v2 }
 0x3e0   :  { %v1833_v56 = vpop.xlane.xlu1 %1832  ;;  %v2098_v39 = vsel %vm1743_vm1, %v12122_v5, 0.0 }
 0x3e1   :  { %10183 = vpow2.f32 %v2014_v38  ;;  %v2012_v48 = vmul.f32 1.442695, %v1926_v37  ;;  %v1917_v12 = vsub.f32 %v11918_v35, %v1833_v56  ;;  %2099 = vadd.xlane.f32.xlu0 %v2098_v39 }
 0x3e2   :  { %v12128_v41 = vpop.eup %10171  ;;  %v1830_v61 = vpop.xlane.xlu0 %1829 }
 0x3e3   :  { %10185 = vpow2.f32 %v2012_v48  ;;  %v1994_v63 = vmul.f32 1.442695, %v1917_v12  ;;  %v1916_v51 = vsub.f32 %v11923_v55, %v1830_v61  ;;  %v2107_v0 = vsel %vm1743_vm1, %v12128_v41, 0.0 }
 0x3e4   :  { %v12133_v33 = vpop.eup %10173  ;;  %v1869_v49 = vpop.xlane.xlu1 %1868  ;;  %2108 = vadd.xlane.f32.xlu1 %v2107_v0 }
 0x3e5   :  { %10187 = vpow2.f32 %v1994_v63  ;;  %v1992_v22 = vmul.f32 1.442695, %v1916_v51  ;;  %v1929_v9 = vsub.f32 %v11928_v1, %v1869_v49  ;;  %v2104_v35 = vsel %vm1743_vm1, %v12133_v33, 0.0 }
 0x3e6   :  { %v12138_v16 = vpop.eup %10175  ;;  %v1866_v57 = vpop.xlane.xlu0 %1865  ;;  %2105 = vadd.xlane.f32.xlu0 %v2104_v35 }
 0x3e7   :  { %10189 = vpow2.f32 %v1992_v22  ;;  %v2018_v55 = vmul.f32 1.442695, %v1929_v9  ;;  %v1928_v50 = vsub.f32 %v11933_v8, %v1866_v57  ;;  %v2143_v45 = vsel %vm1743_vm1, %v12138_v16, 0.0 }
 0x3e8   :  { %v12143_v44 = vpop.eup %10177  ;;  %v1839_v43 = vpop.xlane.xlu1 %1838  ;;  %2144 = vadd.xlane.f32.xlu1 %v2143_v45 }
 0x3e9   :  { %10191 = vpow2.f32 %v2018_v55  ;;  %v2016_v1 = vmul.f32 1.442695, %v1928_v50  ;;  %v1919_v2 = vsub.f32 %v11938_v60, %v1839_v43  ;;  %v2140_v38 = vsel %vm1743_vm1, %v12143_v44, 0.0 }
 0x3ea   :  { %v12148_v37 = vpop.eup %10179  ;;  %v1836_v56 = vpop.xlane.xlu0 %1835  ;;  %2141 = vadd.xlane.f32.xlu0 %v2140_v38 }
 0x3eb   :  { %10193 = vpow2.f32 %v2016_v1  ;;  %v1998_v8 = vmul.f32 1.442695, %v1919_v2  ;;  %v1918_v39 = vsub.f32 %v11943_v40, %v1836_v56  ;;  %v2113_v48 = vsel %vm1743_vm1, %v12148_v37, 0.0 }
 0x3ec   :  { %v12153_v12 = vpop.eup %10181  ;;  %v1875_v61 = vpop.xlane.xlu1 %1874  ;;  %2114 = vadd.xlane.f32.xlu1 %v2113_v48 }
 0x3ed   :  { %10195 = vpow2.f32 %v1998_v8  ;;  %v1996_v60 = vmul.f32 1.442695, %v1918_v39  ;;  %v1931_v63 = vsub.f32 %v11948_v31, %v1875_v61  ;;  %v2110_v51 = vsel %vm1743_vm1, %v12153_v12, 0.0 }
 0x3ee   :  { %v12158_v0 = vpop.eup %10183  ;;  %v1872_v49 = vpop.xlane.xlu0 %1871  ;;  %2111 = vadd.xlane.f32.xlu0 %v2110_v51 }
 0x3ef   :  { %10197 = vpow2.f32 %v1996_v60  ;;  %v2022_v40 = vmul.f32 1.442695, %v1931_v63  ;;  %v1930_v22 = vsub.f32 %v11953_v17, %v1872_v49  ;;  %v2149_v9 = vsel %vm1743_vm1, %v12158_v0, 0.0 }
 0x3f0   :  { %v12163_v35 = vpop.eup %10185  ;;  %v1845_v57 = vpop.xlane.xlu1 %1844  ;;  %2150 = vadd.xlane.f32.xlu1 %v2149_v9 }
 0x3f1   :  { %10199 = vpow2.f32 %v2022_v40  ;;  %v2020_v31 = vmul.f32 1.442695, %v1930_v22  ;;  %v1921_v55 = vsub.f32 %v11958_v21, %v1845_v57  ;;  %v2146_v50 = vsel %vm1743_vm1, %v12163_v35, 0.0 }
 0x3f2   :  { %v12168_v45 = vpop.eup %10187  ;;  %v1842_v43 = vpop.xlane.xlu0 %1841  ;;  %2147 = vadd.xlane.f32.xlu0 %v2146_v50 }
 0x3f3   :  { %10201 = vpow2.f32 %v2020_v31  ;;  %v2002_v17 = vmul.f32 1.442695, %v1921_v55  ;;  %v1920_v1 = vsub.f32 %v11963_v24, %v1842_v43  ;;  %v2119_v2 = vsel %vm1743_vm1, %v12168_v45, 0.0 }
 0x3f4   :  { %v12173_v38 = vpop.eup %10189  ;;  %v1881_v56 = vpop.xlane.xlu1 %1880  ;;  %2120 = vadd.xlane.f32.xlu1 %v2119_v2 }
 0x3f5   :  { %10203 = vpow2.f32 %v2002_v17  ;;  %v2000_v21 = vmul.f32 1.442695, %v1920_v1  ;;  %v1933_v8 = vsub.f32 %v11968_v58, %v1881_v56  ;;  %v2116_v39 = vsel %vm1743_vm1, %v12173_v38, 0.0 }
 0x3f6   :  { %v12178_v48 = vpop.eup %10191  ;;  %v1878_v61 = vpop.xlane.xlu0 %1877  ;;  %2117 = vadd.xlane.f32.xlu0 %v2116_v39 }
 0x3f7   :  { %10205 = vpow2.f32 %v2000_v21  ;;  %v2026_v24 = vmul.f32 1.442695, %v1933_v8  ;;  %v1932_v60 = vsub.f32 %v11973_v32, %v1878_v61  ;;  %v2155_v63 = vsel %vm1743_vm1, %v12178_v48, 0.0 }
 0x3f8   :  { %v12183_v51 = vpop.eup %10193  ;;  %2156 = vadd.xlane.f32.xlu1 %v2155_v63  ;;  %v1851_v49 = vpop.xlane.xlu1 %1850 }
 0x3f9   :  { %10207 = vpow2.f32 %v2026_v24  ;;  %v2024_v58 = vmul.f32 1.442695, %v1932_v60  ;;  %v1923_v40 = vsub.f32 %v11978_v7, %v1851_v49  ;;  %v2152_v22 = vsel %vm1743_vm1, %v12183_v51, 0.0 }
 0x3fa   :  { %v12188_v9 = vpop.eup %10195  ;;  %2153 = vadd.xlane.f32.xlu0 %v2152_v22  ;;  %v1848_v57 = vpop.xlane.xlu0 %1847 }
 0x3fb   :  { %10209 = vpow2.f32 %v2024_v58  ;;  %v2006_v32 = vmul.f32 1.442695, %v1923_v40  ;;  %v1922_v31 = vsub.f32 %v11983_v42, %v1848_v57  ;;  %v2125_v55 = vsel %vm1743_vm1, %v12188_v9, 0.0 }
 0x3fc   :  { %v12193_v50 = vpop.eup %10197  ;;  %2126 = vadd.xlane.f32.xlu1 %v2125_v55  ;;  %v1887_v43 = vpop.xlane.xlu1 %1886 }
 0x3fd   :  { %10211 = vpow2.f32 %v2006_v32  ;;  %v2004_v7 = vmul.f32 1.442695, %v1922_v31  ;;  %v1935_v17 = vsub.f32 %v11988_v25, %v1887_v43  ;;  %v2122_v1 = vsel %vm1743_vm1, %v12193_v50, 0.0 }
 0x3fe   :  { %v12198_v2 = vpop.eup %10199  ;;  %2123 = vadd.xlane.f32.xlu0 %v2122_v1  ;;  %v1884_v56 = vpop.xlane.xlu0 %1883 }
 0x3ff   :  { %10213 = vpow2.f32 %v2004_v7  ;;  %v2030_v42 = vmul.f32 1.442695, %v1935_v17  ;;  %v1934_v21 = vsub.f32 %v11993_v4, %v1884_v56  ;;  %v2161_v8 = vsel %vm1743_vm1, %v12198_v2, 0.0 }
 0x400   :  { %v12203_v39 = vpop.eup %10201  ;;  %2162 = vadd.xlane.f32.xlu1 %v2161_v8 }
 0x401   :  { %10215 = vpow2.f32 %v2030_v42  ;;  %v2028_v61 = vmul.f32 1.442695, %v1934_v21  ;;  %v2158_v25 = vsel %vm1743_vm1, %v12203_v39, 0.0 }
 0x402   :  { %v12207_v24 = vpop.eup %10203  ;;  %2159 = vadd.xlane.f32.xlu0 %v2158_v25 }
 0x403   :  { %10217 = vpow2.f32 %v2028_v61  ;;  %v2131_v60 = vsel %vm1743_vm1, %v12207_v24, 0.0 }
 0x404   :  { %v12211_v63 = vpop.eup %10205  ;;  %2132 = vadd.xlane.f32.xlu1 %v2131_v60 }
 0x405   :  { %v2128_v4 = vsel %vm1743_vm1, %v12211_v63, 0.0 }
 0x406   :  { %v12215_v49 = vpop.eup %10207  ;;  %2129 = vadd.xlane.f32.xlu0 %v2128_v4 }
 0x407   :  { %v2167_v58 = vsel %vm1743_vm1, %v12215_v49, 0.0 }
 0x408   :  { %v12219_v40 = vpop.eup %10209  ;;  %2168 = vadd.xlane.f32.xlu1 %v2167_v58 }
 0x409   :  { %v2164_v22 = vsel %vm1743_vm1, %v12219_v40, 0.0 }
 0x40a   :  { %v12223_v57 = vpop.eup %10211  ;;  %2165 = vadd.xlane.f32.xlu0 %v2164_v22 }
 0x40b   :  { %v2137_v32 = vsel %vm1743_vm1, %v12223_v57, 0.0 }
 0x40c   :  { %v12227_v31 = vpop.eup %10213  ;;  %2138 = vadd.xlane.f32.xlu1 %v2137_v32 }
 0x40d   :  { %v2134_v55 = vsel %vm1743_vm1, %v12227_v31, 0.0 }
 0x40e   :  { %v12231_v43 = vpop.eup %10215  ;;  %2135 = vadd.xlane.f32.xlu0 %v2134_v55 }
 0x40f   :  { %v2173_v7 = vsel %vm1743_vm1, %v12231_v43, 0.0 }
 0x410   :  { %v12235_v17 = vpop.eup %10217  ;;  %2174 = vadd.xlane.f32.xlu1 %v2173_v7 }
 0x411   :  { %v2170_v1 = vsel %vm1743_vm1, %v12235_v17, 0.0 }
 0x412   :  { %2171 = vadd.xlane.f32.xlu0 %v2170_v1 }
 0x43c   :  { %v2037_v56 = vpop.xlane.xlu1 %2036 }
 0x43d   :  { %10219 = vrcp.f32 %v2037_v56 }
 0x43e   :  { %v2034_v42 = vpop.xlane.xlu0 %2033 }
 0x43f   :  { %10221 = vrcp.f32 %v2034_v42 }
 0x440   :  { %v2073_v21 = vpop.xlane.xlu1 %2072 }
 0x441   :  { %10223 = vrcp.f32 %v2073_v21 }
 0x442   :  { %v2070_v8 = vpop.xlane.xlu0 %2069 }
 0x443   :  { %10225 = vrcp.f32 %v2070_v8  ;;  %v12246_v8 = vld [vmem:[%s14904_s2 + $0x2] ss:$0 sm:$0xff] }
 0x444   :  { %v2043_v61 = vpop.xlane.xlu1 %2042 }
 0x445   :  { %10227 = vrcp.f32 %v2043_v61  ;;  %v2306_v61 = vmul.f32 %v12246_v8, %v11537_v29 }
 0x446   :  { %v2040_v25 = vpop.xlane.xlu0 %2039 }
 0x447   :  { %10229 = vrcp.f32 %v2040_v25 }
 0x448   :  { %v2079_v60 = vpop.xlane.xlu1 %2078 }
 0x44a   :  { %v2076_v4 = vpop.xlane.xlu0 %2075  ;;  %v10220_v58 = vpop.eup %10219 }
 0x44b   :  { %10231 = vrcp.f32 %v2076_v4  ;;  %v2225_v7 = vmul.f32 %v10220_v58, %v12008_v14 }
 0x44c   :  { %v10222_v22 = vpop.eup %10221  ;;  %10233 = vrcp.f32 %v2079_v60  ;;  %v2049_v32 = vpop.xlane.xlu1 %2048  ;;  %v15006_v60 = vld [vmem:[#allocation2_spill] sm:$0xff] }
 0x44d   :  { %v2224_v55 = vmul.f32 %v10222_v22, %v12013_v23  ;;  %v2305_v4 = vmul.f32 %v12246_v8, %v15006_v60 }
 0x44e   :  { %v2046_v1 = vpop.xlane.xlu0 %2045  ;;  %v10224_v56 = vpop.eup %10223 }
 0x44f   :  { %10235 = vrcp.f32 %v2046_v1  ;;  %9303 = vmatprep.mubr.msk.f32.mxu1 %vm1743_vm1, %v2224_v55  ;;  %v2237_v23 = vmul.f32 %v10224_v56, %v12018_v10  ;;  %v12262_v10 = vld [vmem:[%s14904_s2 + $0x3] ss:$0 sm:$0xff] }
 0x450   :  { %v10226_v42 = vpop.eup %10225  ;;  %v2085_v21 = vpop.xlane.xlu1 %2084  ;;  %9304 = vmatmul.mubr.msk.f32.vlgmr.msra.gmra.mxu1 %vm1743_vm1, %v2225_v7  ;;  %10237 = vrcp.f32 %v2049_v32  ;;  %v2318_v32 = vmul.f32 %v12262_v10, %v11537_v29  ;;  %v15008_v7 = vld [vmem:[#allocation12_spill] sm:$0xff] }
 0x451   :  { %9364 = vmatpush3.msra.mxu1 %v11691_v52  ;;  %v2236_v14 = vmul.f32 %v10226_v42, %v12023_v34  ;;  %v15007_v52 = vld [vmem:[#allocation3_spill] sm:$0xff]  ;;  %v15009_v42 = vld [vmem:[#allocation4_spill] sm:$0xff] }
 0x452   :  { %9365 = vmatprep.subr.mxu1 %v2306_v61  ;;  %v2082_v25 = vpop.xlane.xlu0 %2081  ;;  %v10228_v58 = vpop.eup %10227  ;;  %v2304_v34 = vmul.f32 %v12246_v8, %v15007_v52 }
 0x453   :  { %9366 = vmatpush3.msra.mxu1 %v2306_v61  ;;  %10239 = vrcp.f32 %v2082_v25  ;;  %9345 = vmatprep.mubr.msk.f32.mxu0 %vm1743_vm1, %v2236_v14  ;;  %v2303_v61 = vmul.f32 %v12246_v8, %v15009_v42  ;;  %v2317_v14 = vmul.f32 %v12262_v10, %v15006_v60  ;;  %v15010_v25 = vld [vmem:[#allocation5_spill] sm:$0xff] }
 0x454   :  { %v10230_v22 = vpop.eup %10229  ;;  %9367 = vmatprep.subr.mxu1 %v2305_v4  ;;  %v2055_v55 = vpop.xlane.xlu1 %2054  ;;  %9346 = vmatmul.mubr.msk.f32.vlgmr.msra.gmra.mxu0 %vm1743_vm1, %v2237_v23  ;;  %10241 = vrcp.f32 %v2085_v21  ;;  %v2227_v23 = vmul.f32 %v10228_v58, %v12028_v19  ;;  %v15011_v58 = vld [vmem:[#allocation6_spill] sm:$0xff] }
 0x455   :  { %9368 = vmatpush3.msra.mxu1 %v2305_v4  ;;  %9406 = vmatpush3.msra.mxu0 %v15008_v7  ;;  %v2226_v1 = vmul.f32 %v10230_v22, %v12033_v11  ;;  %v2302_v4 = vmul.f32 %v12246_v8, %v15010_v25  ;;  %v2316_v22 = vmul.f32 %v12262_v10, %v15007_v52 }
 0x456   :  { %9369 = vmatprep.subr.mxu1 %v2304_v34  ;;  %9407 = vmatprep.subr.mxu0 %v2318_v32  ;;  %v2052_v56 = vpop.xlane.xlu0 %2051  ;;  %v2315_v7 = vmul.f32 %v12262_v10, %v15009_v42 }
 0x457   :  { %9370 = vmatpush3.msra.mxu1 %v2304_v34  ;;  %9408 = vmatpush3.msra.mxu0 %v2318_v32  ;;  %10243 = vrcp.f32 %v2052_v56  ;;  %v2301_v34 = vmul.f32 %v12246_v8, %v15011_v58 }
 0x458   :  { %v10232_v29 = vpop.eup %10231  ;;  %9306 = vmatprep.mubr.msk.f32.mxu1 %vm1743_vm1, %v2226_v1  ;;  %9371 = vmatprep.subr.mxu1 %v2303_v61  ;;  %v2091_v11 = vpop.xlane.xlu1 %2090  ;;  %10245 = vrcp.f32 %v2055_v55  ;;  %v15012_v55 = vld [vmem:[#allocation7_spill] sm:$0xff] }
 0x459   :  { %v10234_v21 = vpop.eup %10233  ;;  %9409 = vmatprep.subr.mxu0 %v2317_v14  ;;  %9307 = vmatmul.mubr.msk.f32.gmra.mxu1 %vm1743_vm1, %v2227_v23  ;;  %v2238_v60 = vmul.f32 %v10232_v29, %v12043_v18  ;;  %v2300_v56 = vmul.f32 %v12246_v8, %v15012_v55  ;;  %v15013_v23 = vld [vmem:[#allocation8_spill] sm:$0xff] }
 0x45a   :  { %9372 = vmatpush3.msra.mxu1 %v2303_v61  ;;  %9410 = vmatpush3.msra.mxu0 %v2317_v14  ;;  %v2088_v19 = vpop.xlane.xlu0 %2087  ;;  %v2239_v52 = vmul.f32 %v10234_v21, %v12038_v47  ;;  %v2314_v61 = vmul.f32 %v12262_v10, %v15010_v25  ;;  %v2299_v29 = vmul.f32 %v12246_v8, %v15013_v23 }
 0x45b   :  { %9373 = vmatprep.subr.mxu1 %v2302_v4  ;;  %9411 = vmatprep.subr.mxu0 %v2316_v22  ;;  %10247 = vrcp.f32 %v2088_v19  ;;  %v2313_v21 = vmul.f32 %v12262_v10, %v15011_v58  ;;  %v2312_v19 = vmul.f32 %v12262_v10, %v15012_v55 }
 0x45c   :  { %v10236_v32 = vpop.eup %10235  ;;  %9374 = vmatpush3.msra.mxu1 %v2302_v4  ;;  %9412 = vmatpush3.msra.mxu0 %v2316_v22  ;;  %v2061_v1 = vpop.xlane.xlu1 %2060  ;;  %10249 = vrcp.f32 %v2091_v11  ;;  %v15014_v22 = vld [vmem:[#allocation9_spill] sm:$0xff] }
 0x45d   :  { %9348 = vmatprep.mubr.msk.f32.mxu0 %vm1743_vm1, %v2238_v60  ;;  %9375 = vmatprep.subr.mxu1 %v2301_v34  ;;  %v10238_v18 = vpop.eup %10237  ;;  %10251 = vrcp.f32 %v2061_v1  ;;  %v2228_v42 = vmul.f32 %v10236_v32, %v12053_v15  ;;  %v2298_v60 = vmul.f32 %v12246_v8, %v15014_v22  ;;  %v15015_v32 = vld [vmem:[#allocation10_spill] sm:$0xff]  ;;  %v2311_v1 = vmul.f32 %v12262_v10, %v15013_v23 }
 0x45e   :  { %9413 = vmatprep.subr.mxu0 %v2315_v7  ;;  %9349 = vmatmul.mubr.msk.f32.gmra.mxu0 %vm1743_vm1, %v2239_v52  ;;  %v2058_v14 = vpop.xlane.xlu0 %2057  ;;  %v2229_v25 = vmul.f32 %v10238_v18, %v12048_v53  ;;  %v2309_v23 = vmul.f32 %v12262_v10, %v15015_v32 }
 0x45f   :  { %9376 = vmatpush3.msra.mxu1 %v2301_v34  ;;  %9414 = vmatpush3.msra.mxu0 %v2315_v7  ;;  %10253 = vrcp.f32 %v2058_v14  ;;  %v2297_v7 = vmul.f32 %v12246_v8, %v15015_v32  ;;  %v2310_v14 = vmul.f32 %v12262_v10, %v15014_v22 }
 0x460   :  { %v10240_v47 = vpop.eup %10239  ;;  %9377 = vmatprep.subr.mxu1 %v2300_v56  ;;  %9415 = vmatprep.subr.mxu0 %v2314_v61  ;;  %v2097_v11 = vpop.xlane.xlu1 %2096 }
 0x461   :  { %9378 = vmatpush3.msra.mxu1 %v2300_v56  ;;  %9416 = vmatpush3.msra.mxu0 %v2314_v61  ;;  %10255 = vrcp.f32 %v2097_v11  ;;  %v10242_v4 = vpop.eup %10241  ;;  %v2240_v58 = vmul.f32 %v10240_v47, %v12063_v28  ;;  %v15016_v56 = vld [vmem:[#allocation11_spill] sm:$0xff] }
 0x462   :  { %9309 = vmatprep.mubr.msk.f32.mxu1 %vm1743_vm1, %v2228_v42  ;;  %9379 = vmatprep.subr.mxu1 %v2299_v29  ;;  %v2094_v15 = vpop.xlane.xlu0 %2093  ;;  %v2241_v52 = vmul.f32 %v10242_v4, %v12058_v46  ;;  %v2296_v61 = vmul.f32 %v12246_v8, %v15016_v56 }
 0x463   :  { %9417 = vmatprep.subr.mxu0 %v2313_v21  ;;  %9310 = vmatmul.mubr.msk.f32.gmra.mxu1 %vm1743_vm1, %v2229_v25  ;;  %10257 = vrcp.f32 %v2094_v15  ;;  %v2308_v25 = vmul.f32 %v12262_v10, %v15016_v56 }
 0x464   :  { %9380 = vmatpush3.msra.mxu1 %v2299_v29  ;;  %9418 = vmatpush3.msra.mxu0 %v2313_v21  ;;  %v2067_v53 = vpop.xlane.xlu1 %2066  ;;  %v10244_v34 = vpop.eup %10243 }
 0x465   :  { %9381 = vmatprep.subr.mxu1 %v2298_v60  ;;  %9419 = vmatprep.subr.mxu0 %v2312_v19  ;;  %10259 = vrcp.f32 %v2067_v53  ;;  %v10246_v55 = vpop.eup %10245  ;;  %v2230_v42 = vmul.f32 %v10244_v34, %v12073_v13 }
 0x466   :  { %9382 = vmatpush3.msra.mxu1 %v2298_v60  ;;  %9420 = vmatpush3.msra.mxu0 %v2312_v19  ;;  %v2064_v18 = vpop.xlane.xlu0 %2063  ;;  %v2231_v8 = vmul.f32 %v10246_v55, %v12068_v26 }
 0x467   :  { %9351 = vmatprep.mubr.msk.f32.mxu0 %vm1743_vm1, %v2240_v58  ;;  %9383 = vmatprep.subr.mxu1 %v2297_v7  ;;  %10261 = vrcp.f32 %v2064_v18 }
 0x468   :  { %v10248_v28 = vpop.eup %10247  ;;  %9421 = vmatprep.subr.mxu0 %v2311_v1  ;;  %9352 = vmatmul.mubr.msk.f32.gmra.mxu0 %vm1743_vm1, %v2241_v52  ;;  %v2103_v47 = vpop.xlane.xlu1 %2102 }
 0x469   :  { %9384 = vmatpush3.msra.mxu1 %v2297_v7  ;;  %9422 = vmatpush3.msra.mxu0 %v2311_v1  ;;  %v10250_v46 = vpop.eup %10249  ;;  %10263 = vrcp.f32 %v2103_v47  ;;  %v2242_v11 = vmul.f32 %v10248_v28, %v12083_v6 }
 0x46a   :  { %9385 = vmatprep.subr.mxu1 %v2296_v61  ;;  %9423 = vmatprep.subr.mxu0 %v2310_v14  ;;  %v2100_v29 = vpop.xlane.xlu0 %2099  ;;  %v10252_v21 = vpop.eup %10251  ;;  %v2243_v6 = vmul.f32 %v10250_v46, %v12078_v54 }
 0x46b   :  { %9386 = vmatpush3.msra.mxu1 %v2296_v61  ;;  %9424 = vmatpush3.msra.mxu0 %v2310_v14  ;;  %10265 = vrcp.f32 %v2100_v29  ;;  %v2233_v60 = vmul.f32 %v10252_v21, %v12087_v3 }
 0x46c   :  { %v10254_v13 = vpop.eup %10253  ;;  %9312 = vmatprep.mubr.msk.f32.mxu1 %vm1743_vm1, %v2230_v42  ;;  %9425 = vmatprep.subr.mxu0 %v2309_v23 }
 0x46d   :  { %9313 = vmatmul.mubr.msk.f32.gmra.mxu1 %vm1743_vm1, %v2231_v8  ;;  %9426 = vmatpush3.msra.mxu0 %v2309_v23  ;;  %v2109_v15 = vpop.xlane.xlu1 %2108  ;;  %v2232_v4 = vmul.f32 %v10254_v13, %v12092_v30 }
 0x46e   :  { %9427 = vmatprep.subr.mxu0 %v2308_v25  ;;  %9354 = vmatprep.mubr.msk.f32.mxu0 %vm1743_vm1, %v2242_v11  ;;  %v10256_v26 = vpop.eup %10255  ;;  %10267 = vrcp.f32 %v2109_v15 }
 0x46f   :  { %9428 = vmatpush3.msra.mxu0 %v2308_v25  ;;  %v2106_v22 = vpop.xlane.xlu0 %2105  ;;  %9315 = vmatprep.mubr.msk.f32.mxu1 %vm1743_vm1, %v2232_v4  ;;  %v2245_v58 = vmul.f32 %v10256_v26, %v12097_v59 }
 0x470   :  { %v10258_v10 = vpop.eup %10257  ;;  %9355 = vmatmul.mubr.msk.f32.gmra.mxu0 %vm1743_vm1, %v2243_v6  ;;  %10269 = vrcp.f32 %v2106_v22 }
 0x471   :  { %v2145_v19 = vpop.xlane.xlu1 %2144  ;;  %9316 = vmatmul.mubr.msk.f32.gmra.mxu1 %vm1743_vm1, %v2233_v60  ;;  %v2244_v30 = vmul.f32 %v10258_v10, %v12102_v20 }
 0x472   :  { %v10260_v54 = vpop.eup %10259  ;;  %10271 = vrcp.f32 %v2145_v19 }
 0x473   :  { %v2142_v53 = vpop.xlane.xlu0 %2141  ;;  %9357 = vmatprep.mubr.msk.f32.mxu0 %vm1743_vm1, %v2244_v30  ;;  %v2235_v7 = vmul.f32 %v10260_v54, %v12107_v27 }
 0x474   :  { %v10262_v34 = vpop.eup %10261  ;;  %10273 = vrcp.f32 %v2142_v53  ;;  %9358 = vmatmul.mubr.msk.f32.gmra.mxu0 %vm1743_vm1, %v2245_v58 }
 0x475   :  { %v2115_v3 = vpop.xlane.xlu1 %2114  ;;  %v2234_v32 = vmul.f32 %v10262_v34, %v12112_v36 }
 0x476   :  { %v10264_v1 = vpop.eup %10263  ;;  %10275 = vrcp.f32 %v2115_v3 }
 0x477   :  { %v2112_v52 = vpop.xlane.xlu0 %2111  ;;  %9318 = vmatprep.mubr.msk.f32.mxu1 %vm1743_vm1, %v2234_v32  ;;  %v2247_v55 = vmul.f32 %v10264_v1, %v12117_v62 }
 0x478   :  { %v10266_v59 = vpop.eup %10265  ;;  %10277 = vrcp.f32 %v2112_v52  ;;  %9319 = vmatmul.mubr.msk.f32.gmra.mxu1 %vm1743_vm1, %v2235_v7 }
 0x479   :  { %v2151_v20 = vpop.xlane.xlu1 %2150  ;;  %v2246_v18 = vmul.f32 %v10266_v59, %v12122_v5 }
 0x47a   :  { %10279 = vrcp.f32 %v2151_v20 }
 0x47b   :  { %v2148_v28 = vpop.xlane.xlu0 %2147  ;;  %9360 = vmatprep.mubr.msk.f32.mxu0 %vm1743_vm1, %v2246_v18  ;;  %v10268_v36 = vpop.eup %10267 }
 0x47c   :  { %10281 = vrcp.f32 %v2148_v28  ;;  %9361 = vmatmul.mubr.msk.f32.gmra.mxu0 %vm1743_vm1, %v2247_v55  ;;  %v2249_v14 = vmul.f32 %v10268_v36, %v12128_v41 }
 0x47d   :  { %v10270_v27 = vpop.eup %10269  ;;  %v2121_v56 = vpop.xlane.xlu1 %2120 }
 0x47e   :  { %v2248_v61 = vmul.f32 %v10270_v27, %v12133_v33  ;;  %10283 = vrcp.f32 %v2121_v56 }
 0x47f   :  { %v2118_v42 = vpop.xlane.xlu0 %2117  ;;  %v10272_v47 = vpop.eup %10271 }
 0x480   :  { %10285 = vrcp.f32 %v2118_v42  ;;  %9387 = vmatprep.mubr.msk.f32.mxu1 %vm1743_vm1, %v2248_v61  ;;  %v2261_v23 = vmul.f32 %v10272_v47, %v12138_v16 }
 0x481   :  { %v10274_v62 = vpop.eup %10273  ;;  %v2157_v5 = vpop.xlane.xlu1 %2156  ;;  %9388 = vmatmul.mubr.msk.f32.vlgmr.msra.gmra.mxu1 %vm1743_vm1, %v2249_v14 }
 0x482   :  { %v2260_v46 = vmul.f32 %v10274_v62, %v12143_v44  ;;  %10287 = vrcp.f32 %v2157_v5 }
 0x483   :  { %v2154_v29 = vpop.xlane.xlu0 %2153  ;;  %v10276_v11 = vpop.eup %10275 }
 0x484   :  { %10289 = vrcp.f32 %v2154_v29  ;;  %9429 = vmatprep.mubr.msk.f32.mxu0 %vm1743_vm1, %v2260_v46  ;;  %v2251_v13 = vmul.f32 %v10276_v11, %v12148_v37 }
 0x485   :  { %v10278_v41 = vpop.eup %10277  ;;  %v2127_v33 = vpop.xlane.xlu1 %2126  ;;  %9430 = vmatmul.mubr.msk.f32.vlgmr.msra.gmra.mxu0 %vm1743_vm1, %v2261_v23 }
 0x486   :  { %v2250_v21 = vmul.f32 %v10278_v41, %v12153_v12  ;;  %10291 = vrcp.f32 %v2127_v33 }
 0x487   :  { %v2124_v8 = vpop.xlane.xlu0 %2123  ;;  %v10280_v25 = vpop.eup %10279 }
 0x488   :  { %10293 = vrcp.f32 %v2124_v8  ;;  %9390 = vmatprep.mubr.msk.f32.mxu1 %vm1743_vm1, %v2250_v21  ;;  %v2263_v6 = vmul.f32 %v10280_v25, %v12158_v0 }
 0x489   :  { %v10282_v16 = vpop.eup %10281  ;;  %v2163_v44 = vpop.xlane.xlu1 %2162  ;;  %9391 = vmatmul.mubr.msk.f32.gmra.mxu1 %vm1743_vm1, %v2251_v13 }
 0x48a   :  { %v2262_v15 = vmul.f32 %v10282_v16, %v12163_v35  ;;  %10295 = vrcp.f32 %v2163_v44 }
 0x48b   :  { %v2160_v4 = vpop.xlane.xlu0 %2159  ;;  %v10284_v26 = vpop.eup %10283 }
 0x48c   :  { %10297 = vrcp.f32 %v2160_v4  ;;  %9432 = vmatprep.mubr.msk.f32.mxu0 %vm1743_vm1, %v2262_v15  ;;  %v2253_v10 = vmul.f32 %v10284_v26, %v12168_v45 }
 0x48d   :  { %v10286_v12 = vpop.eup %10285  ;;  %v2133_v37 = vpop.xlane.xlu1 %2132  ;;  %9433 = vmatmul.mubr.msk.f32.gmra.mxu0 %vm1743_vm1, %v2263_v6 }
 0x48e   :  { %v2252_v22 = vmul.f32 %v10286_v12, %v12173_v38  ;;  %10299 = vrcp.f32 %v2133_v37 }
 0x48f   :  { %v2130_v60 = vpop.xlane.xlu0 %2129  ;;  %v10288_v19 = vpop.eup %10287 }
 0x490   :  { %10301 = vrcp.f32 %v2130_v60  ;;  %9393 = vmatprep.mubr.msk.f32.mxu1 %vm1743_vm1, %v2252_v22  ;;  %v2265_v54 = vmul.f32 %v10288_v19, %v12178_v48 }
 0x491   :  { %v10290_v35 = vpop.eup %10289  ;;  %v2169_v0 = vpop.xlane.xlu1 %2168  ;;  %9394 = vmatmul.mubr.msk.f32.gmra.mxu1 %vm1743_vm1, %v2253_v10 }
 0x492   :  { %v2264_v30 = vmul.f32 %v10290_v35, %v12183_v51  ;;  %10303 = vrcp.f32 %v2169_v0 }
 0x493   :  { %v2166_v58 = vpop.xlane.xlu0 %2165  ;;  %v10292_v53 = vpop.eup %10291 }
 0x494   :  { %10305 = vrcp.f32 %v2166_v58  ;;  %9435 = vmatprep.mubr.msk.f32.mxu0 %vm1743_vm1, %v2264_v30  ;;  %v2255_v32 = vmul.f32 %v10292_v53, %v12188_v9 }
 0x495   :  { %v10294_v38 = vpop.eup %10293  ;;  %v2139_v45 = vpop.xlane.xlu1 %2138  ;;  %9436 = vmatmul.mubr.msk.f32.gmra.mxu0 %vm1743_vm1, %v2265_v54 }
 0x496   :  { %v2254_v34 = vmul.f32 %v10294_v38, %v12193_v50  ;;  %10307 = vrcp.f32 %v2139_v45 }
 0x497   :  { %v2136_v3 = vpop.xlane.xlu0 %2135  ;;  %v10296_v7 = vpop.eup %10295 }
 0x498   :  { %10309 = vrcp.f32 %v2136_v3  ;;  %9396 = vmatprep.mubr.msk.f32.mxu1 %vm1743_vm1, %v2254_v34  ;;  %v2267_v59 = vmul.f32 %v10296_v7, %v12198_v2 }
 0x499   :  { %v10298_v51 = vpop.eup %10297  ;;  %v2175_v48 = vpop.xlane.xlu1 %2174  ;;  %9397 = vmatmul.mubr.msk.f32.gmra.mxu1 %vm1743_vm1, %v2255_v32 }
 0x49a   :  { %v2266_v1 = vmul.f32 %v10298_v51, %v12203_v39  ;;  %10311 = vrcp.f32 %v2175_v48 }
 0x49b   :  { %v2172_v52 = vpop.xlane.xlu0 %2171  ;;  %v10300_v20 = vpop.eup %10299 }
 0x49c   :  { %10313 = vrcp.f32 %v2172_v52  ;;  %9438 = vmatprep.mubr.msk.f32.mxu0 %vm1743_vm1, %v2266_v1  ;;  %v2257_v18 = vmul.f32 %v10300_v20, %v12207_v24 }
 0x49d   :  { %v10302_v50 = vpop.eup %10301  ;;  %9439 = vmatmul.mubr.msk.f32.gmra.mxu0 %vm1743_vm1, %v2267_v59 }
 0x49e   :  { %v2256_v9 = vmul.f32 %v10302_v50, %v12211_v63 }
 0x49f   :  { %v10304_v55 = vpop.eup %10303 }
 0x4a0   :  { %9399 = vmatprep.mubr.msk.f32.mxu1 %vm1743_vm1, %v2256_v9  ;;  %v2269_v2 = vmul.f32 %v10304_v55, %v12215_v49 }
 0x4a1   :  { %v10306_v28 = vpop.eup %10305  ;;  %9400 = vmatmul.mubr.msk.f32.gmra.mxu1 %vm1743_vm1, %v2257_v18 }
 0x4a2   :  { %v2268_v39 = vmul.f32 %v10306_v28, %v12219_v40 }
 0x4a3   :  { %v10308_v36 = vpop.eup %10307 }
 0x4a4   :  { %9441 = vmatprep.mubr.msk.f32.mxu0 %vm1743_vm1, %v2268_v39  ;;  %v2259_v24 = vmul.f32 %v10308_v36, %v12223_v57  ;;  %v3002_v57 = vld [vmem:[%s14908_s11 + $0x10] sm:$0xff] }
 0x4a5   :  { %v10310_v27 = vpop.eup %10309  ;;  %9442 = vmatmul.mubr.msk.f32.gmra.mxu0 %vm1743_vm1, %v2269_v2 }
 0x4a6   :  { %v2258_v63 = vmul.f32 %v10310_v27, %v12227_v31  ;;  %v3003_v31 = vld [vmem:[%s14908_s11 + $0x18] sm:$0xff] }
 0x4a7   :  { %v10312_v56 = vpop.eup %10311  ;;  %9447 = vmatprep.subr.mxu1 %v3003_v31 }
 0x4a8   :  { %9402 = vmatprep.mubr.msk.f32.mxu1 %vm1743_vm1, %v2258_v63  ;;  %v2271_v49 = vmul.f32 %v10312_v56, %v12231_v43  ;;  %9448 = vmatpush3.msra.mxu1 %v3003_v31  ;;  %v3000_v43 = vld [vmem:[%s14908_s11] sm:$0xff] }
 0x4a9   :  { %v10314_v61 = vpop.eup %10313  ;;  %9403 = vmatmul.mubr.msk.f32.gmra.mxu1 %vm1743_vm1, %v2259_v24  ;;  %9449 = vmatprep.subr.mxu1 %v3002_v57 }
 0x4aa   :  { %v2270_v40 = vmul.f32 %v10314_v61, %v12235_v17  ;;  %v3001_v17 = vld [vmem:[%s14908_s11 + $0x8] sm:$0xff]  ;;  %9450 = vmatpush3.msra.mxu1 %v3002_v57 }
 0x4ab   :  { %9451 = vmatprep.subr.mxu1 %v3001_v17 }
 0x4ac   :  { %9444 = vmatprep.mubr.msk.f32.mxu0 %vm1743_vm1, %v2270_v40  ;;  %9452 = vmatpush3.msra.mxu1 %v3001_v17 }
 0x4ad   :  { %9445 = vmatmul.mubr.msk.f32.gmra.mxu0 %vm1743_vm1, %v2271_v49  ;;  %9453 = vmatprep.subr.mxu1 %v3000_v43 }
 0x4ae   :  { %9454 = vmatpush3.msra.mxu1 %v3000_v43 }
 0x510   :  { %v9305_v14 = vpop.f32.mrf.mxu1 }
 0x512   :  { %v2422_v42 = vpop.f32.mrf.mxu1 }
 0x514   :  { %v9347_v47 = vpop.f32.mrf.mxu0 }
 0x515   :  { %v2965_v35 = vadd.f32 %v9347_v47, %v9305_v14 }
 0x516   :  { %v2583_v5 = vpop.f32.mrf.mxu0 }
 0x517   :  { %v2964_v19 = vadd.f32 %v2583_v5, %v2422_v42 }
 0x519   :  { %v9308_v62 = vpop.f32.mrf.mxu1 }
 0x51b   :  { %v2432_v46 = vpop.f32.mrf.mxu1 }
 0x51e   :  { %v9350_v23 = vpop.f32.mrf.mxu0 }
 0x51f   :  { %v2967_v32 = vadd.f32 %v9350_v23, %v9308_v62 }
 0x520   :  { %v2593_v11 = vpop.f32.mrf.mxu0 }
 0x521   :  { %v2966_v3 = vadd.f32 %v2593_v11, %v2432_v46 }
 0x523   :  { %v9311_v29 = vpop.f32.mrf.mxu1 }
 0x525   :  { %v2442_v41 = vpop.f32.mrf.mxu1 }
 0x528   :  { %v9353_v33 = vpop.f32.mrf.mxu0 }
 0x529   :  { %v2969_v18 = vadd.f32 %v9353_v33, %v9311_v29 }
 0x52a   :  { %v2603_v8 = vpop.f32.mrf.mxu0 }
 0x52b   :  { %v2968_v9 = vadd.f32 %v2603_v8, %v2442_v41 }
 0x52d   :  { %v9314_v21 = vpop.f32.mrf.mxu1 }
 0x52f   :  { %v2452_v13 = vpop.f32.mrf.mxu1 }
 0x530   :  { %v9356_v25 = vpop.f32.mrf.mxu0 }
 0x531   :  { %v9317_v16 = vpop.f32.mrf.mxu1  ;;  %v2971_v61 = vadd.f32 %v9356_v25, %v9314_v21 }
 0x532   :  { %v2613_v44 = vpop.f32.mrf.mxu0 }
 0x533   :  { %v2462_v15 = vpop.f32.mrf.mxu1  ;;  %v2970_v56 = vadd.f32 %v2613_v44, %v2452_v13 }
 0x534   :  { %v9359_v4 = vpop.f32.mrf.mxu0 }
 0x535   :  { %v2973_v62 = vadd.f32 %v9359_v4, %v9317_v16 }
 0x536   :  { %v2623_v26 = vpop.f32.mrf.mxu0 }
 0x537   :  { %v2972_v47 = vadd.f32 %v2623_v26, %v2462_v15 }
 0x538   :  { %v12403_v6 = vpop.f32.mrf.mxu1 }
 0x53a   :  { %v12405_v12 = vpop.f32.mrf.mxu1 }
 0x53c   :  { %v12407_v37 = vpop.f32.mrf.mxu0 }
 0x53d   :  { %v2975_v13 = vadd.f32 %v12407_v37, %v12403_v6  ;;  %v10701_v6 = vld [vmem:[%s14988_s29 + $0x8] sm:$0xff] }
 0x53e   :  { %v2633_v60 = vpop.f32.mrf.mxu0 }
 0x53f   :  { %v2974_v8 = vadd.f32 %v2633_v60, %v12405_v12 }
 0x541   :  { %v9389_v22 = vpop.f32.mrf.mxu1 }
 0x542   :  { %v2977_v58 = vadd.f32 %v9389_v22, %v2965_v35 }
 0x543   :  { %v2744_v10 = vpop.f32.mrf.mxu1 }
 0x544   :  { %v2976_v30 = vadd.f32 %v2964_v19, %v2744_v10  ;;  %v12427_v10 = vld [vmem:[%s14909_s12] ss:$0 sm:$0xff] }
 0x545   :  { %v9431_v0 = vpop.f32.mrf.mxu0  ;;  %v10702_v19 = vld [vmem:[%s14988_s29] sm:$0xff] }
 0x546   :  { %v2989_v38 = vadd.f32 %v9431_v0, %v2977_v58 }
 0x547   :  { %v2905_v54 = vpop.f32.mrf.mxu0 }
 0x548   :  { %v2988_v53 = vadd.f32 %v2976_v30, %v2905_v54 }
 0x549   :  { %v9392_v45 = vpop.f32.mrf.mxu1 }
 0x54a   :  { %9455 = vmatprep.mubr.msk.f32.mxu1 %vm101_vm0, %v2988_v53  ;;  %v2979_v48 = vadd.f32 %v9392_v45, %v2967_v32  ;;  %v10703_v53 = vld [vmem:[%s14988_s29 + $0x18] sm:$0xff] }
 0x54b   :  { %v2754_v34 = vpop.f32.mrf.mxu1  ;;  %9456 = vmatmul.mubr.msk.f32.vlgmr.msra.gmra.mxu1 %vm101_vm0, %v2989_v38 }
 0x54c   :  { %v2978_v51 = vadd.f32 %v2966_v3, %v2754_v34  ;;  %v10704_v3 = vld [vmem:[%s14988_s29 + $0x10] sm:$0xff] }
 0x54d   :  { %v9434_v7 = vpop.f32.mrf.mxu0 }
 0x54e   :  { %v2991_v59 = vadd.f32 %v9434_v7, %v2979_v48 }
 0x54f   :  { %v2915_v1 = vpop.f32.mrf.mxu0 }
 0x550   :  { %v2990_v52 = vadd.f32 %v2978_v51, %v2915_v1 }
 0x551   :  { %v9395_v20 = vpop.f32.mrf.mxu1 }
 0x552   :  { %9458 = vmatprep.mubr.msk.f32.mxu1 %vm101_vm0, %v2990_v52  ;;  %v2981_v39 = vadd.f32 %v9395_v20, %v2969_v18  ;;  %v10705_v52 = vld [vmem:[%s14988_s29 + $0x28] sm:$0xff] }
 0x553   :  { %v2764_v50 = vpop.f32.mrf.mxu1  ;;  %9459 = vmatmul.mubr.msk.f32.gmra.mxu1 %vm101_vm0, %v2991_v59 }
 0x554   :  { %v2980_v28 = vadd.f32 %v2968_v9, %v2764_v50  ;;  %v10706_v9 = vld [vmem:[%s14988_s29 + $0x20] sm:$0xff] }
 0x555   :  { %v9437_v55 = vpop.f32.mrf.mxu0 }
 0x556   :  { %v2993_v27 = vadd.f32 %v9437_v55, %v2981_v39 }
 0x557   :  { %v2925_v2 = vpop.f32.mrf.mxu0 }
 0x558   :  { %v2992_v36 = vadd.f32 %v2980_v28, %v2925_v2 }
 0x559   :  { %v9398_v63 = vpop.f32.mrf.mxu1 }
 0x55a   :  { %9461 = vmatprep.mubr.msk.f32.mxu1 %vm101_vm0, %v2992_v36  ;;  %v2983_v31 = vadd.f32 %v9398_v63, %v2971_v61  ;;  %v10707_v36 = vld [vmem:[%s14988_s29 + $0x38] sm:$0xff] }
 0x55b   :  { %v2774_v24 = vpop.f32.mrf.mxu1  ;;  %9462 = vmatmul.mubr.msk.f32.gmra.mxu1 %vm101_vm0, %v2993_v27 }
 0x55c   :  { %v2982_v49 = vadd.f32 %v2970_v56, %v2774_v24  ;;  %v10708_v56 = vld [vmem:[%s14988_s29 + $0x30] sm:$0xff] }
 0x55d   :  { %v9440_v40 = vpop.f32.mrf.mxu0 }
 0x55e   :  { %v2995_v43 = vadd.f32 %v9440_v40, %v2983_v31 }
 0x55f   :  { %v2935_v57 = vpop.f32.mrf.mxu0 }
 0x560   :  { %v2994_v17 = vadd.f32 %v2982_v49, %v2935_v57 }
 0x561   :  { %v9401_v14 = vpop.f32.mrf.mxu1 }
 0x562   :  { %9464 = vmatprep.mubr.msk.f32.mxu1 %vm101_vm0, %v2994_v17  ;;  %v2985_v23 = vadd.f32 %v9401_v14, %v2973_v62  ;;  %v10709_v17 = vld [vmem:[%s14988_s29 + $0x48] sm:$0xff] }
 0x563   :  { %v2784_v42 = vpop.f32.mrf.mxu1  ;;  %9465 = vmatmul.mubr.msk.f32.gmra.mxu1 %vm101_vm0, %v2995_v43 }
 0x564   :  { %v2984_v46 = vadd.f32 %v2972_v47, %v2784_v42  ;;  %v10710_v47 = vld [vmem:[%s14988_s29 + $0x40] sm:$0xff] }
 0x565   :  { %v9443_v5 = vpop.f32.mrf.mxu0 }
 0x566   :  { %v2997_v41 = vadd.f32 %v9443_v5, %v2985_v23 }
 0x567   :  { %v2945_v29 = vpop.f32.mrf.mxu0 }
 0x568   :  { %v2996_v11 = vadd.f32 %v2984_v46, %v2945_v29 }
 0x569   :  { %v9404_v33 = vpop.f32.mrf.mxu1 }
 0x56a   :  { %9467 = vmatprep.mubr.msk.f32.mxu1 %vm101_vm0, %v2996_v11  ;;  %v2987_v16 = vadd.f32 %v9404_v33, %v2975_v13  ;;  %v10711_v11 = vld [vmem:[%s14988_s29 + $0x58] sm:$0xff] }
 0x56b   :  { %v2794_v21 = vpop.f32.mrf.mxu1  ;;  %9468 = vmatmul.mubr.msk.f32.gmra.mxu1 %vm101_vm0, %v2997_v41 }
 0x56c   :  { %v2986_v44 = vadd.f32 %v2974_v8, %v2794_v21  ;;  %v10712_v8 = vld [vmem:[%s14988_s29 + $0x50] sm:$0xff] }
 0x56d   :  { %v9446_v25 = vpop.f32.mrf.mxu0 }
 0x56e   :  { %v2999_v26 = vadd.f32 %v9446_v25, %v2987_v16 }
 0x56f   :  { %v2955_v15 = vpop.f32.mrf.mxu0 }
 0x570   :  { %v2998_v4 = vadd.f32 %v2986_v44, %v2955_v15 }
 0x572   :  { %9470 = vmatprep.mubr.msk.f32.mxu1 %vm101_vm0, %v2998_v4 }
 0x573   :  { %9471 = vmatmul.mubr.msk.f32.gmra.mxu1 %vm101_vm0, %v2999_v26 }
 0x60b   :  { %v9457_v22 = vpop.f32.mrf.mxu1 }
 0x60c   :  { %v3166_v12 = vadd.f32 %v10701_v6, %v9457_v22 }
 0x60d   :  { %v3106_v37 = vpop.f32.mrf.mxu1 }
 0x60e   :  { %v12433_v60 = vadd.f32 %v12427_v10, %v3166_v12  ;;  %v3165_v35 = vadd.f32 %v10702_v19, %v3106_v37 }
 0x610   :  { %v12439_v0 = vadd.f32 %v12427_v10, %v3165_v35  ;;  %v3201_v30 = vsel %vm101_vm0, %v12433_v60, 0.0 }
 0x611   :  { %3202 = vadd.xlane.f32.xlu1 %v3201_v30 }
 0x612   :  { %v3198_v58 = vsel %vm101_vm0, %v12439_v0, 0.0 }
 0x613   :  { %3199 = vadd.xlane.f32.xlu0 %v3198_v58  ;;  %v9460_v54 = vpop.f32.mrf.mxu1 }
 0x614   :  { %v3168_v38 = vadd.f32 %v10703_v53, %v9460_v54 }
 0x615   :  { %v3116_v45 = vpop.f32.mrf.mxu1 }
 0x616   :  { %v12449_v34 = vadd.f32 %v12427_v10, %v3168_v38  ;;  %v3167_v32 = vadd.f32 %v10704_v3, %v3116_v45 }
 0x618   :  { %v12455_v7 = vadd.f32 %v12427_v10, %v3167_v32  ;;  %v3207_v51 = vsel %vm101_vm0, %v12449_v34, 0.0 }
 0x619   :  { %3208 = vadd.xlane.f32.xlu1 %v3207_v51 }
 0x61a   :  { %v3204_v48 = vsel %vm101_vm0, %v12455_v7, 0.0 }
 0x61b   :  { %3205 = vadd.xlane.f32.xlu0 %v3204_v48  ;;  %v9463_v1 = vpop.f32.mrf.mxu1 }
 0x61c   :  { %v3170_v59 = vadd.f32 %v10705_v52, %v9463_v1 }
 0x61d   :  { %v3126_v20 = vpop.f32.mrf.mxu1 }
 0x61e   :  { %v12465_v50 = vadd.f32 %v12427_v10, %v3170_v59  ;;  %v3169_v18 = vadd.f32 %v10706_v9, %v3126_v20 }
 0x620   :  { %v12471_v55 = vadd.f32 %v12427_v10, %v3169_v18  ;;  %v3213_v28 = vsel %vm101_vm0, %v12465_v50, 0.0 }
 0x621   :  { %3214 = vadd.xlane.f32.xlu1 %v3213_v28 }
 0x622   :  { %v3210_v39 = vsel %vm101_vm0, %v12471_v55, 0.0 }
 0x623   :  { %3211 = vadd.xlane.f32.xlu0 %v3210_v39  ;;  %v9466_v2 = vpop.f32.mrf.mxu1 }
 0x624   :  { %v3172_v27 = vadd.f32 %v10707_v36, %v9466_v2 }
 0x625   :  { %v3136_v63 = vpop.f32.mrf.mxu1 }
 0x626   :  { %v12481_v24 = vadd.f32 %v12427_v10, %v3172_v27  ;;  %v3171_v61 = vadd.f32 %v10708_v56, %v3136_v63 }
 0x628   :  { %v12487_v40 = vadd.f32 %v12427_v10, %v3171_v61  ;;  %v3219_v49 = vsel %vm101_vm0, %v12481_v24, 0.0 }
 0x629   :  { %3220 = vadd.xlane.f32.xlu1 %v3219_v49 }
 0x62a   :  { %v3216_v31 = vsel %vm101_vm0, %v12487_v40, 0.0 }
 0x62b   :  { %3217 = vadd.xlane.f32.xlu0 %v3216_v31  ;;  %v9469_v57 = vpop.f32.mrf.mxu1 }
 0x62c   :  { %v3174_v43 = vadd.f32 %v10709_v17, %v9469_v57 }
 0x62d   :  { %v3146_v14 = vpop.f32.mrf.mxu1 }
 0x62e   :  { %v12497_v42 = vadd.f32 %v12427_v10, %v3174_v43  ;;  %v3173_v62 = vadd.f32 %v10710_v47, %v3146_v14 }
 0x630   :  { %v12503_v5 = vadd.f32 %v12427_v10, %v3173_v62  ;;  %v3225_v46 = vsel %vm101_vm0, %v12497_v42, 0.0 }
 0x631   :  { %3226 = vadd.xlane.f32.xlu1 %v3225_v46 }
 0x632   :  { %v3222_v23 = vsel %vm101_vm0, %v12503_v5, 0.0 }
 0x633   :  { %3223 = vadd.xlane.f32.xlu0 %v3222_v23  ;;  %v9472_v29 = vpop.f32.mrf.mxu1 }
 0x634   :  { %v3176_v41 = vadd.f32 %v10711_v11, %v9472_v29 }
 0x635   :  { %v3156_v33 = vpop.f32.mrf.mxu1 }
 0x636   :  { %v12513_v21 = vadd.f32 %v12427_v10, %v3176_v41  ;;  %v3175_v13 = vadd.f32 %v10712_v8, %v3156_v33 }
 0x638   :  { %v12519_v25 = vadd.f32 %v12427_v10, %v3175_v13  ;;  %v3231_v44 = vsel %vm101_vm0, %v12513_v21, 0.0 }
 0x639   :  { %3232 = vadd.xlane.f32.xlu1 %v3231_v44 }
 0x63a   :  { %v3228_v16 = vsel %vm101_vm0, %v12519_v25, 0.0 }
 0x63b   :  { %3229 = vadd.xlane.f32.xlu0 %v3228_v16 }
 0x69a   :  { %v3203_v15 = vpop.xlane.xlu1 %3202 }
 0x69b   :  { %v3235_v4 = vmul.f32 0.03125, %v3203_v15  ;;  %v3393_v15 = vld [vmem:[%s14910_s15 + $0x18] sm:$0xff] }
 0x69c   :  { %v3200_v26 = vpop.xlane.xlu0 %3199  ;;  %9473 = vmatprep.subr.mxu0 %v3393_v15 }
 0x69d   :  { %v12526_v22 = vsub.f32 %v12433_v60, %v3235_v4  ;;  %v3234_v6 = vmul.f32 0.03125, %v3200_v26  ;;  %v3392_v4 = vld [vmem:[%s14910_s15 + $0x10] sm:$0xff]  ;;  %9474 = vmatpush3.msra.mxu0 %v3393_v15 }
 0x69e   :  { %9475 = vmatprep.subr.mxu0 %v3392_v4 }
 0x69f   :  { %v12529_v12 = vsub.f32 %v12439_v0, %v3234_v6  ;;  %v3259_v10 = vmul.f32 %v12526_v22, %v12526_v22  ;;  %9476 = vmatpush3.msra.mxu0 %v3392_v4 }
 0x6a1   :  { %v3273_v37 = vsel %vm101_vm0, %v3259_v10, 0.0  ;;  %v3258_v19 = vmul.f32 %v12529_v12, %v12529_v12 }
 0x6a2   :  { %v3209_v35 = vpop.xlane.xlu1 %3208  ;;  %3274 = vadd.xlane.f32.xlu1 %v3273_v37  ;;  %v3391_v37 = vld [vmem:[%s14910_s15 + $0x8] sm:$0xff] }
 0x6a3   :  { %v3237_v30 = vmul.f32 0.03125, %v3209_v35  ;;  %v3270_v58 = vsel %vm101_vm0, %v3258_v19, 0.0  ;;  %9477 = vmatprep.subr.mxu0 %v3391_v37 }
 0x6a4   :  { %3271 = vadd.xlane.f32.xlu0 %v3270_v58  ;;  %v3206_v54 = vpop.xlane.xlu0 %3205  ;;  %9478 = vmatpush3.msra.mxu0 %v3391_v37 }
 0x6a5   :  { %v12538_v53 = vsub.f32 %v12449_v34, %v3237_v30  ;;  %v3236_v38 = vmul.f32 0.03125, %v3206_v54  ;;  %v3390_v30 = vld [vmem:[%s14910_s15] sm:$0xff] }
 0x6a6   :  { %9479 = vmatprep.subr.mxu0 %v3390_v30 }
 0x6a7   :  { %v12541_v45 = vsub.f32 %v12455_v7, %v3236_v38  ;;  %v3261_v3 = vmul.f32 %v12538_v53, %v12538_v53  ;;  %9480 = vmatpush3.msra.mxu0 %v3390_v30 }
 0x6a9   :  { %v3279_v32 = vsel %vm101_vm0, %v3261_v3, 0.0  ;;  %v3260_v51 = vmul.f32 %v12541_v45, %v12541_v45 }
 0x6aa   :  { %v3215_v48 = vpop.xlane.xlu1 %3214  ;;  %3280 = vadd.xlane.f32.xlu1 %v3279_v32 }
 0x6ab   :  { %v3239_v1 = vmul.f32 0.03125, %v3215_v48  ;;  %v3276_v52 = vsel %vm101_vm0, %v3260_v51, 0.0 }
 0x6ac   :  { %3277 = vadd.xlane.f32.xlu0 %v3276_v52  ;;  %v3212_v59 = vpop.xlane.xlu0 %3211 }
 0x6ad   :  { %v12550_v20 = vsub.f32 %v12465_v50, %v3239_v1  ;;  %v3238_v9 = vmul.f32 0.03125, %v3212_v59 }
 0x6af   :  { %v12553_v18 = vsub.f32 %v12471_v55, %v3238_v9  ;;  %v3263_v28 = vmul.f32 %v12550_v20, %v12550_v20 }
 0x6b1   :  { %v3285_v39 = vsel %vm101_vm0, %v3263_v28, 0.0  ;;  %v3262_v2 = vmul.f32 %v12553_v18, %v12553_v18 }
 0x6b2   :  { %v3221_v36 = vpop.xlane.xlu1 %3220  ;;  %3286 = vadd.xlane.f32.xlu1 %v3285_v39 }
 0x6b3   :  { %v3241_v27 = vmul.f32 0.03125, %v3221_v36  ;;  %v3282_v63 = vsel %vm101_vm0, %v3262_v2, 0.0 }
 0x6b4   :  { %3283 = vadd.xlane.f32.xlu0 %v3282_v63  ;;  %v3218_v56 = vpop.xlane.xlu0 %3217 }
 0x6b5   :  { %v12562_v61 = vsub.f32 %v12481_v24, %v3241_v27  ;;  %v3240_v49 = vmul.f32 0.03125, %v3218_v56 }
 0x6b7   :  { %v12565_v31 = vsub.f32 %v12487_v40, %v3240_v49  ;;  %v3265_v57 = vmul.f32 %v12562_v61, %v12562_v61 }
 0x6b9   :  { %v3291_v17 = vsel %vm101_vm0, %v3265_v57, 0.0  ;;  %v3264_v43 = vmul.f32 %v12565_v31, %v12565_v31  ;;  %v12612_v57 = vld [vmem:[%s14911_s13] ss:$0 sm:$0xff] }
 0x6ba   :  { %v3227_v14 = vpop.xlane.xlu1 %3226  ;;  %3292 = vadd.xlane.f32.xlu1 %v3291_v17 }
 0x6bb   :  { %v3243_v47 = vmul.f32 0.03125, %v3227_v14  ;;  %v3288_v62 = vsel %vm101_vm0, %v3264_v43, 0.0 }
 0x6bc   :  { %3289 = vadd.xlane.f32.xlu0 %v3288_v62  ;;  %v3224_v46 = vpop.xlane.xlu0 %3223 }
 0x6bd   :  { %v12574_v23 = vsub.f32 %v12497_v42, %v3243_v47  ;;  %v3242_v29 = vmul.f32 0.03125, %v3224_v46 }
 0x6bf   :  { %v12577_v11 = vsub.f32 %v12503_v5, %v3242_v29  ;;  %v3267_v41 = vmul.f32 %v12574_v23, %v12574_v23 }
 0x6c1   :  { %v3297_v33 = vsel %vm101_vm0, %v3267_v41, 0.0  ;;  %v3266_v8 = vmul.f32 %v12577_v11, %v12577_v11  ;;  %v12620_v41 = vld [vmem:[%s14912_s14] ss:$0 sm:$0xff] }
 0x6c2   :  { %3298 = vadd.xlane.f32.xlu1 %v3297_v33  ;;  %v3233_v13 = vpop.xlane.xlu1 %3232 }
 0x6c3   :  { %v3245_v44 = vmul.f32 0.03125, %v3233_v13  ;;  %v3294_v16 = vsel %vm101_vm0, %v3266_v8, 0.0 }
 0x6c4   :  { %3295 = vadd.xlane.f32.xlu0 %v3294_v16  ;;  %v3230_v26 = vpop.xlane.xlu0 %3229 }
 0x6c5   :  { %v12592_v6 = vsub.f32 %v12513_v21, %v3245_v44  ;;  %v3244_v10 = vmul.f32 0.03125, %v3230_v26 }
 0x6c7   :  { %v12598_v19 = vsub.f32 %v12519_v25, %v3244_v10  ;;  %v3269_v35 = vmul.f32 %v12592_v6, %v12592_v6 }
 0x6c9   :  { %v3303_v58 = vsel %vm101_vm0, %v3269_v35, 0.0  ;;  %v3268_v54 = vmul.f32 %v12598_v19, %v12598_v19 }
 0x6ca   :  { %3304 = vadd.xlane.f32.xlu1 %v3303_v58 }
 0x6cb   :  { %v3300_v38 = vsel %vm101_vm0, %v3268_v54, 0.0 }
 0x6cc   :  { %3301 = vadd.xlane.f32.xlu0 %v3300_v38 }
 0x72b   :  { %v3275_v3 = vpop.xlane.xlu1 %3274 }
 0x72c   :  { %v3307_v32 = vmul.f32 0.03125, %v3275_v3 }
 0x72d   :  { %v3272_v51 = vpop.xlane.xlu0 %3271 }
 0x72e   :  { %v3319_v48 = vadd.f32 1e-05, %v3307_v32  ;;  %v3306_v1 = vmul.f32 0.03125, %v3272_v51 }
 0x730   :  { %10315 = vrsqrt.f32 %v3319_v48  ;;  %v3318_v52 = vadd.f32 1e-05, %v3306_v1 }
 0x732   :  { %10317 = vrsqrt.f32 %v3318_v52 }
 0x733   :  { %v3281_v59 = vpop.xlane.xlu1 %3280 }
 0x734   :  { %v3309_v9 = vmul.f32 0.03125, %v3281_v59 }
 0x735   :  { %v3278_v28 = vpop.xlane.xlu0 %3277 }
 0x736   :  { %v3321_v39 = vadd.f32 1e-05, %v3309_v9  ;;  %v3308_v2 = vmul.f32 0.03125, %v3278_v28 }
 0x738   :  { %10319 = vrsqrt.f32 %v3321_v39  ;;  %v3320_v36 = vadd.f32 1e-05, %v3308_v2 }
 0x73a   :  { %10321 = vrsqrt.f32 %v3320_v36 }
 0x73b   :  { %v3287_v27 = vpop.xlane.xlu1 %3286 }
 0x73c   :  { %v3311_v63 = vmul.f32 0.03125, %v3287_v27 }
 0x73d   :  { %v10316_v56 = vpop.eup %10315  ;;  %v3284_v49 = vpop.xlane.xlu0 %3283 }
 0x73e   :  { %v3343_v17 = vmul.f32 %v10316_v56, %v12526_v22  ;;  %v3323_v43 = vadd.f32 1e-05, %v3311_v63  ;;  %v3310_v14 = vmul.f32 0.03125, %v3284_v49 }
 0x73f   :  { %v10318_v47 = vpop.eup %10317 }
 0x740   :  { %10323 = vrsqrt.f32 %v3323_v43  ;;  %v3322_v62 = vadd.f32 1e-05, %v3310_v14  ;;  %v3342_v46 = vmul.f32 %v10318_v47, %v12529_v12  ;;  %v3361_v29 = vmul.f32 %v12612_v57, %v3343_v17 }
 0x742   :  { %10325 = vrsqrt.f32 %v3322_v62  ;;  %v3360_v33 = vmul.f32 %v12612_v57, %v3342_v46  ;;  %v3379_v15 = vadd.f32 %v12620_v41, %v3361_v29 }
 0x743   :  { %v3293_v8 = vpop.xlane.xlu1 %3292 }
 0x744   :  { %v3313_v13 = vmul.f32 0.03125, %v3293_v8  ;;  %v3378_v22 = vadd.f32 %v12620_v41, %v3360_v33 }
 0x745   :  { %v10320_v44 = vpop.eup %10319  ;;  %v3290_v16 = vpop.xlane.xlu0 %3289 }
 0x746   :  { %v3325_v4 = vadd.f32 1e-05, %v3313_v13  ;;  %v3312_v12 = vmul.f32 0.03125, %v3290_v16  ;;  %9481 = vmatprep.mubr.msk.f32.mxu0 %vm101_vm0, %v3378_v22  ;;  %v3345_v26 = vmul.f32 %v10320_v44, %v12538_v53 }
 0x747   :  { %v10322_v10 = vpop.eup %10321  ;;  %9482 = vmatmul.mubr.msk.f32.vlgmr.msra.gmra.mxu0 %vm101_vm0, %v3379_v15 }
 0x748   :  { %10327 = vrsqrt.f32 %v3325_v4  ;;  %v3324_v37 = vadd.f32 1e-05, %v3312_v12  ;;  %v3344_v35 = vmul.f32 %v10322_v10, %v12541_v45  ;;  %v3363_v30 = vmul.f32 %v12612_v57, %v3345_v26 }
 0x74a   :  { %10329 = vrsqrt.f32 %v3324_v37  ;;  %v3362_v58 = vmul.f32 %v12612_v57, %v3344_v35  ;;  %v3381_v53 = vadd.f32 %v12620_v41, %v3363_v30  ;;  %v3669_v30 = vld [vmem:[%s14913_s17 + $0x58] sm:$0xff] }
 0x74b   :  { %v3299_v54 = vpop.xlane.xlu1 %3298 }
 0x74c   :  { %v3315_v38 = vmul.f32 0.03125, %v3299_v54  ;;  %v3380_v3 = vadd.f32 %v12620_v41, %v3362_v58  ;;  %v3668_v58 = vld [vmem:[%s14913_s17 + $0x50] sm:$0xff]  ;;  %v3667_v54 = vld [vmem:[%s14913_s17 + $0x48] sm:$0xff] }
 0x74d   :  { %v10324_v32 = vpop.eup %10323  ;;  %v3296_v51 = vpop.xlane.xlu0 %3295 }
 0x74e   :  { %v3327_v48 = vadd.f32 1e-05, %v3315_v38  ;;  %v3314_v1 = vmul.f32 0.03125, %v3296_v51  ;;  %9484 = vmatprep.mubr.msk.f32.mxu0 %vm101_vm0, %v3380_v3  ;;  %v3347_v52 = vmul.f32 %v10324_v32, %v12550_v20  ;;  %v3666_v38 = vld [vmem:[%s14913_s17 + $0x40] sm:$0xff]  ;;  %v3665_v3 = vld [vmem:[%s14913_s17 + $0x38] sm:$0xff]  ;;  %v3664_v32 = vld [vmem:[%s14913_s17 + $0x30] sm:$0xff] }
 0x74f   :  { %v10326_v45 = vpop.eup %10325  ;;  %9485 = vmatmul.mubr.msk.f32.gmra.mxu0 %vm101_vm0, %v3381_v53  ;;  %v3663_v51 = vld [vmem:[%s14913_s17 + $0x28] sm:$0xff]  ;;  %v3662_v53 = vld [vmem:[%s14913_s17 + $0x20] sm:$0xff] }
 0x750   :  { %10331 = vrsqrt.f32 %v3327_v48  ;;  %v3326_v59 = vadd.f32 1e-05, %v3314_v1  ;;  %v3346_v9 = vmul.f32 %v10326_v45, %v12553_v18  ;;  %v3365_v28 = vmul.f32 %v12612_v57, %v3347_v52  ;;  %v3661_v48 = vld [vmem:[%s14913_s17 + $0x18] sm:$0xff]  ;;  %v3660_v1 = vld [vmem:[%s14913_s17 + $0x10] sm:$0xff]  ;;  %v3659_v52 = vld [vmem:[%s14913_s17 + $0x8] sm:$0xff] }
 0x751   :  { %v3658_v45 = vld [vmem:[%s14913_s17] sm:$0xff] }
 0x752   :  { %10333 = vrsqrt.f32 %v3326_v59  ;;  %v3364_v39 = vmul.f32 %v12612_v57, %v3346_v9  ;;  %v3383_v20 = vadd.f32 %v12620_v41, %v3365_v28  ;;  %v12718_v59 = vld [vmem:[%s14914_s16] ss:$0 sm:$0xff] }
 0x753   :  { %v3305_v2 = vpop.xlane.xlu1 %3304 }
 0x754   :  { %v3317_v36 = vmul.f32 0.03125, %v3305_v2  ;;  %v3382_v27 = vadd.f32 %v12620_v41, %v3364_v39 }
 0x755   :  { %v10328_v63 = vpop.eup %10327  ;;  %v3302_v56 = vpop.xlane.xlu0 %3301 }
 0x756   :  { %v3329_v49 = vadd.f32 1e-05, %v3317_v36  ;;  %v3316_v17 = vmul.f32 0.03125, %v3302_v56  ;;  %9487 = vmatprep.mubr.msk.f32.mxu0 %vm101_vm0, %v3382_v27  ;;  %v3349_v43 = vmul.f32 %v10328_v63, %v12562_v61 }
 0x757   :  { %v10330_v18 = vpop.eup %10329  ;;  %9488 = vmatmul.mubr.msk.f32.gmra.mxu0 %vm101_vm0, %v3383_v20 }
 0x758   :  { %10335 = vrsqrt.f32 %v3329_v49  ;;  %v3328_v14 = vadd.f32 1e-05, %v3316_v17  ;;  %v3348_v47 = vmul.f32 %v10330_v18, %v12565_v31  ;;  %v3367_v62 = vmul.f32 %v12612_v57, %v3349_v43 }
 0x75a   :  { %10337 = vrsqrt.f32 %v3328_v14  ;;  %v3366_v46 = vmul.f32 %v12612_v57, %v3348_v47  ;;  %v3385_v8 = vadd.f32 %v12620_v41, %v3367_v62 }
 0x75c   :  { %v3384_v29 = vadd.f32 %v12620_v41, %v3366_v46 }
 0x75d   :  { %v10332_v33 = vpop.eup %10331 }
 0x75e   :  { %9490 = vmatprep.mubr.msk.f32.mxu0 %vm101_vm0, %v3384_v29  ;;  %v3351_v61 = vmul.f32 %v10332_v33, %v12574_v23 }
 0x75f   :  { %v10334_v13 = vpop.eup %10333  ;;  %9491 = vmatmul.mubr.msk.f32.gmra.mxu0 %vm101_vm0, %v3385_v8 }
 0x760   :  { %v3350_v22 = vmul.f32 %v10334_v13, %v12577_v11  ;;  %v3369_v31 = vmul.f32 %v12612_v57, %v3351_v61 }
 0x762   :  { %v3368_v44 = vmul.f32 %v12612_v57, %v3350_v22  ;;  %v3387_v4 = vadd.f32 %v12620_v41, %v3369_v31 }
 0x764   :  { %v3386_v16 = vadd.f32 %v12620_v41, %v3368_v44 }
 0x765   :  { %v10336_v15 = vpop.eup %10335 }
 0x766   :  { %9493 = vmatprep.mubr.msk.f32.mxu0 %vm101_vm0, %v3386_v16  ;;  %v3353_v12 = vmul.f32 %v10336_v15, %v12592_v6  ;;  %v3673_v6 = vld [vmem:[%s14913_s17 + $0x78] sm:$0xff] }
 0x767   :  { %v10338_v26 = vpop.eup %10337  ;;  %9494 = vmatmul.mubr.msk.f32.gmra.mxu0 %vm101_vm0, %v3387_v4  ;;  %9499 = vmatprep.subr.mxu1 %v3673_v6 }
 0x768   :  { %v3352_v23 = vmul.f32 %v10338_v26, %v12598_v19  ;;  %v3371_v11 = vmul.f32 %v12612_v57, %v3353_v12  ;;  %9500 = vmatpush3.msra.mxu1 %v3673_v6  ;;  %v3672_v19 = vld [vmem:[%s14913_s17 + $0x70] sm:$0xff] }
 0x769   :  { %9501 = vmatprep.subr.mxu1 %v3672_v19 }
 0x76a   :  { %v3370_v10 = vmul.f32 %v12612_v57, %v3352_v23  ;;  %v3389_v35 = vadd.f32 %v12620_v41, %v3371_v11  ;;  %9502 = vmatpush3.msra.mxu1 %v3672_v19  ;;  %v3671_v57 = vld [vmem:[%s14913_s17 + $0x68] sm:$0xff] }
 0x76b   :  { %9503 = vmatprep.subr.mxu1 %v3671_v57 }
 0x76c   :  { %v3388_v37 = vadd.f32 %v12620_v41, %v3370_v10  ;;  %9504 = vmatpush3.msra.mxu1 %v3671_v57  ;;  %v3670_v41 = vld [vmem:[%s14913_s17 + $0x60] sm:$0xff] }
 0x76d   :  { %9505 = vmatprep.subr.mxu1 %v3670_v41 }
 0x76e   :  { %9496 = vmatprep.mubr.msk.f32.mxu0 %vm101_vm0, %v3388_v37  ;;  %9506 = vmatpush3.msra.mxu1 %v3670_v41 }
 0x76f   :  { %9497 = vmatmul.mubr.msk.f32.gmra.mxu0 %vm101_vm0, %v3389_v35  ;;  %9507 = vmatprep.subr.mxu1 %v3669_v30 }
 0x770   :  { %9508 = vmatpush3.msra.mxu1 %v3669_v30 }
 0x771   :  { %9509 = vmatprep.subr.mxu1 %v3668_v58 }
 0x772   :  { %9510 = vmatpush3.msra.mxu1 %v3668_v58 }
 0x773   :  { %9511 = vmatprep.subr.mxu1 %v3667_v54 }
 0x774   :  { %9512 = vmatpush3.msra.mxu1 %v3667_v54 }
 0x775   :  { %9513 = vmatprep.subr.mxu1 %v3666_v38 }
 0x776   :  { %9514 = vmatpush3.msra.mxu1 %v3666_v38 }
 0x777   :  { %9515 = vmatprep.subr.mxu1 %v3665_v3 }
 0x778   :  { %9516 = vmatpush3.msra.mxu1 %v3665_v3 }
 0x779   :  { %9517 = vmatprep.subr.mxu1 %v3664_v32 }
 0x77a   :  { %9518 = vmatpush3.msra.mxu1 %v3664_v32 }
 0x77b   :  { %9519 = vmatprep.subr.mxu1 %v3663_v51 }
 0x77c   :  { %9520 = vmatpush3.msra.mxu1 %v3663_v51 }
 0x77d   :  { %9521 = vmatprep.subr.mxu1 %v3662_v53 }
 0x77e   :  { %9522 = vmatpush3.msra.mxu1 %v3662_v53 }
 0x77f   :  { %9523 = vmatprep.subr.mxu1 %v3661_v48 }
 0x780   :  { %9524 = vmatpush3.msra.mxu1 %v3661_v48 }
 0x781   :  { %9525 = vmatprep.subr.mxu1 %v3660_v1 }
 0x782   :  { %9526 = vmatpush3.msra.mxu1 %v3660_v1 }
 0x783   :  { %9527 = vmatprep.subr.mxu1 %v3659_v52 }
 0x784   :  { %9528 = vmatpush3.msra.mxu1 %v3659_v52 }
 0x785   :  { %9529 = vmatprep.subr.mxu1 %v3658_v45 }
 0x786   :  { %9530 = vmatpush3.msra.mxu1 %v3658_v45 }
 0x807   :  { %v9483_v9 = vpop.f32.mrf.mxu0 }
 0x808   :  { %v12721_v28 = vadd.f32 %v9483_v9, %v12718_v59 }
 0x809   :  { %v3503_v39 = vpop.f32.mrf.mxu0 }
 0x80a   :  { %v8119_v2 = vmul.f32 -1.702, %v12721_v28  ;;  %v3504_v36 = vadd.f32 %v12718_v59, %v3503_v39 }
 0x80c   :  { %v3588_v27 = vmul.f32 1.442695, %v8119_v2  ;;  %v8118_v63 = vmul.f32 -1.702, %v3504_v36 }
 0x80e   :  { %10339 = vpow2.f32 %v3588_v27  ;;  %v3586_v56 = vmul.f32 1.442695, %v8118_v63 }
 0x80f   :  { %v9486_v20 = vpop.f32.mrf.mxu0 }
 0x810   :  { %10341 = vpow2.f32 %v3586_v56  ;;  %v12726_v49 = vadd.f32 %v9486_v20, %v12718_v59 }
 0x811   :  { %v3513_v17 = vpop.f32.mrf.mxu0 }
 0x812   :  { %v8121_v43 = vmul.f32 -1.702, %v12726_v49  ;;  %v12730_v18 = vadd.f32 %v12718_v59, %v3513_v17 }
 0x814   :  { %v3592_v14 = vmul.f32 1.442695, %v8121_v43  ;;  %v8120_v47 = vmul.f32 -1.702, %v12730_v18 }
 0x816   :  { %10343 = vpow2.f32 %v3592_v14  ;;  %v3590_v62 = vmul.f32 1.442695, %v8120_v47 }
 0x817   :  { %v9489_v46 = vpop.f32.mrf.mxu0 }
 0x818   :  { %10345 = vpow2.f32 %v3590_v62  ;;  %v12734_v29 = vadd.f32 %v9489_v46, %v12718_v59 }
 0x819   :  { %v3523_v33 = vpop.f32.mrf.mxu0 }
 0x81a   :  { %v8123_v8 = vmul.f32 -1.702, %v12734_v29  ;;  %v12738_v61 = vadd.f32 %v12718_v59, %v3523_v33 }
 0x81b   :  { %v10340_v13 = vpop.eup %10339 }
 0x81c   :  { %v3611_v22 = vadd.f32 1.0, %v10340_v13  ;;  %v3596_v31 = vmul.f32 1.442695, %v8123_v8  ;;  %v8122_v44 = vmul.f32 -1.702, %v12738_v61 }
 0x81d   :  { %v10342_v16 = vpop.eup %10341 }
 0x81e   :  { %10347 = vrcp.f32 %v3611_v22  ;;  %v3610_v15 = vadd.f32 1.0, %v10342_v16  ;;  %v3594_v4 = vmul.f32 1.442695, %v8122_v44 }
 0x81f   :  { %10349 = vpow2.f32 %v3596_v31  ;;  %v9492_v12 = vpop.f32.mrf.mxu0 }
 0x820   :  { %10351 = vrcp.f32 %v3610_v15  ;;  %v12742_v26 = vadd.f32 %v9492_v12, %v12718_v59 }
 0x821   :  { %10353 = vpow2.f32 %v3594_v4  ;;  %v3533_v23 = vpop.f32.mrf.mxu0 }
 0x822   :  { %v8125_v11 = vmul.f32 -1.702, %v12742_v26  ;;  %v12746_v10 = vadd.f32 %v12718_v59, %v3533_v23 }
 0x823   :  { %v10344_v37 = vpop.eup %10343 }
 0x824   :  { %v3613_v35 = vadd.f32 1.0, %v10344_v37  ;;  %v3600_v6 = vmul.f32 1.442695, %v8125_v11  ;;  %v8124_v19 = vmul.f32 -1.702, %v12746_v10 }
 0x825   :  { %v10346_v57 = vpop.eup %10345 }
 0x826   :  { %10355 = vrcp.f32 %v3613_v35  ;;  %v3612_v41 = vadd.f32 1.0, %v10346_v57  ;;  %v3598_v30 = vmul.f32 1.442695, %v8124_v19 }
 0x827   :  { %10357 = vpow2.f32 %v3600_v6  ;;  %v9495_v58 = vpop.f32.mrf.mxu0 }
 0x828   :  { %10359 = vrcp.f32 %v3612_v41  ;;  %v12750_v54 = vadd.f32 %v9495_v58, %v12718_v59 }
 0x829   :  { %10361 = vpow2.f32 %v3598_v30  ;;  %v3543_v38 = vpop.f32.mrf.mxu0 }
 0x82a   :  { %v8127_v3 = vmul.f32 -1.702, %v12750_v54  ;;  %v12754_v32 = vadd.f32 %v12718_v59, %v3543_v38 }
 0x82b   :  { %v10348_v51 = vpop.eup %10347 }
 0x82c   :  { %v10350_v53 = vpop.eup %10349  ;;  %v3604_v48 = vmul.f32 1.442695, %v8127_v3  ;;  %v8126_v1 = vmul.f32 -1.702, %v12754_v32  ;;  %v3647_v27 = vmul.f32 %v10348_v51, %v12721_v28 }
 0x82d   :  { %v10352_v52 = vpop.eup %10351  ;;  %v3615_v45 = vadd.f32 1.0, %v10350_v53 }
 0x82e   :  { %v10354_v9 = vpop.eup %10353  ;;  %v3646_v39 = vmul.f32 %v10352_v52, %v3504_v36  ;;  %10363 = vpow2.f32 %v3604_v48  ;;  %v3602_v2 = vmul.f32 1.442695, %v8126_v1 }
 0x82f   :  { %10365 = vrcp.f32 %v3615_v45  ;;  %v3614_v63 = vadd.f32 1.0, %v10354_v9  ;;  %v9498_v56 = vpop.f32.mrf.mxu0 }
 0x830   :  { %10367 = vpow2.f32 %v3602_v2  ;;  %v3559_v20 = vadd.f32 %v9498_v56, %v12718_v59  ;;  %9531 = vmatprep.mubr.f32.mxu1 %v3646_v39 }
 0x831   :  { %10369 = vrcp.f32 %v3614_v63  ;;  %v3553_v17 = vpop.f32.mrf.mxu0  ;;  %9532 = vmatmul.mubr.f32.vlgmr.msra.gmra.mxu1 %v3647_v27 }
 0x832   :  { %v8129_v43 = vmul.f32 -1.702, %v3559_v20  ;;  %v3554_v14 = vadd.f32 %v12718_v59, %v3553_v17 }
 0x833   :  { %v10356_v47 = vpop.eup %10355 }
 0x834   :  { %v10358_v62 = vpop.eup %10357  ;;  %v3608_v36 = vmul.f32 1.442695, %v8129_v43  ;;  %v8128_v46 = vmul.f32 -1.702, %v3554_v14  ;;  %v3649_v31 = vmul.f32 %v10356_v47, %v12726_v49 }
 0x835   :  { %v10360_v33 = vpop.eup %10359  ;;  %v3617_v8 = vadd.f32 1.0, %v10358_v62 }
 0x836   :  { %v10362_v28 = vpop.eup %10361  ;;  %v3648_v13 = vmul.f32 %v10360_v33, %v12730_v18  ;;  %10371 = vpow2.f32 %v3608_v36  ;;  %v3606_v22 = vmul.f32 1.442695, %v8128_v46 }
 0x837   :  { %10373 = vrcp.f32 %v3617_v8  ;;  %v3616_v44 = vadd.f32 1.0, %v10362_v28 }
 0x838   :  { %10375 = vpow2.f32 %v3606_v22  ;;  %9534 = vmatprep.mubr.f32.mxu1 %v3648_v13 }
 0x839   :  { %10377 = vrcp.f32 %v3616_v44  ;;  %9535 = vmatmul.mubr.f32.gmra.mxu1 %v3649_v31 }
 0x83b   :  { %v10364_v59 = vpop.eup %10363 }
 0x83c   :  { %v10366_v16 = vpop.eup %10365  ;;  %v3619_v15 = vadd.f32 1.0, %v10364_v59 }
 0x83d   :  { %v10368_v4 = vpop.eup %10367  ;;  %v3651_v18 = vmul.f32 %v10366_v16, %v12734_v29 }
 0x83e   :  { %v10370_v12 = vpop.eup %10369  ;;  %v3618_v23 = vadd.f32 1.0, %v10368_v4  ;;  %10379 = vrcp.f32 %v3619_v15 }
 0x83f   :  { %v3650_v11 = vmul.f32 %v10370_v12, %v12738_v61 }
 0x840   :  { %10381 = vrcp.f32 %v3618_v23 }
 0x841   :  { %9537 = vmatprep.mubr.f32.mxu1 %v3650_v11 }
 0x842   :  { %9538 = vmatmul.mubr.f32.gmra.mxu1 %v3651_v18 }
 0x843   :  { %v10372_v49 = vpop.eup %10371 }
 0x844   :  { %v10374_v37 = vpop.eup %10373  ;;  %v3621_v35 = vadd.f32 1.0, %v10372_v49 }
 0x845   :  { %v10376_v6 = vpop.eup %10375  ;;  %v3653_v30 = vmul.f32 %v10374_v37, %v12742_v26  ;;  %v8130_v26 = vld [vmem:[%s14915_s18] ss:$0 sm:$0xff] }
 0x846   :  { %v10378_v19 = vpop.eup %10377  ;;  %v3620_v57 = vadd.f32 1.0, %v10376_v6  ;;  %10383 = vrcp.f32 %v3621_v35 }
 0x847   :  { %v3652_v41 = vmul.f32 %v10378_v19, %v12746_v10 }
 0x848   :  { %10385 = vrcp.f32 %v3620_v57 }
 0x849   :  { %9540 = vmatprep.mubr.f32.mxu1 %v3652_v41 }
 0x84a   :  { %9541 = vmatmul.mubr.f32.gmra.mxu1 %v3653_v30 }
 0x84b   :  { %v10380_v61 = vpop.eup %10379 }
 0x84c   :  { %v3655_v38 = vmul.f32 %v10380_v61, %v12750_v54 }
 0x84d   :  { %v10382_v58 = vpop.eup %10381 }
 0x84e   :  { %v3654_v29 = vmul.f32 %v10382_v58, %v12754_v32 }
 0x850   :  { %9543 = vmatprep.mubr.f32.mxu1 %v3654_v29 }
 0x851   :  { %9544 = vmatmul.mubr.f32.gmra.mxu1 %v3655_v38 }
 0x853   :  { %v10384_v3 = vpop.eup %10383 }
 0x854   :  { %v3657_v48 = vmul.f32 %v10384_v3, %v3559_v20 }
 0x855   :  { %v10386_v51 = vpop.eup %10385 }
 0x856   :  { %v3656_v53 = vmul.f32 %v10386_v51, %v3554_v14 }
 0x858   :  { %9546 = vmatprep.mubr.f32.mxu1 %v3656_v53 }
 0x859   :  { %9547 = vmatmul.mubr.f32.gmra.mxu1 %v3657_v48 }
 0x8f1   :  { %v9533_v10 = vpop.f32.mrf.mxu1 }
 0x8f2   :  { %v3753_v1 = vadd.f32 %v9533_v10, %v8130_v26 }
 0x8f3   :  { %v3747_v52 = vpop.f32.mrf.mxu1 }
 0x8f4   :  { %v12772_v45 = vadd.f32 %v3753_v1, %v12433_v60  ;;  %v3748_v32 = vadd.f32 %v8130_v26, %v3747_v52 }
 0x8f6   :  { %15017 = vst [vmem:[#allocation2_spill] sm:$0xff] %v12772_v45  ;;  %v12775_v54 = vadd.f32 %v3748_v32, %v12439_v0  ;;  %v3825_v9 = vsel %vm101_vm0, %v12772_v45, 0.0 }
 0x8f7   :  { %3826 = vadd.xlane.f32.xlu1 %v3825_v9 }
 0x8f8   :  { %15018 = vst [vmem:[#allocation3_spill] sm:$0xff] %v12775_v54  ;;  %v3822_v39 = vsel %vm101_vm0, %v12775_v54, 0.0 }
 0x8f9   :  { %3823 = vadd.xlane.f32.xlu0 %v3822_v39  ;;  %v9536_v2 = vpop.f32.mrf.mxu1 }
 0x8fa   :  { %v3763_v27 = vadd.f32 %v9536_v2, %v8130_v26 }
 0x8fb   :  { %v3757_v63 = vpop.f32.mrf.mxu1 }
 0x8fc   :  { %v12782_v56 = vadd.f32 %v3763_v27, %v12449_v34  ;;  %v3758_v60 = vadd.f32 %v8130_v26, %v3757_v63 }
 0x8fe   :  { %15019 = vst [vmem:[#allocation12_spill] sm:$0xff] %v12782_v56  ;;  %v12785_v20 = vadd.f32 %v3758_v60, %v12455_v7  ;;  %v3831_v0 = vsel %vm101_vm0, %v12782_v56, 0.0 }
 0x8ff   :  { %3832 = vadd.xlane.f32.xlu1 %v3831_v0 }
 0x900   :  { %15020 = vst [vmem:[#allocation4_spill] sm:$0xff] %v12785_v20  ;;  %v3828_v17 = vsel %vm101_vm0, %v12785_v20, 0.0 }
 0x901   :  { %3829 = vadd.xlane.f32.xlu0 %v3828_v17 }
 0x902   :  { %v9539_v43 = vpop.f32.mrf.mxu1 }
 0x903   :  { %v3773_v14 = vadd.f32 %v9539_v43, %v8130_v26 }
 0x904   :  { %v3767_v47 = vpop.f32.mrf.mxu1 }
 0x905   :  { %v12792_v62 = vadd.f32 %v3773_v14, %v12465_v50  ;;  %v3768_v34 = vadd.f32 %v8130_v26, %v3767_v47 }
 0x907   :  { %15021 = vst [vmem:[#allocation5_spill] sm:$0xff] %v12792_v62  ;;  %v12795_v36 = vadd.f32 %v3768_v34, %v12471_v55  ;;  %v3837_v7 = vsel %vm101_vm0, %v12792_v62, 0.0 }
 0x908   :  { %3838 = vadd.xlane.f32.xlu1 %v3837_v7 }
 0x909   :  { %15022 = vst [vmem:[#allocation6_spill] sm:$0xff] %v12795_v36  ;;  %v3834_v46 = vsel %vm101_vm0, %v12795_v36, 0.0 }
 0x90a   :  { %3835 = vadd.xlane.f32.xlu0 %v3834_v46  ;;  %v9542_v33 = vpop.f32.mrf.mxu1 }
 0x90b   :  { %v3783_v8 = vadd.f32 %v9542_v33, %v8130_v26 }
 0x90c   :  { %v3777_v28 = vpop.f32.mrf.mxu1 }
 0x90d   :  { %v12802_v13 = vadd.f32 %v3783_v8, %v12481_v24  ;;  %v3778_v50 = vadd.f32 %v8130_v26, %v3777_v28 }
 0x90f   :  { %15023 = vst [vmem:[#allocation7_spill] sm:$0xff] %v12802_v13  ;;  %v12805_v22 = vadd.f32 %v3778_v50, %v12487_v40  ;;  %v3843_v55 = vsel %vm101_vm0, %v12802_v13, 0.0 }
 0x910   :  { %3844 = vadd.xlane.f32.xlu1 %v3843_v55 }
 0x911   :  { %15024 = vst [vmem:[#allocation8_spill] sm:$0xff] %v12805_v22  ;;  %v3840_v31 = vsel %vm101_vm0, %v12805_v22, 0.0  ;;  %v9545_v44 = vpop.f32.mrf.mxu1 }
 0x912   :  { %3841 = vadd.xlane.f32.xlu0 %v3840_v31  ;;  %v3793_v59 = vadd.f32 %v9545_v44, %v8130_v26 }
 0x913   :  { %v3787_v16 = vpop.f32.mrf.mxu1 }
 0x914   :  { %v12812_v15 = vadd.f32 %v3793_v59, %v12497_v42  ;;  %v3788_v24 = vadd.f32 %v8130_v26, %v3787_v16 }
 0x916   :  { %15025 = vst [vmem:[#allocation9_spill] sm:$0xff] %v12812_v15  ;;  %v12815_v4 = vadd.f32 %v3788_v24, %v12503_v5  ;;  %v3849_v40 = vsel %vm101_vm0, %v12812_v15, 0.0 }
 0x917   :  { %3850 = vadd.xlane.f32.xlu1 %v3849_v40 }
 0x918   :  { %15026 = vst [vmem:[#allocation10_spill] sm:$0xff] %v12815_v4  ;;  %v3846_v12 = vsel %vm101_vm0, %v12815_v4, 0.0 }
 0x919   :  { %3847 = vadd.xlane.f32.xlu0 %v3846_v12  ;;  %v9548_v23 = vpop.f32.mrf.mxu1 }
 0x91a   :  { %v3803_v11 = vadd.f32 %v9548_v23, %v8130_v26 }
 0x91b   :  { %v3797_v18 = vpop.f32.mrf.mxu1 }
 0x91c   :  { %v12822_v49 = vadd.f32 %v3803_v11, %v12513_v21  ;;  %v3798_v42 = vadd.f32 %v8130_v26, %v3797_v18 }
 0x91e   :  { %15027 = vst [vmem:[#allocation11_spill] sm:$0xff] %v12822_v49  ;;  %v12825_v37 = vadd.f32 %v3798_v42, %v12519_v25  ;;  %v3855_v5 = vsel %vm101_vm0, %v12822_v49, 0.0 }
 0x91f   :  { %3856 = vadd.xlane.f32.xlu1 %v3855_v5 }
 0x920   :  { %15028 = vst [vmem:[#allocation13_spill] sm:$0xff] %v12825_v37  ;;  %v3852_v35 = vsel %vm101_vm0, %v12825_v37, 0.0 }
 0x921   :  { %3853 = vadd.xlane.f32.xlu0 %v3852_v35 }
 0x980   :  { %v3827_v6 = vpop.xlane.xlu1 %3826 }
 0x981   :  { %v3859_v19 = vmul.f32 0.03125, %v3827_v6  ;;  %v8138_v6 = vld [vmem:[%s14989_s7 + $0x38] sm:$0xff] }
 0x982   :  { %v3824_v57 = vpop.xlane.xlu0 %3823  ;;  %9549 = vmatprep.subr.mxu0 %v8138_v6 }
 0x983   :  { %v12832_v41 = vsub.f32 %v12772_v45, %v3859_v19  ;;  %v3858_v21 = vmul.f32 0.03125, %v3824_v57  ;;  %v8156_v19 = vld [vmem:[%s14990_s28 + $0x38] sm:$0xff]  ;;  %v8137_v57 = vld [vmem:[%s14989_s7 + $0x30] sm:$0xff]  ;;  %9550 = vmatpush3.msra.mxu0 %v8138_v6 }
 0x984   :  { %9575 = vmatprep.subr.mxu1 %v8156_v19  ;;  %9551 = vmatprep.subr.mxu0 %v8137_v57 }
 0x985   :  { %v12835_v30 = vsub.f32 %v12775_v54, %v3858_v21  ;;  %v3883_v25 = vmul.f32 %v12832_v41, %v12832_v41  ;;  %9576 = vmatpush3.msra.mxu1 %v8156_v19  ;;  %9552 = vmatpush3.msra.mxu0 %v8137_v57 }
 0x987   :  { %v3897_v61 = vsel %vm101_vm0, %v3883_v25, 0.0  ;;  %v3882_v58 = vmul.f32 %v12835_v30, %v12835_v30  ;;  %v8155_v25 = vld [vmem:[%s14990_s28 + $0x30] sm:$0xff] }
 0x988   :  { %v3833_v29 = vpop.xlane.xlu1 %3832  ;;  %3898 = vadd.xlane.f32.xlu1 %v3897_v61  ;;  %9577 = vmatprep.subr.mxu1 %v8155_v25 }
 0x989   :  { %v3861_v38 = vmul.f32 0.03125, %v3833_v29  ;;  %v3894_v3 = vsel %vm101_vm0, %v3882_v58, 0.0  ;;  %v8136_v29 = vld [vmem:[%s14989_s7 + $0x28] sm:$0xff]  ;;  %9578 = vmatpush3.msra.mxu1 %v8155_v25 }
 0x98a   :  { %3895 = vadd.xlane.f32.xlu0 %v3894_v3  ;;  %v3830_v51 = vpop.xlane.xlu0 %3829  ;;  %9553 = vmatprep.subr.mxu0 %v8136_v29 }
 0x98b   :  { %v12844_v53 = vsub.f32 %v12782_v56, %v3861_v38  ;;  %v3860_v48 = vmul.f32 0.03125, %v3830_v51  ;;  %v8154_v38 = vld [vmem:[%s14990_s28 + $0x28] sm:$0xff]  ;;  %9554 = vmatpush3.msra.mxu0 %v8136_v29  ;;  %v8173_v29 = vld [vmem:[%s14991_s0 + $0x30] sm:$0xff] }
 0x98c   :  { %9579 = vmatprep.subr.mxu1 %v8154_v38 }
 0x98d   :  { %v12847_v26 = vsub.f32 %v12785_v20, %v3860_v48  ;;  %v3885_v10 = vmul.f32 %v12844_v53, %v12844_v53  ;;  %9580 = vmatpush3.msra.mxu1 %v8154_v38 }
 0x98f   :  { %v3903_v1 = vsel %vm101_vm0, %v3885_v10, 0.0  ;;  %v3884_v52 = vmul.f32 %v12847_v26, %v12847_v26 }
 0x990   :  { %3904 = vadd.xlane.f32.xlu1 %v3903_v1  ;;  %v8135_v1 = vld [vmem:[%s14989_s7 + $0x20] sm:$0xff] }
 0x991   :  { %v3839_v32 = vpop.xlane.xlu1 %3838  ;;  %v3900_v9 = vsel %vm101_vm0, %v3884_v52, 0.0  ;;  %v8153_v52 = vld [vmem:[%s14990_s28 + $0x20] sm:$0xff]  ;;  %9555 = vmatprep.subr.mxu0 %v8135_v1 }
 0x992   :  { %v3863_v39 = vmul.f32 0.03125, %v3839_v32  ;;  %3901 = vadd.xlane.f32.xlu0 %v3900_v9  ;;  %9581 = vmatprep.subr.mxu1 %v8153_v52  ;;  %v8174_v9 = vld [vmem:[%s14991_s0 + $0x38] sm:$0xff] }
 0x993   :  { %v3836_v2 = vpop.xlane.xlu0 %3835  ;;  %9556 = vmatpush3.msra.mxu0 %v8135_v1  ;;  %9582 = vmatpush3.msra.mxu1 %v8153_v52 }
 0x994   :  { %v12856_v27 = vsub.f32 %v12792_v62, %v3863_v39  ;;  %v3862_v63 = vmul.f32 0.03125, %v3836_v2  ;;  %9601 = vmatprep.subr.mxu0 %v8174_v9 }
 0x996   :  { %v12859_v60 = vsub.f32 %v12795_v36, %v3862_v63  ;;  %v3887_v0 = vmul.f32 %v12856_v27, %v12856_v27 }
 0x998   :  { %v3909_v17 = vsel %vm101_vm0, %v3887_v0, 0.0  ;;  %v3886_v43 = vmul.f32 %v12859_v60, %v12859_v60 }
 0x999   :  { %v3845_v14 = vpop.xlane.xlu1 %3844  ;;  %3910 = vadd.xlane.f32.xlu1 %v3909_v17 }
 0x99a   :  { %v3865_v47 = vmul.f32 0.03125, %v3845_v14  ;;  %v3906_v34 = vsel %vm101_vm0, %v3886_v43, 0.0 }
 0x99b   :  { %3907 = vadd.xlane.f32.xlu0 %v3906_v34  ;;  %v3842_v7 = vpop.xlane.xlu0 %3841 }
 0x99c   :  { %v12868_v46 = vsub.f32 %v12802_v13, %v3865_v47  ;;  %v3864_v33 = vmul.f32 0.03125, %v3842_v7 }
 0x99e   :  { %v12871_v8 = vsub.f32 %v12805_v22, %v3864_v33  ;;  %v3889_v28 = vmul.f32 %v12868_v46, %v12868_v46 }
 0x9a0   :  { %v3851_v50 = vpop.xlane.xlu1 %3850  ;;  %v3915_v55 = vsel %vm101_vm0, %v3889_v28, 0.0  ;;  %v3888_v31 = vmul.f32 %v12871_v8, %v12871_v8 }
 0x9a1   :  { %v3867_v44 = vmul.f32 0.03125, %v3851_v50  ;;  %3916 = vadd.xlane.f32.xlu1 %v3915_v55 }
 0x9a2   :  { %v3912_v59 = vsel %vm101_vm0, %v3888_v31, 0.0  ;;  %v3848_v16 = vpop.xlane.xlu0 %3847  ;;  %v12933_v31 = vld [vmem:[%s14992_s5 + $0x1] ss:$0 sm:$0xff] }
 0x9a3   :  { %v12880_v24 = vsub.f32 %v12812_v15, %v3867_v44  ;;  %3913 = vadd.xlane.f32.xlu0 %v3912_v59  ;;  %v3866_v40 = vmul.f32 0.03125, %v3848_v16 }
 0x9a5   :  { %v12883_v12 = vsub.f32 %v12815_v4, %v3866_v40  ;;  %v3891_v23 = vmul.f32 %v12880_v24, %v12880_v24 }
 0x9a7   :  { %v3921_v11 = vsel %vm101_vm0, %v3891_v23, 0.0  ;;  %v3890_v18 = vmul.f32 %v12883_v12, %v12883_v12  ;;  %v12939_v23 = vld [vmem:[%s14993_s25 + $0x1] ss:$0 sm:$0xff] }
 0x9a8   :  { %3922 = vadd.xlane.f32.xlu1 %v3921_v11  ;;  %v3857_v42 = vpop.xlane.xlu1 %3856 }
 0x9a9   :  { %v3869_v5 = vmul.f32 0.03125, %v3857_v42  ;;  %v3918_v35 = vsel %vm101_vm0, %v3890_v18, 0.0 }
 0x9aa   :  { %3919 = vadd.xlane.f32.xlu0 %v3918_v35  ;;  %v3854_v21 = vpop.xlane.xlu0 %3853 }
 0x9ab   :  { %v12904_v61 = vsub.f32 %v12822_v49, %v3869_v5  ;;  %v3868_v58 = vmul.f32 0.03125, %v3854_v21 }
 0x9ad   :  { %v12913_v3 = vsub.f32 %v12825_v37, %v3868_v58  ;;  %v3893_v51 = vmul.f32 %v12904_v61, %v12904_v61 }
 0x9af   :  { %v3927_v48 = vsel %vm101_vm0, %v3893_v51, 0.0  ;;  %v3892_v10 = vmul.f32 %v12913_v3, %v12913_v3 }
 0x9b0   :  { %3928 = vadd.xlane.f32.xlu1 %v3927_v48 }
 0x9b1   :  { %v3924_v32 = vsel %vm101_vm0, %v3892_v10, 0.0 }
 0x9b2   :  { %3925 = vadd.xlane.f32.xlu0 %v3924_v32 }
 0xa11   :  { %v3899_v39 = vpop.xlane.xlu1 %3898 }
 0xa12   :  { %v3931_v2 = vmul.f32 0.03125, %v3899_v39 }
 0xa13   :  { %v3896_v63 = vpop.xlane.xlu0 %3895 }
 0xa14   :  { %v3943_v0 = vadd.f32 1e-05, %v3931_v2  ;;  %v3930_v17 = vmul.f32 0.03125, %v3896_v63 }
 0xa16   :  { %10387 = vrsqrt.f32 %v3943_v0  ;;  %v3942_v43 = vadd.f32 1e-05, %v3930_v17 }
 0xa18   :  { %10389 = vrsqrt.f32 %v3942_v43 }
 0xa19   :  { %v3905_v14 = vpop.xlane.xlu1 %3904 }
 0xa1a   :  { %v3933_v47 = vmul.f32 0.03125, %v3905_v14 }
 0xa1b   :  { %v3902_v34 = vpop.xlane.xlu0 %3901 }
 0xa1c   :  { %v3945_v7 = vadd.f32 1e-05, %v3933_v47  ;;  %v3932_v33 = vmul.f32 0.03125, %v3902_v34 }
 0xa1e   :  { %10391 = vrsqrt.f32 %v3945_v7  ;;  %v3944_v28 = vadd.f32 1e-05, %v3932_v33 }
 0xa20   :  { %10393 = vrsqrt.f32 %v3944_v28 }
 0xa22   :  { %v3911_v50 = vpop.xlane.xlu1 %3910 }
 0xa23   :  { %v10388_v55 = vpop.eup %10387  ;;  %v3935_v44 = vmul.f32 0.03125, %v3911_v50 }
 0xa24   :  { %v3967_v59 = vmul.f32 %v10388_v55, %v12832_v41  ;;  %v3908_v16 = vpop.xlane.xlu0 %3907 }
 0xa25   :  { %v10390_v40 = vpop.eup %10389  ;;  %v3947_v11 = vadd.f32 1e-05, %v3935_v44  ;;  %v3934_v18 = vmul.f32 0.03125, %v3908_v16 }
 0xa26   :  { %v3985_v42 = vmul.f32 %v12933_v31, %v3967_v59  ;;  %v3966_v5 = vmul.f32 %v10390_v40, %v12835_v30 }
 0xa27   :  { %10395 = vrsqrt.f32 %v3947_v11  ;;  %v3946_v35 = vadd.f32 1e-05, %v3934_v18 }
 0xa28   :  { %v3984_v6 = vmul.f32 %v12933_v31, %v3966_v5  ;;  %v12945_v19 = vadd.f32 %v12939_v23, %v3985_v42 }
 0xa29   :  { %10397 = vrsqrt.f32 %v3946_v35 }
 0xa2a   :  { %v3917_v41 = vpop.xlane.xlu1 %3916  ;;  %v12948_v57 = vadd.f32 %v12939_v23, %v3984_v6 }
 0xa2b   :  { %v10392_v21 = vpop.eup %10391  ;;  %v3937_v25 = vmul.f32 0.03125, %v3917_v41 }
 0xa2c   :  { %v3914_v58 = vpop.xlane.xlu0 %3913  ;;  %9557 = vmatprep.mubr.msk.f32.mxu0 %vm101_vm0, %v12948_v57  ;;  %9583 = vmatprep.mubr.msk.f32.mxu1 %vm101_vm0, %v12948_v57  ;;  %v3969_v30 = vmul.f32 %v10392_v21, %v12844_v53  ;;  %v8172_v53 = vld [vmem:[%s14991_s0 + $0x28] sm:$0xff] }
 0xa2d   :  { %v10394_v38 = vpop.eup %10393  ;;  %v3949_v51 = vadd.f32 1e-05, %v3937_v25  ;;  %v3936_v48 = vmul.f32 0.03125, %v3914_v58  ;;  %9558 = vmatmul.mubr.msk.f32.vlgmr.msra.gmra.mxu0 %vm101_vm0, %v12945_v19  ;;  %9584 = vmatmul.mubr.msk.f32.vlgmr.msra.gmra.mxu1 %vm101_vm0, %v12945_v19 }
 0xa2e   :  { %v3968_v10 = vmul.f32 %v10394_v38, %v12847_v26  ;;  %v3987_v1 = vmul.f32 %v12933_v31, %v3969_v30  ;;  %9602 = vmatpush3.msra.mxu0 %v8174_v9  ;;  %v8171_v26 = vld [vmem:[%s14991_s0 + $0x20] sm:$0xff] }
 0xa2f   :  { %10399 = vrsqrt.f32 %v3949_v51  ;;  %v3948_v52 = vadd.f32 1e-05, %v3936_v48  ;;  %9603 = vmatprep.subr.mxu0 %v8173_v29 }
 0xa30   :  { %v3986_v32 = vmul.f32 %v12933_v31, %v3968_v10  ;;  %v12969_v39 = vadd.f32 %v12939_v23, %v3987_v1  ;;  %9604 = vmatpush3.msra.mxu0 %v8173_v29 }
 0xa31   :  { %10401 = vrsqrt.f32 %v3948_v52  ;;  %v3923_v2 = vpop.xlane.xlu1 %3922  ;;  %9605 = vmatprep.subr.mxu0 %v8172_v53 }
 0xa32   :  { %v3939_v9 = vmul.f32 0.03125, %v3923_v2  ;;  %v12975_v63 = vadd.f32 %v12939_v23, %v3986_v32  ;;  %9606 = vmatpush3.msra.mxu0 %v8172_v53  ;;  %v13062_v2 = vld [vmem:[%s14904_s2 + $0x1] ss:$0 sm:$0xff] }
 0xa33   :  { %v3920_v0 = vpop.xlane.xlu0 %3919  ;;  %9607 = vmatprep.subr.mxu0 %v8171_v26 }
 0xa34   :  { %v10396_v17 = vpop.eup %10395  ;;  %v3951_v43 = vadd.f32 1e-05, %v3939_v9  ;;  %v3938_v14 = vmul.f32 0.03125, %v3920_v0  ;;  %9560 = vmatprep.mubr.msk.f32.mxu0 %vm101_vm0, %v12975_v63  ;;  %9586 = vmatprep.mubr.msk.f32.mxu1 %vm101_vm0, %v12975_v63 }
 0xa35   :  { %9561 = vmatmul.mubr.msk.f32.gmra.mxu0 %vm101_vm0, %v12969_v39  ;;  %9587 = vmatmul.mubr.msk.f32.gmra.mxu1 %vm101_vm0, %v12969_v39  ;;  %v3971_v47 = vmul.f32 %v10396_v17, %v12856_v27 }
 0xa36   :  { %v10398_v34 = vpop.eup %10397  ;;  %10403 = vrsqrt.f32 %v3951_v43  ;;  %v3950_v7 = vadd.f32 1e-05, %v3938_v14  ;;  %9608 = vmatpush3.msra.mxu0 %v8171_v26 }
 0xa37   :  { %v3970_v33 = vmul.f32 %v10398_v34, %v12859_v60  ;;  %v3989_v28 = vmul.f32 %v12933_v31, %v3971_v47 }
 0xa38   :  { %10405 = vrsqrt.f32 %v3950_v7 }
 0xa39   :  { %v3929_v50 = vpop.xlane.xlu1 %3928  ;;  %v3988_v55 = vmul.f32 %v12933_v31, %v3970_v33  ;;  %v4007_v44 = vadd.f32 %v12939_v23, %v3989_v28 }
 0xa3a   :  { %v3941_v59 = vmul.f32 0.03125, %v3929_v50  ;;  %v13077_v50 = vld [vmem:[%s14905_s8 + $0x1] ss:$0 sm:$0xff] }
 0xa3b   :  { %v3926_v16 = vpop.xlane.xlu0 %3925  ;;  %v4006_v40 = vadd.f32 %v12939_v23, %v3988_v55 }
 0xa3c   :  { %v10400_v11 = vpop.eup %10399  ;;  %v3953_v27 = vadd.f32 1e-05, %v3941_v59  ;;  %v3940_v18 = vmul.f32 0.03125, %v3926_v16 }
 0xa3d   :  { %9563 = vmatprep.mubr.msk.f32.mxu0 %vm101_vm0, %v4006_v40  ;;  %9589 = vmatprep.mubr.msk.f32.mxu1 %vm101_vm0, %v4006_v40  ;;  %v3973_v60 = vmul.f32 %v10400_v11, %v12868_v46 }
 0xa3e   :  { %v10402_v42 = vpop.eup %10401  ;;  %10407 = vrsqrt.f32 %v3953_v27  ;;  %v3952_v5 = vadd.f32 1e-05, %v3940_v18  ;;  %9564 = vmatmul.mubr.msk.f32.gmra.mxu0 %vm101_vm0, %v4007_v44  ;;  %9590 = vmatmul.mubr.msk.f32.gmra.mxu1 %vm101_vm0, %v4007_v44 }
 0xa3f   :  { %v3972_v35 = vmul.f32 %v10402_v42, %v12871_v8  ;;  %v3991_v6 = vmul.f32 %v12933_v31, %v3973_v60 }
 0xa40   :  { %10409 = vrsqrt.f32 %v3952_v5 }
 0xa41   :  { %v3990_v41 = vmul.f32 %v12933_v31, %v3972_v35  ;;  %v4009_v21 = vadd.f32 %v12939_v23, %v3991_v6 }
 0xa43   :  { %v10404_v25 = vpop.eup %10403  ;;  %v4008_v58 = vadd.f32 %v12939_v23, %v3990_v41 }
 0xa44   :  { %v3975_v46 = vmul.f32 %v10404_v25, %v12880_v24 }
 0xa45   :  { %v10406_v30 = vpop.eup %10405  ;;  %9566 = vmatprep.mubr.msk.f32.mxu0 %vm101_vm0, %v4008_v58  ;;  %9592 = vmatprep.mubr.msk.f32.mxu1 %vm101_vm0, %v4008_v58 }
 0xa46   :  { %9567 = vmatmul.mubr.msk.f32.gmra.mxu0 %vm101_vm0, %v4009_v21  ;;  %9593 = vmatmul.mubr.msk.f32.gmra.mxu1 %vm101_vm0, %v4009_v21  ;;  %v3974_v8 = vmul.f32 %v10406_v30, %v12883_v12  ;;  %v3993_v29 = vmul.f32 %v12933_v31, %v3975_v46 }
 0xa48   :  { %v3992_v38 = vmul.f32 %v12933_v31, %v3974_v8  ;;  %v4011_v51 = vadd.f32 %v12939_v23, %v3993_v29 }
 0xa4a   :  { %v4010_v48 = vadd.f32 %v12939_v23, %v3992_v38 }
 0xa4b   :  { %v10408_v24 = vpop.eup %10407 }
 0xa4c   :  { %9569 = vmatprep.mubr.msk.f32.mxu0 %vm101_vm0, %v4010_v48  ;;  %9595 = vmatprep.mubr.msk.f32.mxu1 %vm101_vm0, %v4010_v48  ;;  %v3977_v10 = vmul.f32 %v10408_v24, %v12904_v61  ;;  %v13044_v61 = vld [vmem:[%s14994_s6 + $0x1] ss:$0 sm:$0xff] }
 0xa4d   :  { %v10410_v1 = vpop.eup %10409  ;;  %9570 = vmatmul.mubr.msk.f32.gmra.mxu0 %vm101_vm0, %v4011_v51  ;;  %9596 = vmatmul.mubr.msk.f32.gmra.mxu1 %vm101_vm0, %v4011_v51 }
 0xa4e   :  { %v3976_v12 = vmul.f32 %v10410_v1, %v12913_v3  ;;  %v3995_v53 = vmul.f32 %v12933_v31, %v3977_v10 }
 0xa50   :  { %v3994_v52 = vmul.f32 %v12933_v31, %v3976_v12  ;;  %v4013_v32 = vadd.f32 %v12939_v23, %v3995_v53 }
 0xa52   :  { %v4012_v26 = vadd.f32 %v12939_v23, %v3994_v52 }
 0xa54   :  { %9572 = vmatprep.mubr.msk.f32.mxu0 %vm101_vm0, %v4012_v26  ;;  %9598 = vmatprep.mubr.msk.f32.mxu1 %vm101_vm0, %v4012_v26 }
 0xa55   :  { %9573 = vmatmul.mubr.msk.f32.gmra.mxu0 %vm101_vm0, %v4013_v32  ;;  %9599 = vmatmul.mubr.msk.f32.gmra.mxu1 %vm101_vm0, %v4013_v32 }
 0xa56   :  { %9609 = vmatprep.mubr.msk.f32.mxu0 %vm101_vm0, %v12948_v57  ;;  %v13055_v57 = vld [vmem:[%s14904_s2] ss:$0 sm:$0xff] }
 0xa59   :  { %9610 = vmatmul.mubr.msk.f32.vlgmr.msra.gmra.mxu0 %vm101_vm0, %v12945_v19 }
 0xa5a   :  { %9612 = vmatprep.mubr.msk.f32.mxu0 %vm101_vm0, %v12975_v63 }
 0xa5d   :  { %9613 = vmatmul.mubr.msk.f32.gmra.mxu0 %vm101_vm0, %v12969_v39 }
 0xa5e   :  { %9615 = vmatprep.mubr.msk.f32.mxu0 %vm101_vm0, %v4006_v40 }
 0xa61   :  { %9616 = vmatmul.mubr.msk.f32.gmra.mxu0 %vm101_vm0, %v4007_v44 }
 0xa62   :  { %9618 = vmatprep.mubr.msk.f32.mxu0 %vm101_vm0, %v4008_v58 }
 0xa65   :  { %9619 = vmatmul.mubr.msk.f32.gmra.mxu0 %vm101_vm0, %v4009_v21 }
 0xa66   :  { %9621 = vmatprep.mubr.msk.f32.mxu0 %vm101_vm0, %v4010_v48 }
 0xa69   :  { %9622 = vmatmul.mubr.msk.f32.gmra.mxu0 %vm101_vm0, %v4011_v51 }
 0xa6a   :  { %9624 = vmatprep.mubr.msk.f32.mxu0 %vm101_vm0, %v4012_v26 }
 0xa6d   :  { %9625 = vmatmul.mubr.msk.f32.gmra.mxu0 %vm101_vm0, %v4013_v32 }
 0xaed   :  { %v9559_v3 = vpop.f32.mrf.mxu0  ;;  %v13068_v63 = vpop.f32.mrf.mxu1 }
 0xaee   :  { %v13047_v31 = vadd.f32 %v9559_v3, %v13044_v61 }
 0xaef   :  { %v4129_v23 = vpop.f32.mrf.mxu0  ;;  %v13070_v0 = vpop.f32.mrf.mxu1 }
 0xaf0   :  { %v13050_v19 = vadd.f32 %v13044_v61, %v4129_v23 }
 0xaf2   :  { %v4464_v39 = vmul.f32 %v13055_v57, %v13050_v19  ;;  %v4476_v9 = vmul.f32 %v13062_v2, %v13050_v19 }
 0xaf4   :  { %9651 = vmatprep.mubr.msk.f32.mxu1 %vm101_vm0, %v4464_v39  ;;  %9693 = vmatprep.mubr.msk.f32.mxu0 %vm101_vm0, %v4476_v9 }
 0xaf5   :  { %v9588_v17 = vpop.f32.mrf.mxu1  ;;  %v13133_v30 = vpop.f32.mrf.mxu0 }
 0xaf6   :  { %v13162_v12 = vadd.f32 %v9588_v17, %v13077_v50  ;;  %v13188_v17 = vadd.f32 %v13068_v63, %v13077_v50  ;;  %v13202_v63 = vadd.f32 %v13077_v50, %v13070_v0 }
 0xaf7   :  { %v13072_v43 = vpop.f32.mrf.mxu1  ;;  %v4139_v51 = vpop.f32.mrf.mxu0 }
 0xaf8   :  { %v13176_v3 = vadd.f32 %v13077_v50, %v13072_v43  ;;  %v4515_v23 = vmul.f32 %v13055_v57, %v13162_v12  ;;  %v4527_v39 = vmul.f32 %v13062_v2, %v13162_v12  ;;  %v4512_v0 = vmul.f32 %v13055_v57, %v13202_v63 }
 0xafe   :  { %v9591_v14 = vpop.f32.mrf.mxu1  ;;  %v13148_v48 = vpop.f32.mrf.mxu0 }
 0xaff   :  { %v13138_v8 = vadd.f32 %v9591_v14, %v13077_v50  ;;  %v4514_v14 = vmul.f32 %v13055_v57, %v13176_v3 }
 0xb00   :  { %v4287_v47 = vpop.f32.mrf.mxu1  ;;  %v4149_v53 = vpop.f32.mrf.mxu0 }
 0xb01   :  { %v13151_v24 = vadd.f32 %v13077_v50, %v4287_v47  ;;  %v4517_v10 = vmul.f32 %v13055_v57, %v13138_v8  ;;  %v4529_v1 = vmul.f32 %v13062_v2, %v13138_v8  ;;  %v4526_v47 = vmul.f32 %v13062_v2, %v13176_v3 }
 0xb03   :  { %v4516_v52 = vmul.f32 %v13055_v57, %v13151_v24  ;;  %v4528_v32 = vmul.f32 %v13062_v2, %v13151_v24 }
 0xb06   :  { %v9594_v34 = vpop.f32.mrf.mxu1  ;;  %v13170_v26 = vpop.f32.mrf.mxu0 }
 0xb07   :  { %v13114_v6 = vadd.f32 %v9594_v34, %v13077_v50 }
 0xb08   :  { %v4297_v7 = vpop.f32.mrf.mxu1  ;;  %v4159_v9 = vpop.f32.mrf.mxu0 }
 0xb09   :  { %v13125_v25 = vadd.f32 %v13077_v50, %v4297_v7  ;;  %v4519_v58 = vmul.f32 %v13055_v57, %v13114_v6  ;;  %v4531_v46 = vmul.f32 %v13062_v2, %v13114_v6  ;;  %v4513_v7 = vmul.f32 %v13055_v57, %v13188_v17 }
 0xb0b   :  { %v4518_v29 = vmul.f32 %v13055_v57, %v13125_v25  ;;  %v4530_v38 = vmul.f32 %v13062_v2, %v13125_v25 }
 0xb0d   :  { %v9597_v33 = vpop.f32.mrf.mxu1  ;;  %v13190_v43 = vpop.f32.mrf.mxu0 }
 0xb0e   :  { %v13090_v27 = vadd.f32 %v9597_v33, %v13077_v50  ;;  %v4525_v33 = vmul.f32 %v13062_v2, %v13188_v17 }
 0xb0f   :  { %v4307_v28 = vpop.f32.mrf.mxu1  ;;  %v4169_v34 = vpop.f32.mrf.mxu0 }
 0xb10   :  { %v13103_v42 = vadd.f32 %v13077_v50, %v4307_v28  ;;  %v4521_v5 = vmul.f32 %v13055_v57, %v13090_v27  ;;  %v4533_v35 = vmul.f32 %v13062_v2, %v13090_v27 }
 0xb12   :  { %v4520_v41 = vmul.f32 %v13055_v57, %v13103_v42  ;;  %v4532_v21 = vmul.f32 %v13062_v2, %v13103_v42 }
 0xb15   :  { %v9600_v55 = vpop.f32.mrf.mxu1  ;;  %v13210_v28 = vpop.f32.mrf.mxu0 }
 0xb16   :  { %v13080_v44 = vadd.f32 %v9600_v55, %v13077_v50 }
 0xb17   :  { %v4317_v59 = vpop.f32.mrf.mxu1  ;;  %v13220_v55 = vpop.f32.mrf.mxu0 }
 0xb18   :  { %v13083_v16 = vadd.f32 %v13077_v50, %v4317_v59  ;;  %v4523_v40 = vmul.f32 %v13055_v57, %v13080_v44  ;;  %v4535_v11 = vmul.f32 %v13062_v2, %v13080_v44  ;;  %v4524_v50 = vmul.f32 %v13062_v2, %v13202_v63 }
 0xb19   :  { %v13225_v59 = vadd.f32 %v13044_v61, %v4139_v51 }
 0xb1a   :  { %9627 = vmatprep.subr.msk.mxu1 %vm101_vm0, %v4523_v40  ;;  %9669 = vmatprep.subr.msk.mxu0 %vm101_vm0, %v4535_v11  ;;  %v4522_v18 = vmul.f32 %v13055_v57, %v13083_v16  ;;  %v4534_v60 = vmul.f32 %v13062_v2, %v13083_v16 }
 0xb1b   :  { %9628 = vmatpush3.xpose.msk.msra.mxu1 %vm101_vm0, %v4523_v40  ;;  %9670 = vmatpush3.xpose.msk.msra.mxu0 %vm101_vm0, %v4535_v11  ;;  %v13230_v40 = vld [vmem:[%s14904_s2 + $0x2] ss:$0 sm:$0xff] }
 0xb1c   :  { %9629 = vmatprep.subr.msk.mxu1 %vm101_vm0, %v4522_v18  ;;  %9671 = vmatprep.subr.msk.mxu0 %vm101_vm0, %v4534_v60  ;;  %v4547_v11 = vmul.f32 %v13230_v40, %v13080_v44 }
 0xb1f   :  { %9630 = vmatpush3.xpose.msk.msra.mxu1 %vm101_vm0, %v4522_v18  ;;  %9672 = vmatpush3.xpose.msk.msra.mxu0 %vm101_vm0, %v4534_v60  ;;  %v13237_v18 = vld [vmem:[%s14904_s2 + $0x3] ss:$0 sm:$0xff] }
 0xb20   :  { %9631 = vmatprep.subr.msk.mxu1 %vm101_vm0, %v4521_v5  ;;  %9673 = vmatprep.subr.msk.mxu0 %vm101_vm0, %v4533_v35  ;;  %v4559_v60 = vmul.f32 %v13237_v18, %v13080_v44  ;;  %v13256_v44 = vadd.f32 %v13044_v61, %v4149_v53  ;;  %v13283_v53 = vadd.f32 %v13044_v61, %v4159_v9 }
 0xb23   :  { %9632 = vmatpush3.xpose.msk.msra.mxu1 %vm101_vm0, %v4521_v5  ;;  %9674 = vmatpush3.xpose.msk.msra.mxu0 %vm101_vm0, %v4533_v35  ;;  %v4465_v5 = vmul.f32 %v13055_v57, %v13047_v31  ;;  %v4477_v35 = vmul.f32 %v13062_v2, %v13047_v31 }
 0xb24   :  { %9633 = vmatprep.subr.msk.mxu1 %vm101_vm0, %v4520_v41  ;;  %9675 = vmatprep.subr.msk.mxu0 %vm101_vm0, %v4532_v21 }
 0xb27   :  { %9634 = vmatpush3.xpose.msk.msra.mxu1 %vm101_vm0, %v4520_v41  ;;  %9676 = vmatpush3.xpose.msk.msra.mxu0 %vm101_vm0, %v4532_v21  ;;  %v13249_v41 = vadd.f32 %v13133_v30, %v13044_v61  ;;  %v13251_v21 = vpop.f32.mrf.mxu0  ;;  %v4546_v30 = vmul.f32 %v13230_v40, %v13083_v16 }
 0xb28   :  { %9635 = vmatprep.subr.msk.mxu1 %vm101_vm0, %v4519_v58  ;;  %9677 = vmatprep.subr.msk.mxu0 %vm101_vm0, %v4531_v46 }
 0xb29   :  { %v13274_v51 = vpop.f32.mrf.mxu0 }
 0xb2b   :  { %9636 = vmatpush3.xpose.msk.msra.mxu1 %vm101_vm0, %v4519_v58  ;;  %9678 = vmatpush3.xpose.msk.msra.mxu0 %vm101_vm0, %v4531_v46  ;;  %v4466_v58 = vmul.f32 %v13055_v57, %v13225_v59  ;;  %v4478_v46 = vmul.f32 %v13062_v2, %v13225_v59  ;;  %v13305_v9 = vpop.f32.mrf.mxu0 }
 0xb2c   :  { %9637 = vmatprep.subr.msk.mxu1 %vm101_vm0, %v4518_v29  ;;  %9679 = vmatprep.subr.msk.mxu0 %vm101_vm0, %v4530_v38 }
 0xb2f   :  { %9638 = vmatpush3.xpose.msk.msra.mxu1 %vm101_vm0, %v4518_v29  ;;  %9680 = vmatpush3.xpose.msk.msra.mxu0 %vm101_vm0, %v4530_v38  ;;  %v4558_v29 = vmul.f32 %v13237_v18, %v13083_v16  ;;  %v13272_v38 = vadd.f32 %v13148_v48, %v13044_v61  ;;  %v4468_v16 = vmul.f32 %v13055_v57, %v13256_v44 }
 0xb30   :  { %9639 = vmatprep.subr.msk.mxu1 %vm101_vm0, %v4517_v10  ;;  %9681 = vmatprep.subr.msk.mxu0 %vm101_vm0, %v4529_v1  ;;  %v4480_v48 = vmul.f32 %v13062_v2, %v13256_v44 }
 0xb33   :  { %9640 = vmatpush3.xpose.msk.msra.mxu1 %vm101_vm0, %v4517_v10  ;;  %9682 = vmatpush3.xpose.msk.msra.mxu0 %vm101_vm0, %v4529_v1  ;;  %v4467_v10 = vmul.f32 %v13055_v57, %v13249_v41  ;;  %v4479_v1 = vmul.f32 %v13062_v2, %v13249_v41 }
 0xb34   :  { %9641 = vmatprep.subr.msk.mxu1 %vm101_vm0, %v4516_v52  ;;  %9683 = vmatprep.subr.msk.mxu0 %vm101_vm0, %v4528_v32 }
 0xb37   :  { %9642 = vmatpush3.xpose.msk.msra.mxu1 %vm101_vm0, %v4516_v52  ;;  %9684 = vmatpush3.xpose.msk.msra.mxu0 %vm101_vm0, %v4528_v32  ;;  %v4545_v52 = vmul.f32 %v13230_v40, %v13090_v27  ;;  %v4557_v32 = vmul.f32 %v13237_v18, %v13090_v27  ;;  %v4470_v27 = vmul.f32 %v13055_v57, %v13283_v53 }
 0xb38   :  { %9643 = vmatprep.subr.msk.mxu1 %vm101_vm0, %v4515_v23  ;;  %9685 = vmatprep.subr.msk.mxu0 %vm101_vm0, %v4527_v39 }
 0xb3b   :  { %9644 = vmatpush3.xpose.msk.msra.mxu1 %vm101_vm0, %v4515_v23  ;;  %9686 = vmatpush3.xpose.msk.msra.mxu0 %vm101_vm0, %v4527_v39  ;;  %v4481_v23 = vmul.f32 %v13062_v2, %v13272_v38  ;;  %v13303_v39 = vadd.f32 %v13170_v26, %v13044_v61  ;;  %v4482_v26 = vmul.f32 %v13062_v2, %v13283_v53 }
 0xb3c   :  { %9645 = vmatprep.subr.msk.mxu1 %vm101_vm0, %v4514_v14  ;;  %9687 = vmatprep.subr.msk.mxu0 %vm101_vm0, %v4526_v47 }
 0xb3f   :  { %9646 = vmatpush3.xpose.msk.msra.mxu1 %vm101_vm0, %v4514_v14  ;;  %9688 = vmatpush3.xpose.msk.msra.mxu0 %vm101_vm0, %v4526_v47  ;;  %v4469_v14 = vmul.f32 %v13055_v57, %v13272_v38  ;;  %v13312_v47 = vadd.f32 %v13044_v61, %v4169_v34  ;;  %v4544_v34 = vmul.f32 %v13230_v40, %v13103_v42 }
 0xb40   :  { %9647 = vmatprep.subr.msk.mxu1 %vm101_vm0, %v4513_v7  ;;  %9689 = vmatprep.subr.msk.mxu0 %vm101_vm0, %v4525_v33 }
 0xb43   :  { %9648 = vmatpush3.xpose.msk.msra.mxu1 %vm101_vm0, %v4513_v7  ;;  %9690 = vmatpush3.xpose.msk.msra.mxu0 %vm101_vm0, %v4525_v33  ;;  %v4556_v7 = vmul.f32 %v13237_v18, %v13103_v42  ;;  %v4483_v33 = vmul.f32 %v13062_v2, %v13303_v39  ;;  %v4472_v42 = vmul.f32 %v13055_v57, %v13312_v47 }
 0xb44   :  { %9649 = vmatprep.subr.msk.mxu1 %vm101_vm0, %v4512_v0  ;;  %9691 = vmatprep.subr.msk.mxu0 %vm101_vm0, %v4524_v50 }
 0xb47   :  { %9650 = vmatpush3.xpose.msk.msra.mxu1 %vm101_vm0, %v4512_v0  ;;  %9692 = vmatpush3.xpose.msk.msra.mxu0 %vm101_vm0, %v4524_v50  ;;  %v13332_v0 = vadd.f32 %v13190_v43, %v13044_v61  ;;  %v13334_v50 = vpop.f32.mrf.mxu0  ;;  %v4484_v43 = vmul.f32 %v13062_v2, %v13312_v47 }
 0xb48   :  { %9711 = vmatprep.subr.msk.mxu1 %vm101_vm0, %v4547_v11  ;;  %9753 = vmatprep.subr.msk.mxu0 %vm101_vm0, %v4559_v60 }
 0xb4a   :  { %9652 = vmatmul.mubr.msk.f32.vlgmr.msra.gmra.mxu1 %vm101_vm0, %v4465_v5  ;;  %9694 = vmatmul.mubr.msk.f32.vlgmr.msra.gmra.mxu0 %vm101_vm0, %v4477_v35  ;;  %v4555_v5 = vmul.f32 %v13237_v18, %v13114_v6  ;;  %v4485_v35 = vmul.f32 %v13062_v2, %v13332_v0 }
 0xb4b   :  { %9654 = vmatprep.mubr.msk.f32.mxu1 %vm101_vm0, %v4466_v58  ;;  %9696 = vmatprep.mubr.msk.f32.mxu0 %vm101_vm0, %v4478_v46  ;;  %v13362_v58 = vadd.f32 %v13210_v28, %v13044_v61  ;;  %v13364_v46 = vpop.f32.mrf.mxu0  ;;  %v4542_v28 = vmul.f32 %v13230_v40, %v13125_v25 }
 0xb4c   :  { %9712 = vmatpush3.xpose.msk.msra.mxu1 %vm101_vm0, %v4547_v11  ;;  %9754 = vmatpush3.xpose.msk.msra.mxu0 %vm101_vm0, %v4559_v60  ;;  %v4471_v11 = vmul.f32 %v13055_v57, %v13303_v39  ;;  %v13342_v60 = vadd.f32 %v13044_v61, %v13220_v55  ;;  %v4543_v55 = vmul.f32 %v13230_v40, %v13114_v6 }
 0xb4d   :  { %9713 = vmatprep.subr.msk.mxu1 %vm101_vm0, %v4546_v30  ;;  %9755 = vmatprep.subr.msk.mxu0 %vm101_vm0, %v4558_v29 }
 0xb4e   :  { %9655 = vmatmul.mubr.msk.f32.gmra.mxu1 %vm101_vm0, %v4467_v10  ;;  %9697 = vmatmul.mubr.msk.f32.gmra.mxu0 %vm101_vm0, %v4479_v1  ;;  %v4474_v6 = vmul.f32 %v13055_v57, %v13342_v60  ;;  %v4486_v61 = vmul.f32 %v13062_v2, %v13342_v60  ;;  %v4487_v10 = vmul.f32 %v13062_v2, %v13362_v58  ;;  %v13386_v1 = vpop.f32.mrf.mxu0 }
 0xb4f   :  { %9657 = vmatprep.mubr.msk.f32.mxu1 %vm101_vm0, %v4468_v16  ;;  %9699 = vmatprep.mubr.msk.f32.mxu0 %vm101_vm0, %v4480_v48  ;;  %v4475_v16 = vmul.f32 %v13055_v57, %v13362_v58  ;;  %v4488_v48 = vmul.f32 %v13230_v40, %v13050_v19 }
 0xb50   :  { %9714 = vmatpush3.xpose.msk.msra.mxu1 %vm101_vm0, %v4546_v30  ;;  %9756 = vmatpush3.xpose.msk.msra.mxu0 %vm101_vm0, %v4558_v29  ;;  %v4473_v30 = vmul.f32 %v13055_v57, %v13332_v0  ;;  %v4554_v29 = vmul.f32 %v13237_v18, %v13125_v25  ;;  %v4500_v25 = vmul.f32 %v13237_v18, %v13050_v19 }
 0xb51   :  { %9715 = vmatprep.subr.msk.mxu1 %vm101_vm0, %v4545_v52  ;;  %9757 = vmatprep.subr.msk.mxu0 %vm101_vm0, %v4557_v32  ;;  %v4540_v19 = vmul.f32 %v13230_v40, %v13151_v24 }
 0xb52   :  { %9658 = vmatmul.mubr.msk.f32.gmra.mxu1 %vm101_vm0, %v4469_v14  ;;  %9700 = vmatmul.mubr.msk.f32.gmra.mxu0 %vm101_vm0, %v4481_v23  ;;  %v13406_v23 = vpop.f32.mrf.mxu0  ;;  %v4552_v14 = vmul.f32 %v13237_v18, %v13151_v24  ;;  %v4538_v24 = vmul.f32 %v13230_v40, %v13176_v3 }
 0xb53   :  { %9660 = vmatprep.mubr.msk.f32.mxu1 %vm101_vm0, %v4470_v27  ;;  %9702 = vmatprep.mubr.msk.f32.mxu0 %vm101_vm0, %v4482_v26  ;;  %v4551_v26 = vmul.f32 %v13237_v18, %v13162_v12 }
 0xb54   :  { %9716 = vmatpush3.xpose.msk.msra.mxu1 %vm101_vm0, %v4545_v52  ;;  %9758 = vmatpush3.xpose.msk.msra.mxu0 %vm101_vm0, %v4557_v32  ;;  %v4541_v52 = vmul.f32 %v13230_v40, %v13138_v8  ;;  %v4553_v32 = vmul.f32 %v13237_v18, %v13138_v8  ;;  %v13416_v27 = vpop.f32.mrf.mxu0  ;;  %v4539_v8 = vmul.f32 %v13230_v40, %v13162_v12 }
 0xb55   :  { %9717 = vmatprep.subr.msk.mxu1 %vm101_vm0, %v4544_v34  ;;  %9759 = vmatprep.subr.msk.mxu0 %vm101_vm0, %v4556_v7  ;;  %v4537_v12 = vmul.f32 %v13230_v40, %v13188_v17 }
 0xb56   :  { %9661 = vmatmul.mubr.msk.f32.gmra.mxu1 %vm101_vm0, %v4471_v11  ;;  %9703 = vmatmul.mubr.msk.f32.gmra.mxu0 %vm101_vm0, %v4483_v33  ;;  %v4549_v11 = vmul.f32 %v13237_v18, %v13188_v17  ;;  %v4536_v17 = vmul.f32 %v13230_v40, %v13202_v63 }
 0xb57   :  { %9663 = vmatprep.mubr.msk.f32.mxu1 %vm101_vm0, %v4472_v42  ;;  %9705 = vmatprep.mubr.msk.f32.mxu0 %vm101_vm0, %v4484_v43 }
 0xb58   :  { %9718 = vmatpush3.xpose.msk.msra.mxu1 %vm101_vm0, %v4544_v34  ;;  %9760 = vmatpush3.xpose.msk.msra.mxu0 %vm101_vm0, %v4556_v7  ;;  %v9623_v34 = vpop.f32.mrf.mxu0  ;;  %v4550_v7 = vmul.f32 %v13237_v18, %v13176_v3  ;;  %v13449_v3 = vld [vmem:[%s14906_s10 + $0x1] ss:$0 sm:$0xff] }
 0xb59   :  { %9719 = vmatprep.subr.msk.mxu1 %vm101_vm0, %v4543_v55  ;;  %9761 = vmatprep.subr.msk.mxu0 %vm101_vm0, %v4555_v5 }
 0xb5a   :  { %9664 = vmatmul.mubr.msk.f32.gmra.mxu1 %vm101_vm0, %v4473_v30  ;;  %9706 = vmatmul.mubr.msk.f32.gmra.mxu0 %vm101_vm0, %v4485_v35  ;;  %v4445_v33 = vpop.f32.mrf.mxu0 }
 0xb5b   :  { %9666 = vmatprep.mubr.msk.f32.mxu1 %vm101_vm0, %v4474_v6  ;;  %9708 = vmatprep.mubr.msk.f32.mxu0 %vm101_vm0, %v4486_v61  ;;  %v4501_v61 = vmul.f32 %v13237_v18, %v13047_v31 }
 0xb5c   :  { %9720 = vmatpush3.xpose.msk.msra.mxu1 %vm101_vm0, %v4543_v55  ;;  %9762 = vmatpush3.xpose.msk.msra.mxu0 %vm101_vm0, %v4555_v5  ;;  %v9626_v42 = vpop.f32.mrf.mxu0  ;;  %v4548_v55 = vmul.f32 %v13237_v18, %v13202_v63  ;;  %v4489_v63 = vmul.f32 %v13230_v40, %v13047_v31 }
 0xb5d   :  { %9721 = vmatprep.subr.msk.mxu1 %vm101_vm0, %v4542_v28  ;;  %9763 = vmatprep.subr.msk.mxu0 %vm101_vm0, %v4554_v29  ;;  %v13452_v43 = vadd.f32 %v9626_v42, %v13449_v3  ;;  %v13551_v42 = vadd.f32 %v13449_v3, %v13386_v1  ;;  %v4508_v1 = vmul.f32 %v13237_v18, %v13312_v47 }
 0xb5e   :  { %9667 = vmatmul.mubr.msk.f32.gmra.mxu1 %vm101_vm0, %v4475_v16  ;;  %9709 = vmatmul.mubr.msk.f32.gmra.mxu0 %vm101_vm0, %v4487_v10  ;;  %v4455_v5 = vpop.f32.mrf.mxu0  ;;  %v13480_v10 = vadd.f32 %v9623_v34, %v13449_v3  ;;  %v13523_v34 = vadd.f32 %v13449_v3, %v13416_v27  ;;  %v4506_v27 = vmul.f32 %v13237_v18, %v13283_v53 }
 0xb5f   :  { %9735 = vmatprep.mubr.msk.f32.mxu1 %vm101_vm0, %v4488_v48  ;;  %9777 = vmatprep.mubr.msk.f32.mxu0 %vm101_vm0, %v4500_v25  ;;  %v5983_v35 = vmul.f32 %v13055_v57, %v13452_v43  ;;  %v5995_v30 = vmul.f32 %v13062_v2, %v13452_v43  ;;  %v13467_v6 = vadd.f32 %v13449_v3, %v4455_v5 }
 0xb60   :  { %9722 = vmatpush3.xpose.msk.msra.mxu1 %vm101_vm0, %v4542_v28  ;;  %9764 = vmatpush3.xpose.msk.msra.mxu0 %vm101_vm0, %v4554_v29  ;;  %v4490_v28 = vmul.f32 %v13230_v40, %v13225_v59  ;;  %v4502_v29 = vmul.f32 %v13237_v18, %v13225_v59  ;;  %15029 = vst [vmem:[#allocation14_spill] sm:$0xff] %v13480_v10  ;;  %15032 = vst [vmem:[#allocation17_spill] sm:$0xff] %v13523_v34 }
 0xb61   :  { %9723 = vmatprep.subr.msk.mxu1 %vm101_vm0, %v4541_v52  ;;  %9765 = vmatprep.subr.msk.mxu0 %vm101_vm0, %v4553_v32  ;;  %v5982_v31 = vmul.f32 %v13055_v57, %v13467_v6  ;;  %v5994_v16 = vmul.f32 %v13062_v2, %v13467_v6  ;;  %v4503_v59 = vmul.f32 %v13237_v18, %v13249_v41 }
 0xb62   :  { %v13493_v48 = vadd.f32 %v13449_v3, %v4445_v33  ;;  %v4491_v25 = vmul.f32 %v13230_v40, %v13249_v41  ;;  %v13509_v41 = vadd.f32 %v13406_v23, %v13449_v3  ;;  %v4505_v23 = vmul.f32 %v13237_v18, %v13272_v38  ;;  %15034 = vst [vmem:[#allocation19_spill] sm:$0xff] %v13551_v42 }
 0xb63   :  { %v13537_v33 = vadd.f32 %v13364_v46, %v13449_v3  ;;  %v4507_v46 = vmul.f32 %v13237_v18, %v13303_v39  ;;  %v13565_v5 = vadd.f32 %v13305_v9, %v13449_v3  ;;  %v4509_v9 = vmul.f32 %v13237_v18, %v13332_v0 }
 0xb64   :  { %9724 = vmatpush3.xpose.msk.msra.mxu1 %vm101_vm0, %v4541_v52  ;;  %9766 = vmatpush3.xpose.msk.msra.mxu0 %vm101_vm0, %v4553_v32  ;;  %15030 = vst [vmem:[#allocation15_spill] sm:$0xff] %v13493_v48  ;;  %v5981_v52 = vmul.f32 %v13055_v57, %v13480_v10  ;;  %v5993_v32 = vmul.f32 %v13062_v2, %v13480_v10  ;;  %15031 = vst [vmem:[#allocation16_spill] sm:$0xff] %v13509_v41 }
 0xb65   :  { %9725 = vmatprep.subr.msk.mxu1 %vm101_vm0, %v4540_v19  ;;  %9767 = vmatprep.subr.msk.mxu0 %vm101_vm0, %v4552_v14  ;;  %15033 = vst [vmem:[#allocation18_spill] sm:$0xff] %v13537_v33  ;;  %15035 = vst [vmem:[#allocation20_spill] sm:$0xff] %v13565_v5 }
 0xb68   :  { %9726 = vmatpush3.xpose.msk.msra.mxu1 %vm101_vm0, %v4540_v19  ;;  %9768 = vmatpush3.xpose.msk.msra.mxu0 %vm101_vm0, %v4552_v14  ;;  %v4492_v19 = vmul.f32 %v13230_v40, %v13256_v44  ;;  %v4504_v14 = vmul.f32 %v13237_v18, %v13256_v44  ;;  %v4493_v44 = vmul.f32 %v13230_v40, %v13272_v38 }
 0xb69   :  { %9727 = vmatprep.subr.msk.mxu1 %vm101_vm0, %v4539_v8  ;;  %9769 = vmatprep.subr.msk.mxu0 %vm101_vm0, %v4551_v26  ;;  %v4494_v38 = vmul.f32 %v13230_v40, %v13283_v53  ;;  %v4495_v53 = vmul.f32 %v13230_v40, %v13303_v39  ;;  %v4496_v39 = vmul.f32 %v13230_v40, %v13312_v47 }
 0xb6a   :  { %v4497_v47 = vmul.f32 %v13230_v40, %v13332_v0  ;;  %v4498_v0 = vmul.f32 %v13230_v40, %v13342_v60 }
 0xb6c   :  { %9728 = vmatpush3.xpose.msk.msra.mxu1 %vm101_vm0, %v4539_v8  ;;  %9770 = vmatpush3.xpose.msk.msra.mxu0 %vm101_vm0, %v4551_v26  ;;  %v5980_v8 = vmul.f32 %v13055_v57, %v13493_v48  ;;  %v5992_v26 = vmul.f32 %v13062_v2, %v13493_v48 }
 0xb6d   :  { %9729 = vmatprep.subr.msk.mxu1 %vm101_vm0, %v4538_v24  ;;  %9771 = vmatprep.subr.msk.mxu0 %vm101_vm0, %v4550_v7 }
 0xb70   :  { %9730 = vmatpush3.xpose.msk.msra.mxu1 %vm101_vm0, %v4538_v24  ;;  %9772 = vmatpush3.xpose.msk.msra.mxu0 %vm101_vm0, %v4550_v7  ;;  %v5979_v24 = vmul.f32 %v13055_v57, %v13509_v41  ;;  %v5991_v7 = vmul.f32 %v13062_v2, %v13509_v41 }
 0xb71   :  { %9731 = vmatprep.subr.msk.mxu1 %vm101_vm0, %v4537_v12  ;;  %9773 = vmatprep.subr.msk.mxu0 %vm101_vm0, %v4549_v11 }
 0xb74   :  { %9732 = vmatpush3.xpose.msk.msra.mxu1 %vm101_vm0, %v4537_v12  ;;  %9774 = vmatpush3.xpose.msk.msra.mxu0 %vm101_vm0, %v4549_v11  ;;  %v5978_v12 = vmul.f32 %v13055_v57, %v13523_v34  ;;  %v5990_v11 = vmul.f32 %v13062_v2, %v13523_v34 }
 0xb75   :  { %9733 = vmatprep.subr.msk.mxu1 %vm101_vm0, %v4536_v17  ;;  %9775 = vmatprep.subr.msk.mxu0 %vm101_vm0, %v4548_v55 }
 0xb78   :  { %9734 = vmatpush3.xpose.msk.msra.mxu1 %vm101_vm0, %v4536_v17  ;;  %9776 = vmatpush3.xpose.msk.msra.mxu0 %vm101_vm0, %v4548_v55  ;;  %v5977_v17 = vmul.f32 %v13055_v57, %v13537_v33  ;;  %v5989_v55 = vmul.f32 %v13062_v2, %v13537_v33 }
 0xb79   :  { %9795 = vmatprep.subr.mxu1 %v5983_v35  ;;  %9837 = vmatprep.subr.mxu0 %v5995_v30 }
 0xb7b   :  { %9736 = vmatmul.mubr.msk.f32.vlgmr.msra.gmra.mxu1 %vm101_vm0, %v4489_v63  ;;  %9778 = vmatmul.mubr.msk.f32.vlgmr.msra.gmra.mxu0 %vm101_vm0, %v4501_v61  ;;  %v13579_v63 = vadd.f32 %v13449_v3, %v13334_v50  ;;  %v5975_v61 = vmul.f32 %v13055_v57, %v13565_v5  ;;  %v4510_v50 = vmul.f32 %v13237_v18, %v13342_v60 }
 0xb7c   :  { %9738 = vmatprep.mubr.msk.f32.mxu1 %vm101_vm0, %v4490_v28  ;;  %9780 = vmatprep.mubr.msk.f32.mxu0 %vm101_vm0, %v4502_v29  ;;  %v5987_v28 = vmul.f32 %v13062_v2, %v13565_v5  ;;  %v13593_v29 = vadd.f32 %v13251_v21, %v13449_v3  ;;  %v4499_v21 = vmul.f32 %v13230_v40, %v13362_v58 }
 0xb7d   :  { %9796 = vmatpush3.msra.mxu1 %v5983_v35  ;;  %9838 = vmatpush3.msra.mxu0 %v5995_v30  ;;  %v5976_v35 = vmul.f32 %v13055_v57, %v13551_v42  ;;  %v5988_v30 = vmul.f32 %v13062_v2, %v13551_v42  ;;  %15036 = vst [vmem:[#allocation21_spill] sm:$0xff] %v13579_v63 }
 0xb7e   :  { %9797 = vmatprep.subr.mxu1 %v5982_v31  ;;  %9839 = vmatprep.subr.mxu0 %v5994_v16  ;;  %15037 = vst [vmem:[#allocation22_spill] sm:$0xff] %v13593_v29  ;;  %v4511_v60 = vmul.f32 %v13237_v18, %v13362_v58 }
 0xb7f   :  { %9798 = vmatpush3.msra.mxu1 %v5982_v31  ;;  %9840 = vmatpush3.msra.mxu0 %v5994_v16  ;;  %v5974_v31 = vmul.f32 %v13055_v57, %v13579_v63  ;;  %v5986_v16 = vmul.f32 %v13062_v2, %v13579_v63 }
 0xb80   :  { %9739 = vmatmul.mubr.msk.f32.gmra.mxu1 %vm101_vm0, %v4491_v25  ;;  %9781 = vmatmul.mubr.msk.f32.gmra.mxu0 %vm101_vm0, %v4503_v59  ;;  %v13603_v59 = vadd.f32 %v13449_v3, %v13274_v51  ;;  %v5973_v25 = vmul.f32 %v13055_v57, %v13593_v29  ;;  %v13621_v3 = vmul.f32 %v13230_v40, %v13452_v43  ;;  %v13632_v40 = vld [vmem:[%s14907_s1 + $0x8] sm:$0xff] }
 0xb81   :  { %9799 = vmatprep.subr.mxu1 %v5981_v52  ;;  %9841 = vmatprep.subr.mxu0 %v5993_v32 }
 0xb82   :  { %9741 = vmatprep.mubr.msk.f32.mxu1 %vm101_vm0, %v4492_v19  ;;  %9783 = vmatprep.mubr.msk.f32.mxu0 %vm101_vm0, %v4504_v14  ;;  %15038 = vst [vmem:[#allocation23_spill] sm:$0xff] %v13603_v59  ;;  %v5972_v51 = vmul.f32 %v13055_v57, %v13603_v59  ;;  %v5984_v58 = vmul.f32 %v13062_v2, %v13603_v59 }
 0xb83   :  { %9800 = vmatpush3.msra.mxu1 %v5981_v52  ;;  %9842 = vmatpush3.msra.mxu0 %v5993_v32  ;;  %v5985_v52 = vmul.f32 %v13062_v2, %v13593_v29  ;;  %v13625_v32 = vmul.f32 %v13237_v18, %v13452_v43 }
 0xb84   :  { %9801 = vmatprep.subr.mxu1 %v5980_v8  ;;  %9843 = vmatprep.subr.mxu0 %v5992_v26 }
 0xb85   :  { %9802 = vmatpush3.msra.mxu1 %v5980_v8  ;;  %9844 = vmatpush3.msra.mxu0 %v5992_v26  ;;  %15039 = vst [vmem:[#allocation24_spill] sm:$0xff] %v13625_v32 }
 0xb86   :  { %9742 = vmatmul.mubr.msk.f32.gmra.mxu1 %vm101_vm0, %v4493_v44  ;;  %9784 = vmatmul.mubr.msk.f32.gmra.mxu0 %vm101_vm0, %v4505_v23 }
 0xb87   :  { %9803 = vmatprep.subr.mxu1 %v5979_v24  ;;  %9845 = vmatprep.subr.mxu0 %v5991_v7 }
 0xb88   :  { %9744 = vmatprep.mubr.msk.f32.mxu1 %vm101_vm0, %v4494_v38  ;;  %9786 = vmatprep.mubr.msk.f32.mxu0 %vm101_vm0, %v4506_v27 }
 0xb89   :  { %9804 = vmatpush3.msra.mxu1 %v5979_v24  ;;  %9846 = vmatpush3.msra.mxu0 %v5991_v7  ;;  %v13640_v24 = vld [vmem:[%s14907_s1] sm:$0xff] }
 0xb8a   :  { %9805 = vmatprep.subr.mxu1 %v5978_v12  ;;  %9847 = vmatprep.subr.mxu0 %v5990_v11 }
 0xb8b   :  { %9806 = vmatpush3.msra.mxu1 %v5978_v12  ;;  %9848 = vmatpush3.msra.mxu0 %v5990_v11 }
 0xb8c   :  { %9745 = vmatmul.mubr.msk.f32.gmra.mxu1 %vm101_vm0, %v4495_v53  ;;  %9787 = vmatmul.mubr.msk.f32.gmra.mxu0 %vm101_vm0, %v4507_v46 }
 0xb8d   :  { %9807 = vmatprep.subr.mxu1 %v5977_v17  ;;  %9849 = vmatprep.subr.mxu0 %v5989_v55 }
 0xb8e   :  { %9747 = vmatprep.mubr.msk.f32.mxu1 %vm101_vm0, %v4496_v39  ;;  %9789 = vmatprep.mubr.msk.f32.mxu0 %vm101_vm0, %v4508_v1 }
 0xb8f   :  { %9808 = vmatpush3.msra.mxu1 %v5977_v17  ;;  %9850 = vmatpush3.msra.mxu0 %v5989_v55 }
 0xb90   :  { %9809 = vmatprep.subr.mxu1 %v5976_v35  ;;  %9851 = vmatprep.subr.mxu0 %v5988_v30 }
 0xb91   :  { %9810 = vmatpush3.msra.mxu1 %v5976_v35  ;;  %9852 = vmatpush3.msra.mxu0 %v5988_v30  ;;  %v13658_v35 = vld [vmem:[%s14907_s1 + $0x18] sm:$0xff] }
 0xb92   :  { %9748 = vmatmul.mubr.msk.f32.gmra.mxu1 %vm101_vm0, %v4497_v47  ;;  %9790 = vmatmul.mubr.msk.f32.gmra.mxu0 %vm101_vm0, %v4509_v9 }
 0xb93   :  { %9811 = vmatprep.subr.mxu1 %v5975_v61  ;;  %9853 = vmatprep.subr.mxu0 %v5987_v28 }
 0xb94   :  { %9750 = vmatprep.mubr.msk.f32.mxu1 %vm101_vm0, %v4498_v0  ;;  %9792 = vmatprep.mubr.msk.f32.mxu0 %vm101_vm0, %v4510_v50 }
 0xb95   :  { %9812 = vmatpush3.msra.mxu1 %v5975_v61  ;;  %9854 = vmatpush3.msra.mxu0 %v5987_v28  ;;  %v13668_v61 = vld [vmem:[%s14907_s1 + $0x10] sm:$0xff] }
 0xb96   :  { %9813 = vmatprep.subr.mxu1 %v5974_v31  ;;  %9855 = vmatprep.subr.mxu0 %v5986_v16 }
 0xb97   :  { %9814 = vmatpush3.msra.mxu1 %v5974_v31  ;;  %9856 = vmatpush3.msra.mxu0 %v5986_v16 }
 0xb98   :  { %9751 = vmatmul.mubr.msk.f32.gmra.mxu1 %vm101_vm0, %v4499_v21  ;;  %9793 = vmatmul.mubr.msk.f32.gmra.mxu0 %vm101_vm0, %v4511_v60 }
 0xb99   :  { %9815 = vmatprep.subr.mxu1 %v5973_v25  ;;  %9857 = vmatprep.subr.mxu0 %v5985_v52 }
 0xb9a   :  { %9816 = vmatpush3.msra.mxu1 %v5973_v25  ;;  %9858 = vmatpush3.msra.mxu0 %v5985_v52 }
 0xb9b   :  { %9817 = vmatprep.subr.mxu1 %v5972_v51  ;;  %9859 = vmatprep.subr.mxu0 %v5984_v58 }
 0xb9c   :  { %9818 = vmatpush3.msra.mxu1 %v5972_v51  ;;  %9860 = vmatpush3.msra.mxu0 %v5984_v58 }
 0xb9d   :  { %9879 = vmatprep.subr.mxu1 %v13621_v3  ;;  %9921 = vmatprep.subr.mxu0 %v13625_v32 }
 0xc0a   :  { %v9653_v57 = vpop.f32.mrf.mxu1  ;;  %v9695_v2 = vpop.f32.mrf.mxu0 }
 0xc0b   :  { %v5349_v19 = vmul.f32 0.35355338, %v9653_v57  ;;  %v5361_v14 = vmul.f32 0.35355338, %v9695_v2 }
 0xc0c   :  { %v4698_v8 = vpop.f32.mrf.mxu1  ;;  %v4895_v26 = vpop.f32.mrf.mxu0 }
 0xc0d   :  { %v13635_v18 = vadd.f32 %v13632_v40, %v5349_v19  ;;  %v5348_v43 = vmul.f32 0.35355338, %v4698_v8  ;;  %v5360_v44 = vmul.f32 0.35355338, %v4895_v26  ;;  %v13646_v27 = vadd.f32 %v13632_v40, %v5361_v14  ;;  %v13688_v19 = vld [vmem:[%s14907_s1 + $0x28] sm:$0xff] }
 0xc0e   :  { %v9656_v23 = vpop.f32.mrf.mxu1  ;;  %v9698_v38 = vpop.f32.mrf.mxu0 }
 0xc0f   :  { %v13643_v7 = vadd.f32 %v13640_v24, %v5348_v43  ;;  %v5351_v12 = vmul.f32 0.35355338, %v9656_v23  ;;  %v5447_v11 = vsel %vm1743_vm1, %v13635_v18, -inf  ;;  %v13651_v46 = vadd.f32 %v13640_v24, %v5360_v44  ;;  %v13698_v43 = vld [vmem:[%s14907_s1 + $0x20] sm:$0xff] }
 0xc10   :  { %v4708_v53 = vpop.f32.mrf.mxu1  ;;  %5448 = vmax.xlane.f32.xlu1 %v5447_v11  ;;  %v4905_v39 = vpop.f32.mrf.mxu0  ;;  %v5363_v47 = vmul.f32 0.35355338, %v9698_v38  ;;  %v5483_v9 = vsel %vm1743_vm1, %v13646_v27, -inf }
 0xc11   :  { %v5350_v17 = vmul.f32 0.35355338, %v4708_v53  ;;  %v5444_v55 = vsel %vm1743_vm1, %v13643_v7, -inf  ;;  %v13661_v30 = vadd.f32 %v13658_v35, %v5351_v12  ;;  %v5362_v0 = vmul.f32 0.35355338, %v4905_v39 }
 0xc12   :  { %5445 = vmax.xlane.f32.xlu0 %v5444_v55  ;;  %v9659_v1 = vpop.f32.mrf.mxu1  ;;  %v5480_v50 = vsel %vm1743_vm1, %v13651_v46, -inf  ;;  %v9701_v31 = vpop.f32.mrf.mxu0  ;;  %v13676_v21 = vadd.f32 %v13658_v35, %v5363_v47 }
 0xc13   :  { %v13671_v28 = vadd.f32 %v13668_v61, %v5350_v17  ;;  %v5353_v60 = vmul.f32 0.35355338, %v9659_v1  ;;  %v5453_v25 = vsel %vm1743_vm1, %v13661_v30, -inf  ;;  %v13681_v52 = vadd.f32 %v13668_v61, %v5362_v0 }
 0xc14   :  { %5484 = vmax.xlane.f32.xlu1 %v5483_v9  ;;  %v4718_v16 = vpop.f32.mrf.mxu1  ;;  %v4915_v57 = vpop.f32.mrf.mxu0  ;;  %v5365_v8 = vmul.f32 0.35355338, %v9701_v31  ;;  %v5489_v26 = vsel %vm1743_vm1, %v13676_v21, -inf }
 0xc15   :  { %v5352_v51 = vmul.f32 0.35355338, %v4718_v16  ;;  %v5450_v58 = vsel %vm1743_vm1, %v13671_v28, -inf  ;;  %v13691_v14 = vadd.f32 %v13688_v19, %v5353_v60  ;;  %v5364_v23 = vmul.f32 0.35355338, %v4915_v57 }
 0xc16   :  { %5481 = vmax.xlane.f32.xlu0 %v5480_v50  ;;  %v9662_v2 = vpop.f32.mrf.mxu1  ;;  %v5486_v38 = vsel %vm1743_vm1, %v13681_v52, -inf  ;;  %v9704_v12 = vpop.f32.mrf.mxu0  ;;  %v13706_v53 = vadd.f32 %v13688_v19, %v5365_v8  ;;  %v13718_v50 = vld [vmem:[%s14907_s1 + $0x38] sm:$0xff] }
 0xc17   :  { %v13701_v44 = vadd.f32 %v13698_v43, %v5352_v51  ;;  %v5355_v17 = vmul.f32 0.35355338, %v9662_v2  ;;  %v5459_v55 = vsel %vm1743_vm1, %v13691_v14, -inf  ;;  %v13711_v39 = vadd.f32 %v13698_v43, %v5364_v23 }
 0xc18   :  { %5454 = vmax.xlane.f32.xlu1 %v5453_v25  ;;  %v4728_v11 = vpop.f32.mrf.mxu1  ;;  %v4925_v9 = vpop.f32.mrf.mxu0  ;;  %v5367_v16 = vmul.f32 0.35355338, %v9704_v12  ;;  %v5495_v60 = vsel %vm1743_vm1, %v13706_v53, -inf  ;;  %v13728_v25 = vld [vmem:[%s14907_s1 + $0x30] sm:$0xff] }
 0xc19   :  { %v5354_v1 = vmul.f32 0.35355338, %v4728_v11  ;;  %v5456_v47 = vsel %vm1743_vm1, %v13701_v44, -inf  ;;  %v13721_v31 = vadd.f32 %v13718_v50, %v5355_v17  ;;  %v5492_v57 = vsel %vm1743_vm1, %v13711_v39, -inf }
 0xc1a   :  { %5451 = vmax.xlane.f32.xlu0 %v5450_v58  ;;  %v9665_v0 = vpop.f32.mrf.mxu1  ;;  %v5366_v58 = vmul.f32 0.35355338, %v4925_v9  ;;  %v9707_v2 = vpop.f32.mrf.mxu0 }
 0xc1b   :  { %v13731_v51 = vadd.f32 %v13728_v25, %v5354_v1  ;;  %v5357_v23 = vmul.f32 0.35355338, %v9665_v0  ;;  %v5369_v0 = vmul.f32 0.35355338, %v9707_v2 }
 0xc1c   :  { %5490 = vmax.xlane.f32.xlu1 %v5489_v26  ;;  %v4738_v8 = vpop.f32.mrf.mxu1  ;;  %v13736_v26 = vadd.f32 %v13718_v50, %v5367_v16  ;;  %v13741_v12 = vadd.f32 %v13728_v25, %v5366_v58 }
 0xc1d   :  { %v5356_v11 = vmul.f32 0.35355338, %v4738_v8  ;;  %v5462_v17 = vsel %vm1743_vm1, %v13731_v51, -inf }
 0xc1e   :  { %5487 = vmax.xlane.f32.xlu0 %v5486_v38  ;;  %v5465_v38 = vsel %vm1743_vm1, %v13721_v31, -inf  ;;  %v9668_v1 = vpop.f32.mrf.mxu1  ;;  %v5501_v16 = vsel %vm1743_vm1, %v13736_v26, -inf  ;;  %v5498_v8 = vsel %vm1743_vm1, %v13741_v12, -inf }
 0xc20   :  { %5460 = vmax.xlane.f32.xlu1 %v5459_v55  ;;  %v4935_v55 = vpop.f32.mrf.mxu0 }
 0xc22   :  { %5457 = vmax.xlane.f32.xlu0 %v5456_v47  ;;  %v13748_v47 = vld [vmem:[%s14907_s1 + $0x48] sm:$0xff] }
 0xc23   :  { %v13751_v9 = vadd.f32 %v13748_v47, %v5357_v23  ;;  %v4748_v23 = vpop.f32.mrf.mxu1  ;;  %v13766_v2 = vadd.f32 %v13748_v47, %v5369_v0 }
 0xc24   :  { %5496 = vmax.xlane.f32.xlu1 %v5495_v60  ;;  %v13758_v60 = vld [vmem:[%s14907_s1 + $0x40] sm:$0xff] }
 0xc25   :  { %v13761_v58 = vadd.f32 %v13758_v60, %v5356_v11  ;;  %v5358_v11 = vmul.f32 0.35355338, %v4748_v23 }
 0xc26   :  { %5493 = vmax.xlane.f32.xlu0 %v5492_v57  ;;  %v5368_v57 = vmul.f32 0.35355338, %v4935_v55 }
 0xc27   :  { %v5468_v55 = vsel %vm1743_vm1, %v13761_v58, -inf }
 0xc28   :  { %5466 = vmax.xlane.f32.xlu1 %v5465_v38  ;;  %v9710_v38 = vpop.f32.mrf.mxu0  ;;  %v13771_v37 = vadd.f32 %v13758_v60, %v5368_v57  ;;  %v13788_v57 = vld [vmem:[%s14907_s1 + $0x50] sm:$0xff] }
 0xc29   :  { %v5371_v0 = vmul.f32 0.35355338, %v9710_v38  ;;  %v13791_v23 = vadd.f32 %v13788_v57, %v5358_v11 }
 0xc2a   :  { %5463 = vmax.xlane.f32.xlu0 %v5462_v17  ;;  %v5359_v17 = vmul.f32 0.35355338, %v9668_v1  ;;  %v4945_v49 = vpop.f32.mrf.mxu0  ;;  %v5504_v4 = vsel %vm1743_vm1, %v13771_v37, -inf }
 0xc2b   :  { %v5474_v15 = vsel %vm1743_vm1, %v13791_v23, -inf }
 0xc2c   :  { %5502 = vmax.xlane.f32.xlu1 %v5501_v16  ;;  %v5471_v16 = vsel %vm1743_vm1, %v13751_v9, -inf }
 0xc2e   :  { %5499 = vmax.xlane.f32.xlu0 %v5498_v8  ;;  %v13778_v8 = vld [vmem:[%s14907_s1 + $0x58] sm:$0xff] }
 0xc2f   :  { %v13781_v1 = vadd.f32 %v13778_v8, %v5359_v17  ;;  %v13796_v17 = vadd.f32 %v13778_v8, %v5371_v0 }
 0xc30   :  { %5472 = vmax.xlane.f32.xlu1 %v5471_v16  ;;  %v5507_v16 = vsel %vm1743_vm1, %v13766_v2, -inf }
 0xc31   :  { %v5477_v38 = vsel %vm1743_vm1, %v13781_v1, -inf }
 0xc32   :  { %5469 = vmax.xlane.f32.xlu0 %v5468_v55  ;;  %v5370_v55 = vmul.f32 0.35355338, %v4945_v49 }
 0xc34   :  { %5508 = vmax.xlane.f32.xlu1 %v5507_v16  ;;  %v13801_v16 = vadd.f32 %v13788_v57, %v5370_v55 }
 0xc36   :  { %5505 = vmax.xlane.f32.xlu0 %v5504_v4  ;;  %v5513_v4 = vsel %vm1743_vm1, %v13796_v17, -inf  ;;  %v5510_v20 = vsel %vm1743_vm1, %v13801_v16, -inf }
 0xc38   :  { %5478 = vmax.xlane.f32.xlu1 %v5477_v38 }
 0xc3a   :  { %5475 = vmax.xlane.f32.xlu0 %v5474_v15 }
 0xc3b   :  { %v9779_v11 = vpop.f32.mrf.mxu0  ;;  %v9737_v49 = vpop.f32.mrf.mxu1 }
 0xc3c   :  { %v5385_v22 = vmul.f32 0.35355338, %v9779_v11  ;;  %v5373_v13 = vmul.f32 0.35355338, %v9737_v49  ;;  %5514 = vmax.xlane.f32.xlu1 %v5513_v4 }
 0xc3d   :  { %v5289_v0 = vpop.f32.mrf.mxu0  ;;  %v5092_v36 = vpop.f32.mrf.mxu1 }
 0xc3e   :  { %v13808_v62 = vadd.f32 %v13632_v40, %v5373_v13  ;;  %v5384_v38 = vmul.f32 0.35355338, %v5289_v0  ;;  %v5372_v55 = vmul.f32 0.35355338, %v5092_v36  ;;  %5511 = vmax.xlane.f32.xlu0 %v5510_v20  ;;  %v13813_v15 = vadd.f32 %v13632_v40, %v5385_v22 }
 0xc40   :  { %v13816_v11 = vadd.f32 %v13640_v24, %v5372_v55  ;;  %v9782_v49 = vpop.f32.mrf.mxu0  ;;  %v9740_v56 = vpop.f32.mrf.mxu1  ;;  %v5519_v4 = vsel %vm1743_vm1, %v13808_v62, -inf  ;;  %v13821_v13 = vadd.f32 %v13640_v24, %v5384_v38  ;;  %v5555_v45 = vsel %vm1743_vm1, %v13813_v15, -inf }
 0xc41   :  { %v5375_v54 = vmul.f32 0.35355338, %v9740_v56  ;;  %5520 = vmax.xlane.f32.xlu1 %v5519_v4  ;;  %v5387_v40 = vmul.f32 0.35355338, %v9782_v49 }
 0xc42   :  { %v5102_v36 = vpop.f32.mrf.mxu1  ;;  %v5516_v20 = vsel %vm1743_vm1, %v13816_v11, -inf  ;;  %v5299_v0 = vpop.f32.mrf.mxu0  ;;  %v5552_v38 = vsel %vm1743_vm1, %v13821_v13, -inf }
 0xc43   :  { %v5374_v22 = vmul.f32 0.35355338, %v5102_v36  ;;  %5517 = vmax.xlane.f32.xlu0 %v5516_v20  ;;  %v13826_v55 = vadd.f32 %v13658_v35, %v5375_v54  ;;  %v5386_v56 = vmul.f32 0.35355338, %v5299_v0  ;;  %v13836_v36 = vadd.f32 %v13658_v35, %v5387_v40 }
 0xc45   :  { %5556 = vmax.xlane.f32.xlu1 %v5555_v45  ;;  %v13831_v4 = vadd.f32 %v13668_v61, %v5374_v22  ;;  %v5525_v20 = vsel %vm1743_vm1, %v13826_v55, -inf  ;;  %v13841_v45 = vadd.f32 %v13668_v61, %v5386_v56  ;;  %v5561_v40 = vsel %vm1743_vm1, %v13836_v36, -inf }
 0xc46   :  { %v9743_v24 = vpop.f32.mrf.mxu1  ;;  %v9785_v59 = vpop.f32.mrf.mxu0 }
 0xc47   :  { %5553 = vmax.xlane.f32.xlu0 %v5552_v38  ;;  %v5377_v49 = vmul.f32 0.35355338, %v9743_v24  ;;  %v5522_v22 = vsel %vm1743_vm1, %v13831_v4, -inf  ;;  %v5389_v63 = vmul.f32 0.35355338, %v9785_v59  ;;  %v5558_v61 = vsel %vm1743_vm1, %v13841_v45, -inf }
 0xc48   :  { %v5112_v54 = vpop.f32.mrf.mxu1  ;;  %v5309_v29 = vpop.f32.mrf.mxu0 }
 0xc49   :  { %5526 = vmax.xlane.f32.xlu1 %v5525_v20  ;;  %v5376_v0 = vmul.f32 0.35355338, %v5112_v54  ;;  %v13846_v38 = vadd.f32 %v13688_v19, %v5377_v49  ;;  %v5388_v24 = vmul.f32 0.35355338, %v5309_v29  ;;  %v13856_v59 = vadd.f32 %v13688_v19, %v5389_v63 }
 0xc4b   :  { %5523 = vmax.xlane.f32.xlu0 %v5522_v22  ;;  %v13851_v20 = vadd.f32 %v13698_v43, %v5376_v0  ;;  %v5531_v22 = vsel %vm1743_vm1, %v13846_v38, -inf  ;;  %v5567_v63 = vsel %vm1743_vm1, %v13856_v59, -inf }
 0xc4c   :  { %v9746_v35 = vpop.f32.mrf.mxu1  ;;  %v9788_v56 = vpop.f32.mrf.mxu0 }
 0xc4d   :  { %5562 = vmax.xlane.f32.xlu1 %v5561_v40  ;;  %v5379_v49 = vmul.f32 0.35355338, %v9746_v35  ;;  %v13861_v40 = vadd.f32 %v13698_v43, %v5388_v24  ;;  %v5528_v0 = vsel %vm1743_vm1, %v13851_v20, -inf  ;;  %v5391_v33 = vmul.f32 0.35355338, %v9788_v56 }
 0xc4e   :  { %v5122_v54 = vpop.f32.mrf.mxu1  ;;  %v5319_v5 = vpop.f32.mrf.mxu0 }
 0xc4f   :  { %5559 = vmax.xlane.f32.xlu0 %v5558_v61  ;;  %v5378_v29 = vmul.f32 0.35355338, %v5122_v54  ;;  %v13866_v61 = vadd.f32 %v13718_v50, %v5379_v49  ;;  %v5390_v19 = vmul.f32 0.35355338, %v5319_v5  ;;  %v5564_v43 = vsel %vm1743_vm1, %v13861_v40, -inf }
 0xc51   :  { %5532 = vmax.xlane.f32.xlu1 %v5531_v22  ;;  %v13871_v35 = vadd.f32 %v13728_v25, %v5378_v29  ;;  %v13876_v22 = vadd.f32 %v13718_v50, %v5391_v33  ;;  %v5537_v49 = vsel %vm1743_vm1, %v13866_v61, -inf }
 0xc52   :  { %v9749_v42 = vpop.f32.mrf.mxu1  ;;  %v9791_v24 = vpop.f32.mrf.mxu0 }
 0xc53   :  { %5529 = vmax.xlane.f32.xlu0 %v5528_v0  ;;  %v5381_v56 = vmul.f32 0.35355338, %v9749_v42  ;;  %v13881_v0 = vadd.f32 %v13728_v25, %v5390_v19  ;;  %v5534_v29 = vsel %vm1743_vm1, %v13871_v35, -inf  ;;  %v5393_v41 = vmul.f32 0.35355338, %v9791_v24 }
 0xc54   :  { %v5132_v54 = vpop.f32.mrf.mxu1  ;;  %v5573_v33 = vsel %vm1743_vm1, %v13876_v22, -inf }
 0xc55   :  { %5568 = vmax.xlane.f32.xlu1 %v5567_v63  ;;  %v5380_v5 = vmul.f32 0.35355338, %v5132_v54  ;;  %v5329_v63 = vpop.f32.mrf.mxu0  ;;  %v5570_v25 = vsel %vm1743_vm1, %v13881_v0, -inf }
 0xc56   :  { %v5392_v42 = vmul.f32 0.35355338, %v5329_v63 }
 0xc57   :  { %5565 = vmax.xlane.f32.xlu0 %v5564_v43  ;;  %v13886_v43 = vadd.f32 %v13748_v47, %v5381_v56  ;;  %v13891_v50 = vadd.f32 %v13758_v60, %v5380_v5 }
 0xc58   :  { %v9752_v34 = vpop.f32.mrf.mxu1  ;;  %v9794_v19 = vpop.f32.mrf.mxu0 }
 0xc59   :  { %5538 = vmax.xlane.f32.xlu1 %v5537_v49  ;;  %v13896_v49 = vadd.f32 %v13748_v47, %v5393_v41  ;;  %v5383_v24 = vmul.f32 0.35355338, %v9752_v34  ;;  %v5543_v56 = vsel %vm1743_vm1, %v13886_v43, -inf  ;;  %v5540_v5 = vsel %vm1743_vm1, %v13891_v50, -inf }
 0xc5a   :  { %v5142_v54 = vpop.f32.mrf.mxu1  ;;  %v5395_v32 = vmul.f32 0.35355338, %v9794_v19 }
 0xc5b   :  { %5535 = vmax.xlane.f32.xlu0 %v5534_v29  ;;  %v13901_v29 = vadd.f32 %v13758_v60, %v5392_v42  ;;  %v5382_v63 = vmul.f32 0.35355338, %v5142_v54  ;;  %v5579_v41 = vsel %vm1743_vm1, %v13896_v49, -inf }
 0xc5c   :  { %v13916_v42 = vadd.f32 %v13778_v8, %v5395_v32 }
 0xc5d   :  { %5574 = vmax.xlane.f32.xlu1 %v5573_v33  ;;  %v5339_v33 = vpop.f32.mrf.mxu0  ;;  %v13911_v47 = vadd.f32 %v13788_v57, %v5382_v63  ;;  %v5576_v60 = vsel %vm1743_vm1, %v13901_v29, -inf }
 0xc5e   :  { %v5394_v34 = vmul.f32 0.35355338, %v5339_v33 }
 0xc5f   :  { %5571 = vmax.xlane.f32.xlu0 %v5570_v25  ;;  %v13906_v25 = vadd.f32 %v13778_v8, %v5383_v24  ;;  %v5546_v24 = vsel %vm1743_vm1, %v13911_v47, -inf }
 0xc60   :  { %v13921_v54 = vadd.f32 %v13788_v57, %v5394_v34 }
 0xc61   :  { %5544 = vmax.xlane.f32.xlu1 %v5543_v56  ;;  %v5549_v19 = vsel %vm1743_vm1, %v13906_v25, -inf  ;;  %v5585_v56 = vsel %vm1743_vm1, %v13916_v42, -inf }
 0xc62   :  { %v5582_v63 = vsel %vm1743_vm1, %v13921_v54, -inf }
 0xc63   :  { %5541 = vmax.xlane.f32.xlu0 %v5540_v5 }
 0xc65   :  { %5580 = vmax.xlane.f32.xlu1 %v5579_v41 }
 0xc67   :  { %5577 = vmax.xlane.f32.xlu0 %v5576_v60 }
 0xc69   :  { %5550 = vmax.xlane.f32.xlu1 %v5549_v19 }
 0xc6b   :  { %5547 = vmax.xlane.f32.xlu0 %v5546_v24 }
 0xc6d   :  { %5586 = vmax.xlane.f32.xlu1 %v5585_v56 }
 0xc6f   :  { %5583 = vmax.xlane.f32.xlu0 %v5582_v63 }
 0xc99   :  { %v5449_v32 = vpop.xlane.xlu1 %5448 }
 0xc9a   :  { %v5589_v8 = vsub.f32 %v13635_v18, %v5449_v32 }
 0xc9b   :  { %v5446_v5 = vpop.xlane.xlu0 %5445 }
 0xc9c   :  { %v5638_v33 = vmul.f32 1.442695, %v5589_v8  ;;  %v5588_v57 = vsub.f32 %v13643_v7, %v5446_v5 }
 0xc9d   :  { %v5485_v41 = vpop.xlane.xlu1 %5484 }
 0xc9e   :  { %10411 = vpow2.f32 %v5638_v33  ;;  %v5636_v34 = vmul.f32 1.442695, %v5588_v57  ;;  %v5601_v60 = vsub.f32 %v13646_v27, %v5485_v41 }
 0xc9f   :  { %v5482_v19 = vpop.xlane.xlu0 %5481 }
 0xca0   :  { %10413 = vpow2.f32 %v5636_v34  ;;  %v5662_v24 = vmul.f32 1.442695, %v5601_v60  ;;  %v5600_v56 = vsub.f32 %v13651_v46, %v5482_v19 }
 0xca1   :  { %v5455_v48 = vpop.xlane.xlu1 %5454 }
 0xca2   :  { %10415 = vpow2.f32 %v5662_v24  ;;  %v5660_v63 = vmul.f32 1.442695, %v5600_v56  ;;  %v5591_v10 = vsub.f32 %v13661_v30, %v5455_v48 }
 0xca3   :  { %v5452_v18 = vpop.xlane.xlu0 %5451 }
 0xca4   :  { %10417 = vpow2.f32 %v5660_v63  ;;  %v5642_v32 = vmul.f32 1.442695, %v5591_v10  ;;  %v5590_v7 = vsub.f32 %v13671_v28, %v5452_v18 }
 0xca5   :  { %v5491_v8 = vpop.xlane.xlu1 %5490 }
 0xca6   :  { %10419 = vpow2.f32 %v5642_v32  ;;  %v5640_v5 = vmul.f32 1.442695, %v5590_v7  ;;  %v5603_v27 = vsub.f32 %v13676_v21, %v5491_v8 }
 0xca7   :  { %v5488_v33 = vpop.xlane.xlu0 %5487 }
 0xca8   :  { %10421 = vpow2.f32 %v5640_v5  ;;  %v5666_v57 = vmul.f32 1.442695, %v5603_v27  ;;  %v5602_v46 = vsub.f32 %v13681_v52, %v5488_v33 }
 0xca9   :  { %v5461_v41 = vpop.xlane.xlu1 %5460 }
 0xcaa   :  { %10423 = vpow2.f32 %v5666_v57  ;;  %v5664_v34 = vmul.f32 1.442695, %v5602_v46  ;;  %v5593_v48 = vsub.f32 %v13691_v14, %v5461_v41 }
 0xcab   :  { %v13938_v30 = vpop.eup %10411  ;;  %v5458_v10 = vpop.xlane.xlu0 %5457 }
 0xcac   :  { %10425 = vpow2.f32 %v5664_v34  ;;  %v5646_v28 = vmul.f32 1.442695, %v5593_v48  ;;  %v5592_v60 = vsub.f32 %v13701_v44, %v5458_v10  ;;  %v5735_v21 = vsel %vm1743_vm1, %v13938_v30, 0.0 }
 0xcad   :  { %v13943_v19 = vpop.eup %10413  ;;  %v5497_v24 = vpop.xlane.xlu1 %5496  ;;  %5736 = vadd.xlane.f32.xlu1 %v5735_v21 }
 0xcae   :  { %10427 = vpow2.f32 %v5646_v28  ;;  %v5644_v52 = vmul.f32 1.442695, %v5592_v60  ;;  %v5605_v56 = vsub.f32 %v13706_v53, %v5497_v24  ;;  %v5732_v14 = vsel %vm1743_vm1, %v13943_v19, 0.0 }
 0xcaf   :  { %v13948_v63 = vpop.eup %10415  ;;  %v5494_v18 = vpop.xlane.xlu0 %5493  ;;  %5733 = vadd.xlane.f32.xlu0 %v5732_v14 }
 0xcb0   :  { %10429 = vpow2.f32 %v5644_v52  ;;  %v5670_v44 = vmul.f32 1.442695, %v5605_v56  ;;  %v5604_v32 = vsub.f32 %v13711_v39, %v5494_v18  ;;  %v5771_v7 = vsel %vm1743_vm1, %v13948_v63, 0.0 }
 0xcb1   :  { %v13953_v8 = vpop.eup %10417  ;;  %v5467_v5 = vpop.xlane.xlu1 %5466  ;;  %5772 = vadd.xlane.f32.xlu1 %v5771_v7 }
 0xcb2   :  { %10431 = vpow2.f32 %v5670_v44  ;;  %v5668_v53 = vmul.f32 1.442695, %v5604_v32  ;;  %v5595_v27 = vsub.f32 %v13721_v31, %v5467_v5  ;;  %v5768_v33 = vsel %vm1743_vm1, %v13953_v8, 0.0 }
 0xcb3   :  { %v13958_v57 = vpop.eup %10419  ;;  %v5464_v46 = vpop.xlane.xlu0 %5463  ;;  %5769 = vadd.xlane.f32.xlu0 %v5768_v33 }
 0xcb4   :  { %10433 = vpow2.f32 %v5668_v53  ;;  %v5650_v39 = vmul.f32 1.442695, %v5595_v27  ;;  %v5594_v41 = vsub.f32 %v13731_v51, %v5464_v46  ;;  %v5741_v34 = vsel %vm1743_vm1, %v13958_v57, 0.0 }
 0xcb5   :  { %v13963_v48 = vpop.eup %10421  ;;  %v5503_v10 = vpop.xlane.xlu1 %5502  ;;  %5742 = vadd.xlane.f32.xlu1 %v5741_v34 }
 0xcb6   :  { %10435 = vpow2.f32 %v5650_v39  ;;  %v5648_v31 = vmul.f32 1.442695, %v5594_v41  ;;  %v5607_v28 = vsub.f32 %v13736_v26, %v5503_v10  ;;  %v5738_v60 = vsel %vm1743_vm1, %v13963_v48, 0.0 }
 0xcb7   :  { %v13968_v21 = vpop.eup %10423  ;;  %v5500_v24 = vpop.xlane.xlu0 %5499  ;;  %5739 = vadd.xlane.f32.xlu0 %v5738_v60 }
 0xcb8   :  { %10437 = vpow2.f32 %v5648_v31  ;;  %v5674_v51 = vmul.f32 1.442695, %v5607_v28  ;;  %v5606_v52 = vsub.f32 %v13741_v12, %v5500_v24  ;;  %v5777_v56 = vsel %vm1743_vm1, %v13968_v21, 0.0 }
 0xcb9   :  { %v13973_v14 = vpop.eup %10425  ;;  %v5473_v18 = vpop.xlane.xlu1 %5472  ;;  %5778 = vadd.xlane.f32.xlu1 %v5777_v56 }
 0xcba   :  { %10439 = vpow2.f32 %v5674_v51  ;;  %v5672_v26 = vmul.f32 1.442695, %v5606_v52  ;;  %v5597_v44 = vsub.f32 %v13751_v9, %v5473_v18  ;;  %v5774_v32 = vsel %vm1743_vm1, %v13973_v14, 0.0 }
 0xcbb   :  { %v13978_v7 = vpop.eup %10427  ;;  %v5470_v5 = vpop.xlane.xlu0 %5469  ;;  %5775 = vadd.xlane.f32.xlu0 %v5774_v32 }
 0xcbc   :  { %10441 = vpow2.f32 %v5672_v26  ;;  %v5654_v12 = vmul.f32 1.442695, %v5597_v44  ;;  %v5596_v53 = vsub.f32 %v13761_v58, %v5470_v5  ;;  %v5747_v27 = vsel %vm1743_vm1, %v13978_v7, 0.0 }
 0xcbd   :  { %v13983_v33 = vpop.eup %10429  ;;  %v5509_v46 = vpop.xlane.xlu1 %5508  ;;  %5748 = vadd.xlane.f32.xlu1 %v5747_v27 }
 0xcbe   :  { %10443 = vpow2.f32 %v5654_v12  ;;  %v5652_v9 = vmul.f32 1.442695, %v5596_v53  ;;  %v5609_v39 = vsub.f32 %v13766_v2, %v5509_v46  ;;  %v5744_v41 = vsel %vm1743_vm1, %v13983_v33, 0.0 }
 0xcbf   :  { %v13988_v34 = vpop.eup %10431  ;;  %v5506_v10 = vpop.xlane.xlu0 %5505  ;;  %5745 = vadd.xlane.f32.xlu0 %v5744_v41 }
 0xcc0   :  { %10445 = vpow2.f32 %v5652_v9  ;;  %v5678_v58 = vmul.f32 1.442695, %v5609_v39  ;;  %v5608_v31 = vsub.f32 %v13771_v37, %v5506_v10  ;;  %v5783_v28 = vsel %vm1743_vm1, %v13988_v34, 0.0 }
 0xcc1   :  { %v13993_v60 = vpop.eup %10433  ;;  %v5479_v24 = vpop.xlane.xlu1 %5478  ;;  %5784 = vadd.xlane.f32.xlu1 %v5783_v28 }
 0xcc2   :  { %10447 = vpow2.f32 %v5678_v58  ;;  %v5676_v2 = vmul.f32 1.442695, %v5608_v31  ;;  %v5599_v51 = vsub.f32 %v13781_v1, %v5479_v24  ;;  %v5780_v52 = vsel %vm1743_vm1, %v13993_v60, 0.0 }
 0xcc3   :  { %v13998_v56 = vpop.eup %10435  ;;  %v5476_v18 = vpop.xlane.xlu0 %5475  ;;  %5781 = vadd.xlane.f32.xlu0 %v5780_v52 }
 0xcc4   :  { %10449 = vpow2.f32 %v5676_v2  ;;  %v5658_v37 = vmul.f32 1.442695, %v5599_v51  ;;  %v5598_v26 = vsub.f32 %v13791_v23, %v5476_v18  ;;  %v5753_v44 = vsel %vm1743_vm1, %v13998_v56, 0.0 }
 0xcc5   :  { %v14003_v32 = vpop.eup %10437  ;;  %v5515_v5 = vpop.xlane.xlu1 %5514  ;;  %5754 = vadd.xlane.f32.xlu1 %v5753_v44 }
 0xcc6   :  { %10451 = vpow2.f32 %v5658_v37  ;;  %v5656_v1 = vmul.f32 1.442695, %v5598_v26  ;;  %v5611_v12 = vsub.f32 %v13796_v17, %v5515_v5  ;;  %v5750_v53 = vsel %vm1743_vm1, %v14003_v32, 0.0 }
 0xcc7   :  { %v14008_v27 = vpop.eup %10439  ;;  %v5512_v46 = vpop.xlane.xlu0 %5511  ;;  %5751 = vadd.xlane.f32.xlu0 %v5750_v53 }
 0xcc8   :  { %10453 = vpow2.f32 %v5656_v1  ;;  %v5682_v23 = vmul.f32 1.442695, %v5611_v12  ;;  %v5610_v9 = vsub.f32 %v13801_v16, %v5512_v46  ;;  %v5789_v39 = vsel %vm1743_vm1, %v14008_v27, 0.0 }
 0xcc9   :  { %v14013_v41 = vpop.eup %10441  ;;  %5790 = vadd.xlane.f32.xlu1 %v5789_v39 }
 0xcca   :  { %v5521_v10 = vpop.xlane.xlu1 %5520  ;;  %10455 = vpow2.f32 %v5682_v23  ;;  %v5680_v17 = vmul.f32 1.442695, %v5610_v9  ;;  %v5786_v31 = vsel %vm1743_vm1, %v14013_v41, 0.0 }
 0xccb   :  { %v5613_v58 = vsub.f32 %v13808_v62, %v5521_v10  ;;  %v14018_v28 = vpop.eup %10443  ;;  %5787 = vadd.xlane.f32.xlu0 %v5786_v31 }
 0xccc   :  { %v5518_v24 = vpop.xlane.xlu0 %5517  ;;  %10457 = vpow2.f32 %v5680_v17  ;;  %v5759_v51 = vsel %vm1743_vm1, %v14018_v28, 0.0 }
 0xccd   :  { %v5686_v16 = vmul.f32 1.442695, %v5613_v58  ;;  %v5612_v2 = vsub.f32 %v13816_v11, %v5518_v24  ;;  %v14023_v52 = vpop.eup %10445  ;;  %5760 = vadd.xlane.f32.xlu1 %v5759_v51 }
 0xcce   :  { %v5557_v18 = vpop.xlane.xlu1 %5556  ;;  %v5756_v26 = vsel %vm1743_vm1, %v14023_v52, 0.0 }
 0xccf   :  { %10459 = vpow2.f32 %v5686_v16  ;;  %v5684_v62 = vmul.f32 1.442695, %v5612_v2  ;;  %v5625_v37 = vsub.f32 %v13813_v15, %v5557_v18  ;;  %v14028_v44 = vpop.eup %10447  ;;  %5757 = vadd.xlane.f32.xlu0 %v5756_v26 }
 0xcd0   :  { %v5554_v5 = vpop.xlane.xlu0 %5553  ;;  %v5795_v12 = vsel %vm1743_vm1, %v14028_v44, 0.0 }
 0xcd1   :  { %10461 = vpow2.f32 %v5684_v62  ;;  %v5710_v11 = vmul.f32 1.442695, %v5625_v37  ;;  %v5624_v1 = vsub.f32 %v13821_v13, %v5554_v5  ;;  %v14033_v53 = vpop.eup %10449  ;;  %5796 = vadd.xlane.f32.xlu1 %v5795_v12 }
 0xcd2   :  { %v5527_v46 = vpop.xlane.xlu1 %5526  ;;  %v5792_v9 = vsel %vm1743_vm1, %v14033_v53, 0.0 }
 0xcd3   :  { %10463 = vpow2.f32 %v5710_v11  ;;  %v5708_v15 = vmul.f32 1.442695, %v5624_v1  ;;  %v5615_v23 = vsub.f32 %v13826_v55, %v5527_v46  ;;  %v14038_v39 = vpop.eup %10451  ;;  %5793 = vadd.xlane.f32.xlu0 %v5792_v9 }
 0xcd4   :  { %v5524_v10 = vpop.xlane.xlu0 %5523  ;;  %v5765_v58 = vsel %vm1743_vm1, %v14038_v39, 0.0 }
 0xcd5   :  { %10465 = vpow2.f32 %v5708_v15  ;;  %v5690_v13 = vmul.f32 1.442695, %v5615_v23  ;;  %v5614_v17 = vsub.f32 %v13831_v4, %v5524_v10  ;;  %v14043_v31 = vpop.eup %10453  ;;  %5766 = vadd.xlane.f32.xlu1 %v5765_v58 }
 0xcd6   :  { %v5563_v24 = vpop.xlane.xlu1 %5562  ;;  %v5762_v2 = vsel %vm1743_vm1, %v14043_v31, 0.0 }
 0xcd7   :  { %10467 = vpow2.f32 %v5690_v13  ;;  %v5688_v55 = vmul.f32 1.442695, %v5614_v17  ;;  %v5627_v16 = vsub.f32 %v13836_v36, %v5563_v24  ;;  %v14048_v51 = vpop.eup %10455  ;;  %5763 = vadd.xlane.f32.xlu0 %v5762_v2 }
 0xcd8   :  { %v5560_v18 = vpop.xlane.xlu0 %5559  ;;  %v5801_v37 = vsel %vm1743_vm1, %v14048_v51, 0.0 }
 0xcd9   :  { %10469 = vpow2.f32 %v5688_v55  ;;  %v5714_v4 = vmul.f32 1.442695, %v5627_v16  ;;  %v5626_v62 = vsub.f32 %v13841_v45, %v5560_v18  ;;  %v14053_v26 = vpop.eup %10457  ;;  %5802 = vadd.xlane.f32.xlu1 %v5801_v37 }
 0xcda   :  { %v5533_v5 = vpop.xlane.xlu1 %5532  ;;  %v5798_v1 = vsel %vm1743_vm1, %v14053_v26, 0.0 }
 0xcdb   :  { %10471 = vpow2.f32 %v5714_v4  ;;  %v5712_v36 = vmul.f32 1.442695, %v5626_v62  ;;  %v5617_v11 = vsub.f32 %v13846_v38, %v5533_v5  ;;  %5799 = vadd.xlane.f32.xlu0 %v5798_v1 }
 0xcdc   :  { %v14058_v12 = vpop.eup %10459  ;;  %v5530_v46 = vpop.xlane.xlu0 %5529 }
 0xcdd   :  { %10473 = vpow2.f32 %v5712_v36  ;;  %v5694_v45 = vmul.f32 1.442695, %v5617_v11  ;;  %v5616_v15 = vsub.f32 %v13851_v20, %v5530_v46  ;;  %v5807_v23 = vsel %vm1743_vm1, %v14058_v12, 0.0 }
 0xcde   :  { %v14063_v9 = vpop.eup %10461  ;;  %v5569_v10 = vpop.xlane.xlu1 %5568  ;;  %5808 = vadd.xlane.f32.xlu1 %v5807_v23 }
 0xcdf   :  { %10475 = vpow2.f32 %v5694_v45  ;;  %v5692_v38 = vmul.f32 1.442695, %v5616_v15  ;;  %v5629_v13 = vsub.f32 %v13856_v59, %v5569_v10  ;;  %v5804_v17 = vsel %vm1743_vm1, %v14063_v9, 0.0 }
 0xce0   :  { %v14068_v58 = vpop.eup %10463  ;;  %v5566_v24 = vpop.xlane.xlu0 %5565  ;;  %5805 = vadd.xlane.f32.xlu0 %v5804_v17 }
 0xce1   :  { %10477 = vpow2.f32 %v5692_v38  ;;  %v5718_v20 = vmul.f32 1.442695, %v5629_v13  ;;  %v5628_v55 = vsub.f32 %v13861_v40, %v5566_v24  ;;  %v5843_v16 = vsel %vm1743_vm1, %v14068_v58, 0.0 }
 0xce2   :  { %v14073_v2 = vpop.eup %10465  ;;  %v5539_v18 = vpop.xlane.xlu1 %5538  ;;  %5844 = vadd.xlane.f32.xlu1 %v5843_v16 }
 0xce3   :  { %10479 = vpow2.f32 %v5718_v20  ;;  %v5716_v59 = vmul.f32 1.442695, %v5628_v55  ;;  %v5619_v4 = vsub.f32 %v13866_v61, %v5539_v18  ;;  %v5840_v62 = vsel %vm1743_vm1, %v14073_v2, 0.0 }
 0xce4   :  { %v14078_v37 = vpop.eup %10467  ;;  %v5536_v5 = vpop.xlane.xlu0 %5535  ;;  %5841 = vadd.xlane.f32.xlu0 %v5840_v62 }
 0xce5   :  { %10481 = vpow2.f32 %v5716_v59  ;;  %v5698_v40 = vmul.f32 1.442695, %v5619_v4  ;;  %v5618_v36 = vsub.f32 %v13871_v35, %v5536_v5  ;;  %v5813_v11 = vsel %vm1743_vm1, %v14078_v37, 0.0 }
 0xce6   :  { %v14083_v1 = vpop.eup %10469  ;;  %v5575_v46 = vpop.xlane.xlu1 %5574  ;;  %5814 = vadd.xlane.f32.xlu1 %v5813_v11 }
 0xce7   :  { %10483 = vpow2.f32 %v5698_v40  ;;  %v5696_v61 = vmul.f32 1.442695, %v5618_v36  ;;  %v5631_v45 = vsub.f32 %v13876_v22, %v5575_v46  ;;  %v5810_v15 = vsel %vm1743_vm1, %v14083_v1, 0.0 }
 0xce8   :  { %v14088_v23 = vpop.eup %10471  ;;  %v5572_v10 = vpop.xlane.xlu0 %5571  ;;  %5811 = vadd.xlane.f32.xlu0 %v5810_v15 }
 0xce9   :  { %10485 = vpow2.f32 %v5696_v61  ;;  %v5722_v35 = vmul.f32 1.442695, %v5631_v45  ;;  %v5630_v38 = vsub.f32 %v13881_v0, %v5572_v10  ;;  %v5849_v13 = vsel %vm1743_vm1, %v14088_v23, 0.0 }
 0xcea   :  { %v14093_v17 = vpop.eup %10473  ;;  %v5545_v24 = vpop.xlane.xlu1 %5544  ;;  %5850 = vadd.xlane.f32.xlu1 %v5849_v13 }
 0xceb   :  { %10487 = vpow2.f32 %v5722_v35  ;;  %v5720_v22 = vmul.f32 1.442695, %v5630_v38  ;;  %v5621_v20 = vsub.f32 %v13886_v43, %v5545_v24  ;;  %v5846_v55 = vsel %vm1743_vm1, %v14093_v17, 0.0 }
 0xcec   :  { %v14098_v16 = vpop.eup %10475  ;;  %v5542_v18 = vpop.xlane.xlu0 %5541  ;;  %5847 = vadd.xlane.f32.xlu0 %v5846_v55 }
 0xced   :  { %10489 = vpow2.f32 %v5720_v22  ;;  %v5702_v0 = vmul.f32 1.442695, %v5621_v20  ;;  %v5620_v59 = vsub.f32 %v13891_v50, %v5542_v18  ;;  %v5819_v4 = vsel %vm1743_vm1, %v14098_v16, 0.0 }
 0xcee   :  { %v14103_v62 = vpop.eup %10477  ;;  %v5581_v5 = vpop.xlane.xlu1 %5580  ;;  %5820 = vadd.xlane.f32.xlu1 %v5819_v4 }
 0xcef   :  { %10491 = vpow2.f32 %v5702_v0  ;;  %v5700_v43 = vmul.f32 1.442695, %v5620_v59  ;;  %v5633_v40 = vsub.f32 %v13896_v49, %v5581_v5  ;;  %v5816_v36 = vsel %vm1743_vm1, %v14103_v62, 0.0 }
 0xcf0   :  { %v14108_v11 = vpop.eup %10479  ;;  %v5578_v46 = vpop.xlane.xlu0 %5577  ;;  %5817 = vadd.xlane.f32.xlu0 %v5816_v36 }
 0xcf1   :  { %10493 = vpow2.f32 %v5700_v43  ;;  %v5726_v50 = vmul.f32 1.442695, %v5633_v40  ;;  %v5632_v61 = vsub.f32 %v13901_v29, %v5578_v46  ;;  %v5855_v45 = vsel %vm1743_vm1, %v14108_v11, 0.0 }
 0xcf2   :  { %v14113_v15 = vpop.eup %10481  ;;  %5856 = vadd.xlane.f32.xlu1 %v5855_v45  ;;  %v5551_v10 = vpop.xlane.xlu1 %5550 }
 0xcf3   :  { %10495 = vpow2.f32 %v5726_v50  ;;  %v5724_v49 = vmul.f32 1.442695, %v5632_v61  ;;  %v5623_v35 = vsub.f32 %v13906_v25, %v5551_v10  ;;  %v5852_v38 = vsel %vm1743_vm1, %v14113_v15, 0.0 }
 0xcf4   :  { %v14118_v13 = vpop.eup %10483  ;;  %5853 = vadd.xlane.f32.xlu0 %v5852_v38  ;;  %v5548_v24 = vpop.xlane.xlu0 %5547 }
 0xcf5   :  { %10497 = vpow2.f32 %v5724_v49  ;;  %v5706_v29 = vmul.f32 1.442695, %v5623_v35  ;;  %v5622_v22 = vsub.f32 %v13911_v47, %v5548_v24  ;;  %v5825_v20 = vsel %vm1743_vm1, %v14118_v13, 0.0 }
 0xcf6   :  { %v14123_v55 = vpop.eup %10485  ;;  %5826 = vadd.xlane.f32.xlu1 %v5825_v20  ;;  %v5587_v18 = vpop.xlane.xlu1 %5586 }
 0xcf7   :  { %10499 = vpow2.f32 %v5706_v29  ;;  %v5704_v25 = vmul.f32 1.442695, %v5622_v22  ;;  %v5635_v0 = vsub.f32 %v13916_v42, %v5587_v18  ;;  %v5822_v59 = vsel %vm1743_vm1, %v14123_v55, 0.0 }
 0xcf8   :  { %v14128_v4 = vpop.eup %10487  ;;  %5823 = vadd.xlane.f32.xlu0 %v5822_v59  ;;  %v5584_v5 = vpop.xlane.xlu0 %5583 }
 0xcf9   :  { %10501 = vpow2.f32 %v5704_v25  ;;  %v5730_v47 = vmul.f32 1.442695, %v5635_v0  ;;  %v5634_v43 = vsub.f32 %v13921_v54, %v5584_v5  ;;  %v5861_v40 = vsel %vm1743_vm1, %v14128_v4, 0.0 }
 0xcfa   :  { %v14133_v36 = vpop.eup %10489  ;;  %5862 = vadd.xlane.f32.xlu1 %v5861_v40 }
 0xcfb   :  { %10503 = vpow2.f32 %v5730_v47  ;;  %v5728_v46 = vmul.f32 1.442695, %v5634_v43  ;;  %v5858_v42 = vsel %vm1743_vm1, %v14133_v36, 0.0 }
 0xcfc   :  { %v14137_v50 = vpop.eup %10491  ;;  %5859 = vadd.xlane.f32.xlu0 %v5858_v42 }
 0xcfd   :  { %10505 = vpow2.f32 %v5728_v46  ;;  %v5831_v61 = vsel %vm1743_vm1, %v14137_v50, 0.0 }
 0xcfe   :  { %v14141_v45 = vpop.eup %10493  ;;  %5832 = vadd.xlane.f32.xlu1 %v5831_v61 }
 0xcff   :  { %v5828_v54 = vsel %vm1743_vm1, %v14141_v45, 0.0 }
 0xd00   :  { %v14145_v10 = vpop.eup %10495  ;;  %5829 = vadd.xlane.f32.xlu0 %v5828_v54 }
 0xd01   :  { %v5867_v49 = vsel %vm1743_vm1, %v14145_v10, 0.0 }
 0xd02   :  { %v14149_v35 = vpop.eup %10497  ;;  %5868 = vadd.xlane.f32.xlu1 %v5867_v49 }
 0xd03   :  { %v5864_v38 = vsel %vm1743_vm1, %v14149_v35, 0.0 }
 0xd04   :  { %v14153_v24 = vpop.eup %10499  ;;  %5865 = vadd.xlane.f32.xlu0 %v5864_v38 }
 0xd05   :  { %v5837_v29 = vsel %vm1743_vm1, %v14153_v24, 0.0 }
 0xd06   :  { %v14157_v22 = vpop.eup %10501  ;;  %5838 = vadd.xlane.f32.xlu1 %v5837_v29 }
 0xd07   :  { %v5834_v20 = vsel %vm1743_vm1, %v14157_v22, 0.0 }
 0xd08   :  { %v14161_v18 = vpop.eup %10503  ;;  %5835 = vadd.xlane.f32.xlu0 %v5834_v20 }
 0xd09   :  { %v5873_v25 = vsel %vm1743_vm1, %v14161_v18, 0.0 }
 0xd0a   :  { %v14165_v0 = vpop.eup %10505  ;;  %5874 = vadd.xlane.f32.xlu1 %v5873_v25 }
 0xd0b   :  { %v5870_v59 = vsel %vm1743_vm1, %v14165_v0, 0.0 }
 0xd0c   :  { %5871 = vadd.xlane.f32.xlu0 %v5870_v59 }
 0xd36   :  { %v5737_v5 = vpop.xlane.xlu1 %5736 }
 0xd37   :  { %10507 = vrcp.f32 %v5737_v5 }
 0xd38   :  { %v5734_v47 = vpop.xlane.xlu0 %5733 }
 0xd39   :  { %10509 = vrcp.f32 %v5734_v47 }
 0xd3a   :  { %v5773_v43 = vpop.xlane.xlu1 %5772 }
 0xd3b   :  { %10511 = vrcp.f32 %v5773_v43 }
 0xd3c   :  { %v5770_v40 = vpop.xlane.xlu0 %5769 }
 0xd3d   :  { %10513 = vrcp.f32 %v5770_v40  ;;  %v14176_v40 = vld [vmem:[%s14904_s2 + $0x2] ss:$0 sm:$0xff] }
 0xd3e   :  { %v5743_v46 = vpop.xlane.xlu1 %5742 }
 0xd3f   :  { %10515 = vrcp.f32 %v5743_v46  ;;  %v6006_v46 = vmul.f32 %v14176_v40, %v13467_v6 }
 0xd40   :  { %v5740_v42 = vpop.xlane.xlu0 %5739 }
 0xd41   :  { %10517 = vrcp.f32 %v5740_v42 }
 0xd42   :  { %v5779_v61 = vpop.xlane.xlu1 %5778 }
 0xd44   :  { %v5776_v54 = vpop.xlane.xlu0 %5775  ;;  %v10508_v49 = vpop.eup %10507 }
 0xd45   :  { %10519 = vrcp.f32 %v5776_v54  ;;  %v5925_v25 = vmul.f32 %v10508_v49, %v13938_v30 }
 0xd46   :  { %v10510_v38 = vpop.eup %10509  ;;  %10521 = vrcp.f32 %v5779_v61  ;;  %v5749_v29 = vpop.xlane.xlu1 %5748  ;;  %v15040_v61 = vld [vmem:[#allocation14_spill] sm:$0xff] }
 0xd47   :  { %v5924_v20 = vmul.f32 %v10510_v38, %v13943_v19  ;;  %v6005_v54 = vmul.f32 %v14176_v40, %v15040_v61 }
 0xd48   :  { %v5746_v59 = vpop.xlane.xlu0 %5745  ;;  %v10512_v5 = vpop.eup %10511 }
 0xd49   :  { %10523 = vrcp.f32 %v5746_v59  ;;  %9819 = vmatprep.mubr.msk.f32.mxu1 %vm1743_vm1, %v5924_v20  ;;  %v5937_v19 = vmul.f32 %v10512_v5, %v13948_v63  ;;  %v14192_v63 = vld [vmem:[%s14904_s2 + $0x3] ss:$0 sm:$0xff] }
 0xd4a   :  { %v10514_v47 = vpop.eup %10513  ;;  %v5785_v43 = vpop.xlane.xlu1 %5784  ;;  %9820 = vmatmul.mubr.msk.f32.vlgmr.msra.gmra.mxu1 %vm1743_vm1, %v5925_v25  ;;  %10525 = vrcp.f32 %v5749_v29  ;;  %v6018_v29 = vmul.f32 %v14192_v63, %v13467_v6  ;;  %v15042_v25 = vld [vmem:[#allocation24_spill] sm:$0xff] }
 0xd4b   :  { %9880 = vmatpush3.msra.mxu1 %v13621_v3  ;;  %v5936_v30 = vmul.f32 %v10514_v47, %v13953_v8  ;;  %v15041_v3 = vld [vmem:[#allocation15_spill] sm:$0xff]  ;;  %v15043_v47 = vld [vmem:[#allocation16_spill] sm:$0xff] }
 0xd4c   :  { %9881 = vmatprep.subr.mxu1 %v6006_v46  ;;  %v5782_v42 = vpop.xlane.xlu0 %5781  ;;  %v10516_v49 = vpop.eup %10515  ;;  %v6004_v8 = vmul.f32 %v14176_v40, %v15041_v3 }
 0xd4d   :  { %9882 = vmatpush3.msra.mxu1 %v6006_v46  ;;  %10527 = vrcp.f32 %v5782_v42  ;;  %9861 = vmatprep.mubr.msk.f32.mxu0 %vm1743_vm1, %v5936_v30  ;;  %v6003_v46 = vmul.f32 %v14176_v40, %v15043_v47  ;;  %v6017_v30 = vmul.f32 %v14192_v63, %v15040_v61  ;;  %v15044_v42 = vld [vmem:[#allocation17_spill] sm:$0xff] }
 0xd4e   :  { %v10518_v38 = vpop.eup %10517  ;;  %9883 = vmatprep.subr.mxu1 %v6005_v54  ;;  %v5755_v20 = vpop.xlane.xlu1 %5754  ;;  %9862 = vmatmul.mubr.msk.f32.vlgmr.msra.gmra.mxu0 %vm1743_vm1, %v5937_v19  ;;  %10529 = vrcp.f32 %v5785_v43  ;;  %v5927_v19 = vmul.f32 %v10516_v49, %v13958_v57  ;;  %v15045_v49 = vld [vmem:[#allocation18_spill] sm:$0xff] }
 0xd4f   :  { %9884 = vmatpush3.msra.mxu1 %v6005_v54  ;;  %9922 = vmatpush3.msra.mxu0 %v15042_v25  ;;  %v5926_v59 = vmul.f32 %v10518_v38, %v13963_v48  ;;  %v6002_v54 = vmul.f32 %v14176_v40, %v15044_v42  ;;  %v6016_v38 = vmul.f32 %v14192_v63, %v15041_v3 }
 0xd50   :  { %9885 = vmatprep.subr.mxu1 %v6004_v8  ;;  %9923 = vmatprep.subr.mxu0 %v6018_v29  ;;  %v5752_v5 = vpop.xlane.xlu0 %5751  ;;  %v6015_v25 = vmul.f32 %v14192_v63, %v15043_v47 }
 0xd51   :  { %9886 = vmatpush3.msra.mxu1 %v6004_v8  ;;  %9924 = vmatpush3.msra.mxu0 %v6018_v29  ;;  %10531 = vrcp.f32 %v5752_v5  ;;  %v6001_v8 = vmul.f32 %v14176_v40, %v15045_v49 }
 0xd52   :  { %v10520_v6 = vpop.eup %10519  ;;  %9822 = vmatprep.mubr.msk.f32.mxu1 %vm1743_vm1, %v5926_v59  ;;  %9887 = vmatprep.subr.mxu1 %v6003_v46  ;;  %v5791_v48 = vpop.xlane.xlu1 %5790  ;;  %10533 = vrcp.f32 %v5755_v20  ;;  %v15046_v20 = vld [vmem:[#allocation19_spill] sm:$0xff] }
 0xd53   :  { %v10522_v43 = vpop.eup %10521  ;;  %9925 = vmatprep.subr.mxu0 %v6017_v30  ;;  %9823 = vmatmul.mubr.msk.f32.gmra.mxu1 %vm1743_vm1, %v5927_v19  ;;  %v5938_v61 = vmul.f32 %v10520_v6, %v13973_v14  ;;  %v6000_v5 = vmul.f32 %v14176_v40, %v15046_v20  ;;  %v15047_v19 = vld [vmem:[#allocation20_spill] sm:$0xff] }
 0xd54   :  { %9888 = vmatpush3.msra.mxu1 %v6003_v46  ;;  %9926 = vmatpush3.msra.mxu0 %v6017_v30  ;;  %v5788_v57 = vpop.xlane.xlu0 %5787  ;;  %v5939_v3 = vmul.f32 %v10522_v43, %v13968_v21  ;;  %v6014_v46 = vmul.f32 %v14192_v63, %v15044_v42  ;;  %v5999_v6 = vmul.f32 %v14176_v40, %v15047_v19 }
 0xd55   :  { %9889 = vmatprep.subr.mxu1 %v6002_v54  ;;  %9927 = vmatprep.subr.mxu0 %v6016_v38  ;;  %10535 = vrcp.f32 %v5788_v57  ;;  %v6013_v43 = vmul.f32 %v14192_v63, %v15045_v49  ;;  %v6012_v57 = vmul.f32 %v14192_v63, %v15046_v20 }
 0xd56   :  { %v10524_v29 = vpop.eup %10523  ;;  %9890 = vmatpush3.msra.mxu1 %v6002_v54  ;;  %9928 = vmatpush3.msra.mxu0 %v6016_v38  ;;  %v5761_v59 = vpop.xlane.xlu1 %5760  ;;  %10537 = vrcp.f32 %v5791_v48  ;;  %v15048_v38 = vld [vmem:[#allocation21_spill] sm:$0xff] }
 0xd57   :  { %9864 = vmatprep.mubr.msk.f32.mxu0 %vm1743_vm1, %v5938_v61  ;;  %9891 = vmatprep.subr.mxu1 %v6001_v8  ;;  %v10526_v14 = vpop.eup %10525  ;;  %10539 = vrcp.f32 %v5761_v59  ;;  %v5928_v47 = vmul.f32 %v10524_v29, %v13983_v33  ;;  %v5998_v61 = vmul.f32 %v14176_v40, %v15048_v38  ;;  %v15049_v29 = vld [vmem:[#allocation22_spill] sm:$0xff]  ;;  %v6011_v59 = vmul.f32 %v14192_v63, %v15047_v19 }
 0xd58   :  { %9929 = vmatprep.subr.mxu0 %v6015_v25  ;;  %9865 = vmatmul.mubr.msk.f32.gmra.mxu0 %vm1743_vm1, %v5939_v3  ;;  %v5758_v30 = vpop.xlane.xlu0 %5757  ;;  %v5929_v42 = vmul.f32 %v10526_v14, %v13978_v7  ;;  %v6009_v19 = vmul.f32 %v14192_v63, %v15049_v29 }
 0xd59   :  { %9892 = vmatpush3.msra.mxu1 %v6001_v8  ;;  %9930 = vmatpush3.msra.mxu0 %v6015_v25  ;;  %10541 = vrcp.f32 %v5758_v30  ;;  %v5997_v25 = vmul.f32 %v14176_v40, %v15049_v29  ;;  %v6010_v30 = vmul.f32 %v14192_v63, %v15048_v38 }
 0xd5a   :  { %v10528_v21 = vpop.eup %10527  ;;  %9893 = vmatprep.subr.mxu1 %v6000_v5  ;;  %9931 = vmatprep.subr.mxu0 %v6014_v46  ;;  %v5797_v48 = vpop.xlane.xlu1 %5796 }
 0xd5b   :  { %9894 = vmatpush3.msra.mxu1 %v6000_v5  ;;  %9932 = vmatpush3.msra.mxu0 %v6014_v46  ;;  %10543 = vrcp.f32 %v5797_v48  ;;  %v10530_v54 = vpop.eup %10529  ;;  %v5940_v49 = vmul.f32 %v10528_v21, %v13993_v60  ;;  %v15050_v5 = vld [vmem:[#allocation23_spill] sm:$0xff] }
 0xd5c   :  { %9825 = vmatprep.mubr.msk.f32.mxu1 %vm1743_vm1, %v5928_v47  ;;  %9895 = vmatprep.subr.mxu1 %v5999_v6  ;;  %v5794_v33 = vpop.xlane.xlu0 %5793  ;;  %v5941_v3 = vmul.f32 %v10530_v54, %v13988_v34  ;;  %v5996_v46 = vmul.f32 %v14176_v40, %v15050_v5 }
 0xd5d   :  { %9933 = vmatprep.subr.mxu0 %v6013_v43  ;;  %9826 = vmatmul.mubr.msk.f32.gmra.mxu1 %vm1743_vm1, %v5929_v42  ;;  %10545 = vrcp.f32 %v5794_v33  ;;  %v6008_v42 = vmul.f32 %v14192_v63, %v15050_v5 }
 0xd5e   :  { %9896 = vmatpush3.msra.mxu1 %v5999_v6  ;;  %9934 = vmatpush3.msra.mxu0 %v6013_v43  ;;  %v5767_v7 = vpop.xlane.xlu1 %5766  ;;  %v10532_v8 = vpop.eup %10531 }
 0xd5f   :  { %9897 = vmatprep.subr.mxu1 %v5998_v61  ;;  %9935 = vmatprep.subr.mxu0 %v6012_v57  ;;  %10547 = vrcp.f32 %v5767_v7  ;;  %v10534_v20 = vpop.eup %10533  ;;  %v5930_v47 = vmul.f32 %v10532_v8, %v14003_v32 }
 0xd60   :  { %9898 = vmatpush3.msra.mxu1 %v5998_v61  ;;  %9936 = vmatpush3.msra.mxu0 %v6012_v57  ;;  %v5764_v14 = vpop.xlane.xlu0 %5763  ;;  %v5931_v40 = vmul.f32 %v10534_v20, %v13998_v56 }
 0xd61   :  { %9867 = vmatprep.mubr.msk.f32.mxu0 %vm1743_vm1, %v5940_v49  ;;  %9899 = vmatprep.subr.mxu1 %v5997_v25  ;;  %10549 = vrcp.f32 %v5764_v14 }
 0xd62   :  { %v10536_v60 = vpop.eup %10535  ;;  %9937 = vmatprep.subr.mxu0 %v6011_v59  ;;  %9868 = vmatmul.mubr.msk.f32.gmra.mxu0 %vm1743_vm1, %v5941_v3  ;;  %v5803_v21 = vpop.xlane.xlu1 %5802 }
 0xd63   :  { %9900 = vmatpush3.msra.mxu1 %v5997_v25  ;;  %9938 = vmatpush3.msra.mxu0 %v6011_v59  ;;  %v10538_v34 = vpop.eup %10537  ;;  %10551 = vrcp.f32 %v5803_v21  ;;  %v5942_v48 = vmul.f32 %v10536_v60, %v14013_v41 }
 0xd64   :  { %9901 = vmatprep.subr.mxu1 %v5996_v46  ;;  %9939 = vmatprep.subr.mxu0 %v6010_v30  ;;  %v5800_v6 = vpop.xlane.xlu0 %5799  ;;  %v10540_v43 = vpop.eup %10539  ;;  %v5943_v56 = vmul.f32 %v10538_v34, %v14008_v27 }
 0xd65   :  { %9902 = vmatpush3.msra.mxu1 %v5996_v46  ;;  %9940 = vmatpush3.msra.mxu0 %v6010_v30  ;;  %10553 = vrcp.f32 %v5800_v6  ;;  %v5933_v63 = vmul.f32 %v10540_v43, %v14018_v28 }
 0xd66   :  { %v10542_v32 = vpop.eup %10541  ;;  %9828 = vmatprep.mubr.msk.f32.mxu1 %vm1743_vm1, %v5930_v47  ;;  %9941 = vmatprep.subr.mxu0 %v6009_v19 }
 0xd67   :  { %v5809_v33 = vpop.xlane.xlu1 %5808  ;;  %9829 = vmatmul.mubr.msk.f32.gmra.mxu1 %vm1743_vm1, %v5931_v40  ;;  %9942 = vmatpush3.msra.mxu0 %v6009_v19  ;;  %v5932_v54 = vmul.f32 %v10542_v32, %v14023_v52 }
 0xd68   :  { %9943 = vmatprep.subr.mxu0 %v6008_v42  ;;  %9870 = vmatprep.mubr.msk.f32.mxu0 %vm1743_vm1, %v5942_v48  ;;  %10555 = vrcp.f32 %v5809_v33  ;;  %v10544_v38 = vpop.eup %10543 }
 0xd69   :  { %v5806_v41 = vpop.xlane.xlu0 %5805  ;;  %9944 = vmatpush3.msra.mxu0 %v6008_v42  ;;  %9831 = vmatprep.mubr.msk.f32.mxu1 %vm1743_vm1, %v5932_v54  ;;  %v5945_v27 = vmul.f32 %v10544_v38, %v14028_v44 }
 0xd6a   :  { %10557 = vrcp.f32 %v5806_v41  ;;  %v10546_v61 = vpop.eup %10545  ;;  %9871 = vmatmul.mubr.msk.f32.gmra.mxu0 %vm1743_vm1, %v5943_v56 }
 0xd6b   :  { %v5845_v57 = vpop.xlane.xlu1 %5844  ;;  %9832 = vmatmul.mubr.msk.f32.gmra.mxu1 %vm1743_vm1, %v5933_v63  ;;  %v5944_v52 = vmul.f32 %v10546_v61, %v14033_v53 }
 0xd6c   :  { %10559 = vrcp.f32 %v5845_v57  ;;  %v10548_v7 = vpop.eup %10547 }
 0xd6d   :  { %v5842_v49 = vpop.xlane.xlu0 %5841  ;;  %9873 = vmatprep.mubr.msk.f32.mxu0 %vm1743_vm1, %v5944_v52  ;;  %v5935_v59 = vmul.f32 %v10548_v7, %v14038_v39 }
 0xd6e   :  { %10561 = vrcp.f32 %v5842_v49  ;;  %v10550_v8 = vpop.eup %10549  ;;  %9874 = vmatmul.mubr.msk.f32.gmra.mxu0 %vm1743_vm1, %v5945_v27 }
 0xd6f   :  { %v5815_v29 = vpop.xlane.xlu1 %5814  ;;  %v5934_v28 = vmul.f32 %v10550_v8, %v14043_v31 }
 0xd70   :  { %10563 = vrcp.f32 %v5815_v29  ;;  %v10552_v3 = vpop.eup %10551 }
 0xd71   :  { %v5812_v25 = vpop.xlane.xlu0 %5811  ;;  %9834 = vmatprep.mubr.msk.f32.mxu1 %vm1743_vm1, %v5934_v28  ;;  %v5947_v60 = vmul.f32 %v10552_v3, %v14048_v51 }
 0xd72   :  { %10565 = vrcp.f32 %v5812_v25  ;;  %v10554_v53 = vpop.eup %10553  ;;  %9835 = vmatmul.mubr.msk.f32.gmra.mxu1 %vm1743_vm1, %v5935_v59 }
 0xd73   :  { %v5851_v44 = vpop.xlane.xlu1 %5850  ;;  %v5946_v14 = vmul.f32 %v10554_v53, %v14053_v26 }
 0xd74   :  { %10567 = vrcp.f32 %v5851_v44 }
 0xd75   :  { %v5848_v20 = vpop.xlane.xlu0 %5847  ;;  %v10556_v5 = vpop.eup %10555  ;;  %9876 = vmatprep.mubr.msk.f32.mxu0 %vm1743_vm1, %v5946_v14 }
 0xd76   :  { %10569 = vrcp.f32 %v5848_v20  ;;  %9877 = vmatmul.mubr.msk.f32.gmra.mxu0 %vm1743_vm1, %v5947_v60  ;;  %v5949_v30 = vmul.f32 %v10556_v5, %v14058_v12 }
 0xd77   :  { %v10558_v31 = vpop.eup %10557  ;;  %v5821_v39 = vpop.xlane.xlu1 %5820 }
 0xd78   :  { %v5948_v46 = vmul.f32 %v10558_v31, %v14063_v9  ;;  %10571 = vrcp.f32 %v5821_v39 }
 0xd79   :  { %v5818_v47 = vpop.xlane.xlu0 %5817  ;;  %v10560_v21 = vpop.eup %10559 }
 0xd7a   :  { %10573 = vrcp.f32 %v5818_v47  ;;  %9903 = vmatprep.mubr.msk.f32.mxu1 %vm1743_vm1, %v5948_v46  ;;  %v5961_v19 = vmul.f32 %v10560_v21, %v14068_v58 }
 0xd7b   :  { %v10562_v26 = vpop.eup %10561  ;;  %v5857_v51 = vpop.xlane.xlu1 %5856  ;;  %9904 = vmatmul.mubr.msk.f32.vlgmr.msra.gmra.mxu1 %vm1743_vm1, %v5949_v30 }
 0xd7c   :  { %v5960_v34 = vmul.f32 %v10562_v26, %v14073_v2  ;;  %10575 = vrcp.f32 %v5857_v51 }
 0xd7d   :  { %v5854_v6 = vpop.xlane.xlu0 %5853  ;;  %v10564_v48 = vpop.eup %10563 }
 0xd7e   :  { %10577 = vrcp.f32 %v5854_v6  ;;  %9945 = vmatprep.mubr.msk.f32.mxu0 %vm1743_vm1, %v5960_v34  ;;  %v5951_v32 = vmul.f32 %v10564_v48, %v14078_v37 }
 0xd7f   :  { %v10566_v12 = vpop.eup %10565  ;;  %v5827_v9 = vpop.xlane.xlu1 %5826  ;;  %9946 = vmatmul.mubr.msk.f32.vlgmr.msra.gmra.mxu0 %vm1743_vm1, %v5961_v19 }
 0xd80   :  { %v5950_v43 = vmul.f32 %v10566_v12, %v14083_v1  ;;  %10579 = vrcp.f32 %v5827_v9 }
 0xd81   :  { %v5824_v40 = vpop.xlane.xlu0 %5823  ;;  %v10568_v42 = vpop.eup %10567 }
 0xd82   :  { %10581 = vrcp.f32 %v5824_v40  ;;  %9906 = vmatprep.mubr.msk.f32.mxu1 %vm1743_vm1, %v5950_v43  ;;  %v5963_v56 = vmul.f32 %v10568_v42, %v14088_v23 }
 0xd83   :  { %v10570_v58 = vpop.eup %10569  ;;  %v5863_v2 = vpop.xlane.xlu1 %5862  ;;  %9907 = vmatmul.mubr.msk.f32.gmra.mxu1 %vm1743_vm1, %v5951_v32 }
 0xd84   :  { %v5962_v33 = vmul.f32 %v10570_v58, %v14093_v17  ;;  %10583 = vrcp.f32 %v5863_v2 }
 0xd85   :  { %v5860_v54 = vpop.xlane.xlu0 %5859  ;;  %v10572_v41 = vpop.eup %10571 }
 0xd86   :  { %10585 = vrcp.f32 %v5860_v54  ;;  %9948 = vmatprep.mubr.msk.f32.mxu0 %vm1743_vm1, %v5962_v33  ;;  %v5953_v61 = vmul.f32 %v10572_v41, %v14098_v16 }
 0xd87   :  { %v10574_v1 = vpop.eup %10573  ;;  %v5833_v37 = vpop.xlane.xlu1 %5832  ;;  %9949 = vmatmul.mubr.msk.f32.gmra.mxu0 %vm1743_vm1, %v5963_v56 }
 0xd88   :  { %v5952_v38 = vmul.f32 %v10574_v1, %v14103_v62  ;;  %10587 = vrcp.f32 %v5833_v37 }
 0xd89   :  { %v5830_v63 = vpop.xlane.xlu0 %5829  ;;  %v10576_v57 = vpop.eup %10575 }
 0xd8a   :  { %10589 = vrcp.f32 %v5830_v63  ;;  %9909 = vmatprep.mubr.msk.f32.mxu1 %vm1743_vm1, %v5952_v38  ;;  %v5965_v27 = vmul.f32 %v10576_v57, %v14108_v11 }
 0xd8b   :  { %v10578_v17 = vpop.eup %10577  ;;  %v5869_v23 = vpop.xlane.xlu1 %5868  ;;  %9910 = vmatmul.mubr.msk.f32.gmra.mxu1 %vm1743_vm1, %v5953_v61 }
 0xd8c   :  { %v5964_v52 = vmul.f32 %v10578_v17, %v14113_v15  ;;  %10591 = vrcp.f32 %v5869_v23 }
 0xd8d   :  { %v5866_v49 = vpop.xlane.xlu0 %5865  ;;  %v10580_v7 = vpop.eup %10579 }
 0xd8e   :  { %10593 = vrcp.f32 %v5866_v49  ;;  %9951 = vmatprep.mubr.msk.f32.mxu0 %vm1743_vm1, %v5964_v52  ;;  %v5955_v28 = vmul.f32 %v10580_v7, %v14118_v13 }
 0xd8f   :  { %v10582_v62 = vpop.eup %10581  ;;  %v5839_v16 = vpop.xlane.xlu1 %5838  ;;  %9952 = vmatmul.mubr.msk.f32.gmra.mxu0 %vm1743_vm1, %v5965_v27 }
 0xd90   :  { %v5954_v8 = vmul.f32 %v10582_v62, %v14123_v55  ;;  %10595 = vrcp.f32 %v5839_v16 }
 0xd91   :  { %v5836_v29 = vpop.xlane.xlu0 %5835  ;;  %v10584_v25 = vpop.eup %10583 }
 0xd92   :  { %10597 = vrcp.f32 %v5836_v29  ;;  %9912 = vmatprep.mubr.msk.f32.mxu1 %vm1743_vm1, %v5954_v8  ;;  %v5967_v53 = vmul.f32 %v10584_v25, %v14128_v4 }
 0xd93   :  { %v10586_v15 = vpop.eup %10585  ;;  %v5875_v11 = vpop.xlane.xlu1 %5874  ;;  %9913 = vmatmul.mubr.msk.f32.gmra.mxu1 %vm1743_vm1, %v5955_v28 }
 0xd94   :  { %v5966_v59 = vmul.f32 %v10586_v15, %v14133_v36  ;;  %10599 = vrcp.f32 %v5875_v11 }
 0xd95   :  { %v5872_v3 = vpop.xlane.xlu0 %5871  ;;  %v10588_v44 = vpop.eup %10587 }
 0xd96   :  { %10601 = vrcp.f32 %v5872_v3  ;;  %9954 = vmatprep.mubr.msk.f32.mxu0 %vm1743_vm1, %v5966_v59  ;;  %v5957_v14 = vmul.f32 %v10588_v44, %v14137_v50 }
 0xd97   :  { %v10590_v55 = vpop.eup %10589  ;;  %9955 = vmatmul.mubr.msk.f32.gmra.mxu0 %vm1743_vm1, %v5967_v53 }
 0xd98   :  { %v5956_v13 = vmul.f32 %v10590_v55, %v14141_v45 }
 0xd99   :  { %v10592_v20 = vpop.eup %10591 }
 0xd9a   :  { %9915 = vmatprep.mubr.msk.f32.mxu1 %vm1743_vm1, %v5956_v13  ;;  %v5969_v4 = vmul.f32 %v10592_v20, %v14145_v10 }
 0xd9b   :  { %v10594_v60 = vpop.eup %10593  ;;  %9916 = vmatmul.mubr.msk.f32.gmra.mxu1 %vm1743_vm1, %v5957_v14 }
 0xd9c   :  { %v5968_v36 = vmul.f32 %v10594_v60, %v14149_v35 }
 0xd9d   :  { %v10596_v5 = vpop.eup %10595 }
 0xd9e   :  { %9957 = vmatprep.mubr.msk.f32.mxu0 %vm1743_vm1, %v5968_v36  ;;  %v5959_v50 = vmul.f32 %v10596_v5, %v14153_v24  ;;  %v8335_v24 = vld [vmem:[%s14908_s11 + $0x30] sm:$0xff] }
 0xd9f   :  { %v10598_v31 = vpop.eup %10597  ;;  %9958 = vmatmul.mubr.msk.f32.gmra.mxu0 %vm1743_vm1, %v5969_v4 }
 0xda0   :  { %v5958_v45 = vmul.f32 %v10598_v31, %v14157_v22  ;;  %v8336_v22 = vld [vmem:[%s14908_s11 + $0x38] sm:$0xff] }
 0xda1   :  { %v10600_v39 = vpop.eup %10599  ;;  %9963 = vmatprep.subr.mxu1 %v8336_v22 }
 0xda2   :  { %9918 = vmatprep.mubr.msk.f32.mxu1 %vm1743_vm1, %v5958_v45  ;;  %v5971_v10 = vmul.f32 %v10600_v39, %v14161_v18  ;;  %9964 = vmatpush3.msra.mxu1 %v8336_v22  ;;  %v8334_v18 = vld [vmem:[%s14908_s11 + $0x28] sm:$0xff] }
 0xda3   :  { %v10602_v46 = vpop.eup %10601  ;;  %9919 = vmatmul.mubr.msk.f32.gmra.mxu1 %vm1743_vm1, %v5959_v50  ;;  %9965 = vmatprep.subr.mxu1 %v8335_v24 }
 0xda4   :  { %v5970_v35 = vmul.f32 %v10602_v46, %v14165_v0  ;;  %9966 = vmatpush3.msra.mxu1 %v8335_v24  ;;  %v8333_v0 = vld [vmem:[%s14908_s11 + $0x20] sm:$0xff] }
 0xda5   :  { %9967 = vmatprep.subr.mxu1 %v8334_v18 }
 0xda6   :  { %9960 = vmatprep.mubr.msk.f32.mxu0 %vm1743_vm1, %v5970_v35  ;;  %9968 = vmatpush3.msra.mxu1 %v8334_v18 }
 0xda7   :  { %9961 = vmatmul.mubr.msk.f32.gmra.mxu0 %vm1743_vm1, %v5971_v10  ;;  %9969 = vmatprep.subr.mxu1 %v8333_v0 }
 0xda8   :  { %9970 = vmatpush3.msra.mxu1 %v8333_v0 }
 0xe0a   :  { %v9821_v30 = vpop.f32.mrf.mxu1 }
 0xe0c   :  { %v6122_v47 = vpop.f32.mrf.mxu1 }
 0xe0e   :  { %v9863_v21 = vpop.f32.mrf.mxu0 }
 0xe0f   :  { %v6665_v17 = vadd.f32 %v9863_v21, %v9821_v30 }
 0xe10   :  { %v6283_v51 = vpop.f32.mrf.mxu0 }
 0xe11   :  { %v6664_v57 = vadd.f32 %v6283_v51, %v6122_v47 }
 0xe13   :  { %v9824_v26 = vpop.f32.mrf.mxu1 }
 0xe15   :  { %v6132_v34 = vpop.f32.mrf.mxu1 }
 0xe18   :  { %v9866_v19 = vpop.f32.mrf.mxu0 }
 0xe19   :  { %v6667_v28 = vadd.f32 %v9866_v19, %v9824_v26 }
 0xe1a   :  { %v6293_v48 = vpop.f32.mrf.mxu0 }
 0xe1b   :  { %v6666_v29 = vadd.f32 %v6293_v48, %v6132_v34 }
 0xe1d   :  { %v9827_v6 = vpop.f32.mrf.mxu1 }
 0xe1f   :  { %v6142_v12 = vpop.f32.mrf.mxu1 }
 0xe22   :  { %v9869_v9 = vpop.f32.mrf.mxu0 }
 0xe23   :  { %v6669_v14 = vadd.f32 %v9869_v9, %v9827_v6 }
 0xe24   :  { %v6303_v40 = vpop.f32.mrf.mxu0 }
 0xe25   :  { %v6668_v13 = vadd.f32 %v6303_v40, %v6142_v12 }
 0xe27   :  { %v9830_v43 = vpop.f32.mrf.mxu1 }
 0xe29   :  { %v6152_v32 = vpop.f32.mrf.mxu1 }
 0xe2a   :  { %v9872_v42 = vpop.f32.mrf.mxu0 }
 0xe2b   :  { %v9833_v58 = vpop.f32.mrf.mxu1  ;;  %v6671_v46 = vadd.f32 %v9872_v42, %v9830_v43 }
 0xe2c   :  { %v6313_v2 = vpop.f32.mrf.mxu0 }
 0xe2d   :  { %v6162_v33 = vpop.f32.mrf.mxu1  ;;  %v6670_v39 = vadd.f32 %v6313_v2, %v6152_v32 }
 0xe2e   :  { %v9875_v54 = vpop.f32.mrf.mxu0 }
 0xe2f   :  { %v6673_v26 = vadd.f32 %v9875_v54, %v9833_v58 }
 0xe30   :  { %v6323_v41 = vpop.f32.mrf.mxu0 }
 0xe31   :  { %v6672_v21 = vadd.f32 %v6323_v41, %v6162_v33 }
 0xe32   :  { %v14333_v56 = vpop.f32.mrf.mxu1 }
 0xe34   :  { %v14335_v1 = vpop.f32.mrf.mxu1 }
 0xe36   :  { %v14337_v37 = vpop.f32.mrf.mxu0 }
 0xe37   :  { %v6675_v32 = vadd.f32 %v14337_v37, %v14333_v56  ;;  %v15052_v56 = vld [vmem:[#allocation3_spill] sm:$0xff] }
 0xe38   :  { %v6333_v63 = vpop.f32.mrf.mxu0 }
 0xe39   :  { %v6674_v40 = vadd.f32 %v6333_v63, %v14335_v1 }
 0xe3b   :  { %v9905_v38 = vpop.f32.mrf.mxu1 }
 0xe3c   :  { %v6677_v49 = vadd.f32 %v9905_v38, %v6665_v17 }
 0xe3d   :  { %v6444_v61 = vpop.f32.mrf.mxu1 }
 0xe3e   :  { %v6676_v52 = vadd.f32 %v6664_v57, %v6444_v61  ;;  %v8350_v61 = vld [vmem:[%s14909_s12 + $0x1] ss:$0 sm:$0xff] }
 0xe3f   :  { %v9947_v23 = vpop.f32.mrf.mxu0  ;;  %v15051_v57 = vld [vmem:[#allocation2_spill] sm:$0xff] }
 0xe40   :  { %v6689_v62 = vadd.f32 %v9947_v23, %v6677_v49 }
 0xe41   :  { %v6605_v27 = vpop.f32.mrf.mxu0 }
 0xe42   :  { %v6688_v7 = vadd.f32 %v6676_v52, %v6605_v27 }
 0xe43   :  { %v9908_v16 = vpop.f32.mrf.mxu1 }
 0xe44   :  { %9971 = vmatprep.mubr.msk.f32.mxu1 %vm101_vm0, %v6688_v7  ;;  %v6679_v11 = vadd.f32 %v9908_v16, %v6667_v28  ;;  %v15053_v7 = vld [vmem:[#allocation12_spill] sm:$0xff] }
 0xe45   :  { %v6454_v8 = vpop.f32.mrf.mxu1  ;;  %9972 = vmatmul.mubr.msk.f32.vlgmr.msra.gmra.mxu1 %vm101_vm0, %v6689_v62 }
 0xe46   :  { %v6678_v15 = vadd.f32 %v6666_v29, %v6454_v8  ;;  %v15054_v29 = vld [vmem:[#allocation4_spill] sm:$0xff] }
 0xe47   :  { %v9950_v25 = vpop.f32.mrf.mxu0 }
 0xe48   :  { %v6691_v53 = vadd.f32 %v9950_v25, %v6679_v11 }
 0xe49   :  { %v6615_v59 = vpop.f32.mrf.mxu0 }
 0xe4a   :  { %v6690_v3 = vadd.f32 %v6678_v15, %v6615_v59 }
 0xe4b   :  { %v9911_v44 = vpop.f32.mrf.mxu1 }
 0xe4c   :  { %9974 = vmatprep.mubr.msk.f32.mxu1 %vm101_vm0, %v6690_v3  ;;  %v6681_v36 = vadd.f32 %v9911_v44, %v6669_v14  ;;  %v15055_v3 = vld [vmem:[#allocation5_spill] sm:$0xff] }
 0xe4d   :  { %v6464_v55 = vpop.f32.mrf.mxu1  ;;  %9975 = vmatmul.mubr.msk.f32.gmra.mxu1 %vm101_vm0, %v6691_v53 }
 0xe4e   :  { %v6680_v60 = vadd.f32 %v6668_v13, %v6464_v55  ;;  %v15056_v13 = vld [vmem:[#allocation6_spill] sm:$0xff] }
 0xe4f   :  { %v9953_v20 = vpop.f32.mrf.mxu0 }
 0xe50   :  { %v6693_v31 = vadd.f32 %v9953_v20, %v6681_v36 }
 0xe51   :  { %v6625_v4 = vpop.f32.mrf.mxu0 }
 0xe52   :  { %v6692_v5 = vadd.f32 %v6680_v60, %v6625_v4 }
 0xe53   :  { %v9914_v45 = vpop.f32.mrf.mxu1 }
 0xe54   :  { %9977 = vmatprep.mubr.msk.f32.mxu1 %vm101_vm0, %v6692_v5  ;;  %v6683_v22 = vadd.f32 %v9914_v45, %v6671_v46  ;;  %v15057_v5 = vld [vmem:[#allocation7_spill] sm:$0xff] }
 0xe55   :  { %v6474_v50 = vpop.f32.mrf.mxu1  ;;  %9978 = vmatmul.mubr.msk.f32.gmra.mxu1 %vm101_vm0, %v6693_v31 }
 0xe56   :  { %v6682_v10 = vadd.f32 %v6670_v39, %v6474_v50  ;;  %v15058_v39 = vld [vmem:[#allocation8_spill] sm:$0xff] }
 0xe57   :  { %v9956_v35 = vpop.f32.mrf.mxu0 }
 0xe58   :  { %v6695_v0 = vadd.f32 %v9956_v35, %v6683_v22 }
 0xe59   :  { %v6635_v24 = vpop.f32.mrf.mxu0 }
 0xe5a   :  { %v6694_v18 = vadd.f32 %v6682_v10, %v6635_v24 }
 0xe5b   :  { %v9917_v30 = vpop.f32.mrf.mxu1 }
 0xe5c   :  { %9980 = vmatprep.mubr.msk.f32.mxu1 %vm101_vm0, %v6694_v18  ;;  %v6685_v19 = vadd.f32 %v9917_v30, %v6673_v26  ;;  %v15059_v18 = vld [vmem:[#allocation9_spill] sm:$0xff] }
 0xe5d   :  { %v6484_v47 = vpop.f32.mrf.mxu1  ;;  %9981 = vmatmul.mubr.msk.f32.gmra.mxu1 %vm101_vm0, %v6695_v0 }
 0xe5e   :  { %v6684_v34 = vadd.f32 %v6672_v21, %v6484_v47  ;;  %v15060_v21 = vld [vmem:[#allocation10_spill] sm:$0xff] }
 0xe5f   :  { %v9959_v51 = vpop.f32.mrf.mxu0 }
 0xe60   :  { %v6697_v12 = vadd.f32 %v9959_v51, %v6685_v19 }
 0xe61   :  { %v6645_v6 = vpop.f32.mrf.mxu0 }
 0xe62   :  { %v6696_v48 = vadd.f32 %v6684_v34, %v6645_v6 }
 0xe63   :  { %v9920_v9 = vpop.f32.mrf.mxu1 }
 0xe64   :  { %9983 = vmatprep.mubr.msk.f32.mxu1 %vm101_vm0, %v6696_v48  ;;  %v6687_v58 = vadd.f32 %v9920_v9, %v6675_v32  ;;  %v15061_v48 = vld [vmem:[#allocation11_spill] sm:$0xff] }
 0xe65   :  { %v6494_v43 = vpop.f32.mrf.mxu1  ;;  %9984 = vmatmul.mubr.msk.f32.gmra.mxu1 %vm101_vm0, %v6697_v12 }
 0xe66   :  { %v6686_v2 = vadd.f32 %v6674_v40, %v6494_v43  ;;  %v15062_v40 = vld [vmem:[#allocation13_spill] sm:$0xff] }
 0xe67   :  { %v9962_v42 = vpop.f32.mrf.mxu0 }
 0xe68   :  { %v6699_v41 = vadd.f32 %v9962_v42, %v6687_v58 }
 0xe69   :  { %v6655_v33 = vpop.f32.mrf.mxu0 }
 0xe6a   :  { %v6698_v54 = vadd.f32 %v6686_v2, %v6655_v33 }
 0xe6c   :  { %9986 = vmatprep.mubr.msk.f32.mxu1 %vm101_vm0, %v6698_v54 }
 0xe6d   :  { %9987 = vmatmul.mubr.msk.f32.gmra.mxu1 %vm101_vm0, %v6699_v41 }
 0xf05   :  { %v9973_v38 = vpop.f32.mrf.mxu1 }
 0xf06   :  { %v6867_v1 = vadd.f32 %v9973_v38, %v15051_v57 }
 0xf07   :  { %v6807_v63 = vpop.f32.mrf.mxu1 }
 0xf08   :  { %v14358_v17 = vadd.f32 %v8350_v61, %v6867_v1  ;;  %v6866_v37 = vadd.f32 %v6807_v63, %v15052_v56 }
 0xf0a   :  { %v14361_v23 = vadd.f32 %v8350_v61, %v6866_v37  ;;  %v6905_v52 = vsel %vm101_vm0, %v14358_v17, 0.0 }
 0xf0b   :  { %6906 = vadd.xlane.f32.xlu1 %v6905_v52 }
 0xf0c   :  { %v6902_v49 = vsel %vm101_vm0, %v14361_v23, 0.0 }
 0xf0d   :  { %6903 = vadd.xlane.f32.xlu0 %v6902_v49  ;;  %v9976_v27 = vpop.f32.mrf.mxu1 }
 0xf0e   :  { %v6869_v62 = vadd.f32 %v9976_v27, %v15053_v7 }
 0xf0f   :  { %v6817_v16 = vpop.f32.mrf.mxu1 }
 0xf10   :  { %v14368_v8 = vadd.f32 %v8350_v61, %v6869_v62  ;;  %v6868_v28 = vadd.f32 %v6817_v16, %v15054_v29 }
 0xf12   :  { %v14371_v25 = vadd.f32 %v8350_v61, %v6868_v28  ;;  %v6911_v15 = vsel %vm101_vm0, %v14368_v8, 0.0 }
 0xf13   :  { %6912 = vadd.xlane.f32.xlu1 %v6911_v15 }
 0xf14   :  { %v6908_v11 = vsel %vm101_vm0, %v14371_v25, 0.0 }
 0xf15   :  { %6909 = vadd.xlane.f32.xlu0 %v6908_v11  ;;  %v9979_v59 = vpop.f32.mrf.mxu1 }
 0xf16   :  { %v6871_v53 = vadd.f32 %v9979_v59, %v15055_v3 }
 0xf17   :  { %v6827_v44 = vpop.f32.mrf.mxu1 }
 0xf18   :  { %v14378_v55 = vadd.f32 %v8350_v61, %v6871_v53  ;;  %v6870_v14 = vadd.f32 %v6827_v44, %v15056_v13 }
 0xf1a   :  { %v14381_v20 = vadd.f32 %v8350_v61, %v6870_v14  ;;  %v6917_v60 = vsel %vm101_vm0, %v14378_v55, 0.0 }
 0xf1b   :  { %6918 = vadd.xlane.f32.xlu1 %v6917_v60 }
 0xf1c   :  { %v6914_v36 = vsel %vm101_vm0, %v14381_v20, 0.0 }
 0xf1d   :  { %6915 = vadd.xlane.f32.xlu0 %v6914_v36  ;;  %v9982_v4 = vpop.f32.mrf.mxu1 }
 0xf1e   :  { %v6873_v31 = vadd.f32 %v9982_v4, %v15057_v5 }
 0xf1f   :  { %v6837_v45 = vpop.f32.mrf.mxu1 }
 0xf20   :  { %v14388_v50 = vadd.f32 %v8350_v61, %v6873_v31  ;;  %v6872_v46 = vadd.f32 %v6837_v45, %v15058_v39 }
 0xf22   :  { %v14391_v35 = vadd.f32 %v8350_v61, %v6872_v46  ;;  %v6923_v10 = vsel %vm101_vm0, %v14388_v50, 0.0 }
 0xf23   :  { %6924 = vadd.xlane.f32.xlu1 %v6923_v10 }
 0xf24   :  { %v6920_v22 = vsel %vm101_vm0, %v14391_v35, 0.0 }
 0xf25   :  { %6921 = vadd.xlane.f32.xlu0 %v6920_v22  ;;  %v9985_v24 = vpop.f32.mrf.mxu1 }
 0xf26   :  { %v6875_v0 = vadd.f32 %v9985_v24, %v15059_v18 }
 0xf27   :  { %v6847_v30 = vpop.f32.mrf.mxu1 }
 0xf28   :  { %v14398_v47 = vadd.f32 %v8350_v61, %v6875_v0  ;;  %v6874_v26 = vadd.f32 %v6847_v30, %v15060_v21 }
 0xf2a   :  { %v14401_v51 = vadd.f32 %v8350_v61, %v6874_v26  ;;  %v6929_v34 = vsel %vm101_vm0, %v14398_v47, 0.0 }
 0xf2b   :  { %6930 = vadd.xlane.f32.xlu1 %v6929_v34 }
 0xf2c   :  { %v6926_v19 = vsel %vm101_vm0, %v14401_v51, 0.0 }
 0xf2d   :  { %6927 = vadd.xlane.f32.xlu0 %v6926_v19  ;;  %v9988_v6 = vpop.f32.mrf.mxu1 }
 0xf2e   :  { %v6877_v12 = vadd.f32 %v9988_v6, %v15061_v48 }
 0xf2f   :  { %v6857_v9 = vpop.f32.mrf.mxu1 }
 0xf30   :  { %v14408_v43 = vadd.f32 %v8350_v61, %v6877_v12  ;;  %v6876_v32 = vadd.f32 %v6857_v9, %v15062_v40 }
 0xf32   :  { %v14411_v42 = vadd.f32 %v8350_v61, %v6876_v32  ;;  %v6935_v2 = vsel %vm101_vm0, %v14408_v43, 0.0 }
 0xf33   :  { %6936 = vadd.xlane.f32.xlu1 %v6935_v2 }
 0xf34   :  { %v6932_v58 = vsel %vm101_vm0, %v14411_v42, 0.0 }
 0xf35   :  { %6933 = vadd.xlane.f32.xlu0 %v6932_v58 }
 0xf94   :  { %v6907_v33 = vpop.xlane.xlu1 %6906 }
 0xf95   :  { %v6939_v54 = vmul.f32 0.03125, %v6907_v33 }
 0xf96   :  { %v6904_v41 = vpop.xlane.xlu0 %6903 }
 0xf97   :  { %v14418_v38 = vsub.f32 %v14358_v17, %v6939_v54  ;;  %v6938_v57 = vmul.f32 0.03125, %v6904_v41 }
 0xf99   :  { %v14421_v1 = vsub.f32 %v14361_v23, %v6938_v57  ;;  %v6963_v61 = vmul.f32 %v14418_v38, %v14418_v38 }
 0xf9b   :  { %v6977_v63 = vsel %vm101_vm0, %v6963_v61, 0.0  ;;  %v6962_v56 = vmul.f32 %v14421_v1, %v14421_v1 }
 0xf9c   :  { %v6913_v37 = vpop.xlane.xlu1 %6912  ;;  %6978 = vadd.xlane.f32.xlu1 %v6977_v63 }
 0xf9d   :  { %v6941_v52 = vmul.f32 0.03125, %v6913_v37  ;;  %v6974_v49 = vsel %vm101_vm0, %v6962_v56, 0.0 }
 0xf9e   :  { %6975 = vadd.xlane.f32.xlu0 %v6974_v49  ;;  %v6910_v27 = vpop.xlane.xlu0 %6909  ;;  %v8357_v49 = vld [vmem:[%s14910_s15 + $0x30] sm:$0xff] }
 0xf9f   :  { %v14430_v7 = vsub.f32 %v14368_v8, %v6941_v52  ;;  %v6940_v62 = vmul.f32 0.03125, %v6910_v27  ;;  %v8358_v52 = vld [vmem:[%s14910_s15 + $0x38] sm:$0xff]  ;;  %v8356_v27 = vld [vmem:[%s14910_s15 + $0x28] sm:$0xff] }
 0xfa0   :  { %9989 = vmatprep.subr.mxu0 %v8358_v52 }
 0xfa1   :  { %v14433_v16 = vsub.f32 %v14371_v25, %v6940_v62  ;;  %v6965_v29 = vmul.f32 %v14430_v7, %v14430_v7  ;;  %9990 = vmatpush3.msra.mxu0 %v8358_v52  ;;  %v8355_v62 = vld [vmem:[%s14910_s15 + $0x20] sm:$0xff] }
 0xfa2   :  { %9991 = vmatprep.subr.mxu0 %v8357_v49 }
 0xfa3   :  { %v6983_v28 = vsel %vm101_vm0, %v6965_v29, 0.0  ;;  %v6964_v15 = vmul.f32 %v14433_v16, %v14433_v16  ;;  %9992 = vmatpush3.msra.mxu0 %v8357_v49 }
 0xfa4   :  { %v6919_v11 = vpop.xlane.xlu1 %6918  ;;  %6984 = vadd.xlane.f32.xlu1 %v6983_v28  ;;  %9993 = vmatprep.subr.mxu0 %v8356_v27 }
 0xfa5   :  { %v6943_v59 = vmul.f32 0.03125, %v6919_v11  ;;  %v6980_v3 = vsel %vm101_vm0, %v6964_v15, 0.0  ;;  %9994 = vmatpush3.msra.mxu0 %v8356_v27 }
 0xfa6   :  { %6981 = vadd.xlane.f32.xlu0 %v6980_v3  ;;  %v6916_v53 = vpop.xlane.xlu0 %6915  ;;  %9995 = vmatprep.subr.mxu0 %v8355_v62 }
 0xfa7   :  { %v14442_v44 = vsub.f32 %v14378_v55, %v6943_v59  ;;  %v6942_v13 = vmul.f32 0.03125, %v6916_v53  ;;  %9996 = vmatpush3.msra.mxu0 %v8355_v62 }
 0xfa9   :  { %v14445_v14 = vsub.f32 %v14381_v20, %v6942_v13  ;;  %v6967_v60 = vmul.f32 %v14442_v44, %v14442_v44 }
 0xfab   :  { %v6989_v36 = vsel %vm101_vm0, %v6967_v60, 0.0  ;;  %v6966_v4 = vmul.f32 %v14445_v14, %v14445_v14 }
 0xfac   :  { %v6925_v5 = vpop.xlane.xlu1 %6924  ;;  %6990 = vadd.xlane.f32.xlu1 %v6989_v36 }
 0xfad   :  { %v6945_v31 = vmul.f32 0.03125, %v6925_v5  ;;  %v6986_v45 = vsel %vm101_vm0, %v6966_v4, 0.0 }
 0xfae   :  { %6987 = vadd.xlane.f32.xlu0 %v6986_v45  ;;  %v6922_v39 = vpop.xlane.xlu0 %6921 }
 0xfaf   :  { %v14454_v46 = vsub.f32 %v14388_v50, %v6945_v31  ;;  %v6944_v10 = vmul.f32 0.03125, %v6922_v39 }
 0xfb1   :  { %v14457_v22 = vsub.f32 %v14391_v35, %v6944_v10  ;;  %v6969_v24 = vmul.f32 %v14454_v46, %v14454_v46 }
 0xfb3   :  { %v6995_v18 = vsel %vm101_vm0, %v6969_v24, 0.0  ;;  %v6968_v0 = vmul.f32 %v14457_v22, %v14457_v22  ;;  %v14504_v24 = vld [vmem:[%s14911_s13 + $0x1] ss:$0 sm:$0xff] }
 0xfb4   :  { %v6931_v30 = vpop.xlane.xlu1 %6930  ;;  %6996 = vadd.xlane.f32.xlu1 %v6995_v18 }
 0xfb5   :  { %v6947_v21 = vmul.f32 0.03125, %v6931_v30  ;;  %v6992_v26 = vsel %vm101_vm0, %v6968_v0, 0.0 }
 0xfb6   :  { %6993 = vadd.xlane.f32.xlu0 %v6992_v26  ;;  %v6928_v34 = vpop.xlane.xlu0 %6927 }
 0xfb7   :  { %v14466_v19 = vsub.f32 %v14398_v47, %v6947_v21  ;;  %v6946_v6 = vmul.f32 0.03125, %v6928_v34 }
 0xfb9   :  { %v14469_v48 = vsub.f32 %v14401_v51, %v6946_v6  ;;  %v6971_v12 = vmul.f32 %v14466_v19, %v14466_v19 }
 0xfbb   :  { %v7001_v9 = vsel %vm101_vm0, %v6971_v12, 0.0  ;;  %v6970_v40 = vmul.f32 %v14469_v48, %v14469_v48  ;;  %v14512_v12 = vld [vmem:[%s14912_s14 + $0x1] ss:$0 sm:$0xff] }
 0xfbc   :  { %7002 = vadd.xlane.f32.xlu1 %v7001_v9  ;;  %v6937_v32 = vpop.xlane.xlu1 %6936 }
 0xfbd   :  { %v6949_v2 = vmul.f32 0.03125, %v6937_v32  ;;  %v6998_v58 = vsel %vm101_vm0, %v6970_v40, 0.0 }
 0xfbe   :  { %6999 = vadd.xlane.f32.xlu0 %v6998_v58  ;;  %v6934_v33 = vpop.xlane.xlu0 %6933 }
 0xfbf   :  { %v14478_v54 = vsub.f32 %v14408_v43, %v6949_v2  ;;  %v6948_v41 = vmul.f32 0.03125, %v6934_v33 }
 0xfc1   :  { %v14481_v57 = vsub.f32 %v14411_v42, %v6948_v41  ;;  %v6973_v61 = vmul.f32 %v14478_v54, %v14478_v54 }
 0xfc3   :  { %v7007_v63 = vsel %vm101_vm0, %v6973_v61, 0.0  ;;  %v6972_v56 = vmul.f32 %v14481_v57, %v14481_v57 }
 0xfc4   :  { %7008 = vadd.xlane.f32.xlu1 %v7007_v63 }
 0xfc5   :  { %v7004_v37 = vsel %vm101_vm0, %v6972_v56, 0.0 }
 0xfc6   :  { %7005 = vadd.xlane.f32.xlu0 %v7004_v37 }
0x1025   :  { %v6979_v29 = vpop.xlane.xlu1 %6978 }
0x1026   :  { %v7011_v28 = vmul.f32 0.03125, %v6979_v29 }
0x1027   :  { %v6976_v15 = vpop.xlane.xlu0 %6975 }
0x1028   :  { %v7023_v11 = vadd.f32 1e-05, %v7011_v28  ;;  %v7010_v59 = vmul.f32 0.03125, %v6976_v15 }
0x102a   :  { %10603 = vrsqrt.f32 %v7023_v11  ;;  %v7022_v3 = vadd.f32 1e-05, %v7010_v59 }
0x102c   :  { %10605 = vrsqrt.f32 %v7022_v3 }
0x102d   :  { %v6985_v53 = vpop.xlane.xlu1 %6984 }
0x102e   :  { %v7013_v13 = vmul.f32 0.03125, %v6985_v53 }
0x102f   :  { %v6982_v60 = vpop.xlane.xlu0 %6981 }
0x1030   :  { %v7025_v36 = vadd.f32 1e-05, %v7013_v13  ;;  %v7012_v4 = vmul.f32 0.03125, %v6982_v60 }
0x1032   :  { %10607 = vrsqrt.f32 %v7025_v36  ;;  %v7024_v5 = vadd.f32 1e-05, %v7012_v4 }
0x1034   :  { %10609 = vrsqrt.f32 %v7024_v5 }
0x1035   :  { %v6991_v31 = vpop.xlane.xlu1 %6990 }
0x1036   :  { %v7015_v45 = vmul.f32 0.03125, %v6991_v31 }
0x1037   :  { %v10604_v39 = vpop.eup %10603  ;;  %v6988_v10 = vpop.xlane.xlu0 %6987 }
0x1038   :  { %v7047_v18 = vmul.f32 %v10604_v39, %v14418_v38  ;;  %v7027_v0 = vadd.f32 1e-05, %v7015_v45  ;;  %v7014_v30 = vmul.f32 0.03125, %v6988_v10 }
0x1039   :  { %v10606_v21 = vpop.eup %10605 }
0x103a   :  { %10611 = vrsqrt.f32 %v7027_v0  ;;  %v7026_v26 = vadd.f32 1e-05, %v7014_v30  ;;  %v7046_v34 = vmul.f32 %v10606_v21, %v14421_v1  ;;  %v7065_v6 = vmul.f32 %v14504_v24, %v7047_v18 }
0x103c   :  { %10613 = vrsqrt.f32 %v7026_v26  ;;  %v7064_v9 = vmul.f32 %v14504_v24, %v7046_v34  ;;  %v7083_v58 = vadd.f32 %v14512_v12, %v7065_v6 }
0x103d   :  { %v6997_v40 = vpop.xlane.xlu1 %6996 }
0x103e   :  { %v7017_v32 = vmul.f32 0.03125, %v6997_v40  ;;  %v7082_v38 = vadd.f32 %v14512_v12, %v7064_v9 }
0x103f   :  { %v10608_v2 = vpop.eup %10607  ;;  %v6994_v33 = vpop.xlane.xlu0 %6993 }
0x1040   :  { %v7049_v1 = vmul.f32 %v10608_v2, %v14430_v7  ;;  %v7029_v41 = vadd.f32 1e-05, %v7017_v32  ;;  %v7016_v61 = vmul.f32 0.03125, %v6994_v33  ;;  %9997 = vmatprep.mubr.msk.f32.mxu0 %vm101_vm0, %v7082_v38 }
0x1041   :  { %v10610_v63 = vpop.eup %10609  ;;  %9998 = vmatmul.mubr.msk.f32.vlgmr.msra.gmra.mxu0 %vm101_vm0, %v7083_v58 }
0x1042   :  { %10615 = vrsqrt.f32 %v7029_v41  ;;  %v7028_v56 = vadd.f32 1e-05, %v7016_v61  ;;  %v7048_v37 = vmul.f32 %v10610_v63, %v14433_v16  ;;  %v7067_v52 = vmul.f32 %v14504_v24, %v7049_v1 }
0x1044   :  { %10617 = vrsqrt.f32 %v7028_v56  ;;  %v7066_v49 = vmul.f32 %v14504_v24, %v7048_v37  ;;  %v7085_v15 = vadd.f32 %v14512_v12, %v7067_v52  ;;  %v8396_v52 = vld [vmem:[%s14913_s17 + $0xd8] sm:$0xff] }
0x1045   :  { %v7003_v27 = vpop.xlane.xlu1 %7002 }
0x1046   :  { %v7019_v62 = vmul.f32 0.03125, %v7003_v27  ;;  %v7084_v7 = vadd.f32 %v14512_v12, %v7066_v49  ;;  %v8395_v49 = vld [vmem:[%s14913_s17 + $0xd0] sm:$0xff]  ;;  %v8394_v27 = vld [vmem:[%s14913_s17 + $0xc8] sm:$0xff] }
0x1047   :  { %v10612_v29 = vpop.eup %10611  ;;  %v7000_v28 = vpop.xlane.xlu0 %6999 }
0x1048   :  { %v7051_v11 = vmul.f32 %v10612_v29, %v14442_v44  ;;  %v7031_v59 = vadd.f32 1e-05, %v7019_v62  ;;  %v7018_v3 = vmul.f32 0.03125, %v7000_v28  ;;  %10000 = vmatprep.mubr.msk.f32.mxu0 %vm101_vm0, %v7084_v7  ;;  %v8393_v62 = vld [vmem:[%s14913_s17 + $0xc0] sm:$0xff]  ;;  %v8392_v7 = vld [vmem:[%s14913_s17 + $0xb8] sm:$0xff]  ;;  %v8391_v29 = vld [vmem:[%s14913_s17 + $0xb0] sm:$0xff] }
0x1049   :  { %v10614_v16 = vpop.eup %10613  ;;  %10001 = vmatmul.mubr.msk.f32.gmra.mxu0 %vm101_vm0, %v7085_v15  ;;  %v8390_v28 = vld [vmem:[%s14913_s17 + $0xa8] sm:$0xff]  ;;  %v8389_v15 = vld [vmem:[%s14913_s17 + $0xa0] sm:$0xff] }
0x104a   :  { %10619 = vrsqrt.f32 %v7031_v59  ;;  %v7030_v53 = vadd.f32 1e-05, %v7018_v3  ;;  %v7050_v13 = vmul.f32 %v10614_v16, %v14445_v14  ;;  %v7069_v60 = vmul.f32 %v14504_v24, %v7051_v11  ;;  %v8388_v11 = vld [vmem:[%s14913_s17 + $0x98] sm:$0xff]  ;;  %v8387_v59 = vld [vmem:[%s14913_s17 + $0x90] sm:$0xff]  ;;  %v8386_v3 = vld [vmem:[%s14913_s17 + $0x88] sm:$0xff] }
0x104b   :  { %v8385_v16 = vld [vmem:[%s14913_s17 + $0x80] sm:$0xff] }
0x104c   :  { %10621 = vrsqrt.f32 %v7030_v53  ;;  %v7068_v36 = vmul.f32 %v14504_v24, %v7050_v13  ;;  %v7087_v39 = vadd.f32 %v14512_v12, %v7069_v60  ;;  %v14610_v53 = vld [vmem:[%s14914_s16 + $0x1] ss:$0 sm:$0xff] }
0x104d   :  { %v7009_v4 = vpop.xlane.xlu1 %7008 }
0x104e   :  { %v7021_v5 = vmul.f32 0.03125, %v7009_v4  ;;  %v7086_v44 = vadd.f32 %v14512_v12, %v7068_v36 }
0x104f   :  { %v10616_v31 = vpop.eup %10615  ;;  %v7006_v45 = vpop.xlane.xlu0 %7005 }
0x1050   :  { %v7053_v10 = vmul.f32 %v10616_v31, %v14454_v46  ;;  %v7033_v18 = vadd.f32 1e-05, %v7021_v5  ;;  %v7020_v0 = vmul.f32 0.03125, %v7006_v45  ;;  %10003 = vmatprep.mubr.msk.f32.mxu0 %vm101_vm0, %v7086_v44 }
0x1051   :  { %v10618_v14 = vpop.eup %10617  ;;  %10004 = vmatmul.mubr.msk.f32.gmra.mxu0 %vm101_vm0, %v7087_v39 }
0x1052   :  { %10623 = vrsqrt.f32 %v7033_v18  ;;  %v7032_v30 = vadd.f32 1e-05, %v7020_v0  ;;  %v7052_v21 = vmul.f32 %v10618_v14, %v14457_v22  ;;  %v7071_v26 = vmul.f32 %v14504_v24, %v7053_v10 }
0x1054   :  { %10625 = vrsqrt.f32 %v7032_v30  ;;  %v7070_v34 = vmul.f32 %v14504_v24, %v7052_v21  ;;  %v7089_v46 = vadd.f32 %v14512_v12, %v7071_v26 }
0x1056   :  { %v7088_v6 = vadd.f32 %v14512_v12, %v7070_v34 }
0x1057   :  { %v10620_v9 = vpop.eup %10619 }
0x1058   :  { %v7055_v40 = vmul.f32 %v10620_v9, %v14466_v19  ;;  %10006 = vmatprep.mubr.msk.f32.mxu0 %vm101_vm0, %v7088_v6 }
0x1059   :  { %v10622_v32 = vpop.eup %10621  ;;  %10007 = vmatmul.mubr.msk.f32.gmra.mxu0 %vm101_vm0, %v7089_v46 }
0x105a   :  { %v7054_v38 = vmul.f32 %v10622_v32, %v14469_v48  ;;  %v7073_v22 = vmul.f32 %v14504_v24, %v7055_v40 }
0x105c   :  { %v7072_v2 = vmul.f32 %v14504_v24, %v7054_v38  ;;  %v7091_v1 = vadd.f32 %v14512_v12, %v7073_v22 }
0x105e   :  { %v7090_v58 = vadd.f32 %v14512_v12, %v7072_v2 }
0x105f   :  { %v10624_v33 = vpop.eup %10623 }
0x1060   :  { %v7057_v41 = vmul.f32 %v10624_v33, %v14478_v54  ;;  %10009 = vmatprep.mubr.msk.f32.mxu0 %vm101_vm0, %v7090_v58  ;;  %v8400_v54 = vld [vmem:[%s14913_s17 + $0xf8] sm:$0xff] }
0x1061   :  { %v10626_v19 = vpop.eup %10625  ;;  %10010 = vmatmul.mubr.msk.f32.gmra.mxu0 %vm101_vm0, %v7091_v1  ;;  %10015 = vmatprep.subr.mxu1 %v8400_v54 }
0x1062   :  { %v7056_v61 = vmul.f32 %v10626_v19, %v14481_v57  ;;  %v7075_v48 = vmul.f32 %v14504_v24, %v7057_v41  ;;  %10016 = vmatpush3.msra.mxu1 %v8400_v54  ;;  %v8399_v57 = vld [vmem:[%s14913_s17 + $0xf0] sm:$0xff] }
0x1063   :  { %10017 = vmatprep.subr.mxu1 %v8399_v57 }
0x1064   :  { %v7074_v63 = vmul.f32 %v14504_v24, %v7056_v61  ;;  %v7093_v37 = vadd.f32 %v14512_v12, %v7075_v48  ;;  %10018 = vmatpush3.msra.mxu1 %v8399_v57  ;;  %v8398_v24 = vld [vmem:[%s14913_s17 + $0xe8] sm:$0xff] }
0x1065   :  { %10019 = vmatprep.subr.mxu1 %v8398_v24 }
0x1066   :  { %v7092_v56 = vadd.f32 %v14512_v12, %v7074_v63  ;;  %10020 = vmatpush3.msra.mxu1 %v8398_v24  ;;  %v8397_v12 = vld [vmem:[%s14913_s17 + $0xe0] sm:$0xff] }
0x1067   :  { %10021 = vmatprep.subr.mxu1 %v8397_v12 }
0x1068   :  { %10012 = vmatprep.mubr.msk.f32.mxu0 %vm101_vm0, %v7092_v56  ;;  %10022 = vmatpush3.msra.mxu1 %v8397_v12 }
0x1069   :  { %10013 = vmatmul.mubr.msk.f32.gmra.mxu0 %vm101_vm0, %v7093_v37  ;;  %10023 = vmatprep.subr.mxu1 %v8396_v52 }
0x106a   :  { %10024 = vmatpush3.msra.mxu1 %v8396_v52 }
0x106b   :  { %10025 = vmatprep.subr.mxu1 %v8395_v49 }
0x106c   :  { %10026 = vmatpush3.msra.mxu1 %v8395_v49 }
0x106d   :  { %10027 = vmatprep.subr.mxu1 %v8394_v27 }
0x106e   :  { %10028 = vmatpush3.msra.mxu1 %v8394_v27 }
0x106f   :  { %10029 = vmatprep.subr.mxu1 %v8393_v62 }
0x1070   :  { %10030 = vmatpush3.msra.mxu1 %v8393_v62 }
0x1071   :  { %10031 = vmatprep.subr.mxu1 %v8392_v7 }
0x1072   :  { %10032 = vmatpush3.msra.mxu1 %v8392_v7 }
0x1073   :  { %10033 = vmatprep.subr.mxu1 %v8391_v29 }
0x1074   :  { %10034 = vmatpush3.msra.mxu1 %v8391_v29 }
0x1075   :  { %10035 = vmatprep.subr.mxu1 %v8390_v28 }
0x1076   :  { %10036 = vmatpush3.msra.mxu1 %v8390_v28 }
0x1077   :  { %10037 = vmatprep.subr.mxu1 %v8389_v15 }
0x1078   :  { %10038 = vmatpush3.msra.mxu1 %v8389_v15 }
0x1079   :  { %10039 = vmatprep.subr.mxu1 %v8388_v11 }
0x107a   :  { %10040 = vmatpush3.msra.mxu1 %v8388_v11 }
0x107b   :  { %10041 = vmatprep.subr.mxu1 %v8387_v59 }
0x107c   :  { %10042 = vmatpush3.msra.mxu1 %v8387_v59 }
0x107d   :  { %10043 = vmatprep.subr.mxu1 %v8386_v3 }
0x107e   :  { %10044 = vmatpush3.msra.mxu1 %v8386_v3 }
0x107f   :  { %10045 = vmatprep.subr.mxu1 %v8385_v16 }
0x1080   :  { %10046 = vmatpush3.msra.mxu1 %v8385_v16 }
0x1101   :  { %v9999_v13 = vpop.f32.mrf.mxu0 }
0x1102   :  { %v14613_v60 = vadd.f32 %v9999_v13, %v14610_v53 }
0x1103   :  { %v7209_v36 = vpop.f32.mrf.mxu0 }
0x1104   :  { %v8374_v4 = vmul.f32 -1.702, %v14613_v60  ;;  %v7210_v5 = vadd.f32 %v14610_v53, %v7209_v36 }
0x1106   :  { %v7294_v44 = vmul.f32 1.442695, %v8374_v4  ;;  %v8373_v31 = vmul.f32 -1.702, %v7210_v5 }
0x1108   :  { %10627 = vpow2.f32 %v7294_v44  ;;  %v7292_v45 = vmul.f32 1.442695, %v8373_v31 }
0x1109   :  { %v10002_v39 = vpop.f32.mrf.mxu0 }
0x110a   :  { %10629 = vpow2.f32 %v7292_v45  ;;  %v14618_v10 = vadd.f32 %v10002_v39, %v14610_v53 }
0x110b   :  { %v7219_v18 = vpop.f32.mrf.mxu0 }
0x110c   :  { %v8376_v0 = vmul.f32 -1.702, %v14618_v10  ;;  %v14622_v14 = vadd.f32 %v14610_v53, %v7219_v18 }
0x110e   :  { %v7298_v30 = vmul.f32 1.442695, %v8376_v0  ;;  %v8375_v21 = vmul.f32 -1.702, %v14622_v14 }
0x1110   :  { %10631 = vpow2.f32 %v7298_v30  ;;  %v7296_v26 = vmul.f32 1.442695, %v8375_v21 }
0x1111   :  { %v10005_v34 = vpop.f32.mrf.mxu0 }
0x1112   :  { %10633 = vpow2.f32 %v7296_v26  ;;  %v14626_v6 = vadd.f32 %v10005_v34, %v14610_v53 }
0x1113   :  { %v7229_v9 = vpop.f32.mrf.mxu0 }
0x1114   :  { %v8378_v46 = vmul.f32 -1.702, %v14626_v6  ;;  %v14630_v40 = vadd.f32 %v14610_v53, %v7229_v9 }
0x1115   :  { %v10628_v32 = vpop.eup %10627 }
0x1116   :  { %v7317_v38 = vadd.f32 1.0, %v10628_v32  ;;  %v7302_v22 = vmul.f32 1.442695, %v8378_v46  ;;  %v8377_v2 = vmul.f32 -1.702, %v14630_v40 }
0x1117   :  { %v10630_v58 = vpop.eup %10629 }
0x1118   :  { %10635 = vrcp.f32 %v7317_v38  ;;  %v7316_v33 = vadd.f32 1.0, %v10630_v58  ;;  %v7300_v1 = vmul.f32 1.442695, %v8377_v2 }
0x1119   :  { %10637 = vpow2.f32 %v7302_v22  ;;  %v10008_v41 = vpop.f32.mrf.mxu0 }
0x111a   :  { %10639 = vrcp.f32 %v7316_v33  ;;  %v14634_v19 = vadd.f32 %v10008_v41, %v14610_v53 }
0x111b   :  { %10641 = vpow2.f32 %v7300_v1  ;;  %v7239_v61 = vpop.f32.mrf.mxu0 }
0x111c   :  { %v8380_v48 = vmul.f32 -1.702, %v14634_v19  ;;  %v14638_v63 = vadd.f32 %v14610_v53, %v7239_v61 }
0x111d   :  { %v10632_v56 = vpop.eup %10631 }
0x111e   :  { %v7319_v37 = vadd.f32 1.0, %v10632_v56  ;;  %v7306_v54 = vmul.f32 1.442695, %v8380_v48  ;;  %v8379_v57 = vmul.f32 -1.702, %v14638_v63 }
0x111f   :  { %v10634_v24 = vpop.eup %10633 }
0x1120   :  { %10643 = vrcp.f32 %v7319_v37  ;;  %v7318_v12 = vadd.f32 1.0, %v10634_v24  ;;  %v7304_v52 = vmul.f32 1.442695, %v8379_v57 }
0x1121   :  { %10645 = vpow2.f32 %v7306_v54  ;;  %v10011_v49 = vpop.f32.mrf.mxu0 }
0x1122   :  { %10647 = vrcp.f32 %v7318_v12  ;;  %v14642_v27 = vadd.f32 %v10011_v49, %v14610_v53 }
0x1123   :  { %10649 = vpow2.f32 %v7304_v52  ;;  %v7249_v62 = vpop.f32.mrf.mxu0 }
0x1124   :  { %v8382_v7 = vmul.f32 -1.702, %v14642_v27  ;;  %v14646_v29 = vadd.f32 %v14610_v53, %v7249_v62 }
0x1125   :  { %v10636_v28 = vpop.eup %10635 }
0x1126   :  { %v10638_v15 = vpop.eup %10637  ;;  %v7310_v11 = vmul.f32 1.442695, %v8382_v7  ;;  %v8381_v59 = vmul.f32 -1.702, %v14646_v29  ;;  %v7353_v44 = vmul.f32 %v10636_v28, %v14613_v60 }
0x1127   :  { %v10640_v3 = vpop.eup %10639  ;;  %v7321_v16 = vadd.f32 1.0, %v10638_v15 }
0x1128   :  { %v10642_v13 = vpop.eup %10641  ;;  %v7352_v36 = vmul.f32 %v10640_v3, %v7210_v5  ;;  %10651 = vpow2.f32 %v7310_v11  ;;  %v7308_v4 = vmul.f32 1.442695, %v8381_v59 }
0x1129   :  { %10653 = vrcp.f32 %v7321_v16  ;;  %v7320_v31 = vadd.f32 1.0, %v10642_v13  ;;  %v10014_v45 = vpop.f32.mrf.mxu0 }
0x112a   :  { %10655 = vpow2.f32 %v7308_v4  ;;  %v7265_v39 = vadd.f32 %v10014_v45, %v14610_v53  ;;  %10047 = vmatprep.mubr.f32.mxu1 %v7352_v36 }
0x112b   :  { %10657 = vrcp.f32 %v7320_v31  ;;  %v7259_v18 = vpop.f32.mrf.mxu0  ;;  %10048 = vmatmul.mubr.f32.vlgmr.msra.gmra.mxu1 %v7353_v44 }
0x112c   :  { %v8384_v0 = vmul.f32 -1.702, %v7265_v39  ;;  %v7260_v30 = vadd.f32 %v14610_v53, %v7259_v18 }
0x112d   :  { %v10644_v21 = vpop.eup %10643 }
0x112e   :  { %v10646_v26 = vpop.eup %10645  ;;  %v7314_v5 = vmul.f32 1.442695, %v8384_v0  ;;  %v8383_v34 = vmul.f32 -1.702, %v7260_v30  ;;  %v7355_v22 = vmul.f32 %v10644_v21, %v14618_v10 }
0x112f   :  { %v10648_v9 = vpop.eup %10647  ;;  %v7323_v46 = vadd.f32 1.0, %v10646_v26 }
0x1130   :  { %v10650_v60 = vpop.eup %10649  ;;  %v7354_v32 = vmul.f32 %v10648_v9, %v14622_v14  ;;  %10659 = vpow2.f32 %v7314_v5  ;;  %v7312_v38 = vmul.f32 1.442695, %v8383_v34 }
0x1131   :  { %10661 = vrcp.f32 %v7323_v46  ;;  %v7322_v2 = vadd.f32 1.0, %v10650_v60 }
0x1132   :  { %10663 = vpow2.f32 %v7312_v38  ;;  %10050 = vmatprep.mubr.f32.mxu1 %v7354_v32 }
0x1133   :  { %10665 = vrcp.f32 %v7322_v2  ;;  %10051 = vmatmul.mubr.f32.gmra.mxu1 %v7355_v22 }
0x1135   :  { %v10652_v53 = vpop.eup %10651 }
0x1136   :  { %v10654_v58 = vpop.eup %10653  ;;  %v7325_v33 = vadd.f32 1.0, %v10652_v53 }
0x1137   :  { %v10656_v1 = vpop.eup %10655  ;;  %v7357_v14 = vmul.f32 %v10654_v58, %v14626_v6 }
0x1138   :  { %v10658_v41 = vpop.eup %10657  ;;  %v7324_v61 = vadd.f32 1.0, %v10656_v1  ;;  %10667 = vrcp.f32 %v7325_v33 }
0x1139   :  { %v7356_v48 = vmul.f32 %v10658_v41, %v14630_v40 }
0x113a   :  { %10669 = vrcp.f32 %v7324_v61 }
0x113b   :  { %10053 = vmatprep.mubr.f32.mxu1 %v7356_v48 }
0x113c   :  { %10054 = vmatmul.mubr.f32.gmra.mxu1 %v7357_v14 }
0x113d   :  { %v10660_v10 = vpop.eup %10659 }
0x113e   :  { %v10662_v56 = vpop.eup %10661  ;;  %v7327_v37 = vadd.f32 1.0, %v10660_v10 }
0x113f   :  { %v10664_v54 = vpop.eup %10663  ;;  %v7359_v52 = vmul.f32 %v10662_v56, %v14634_v19  ;;  %v8402_v19 = vld [vmem:[%s14915_s18 + $0x1] ss:$0 sm:$0xff] }
0x1140   :  { %v10666_v57 = vpop.eup %10665  ;;  %v7326_v24 = vadd.f32 1.0, %v10664_v54  ;;  %10671 = vrcp.f32 %v7327_v37 }
0x1141   :  { %v7358_v12 = vmul.f32 %v10666_v57, %v14638_v63 }
0x1142   :  { %10673 = vrcp.f32 %v7326_v24 }
0x1143   :  { %10056 = vmatprep.mubr.f32.mxu1 %v7358_v12 }
0x1144   :  { %10057 = vmatmul.mubr.f32.gmra.mxu1 %v7359_v52 }
0x1145   :  { %v10668_v40 = vpop.eup %10667 }
0x1146   :  { %v7361_v62 = vmul.f32 %v10668_v40, %v14642_v27 }
0x1147   :  { %v10670_v49 = vpop.eup %10669 }
0x1148   :  { %v7360_v6 = vmul.f32 %v10670_v49, %v14646_v29 }
0x114a   :  { %10059 = vmatprep.mubr.f32.mxu1 %v7360_v6 }
0x114b   :  { %10060 = vmatmul.mubr.f32.gmra.mxu1 %v7361_v62 }
0x114d   :  { %v10672_v7 = vpop.eup %10671 }
0x114e   :  { %v7363_v11 = vmul.f32 %v10672_v7, %v7265_v39 }
0x114f   :  { %v10674_v28 = vpop.eup %10673 }
0x1150   :  { %v7362_v15 = vmul.f32 %v10674_v28, %v7260_v30 }
0x1152   :  { %10062 = vmatprep.mubr.f32.mxu1 %v7362_v15 }
0x1153   :  { %10063 = vmatmul.mubr.f32.gmra.mxu1 %v7363_v11 }
0x11eb   :  { %v10049_v63 = vpop.f32.mrf.mxu1 }
0x11ec   :  { %v7461_v59 = vadd.f32 %v10049_v63, %v8402_v19 }
0x11ed   :  { %v7455_v3 = vpop.f32.mrf.mxu1 }
0x11ee   :  { %v7515_v16 = vadd.f32 %v7461_v59, %v14358_v17  ;;  %v7456_v29 = vadd.f32 %v8402_v19, %v7455_v3 }
0x11f0   :  { %v7514_v27 = vadd.f32 %v7456_v29, %v14361_v23  ;;  %v7531_v13 = vsel %vm101_vm0, %v7515_v16, 0.0 }
0x11f1   :  { %7532 = vadd.xlane.f32.xlu1 %v7531_v13 }
0x11f2   :  { %v7528_v36 = vsel %vm101_vm0, %v7514_v27, 0.0 }
0x11f3   :  { %7529 = vadd.xlane.f32.xlu0 %v7528_v36  ;;  %v10052_v4 = vpop.f32.mrf.mxu1 }
0x11f4   :  { %v7471_v44 = vadd.f32 %v10052_v4, %v8402_v19 }
0x11f5   :  { %v7465_v31 = vpop.f32.mrf.mxu1 }
0x11f6   :  { %v7517_v45 = vadd.f32 %v7471_v44, %v14368_v8  ;;  %v7466_v39 = vadd.f32 %v8402_v19, %v7465_v31 }
0x11f8   :  { %v7516_v18 = vadd.f32 %v7466_v39, %v14371_v25  ;;  %v7537_v0 = vsel %vm101_vm0, %v7517_v45, 0.0 }
0x11f9   :  { %7538 = vadd.xlane.f32.xlu1 %v7537_v0 }
0x11fa   :  { %v7534_v17 = vsel %vm101_vm0, %v7516_v18, 0.0 }
0x11fb   :  { %7535 = vadd.xlane.f32.xlu0 %v7534_v17 }
0x11fc   :  { %v10055_v23 = vpop.f32.mrf.mxu1 }
0x11fd   :  { %v7481_v30 = vadd.f32 %v10055_v23, %v8402_v19 }
0x11fe   :  { %v7475_v21 = vpop.f32.mrf.mxu1 }
0x11ff   :  { %v14672_v26 = vadd.f32 %v7481_v30, %v14378_v55  ;;  %v7476_v5 = vadd.f32 %v8402_v19, %v7475_v21 }
0x1201   :  { %v14675_v34 = vadd.f32 %v7476_v5, %v14381_v20  ;;  %v7543_v8 = vsel %vm101_vm0, %v14672_v26, 0.0 }
0x1202   :  { %7544 = vadd.xlane.f32.xlu1 %v7543_v8 }
0x1203   :  { %v7540_v25 = vsel %vm101_vm0, %v14675_v34, 0.0 }
0x1204   :  { %7541 = vadd.xlane.f32.xlu0 %v7540_v25  ;;  %v10058_v9 = vpop.f32.mrf.mxu1 }
0x1205   :  { %v7491_v46 = vadd.f32 %v10058_v9, %v8402_v19 }
0x1206   :  { %v7485_v60 = vpop.f32.mrf.mxu1 }
0x1207   :  { %v14682_v32 = vadd.f32 %v7491_v46, %v14388_v50  ;;  %v7486_v55 = vadd.f32 %v8402_v19, %v7485_v60 }
0x1209   :  { %v14685_v38 = vadd.f32 %v7486_v55, %v14391_v35  ;;  %v7549_v20 = vsel %vm101_vm0, %v14682_v32, 0.0 }
0x120a   :  { %7550 = vadd.xlane.f32.xlu1 %v7549_v20 }
0x120b   :  { %v7546_v22 = vsel %vm101_vm0, %v14685_v38, 0.0  ;;  %v10061_v2 = vpop.f32.mrf.mxu1 }
0x120c   :  { %7547 = vadd.xlane.f32.xlu0 %v7546_v22  ;;  %v7501_v58 = vadd.f32 %v10061_v2, %v8402_v19 }
0x120d   :  { %v7495_v53 = vpop.f32.mrf.mxu1 }
0x120e   :  { %v7496_v33 = vadd.f32 %v8402_v19, %v7495_v53  ;;  %v14695_v50 = vadd.f32 %v7501_v58, %v14398_v47 }
0x1210   :  { %v14692_v1 = vadd.f32 %v7496_v33, %v14401_v51  ;;  %v7555_v10 = vsel %vm101_vm0, %v14695_v50, 0.0 }
0x1212   :  { %v7552_v35 = vsel %vm101_vm0, %v14692_v1, 0.0 }
0x1213   :  { %7553 = vadd.xlane.f32.xlu0 %v7552_v35  ;;  %v10064_v41 = vpop.f32.mrf.mxu1 }
0x1214   :  { %v7511_v48 = vadd.f32 %v10064_v41, %v8402_v19 }
0x1215   :  { %v7505_v61 = vpop.f32.mrf.mxu1 }
0x1216   :  { %v7506_v14 = vadd.f32 %v8402_v19, %v7505_v61  ;;  %v14705_v51 = vadd.f32 %v7511_v48, %v14408_v43 }
0x1217   :  { %7556 = vadd.xlane.f32.xlu0 %v7555_v10 }
0x1218   :  { %v14702_v56 = vadd.f32 %v7506_v14, %v14411_v42  ;;  %v7561_v37 = vsel %vm101_vm0, %v14705_v51, 0.0 }
0x121a   :  { %v7558_v47 = vsel %vm101_vm0, %v14702_v56, 0.0 }
0x121b   :  { %7559 = vadd.xlane.f32.xlu1 %v7558_v47  ;;  %v7722_v47 = vld [vmem:[%s14916_s21 + $0x10] sm:$0xff] }
0x121f   :  { %7562 = vadd.xlane.f32.xlu1 %v7561_v37  ;;  %v7720_v37 = vld [vmem:[%s14916_s21] sm:$0xff] }
0x127a   :  { %v7533_v54 = vpop.xlane.xlu1 %7532 }
0x127b   :  { %v7565_v57 = vmul.f32 0.03125, %v7533_v54 }
0x127c   :  { %v7530_v24 = vpop.xlane.xlu0 %7529 }
0x127d   :  { %v14711_v12 = vsub.f32 %v7515_v16, %v7565_v57  ;;  %v7564_v52 = vmul.f32 0.03125, %v7530_v24 }
0x127f   :  { %v14713_v40 = vsub.f32 %v7514_v27, %v7564_v52  ;;  %v7589_v43 = vmul.f32 %v14711_v12, %v14711_v12 }
0x1281   :  { %v7603_v42 = vsel %vm101_vm0, %v7589_v43, 0.0  ;;  %v7588_v49 = vmul.f32 %v14713_v40, %v14713_v40 }
0x1282   :  { %v7539_v6 = vpop.xlane.xlu1 %7538  ;;  %7604 = vadd.xlane.f32.xlu1 %v7603_v42 }
0x1283   :  { %v7567_v62 = vmul.f32 0.03125, %v7539_v6  ;;  %v7600_v7 = vsel %vm101_vm0, %v7588_v49, 0.0 }
0x1284   :  { %7601 = vadd.xlane.f32.xlu0 %v7600_v7  ;;  %v7536_v28 = vpop.xlane.xlu0 %7535 }
0x1285   :  { %v14721_v15 = vsub.f32 %v7517_v45, %v7567_v62  ;;  %v7566_v11 = vmul.f32 0.03125, %v7536_v28 }
0x1287   :  { %v14723_v19 = vsub.f32 %v7516_v18, %v7566_v11  ;;  %v7591_v63 = vmul.f32 %v14721_v15, %v14721_v15 }
0x1289   :  { %v7609_v59 = vsel %vm101_vm0, %v7591_v63, 0.0  ;;  %v7590_v3 = vmul.f32 %v14723_v19, %v14723_v19 }
0x128a   :  { %7610 = vadd.xlane.f32.xlu1 %v7609_v59 }
0x128b   :  { %v7545_v16 = vpop.xlane.xlu1 %7544  ;;  %v7606_v29 = vsel %vm101_vm0, %v7590_v3, 0.0 }
0x128c   :  { %v7569_v27 = vmul.f32 0.03125, %v7545_v16  ;;  %7607 = vadd.xlane.f32.xlu0 %v7606_v29  ;;  %v14794_v16 = vld [vmem:[%s14917_s19] ss:$0 sm:$0xff] }
0x128d   :  { %v7542_v13 = vpop.xlane.xlu0 %7541 }
0x128e   :  { %v14732_v36 = vsub.f32 %v14672_v26, %v7569_v27  ;;  %v7568_v4 = vmul.f32 0.03125, %v7542_v13 }
0x1290   :  { %v14735_v44 = vsub.f32 %v14675_v34, %v7568_v4  ;;  %v7593_v31 = vmul.f32 %v14732_v36, %v14732_v36 }
0x1292   :  { %v7615_v45 = vsel %vm101_vm0, %v7593_v31, 0.0  ;;  %v7592_v39 = vmul.f32 %v14735_v44, %v14735_v44 }
0x1293   :  { %v7551_v18 = vpop.xlane.xlu1 %7550  ;;  %7616 = vadd.xlane.f32.xlu1 %v7615_v45 }
0x1294   :  { %v7571_v0 = vmul.f32 0.03125, %v7551_v18  ;;  %v7612_v17 = vsel %vm101_vm0, %v7592_v39, 0.0 }
0x1295   :  { %7613 = vadd.xlane.f32.xlu0 %v7612_v17  ;;  %v7548_v23 = vpop.xlane.xlu0 %7547 }
0x1296   :  { %v14744_v30 = vsub.f32 %v14682_v32, %v7571_v0  ;;  %v7570_v21 = vmul.f32 0.03125, %v7548_v23  ;;  %v14802_v0 = vld [vmem:[%s14918_s20] ss:$0 sm:$0xff] }
0x1298   :  { %v14747_v26 = vsub.f32 %v14685_v38, %v7570_v21  ;;  %v7595_v5 = vmul.f32 %v14744_v30, %v14744_v30 }
0x129a   :  { %v7621_v34 = vsel %vm101_vm0, %v7595_v5, 0.0  ;;  %v7594_v8 = vmul.f32 %v14747_v26, %v14747_v26 }
0x129b   :  { %7622 = vadd.xlane.f32.xlu1 %v7621_v34 }
0x129c   :  { %v7618_v25 = vsel %vm101_vm0, %v7594_v8, 0.0  ;;  %v7554_v9 = vpop.xlane.xlu0 %7553 }
0x129d   :  { %7619 = vadd.xlane.f32.xlu0 %v7618_v25  ;;  %v7572_v46 = vmul.f32 0.03125, %v7554_v9 }
0x129f   :  { %v14756_v60 = vsub.f32 %v14692_v1, %v7572_v46 }
0x12a0   :  { %v7557_v32 = vpop.xlane.xlu0 %7556 }
0x12a1   :  { %v7573_v55 = vmul.f32 0.03125, %v7557_v32  ;;  %v7596_v38 = vmul.f32 %v14756_v60, %v14756_v60 }
0x12a3   :  { %v14761_v20 = vsub.f32 %v14695_v50, %v7573_v55  ;;  %v7624_v22 = vsel %vm101_vm0, %v7596_v38, 0.0 }
0x12a4   :  { %v7560_v2 = vpop.xlane.xlu1 %7559  ;;  %7625 = vadd.xlane.f32.xlu0 %v7624_v22 }
0x12a5   :  { %v7574_v53 = vmul.f32 0.03125, %v7560_v2  ;;  %v7597_v58 = vmul.f32 %v14761_v20, %v14761_v20 }
0x12a7   :  { %v14767_v33 = vsub.f32 %v14702_v56, %v7574_v53  ;;  %v7627_v1 = vsel %vm101_vm0, %v7597_v58, 0.0  ;;  %v7723_v56 = vld [vmem:[%s14916_s21 + $0x18] sm:$0xff] }
0x12a8   :  { %v7563_v35 = vpop.xlane.xlu1 %7562  ;;  %7628 = vadd.xlane.f32.xlu0 %v7627_v1  ;;  %10065 = vmatprep.subr.mxu0 %v7723_v56 }
0x12a9   :  { %v7575_v41 = vmul.f32 0.03125, %v7563_v35  ;;  %v7598_v50 = vmul.f32 %v14767_v33, %v14767_v33  ;;  %10091 = vmatprep.subr.mxu1 %v7723_v56  ;;  %10066 = vmatpush3.msra.mxu0 %v7723_v56 }
0x12aa   :  { %10095 = vmatpush3.msra.mxu1 %v7723_v56  ;;  %10067 = vmatprep.subr.mxu0 %v7722_v47 }
0x12ab   :  { %v14773_v61 = vsub.f32 %v14705_v51, %v7575_v41  ;;  %v7630_v48 = vsel %vm101_vm0, %v7598_v50, 0.0  ;;  %v7721_v51 = vld [vmem:[%s14916_s21 + $0x8] sm:$0xff]  ;;  %10092 = vmatprep.subr.mxu1 %v7722_v47  ;;  %10068 = vmatpush3.msra.mxu0 %v7722_v47 }
0x12ac   :  { %7631 = vadd.xlane.f32.xlu1 %v7630_v48  ;;  %10096 = vmatpush3.msra.mxu1 %v7722_v47 }
0x12ad   :  { %v7599_v14 = vmul.f32 %v14773_v61, %v14773_v61  ;;  %10069 = vmatprep.subr.mxu0 %v7721_v51  ;;  %10093 = vmatprep.subr.mxu1 %v7721_v51 }
0x12ae   :  { %10070 = vmatpush3.msra.mxu0 %v7721_v51  ;;  %10097 = vmatpush3.msra.mxu1 %v7721_v51 }
0x12af   :  { %v7633_v10 = vsel %vm101_vm0, %v7599_v14, 0.0  ;;  %10071 = vmatprep.subr.mxu0 %v7720_v37  ;;  %10094 = vmatprep.subr.mxu1 %v7720_v37 }
0x12b0   :  { %7634 = vadd.xlane.f32.xlu1 %v7633_v10  ;;  %10072 = vmatpush3.msra.mxu0 %v7720_v37 }
0x12b1   :  { %10098 = vmatpush3.msra.mxu1 %v7720_v37 }
0x130b   :  { %v7605_v54 = vpop.xlane.xlu1 %7604 }
0x130c   :  { %v7637_v57 = vmul.f32 0.03125, %v7605_v54 }
0x130d   :  { %v7602_v24 = vpop.xlane.xlu0 %7601 }
0x130e   :  { %v7649_v52 = vadd.f32 1e-05, %v7637_v57  ;;  %v7636_v43 = vmul.f32 0.03125, %v7602_v24 }
0x1310   :  { %10675 = vrsqrt.f32 %v7649_v52  ;;  %v7648_v42 = vadd.f32 1e-05, %v7636_v43 }
0x1312   :  { %10677 = vrsqrt.f32 %v7648_v42 }
0x1313   :  { %v7611_v49 = vpop.xlane.xlu1 %7610 }
0x1314   :  { %v7639_v6 = vmul.f32 0.03125, %v7611_v49 }
0x1315   :  { %v7608_v62 = vpop.xlane.xlu0 %7607 }
0x1316   :  { %v7651_v7 = vadd.f32 1e-05, %v7639_v6  ;;  %v7638_v28 = vmul.f32 0.03125, %v7608_v62 }
0x1318   :  { %10679 = vrsqrt.f32 %v7651_v7  ;;  %v7650_v11 = vadd.f32 1e-05, %v7638_v28 }
0x131a   :  { %10681 = vrsqrt.f32 %v7650_v11 }
0x131c   :  { %v7617_v63 = vpop.xlane.xlu1 %7616 }
0x131d   :  { %v10676_v59 = vpop.eup %10675  ;;  %v7641_v3 = vmul.f32 0.03125, %v7617_v63 }
0x131e   :  { %v7673_v29 = vmul.f32 %v10676_v59, %v14711_v12  ;;  %v7614_v27 = vpop.xlane.xlu0 %7613 }
0x131f   :  { %v10678_v13 = vpop.eup %10677  ;;  %v7653_v4 = vadd.f32 1e-05, %v7641_v3  ;;  %v7640_v31 = vmul.f32 0.03125, %v7614_v27 }
0x1320   :  { %v7672_v45 = vmul.f32 %v10678_v13, %v14713_v40  ;;  %v7691_v39 = vmul.f32 %v14794_v16, %v7673_v29 }
0x1321   :  { %10683 = vrsqrt.f32 %v7653_v4  ;;  %v7652_v18 = vadd.f32 1e-05, %v7640_v31 }
0x1322   :  { %v7690_v17 = vmul.f32 %v14794_v16, %v7672_v45  ;;  %v7709_v5 = vadd.f32 %v14802_v0, %v7691_v39 }
0x1323   :  { %10685 = vrsqrt.f32 %v7652_v18 }
0x1324   :  { %v7623_v23 = vpop.xlane.xlu1 %7622  ;;  %v7708_v12 = vadd.f32 %v14802_v0, %v7690_v17 }
0x1325   :  { %v10680_v21 = vpop.eup %10679  ;;  %v7643_v34 = vmul.f32 0.03125, %v7623_v23 }
0x1326   :  { %v7675_v40 = vmul.f32 %v10680_v21, %v14721_v15  ;;  %v7620_v8 = vpop.xlane.xlu0 %7619  ;;  %10073 = vmatprep.mubr.msk.f32.mxu0 %vm101_vm0, %v7708_v12 }
0x1327   :  { %v10682_v25 = vpop.eup %10681  ;;  %v7655_v9 = vadd.f32 1e-05, %v7643_v34  ;;  %v7642_v46 = vmul.f32 0.03125, %v7620_v8  ;;  %10074 = vmatmul.mubr.msk.f32.vlgmr.msra.gmra.mxu0 %vm101_vm0, %v7709_v5 }
0x1328   :  { %v7674_v32 = vmul.f32 %v10682_v25, %v14723_v19  ;;  %v7693_v38 = vmul.f32 %v14794_v16, %v7675_v40 }
0x1329   :  { %10687 = vrsqrt.f32 %v7655_v9  ;;  %v7654_v55 = vadd.f32 1e-05, %v7642_v46 }
0x132a   :  { %v7692_v22 = vmul.f32 %v14794_v16, %v7674_v32  ;;  %v7711_v53 = vadd.f32 %v14802_v0, %v7693_v38 }
0x132b   :  { %10689 = vrsqrt.f32 %v7654_v55 }
0x132c   :  { %v7710_v2 = vadd.f32 %v14802_v0, %v7692_v22 }
0x132d   :  { %v7626_v15 = vpop.xlane.xlu0 %7625 }
0x132e   :  { %v10684_v58 = vpop.eup %10683  ;;  %v7644_v1 = vmul.f32 0.03125, %v7626_v15  ;;  %10076 = vmatprep.mubr.msk.f32.mxu0 %vm101_vm0, %v7710_v2 }
0x132f   :  { %v7677_v35 = vmul.f32 %v10684_v58, %v14732_v36  ;;  %10077 = vmatmul.mubr.msk.f32.gmra.mxu0 %vm101_vm0, %v7711_v53 }
0x1330   :  { %v10686_v19 = vpop.eup %10685  ;;  %v7656_v41 = vadd.f32 1e-05, %v7644_v1 }
0x1331   :  { %v7629_v50 = vpop.xlane.xlu0 %7628  ;;  %v7676_v48 = vmul.f32 %v10686_v19, %v14735_v44  ;;  %v7695_v10 = vmul.f32 %v14794_v16, %v7677_v35 }
0x1332   :  { %10691 = vrsqrt.f32 %v7656_v41  ;;  %v7645_v14 = vmul.f32 0.03125, %v7629_v50 }
0x1333   :  { %v7694_v56 = vmul.f32 %v14794_v16, %v7676_v48  ;;  %v7713_v57 = vadd.f32 %v14802_v0, %v7695_v10 }
0x1334   :  { %v7657_v47 = vadd.f32 1e-05, %v7645_v14 }
0x1335   :  { %v7632_v51 = vpop.xlane.xlu1 %7631  ;;  %v7712_v37 = vadd.f32 %v14802_v0, %v7694_v56 }
0x1336   :  { %v10688_v54 = vpop.eup %10687  ;;  %10693 = vrsqrt.f32 %v7657_v47  ;;  %v7646_v36 = vmul.f32 0.03125, %v7632_v51 }
0x1337   :  { %v7679_v24 = vmul.f32 %v10688_v54, %v14744_v30  ;;  %10079 = vmatprep.mubr.msk.f32.mxu0 %vm101_vm0, %v7712_v37 }
0x1338   :  { %v10690_v44 = vpop.eup %10689  ;;  %v7658_v52 = vadd.f32 1e-05, %v7646_v36  ;;  %10080 = vmatmul.mubr.msk.f32.gmra.mxu0 %vm101_vm0, %v7713_v57 }
0x1339   :  { %v7635_v43 = vpop.xlane.xlu1 %7634  ;;  %v7678_v42 = vmul.f32 %v10690_v44, %v14747_v26  ;;  %v7697_v6 = vmul.f32 %v14794_v16, %v7679_v24 }
0x133a   :  { %10695 = vrsqrt.f32 %v7658_v52  ;;  %v7647_v49 = vmul.f32 0.03125, %v7635_v43 }
0x133b   :  { %v7696_v62 = vmul.f32 %v14794_v16, %v7678_v42  ;;  %v7715_v30 = vadd.f32 %v14802_v0, %v7697_v6 }
0x133c   :  { %v7659_v7 = vadd.f32 1e-05, %v7647_v49 }
0x133d   :  { %v7714_v28 = vadd.f32 %v14802_v0, %v7696_v62 }
0x133e   :  { %10697 = vrsqrt.f32 %v7659_v7 }
0x133f   :  { %v10692_v11 = vpop.eup %10691  ;;  %10082 = vmatprep.mubr.msk.f32.mxu0 %vm101_vm0, %v7714_v28 }
0x1340   :  { %10083 = vmatmul.mubr.msk.f32.gmra.mxu0 %vm101_vm0, %v7715_v30  ;;  %v7680_v63 = vmul.f32 %v10692_v11, %v14756_v60 }
0x1342   :  { %v7698_v26 = vmul.f32 %v14794_v16, %v7680_v63 }
0x1343   :  { %v10694_v59 = vpop.eup %10693 }
0x1344   :  { %v7681_v3 = vmul.f32 %v10694_v59, %v14761_v20  ;;  %v7716_v29 = vadd.f32 %v14802_v0, %v7698_v26 }
0x1346   :  { %10085 = vmatprep.mubr.msk.f32.mxu0 %vm101_vm0, %v7716_v29  ;;  %v7699_v27 = vmul.f32 %v14794_v16, %v7681_v3 }
0x1347   :  { %v10696_v13 = vpop.eup %10695 }
0x1348   :  { %v7717_v4 = vadd.f32 %v14802_v0, %v7699_v27  ;;  %v7682_v31 = vmul.f32 %v10696_v13, %v14767_v33 }
0x134a   :  { %10086 = vmatmul.mubr.msk.f32.gmra.mxu0 %vm101_vm0, %v7717_v4  ;;  %v7700_v60 = vmul.f32 %v14794_v16, %v7682_v31 }
0x134b   :  { %v10698_v45 = vpop.eup %10697 }
0x134c   :  { %v7683_v39 = vmul.f32 %v10698_v45, %v14773_v61  ;;  %v7718_v20 = vadd.f32 %v14802_v0, %v7700_v60 }
0x134e   :  { %v7701_v18 = vmul.f32 %v14794_v16, %v7683_v39  ;;  %10088 = vmatprep.mubr.msk.f32.mxu1 %vm101_vm0, %v7718_v20 }
0x1350   :  { %v7719_v17 = vadd.f32 %v14802_v0, %v7701_v18 }
0x1352   :  { %10089 = vmatmul.mubr.msk.f32.vlgmr.msra.gmra.mxu1 %vm101_vm0, %v7719_v17 }
0x13e7   :  { %v10075_v23 = vpop.f32.mrf.mxu0 }
0x13e8   :  { %7886 = vst.msk [vmem:[%s14919_s22 + $0x8] sm:$0xff] %vm101_vm0, %v10075_v23 }
0x13e9   :  { %v7826_v33 = vpop.f32.mrf.mxu0 }
0x13ea   :  { %7885 = vst.msk [vmem:[%s14919_s22] sm:$0xff] %vm101_vm0, %v7826_v33 }
0x13ef   :  { %v10078_v61 = vpop.f32.mrf.mxu0 }
0x13f0   :  { %7888 = vst.msk [vmem:[%s14919_s22 + $0x18] sm:$0xff] %vm101_vm0, %v10078_v61 }
0x13f1   :  { %v7836_v16 = vpop.f32.mrf.mxu0 }
0x13f2   :  { %7887 = vst.msk [vmem:[%s14919_s22 + $0x10] sm:$0xff] %vm101_vm0, %v7836_v16 }
0x13f8   :  { %v10081_v0 = vpop.f32.mrf.mxu0 }
0x13f9   :  { %7890 = vst.msk [vmem:[%s14919_s22 + $0x28] sm:$0xff] %vm101_vm0, %v10081_v0 }
0x13fa   :  { %v7846_v12 = vpop.f32.mrf.mxu0 }
0x13fb   :  { %7889 = vst.msk [vmem:[%s14919_s22 + $0x20] sm:$0xff] %vm101_vm0, %v7846_v12 }
0x1400   :  { %v10084_v21 = vpop.f32.mrf.mxu0 }
0x1401   :  { %7892 = vst.msk [vmem:[%s14919_s22 + $0x38] sm:$0xff] %vm101_vm0, %v10084_v21 }
0x1402   :  { %v7856_v5 = vpop.f32.mrf.mxu0 }
0x1403   :  { %7891 = vst.msk [vmem:[%s14919_s22 + $0x30] sm:$0xff] %vm101_vm0, %v7856_v5 }
0x140a   :  { %v10087_v34 = vpop.f32.mrf.mxu0 }
0x140b   :  { %7894 = vst.msk [vmem:[%s14919_s22 + $0x48] sm:$0xff] %vm101_vm0, %v10087_v34 }
0x140c   :  { %v7866_v40 = vpop.f32.mrf.mxu0 }
0x140d   :  { %7893 = vst.msk [vmem:[%s14919_s22 + $0x40] sm:$0xff] %vm101_vm0, %v7866_v40 }
0x1412   :  { %v10090_v8 = vpop.f32.mrf.mxu1 }
0x1413   :  { %7896 = vst.msk [vmem:[%s14919_s22 + $0x58] sm:$0xff] %vm101_vm0, %v10090_v8 }
0x1414   :  { %v7876_v25 = vpop.f32.mrf.mxu1 }
0x1415   :  { %7895 = vst.msk [vmem:[%s14919_s22 + $0x50] sm:$0xff] %vm101_vm0, %v7876_v25 }

</bundles_post_ra>
